<compile_context>
chip_gen: v7x
topology: tpu7x:2x2x1
jax: 0.10.0
libtpu: 0.0.40
codegen_flags: <defaults>
</compile_context>

<pallas_src>
import numpy as np
import jax
import jax.numpy as jnp
from jax.experimental import pallas as pl
from jax.experimental.pallas import tpu as pltpu

LANE = 128                 # channel padding target (lane-dense MXU / stores)
SUBLANE = 8
MM_ROW_TILE = 256          # rows / grid step for the transposed-conv GEMM
CONV_ROW_TILE = 256        # rows / grid step for the 3x3 convs (acc = 32 vregs)
VMEM_LIMIT = 32 * 1024 * 1024


def _round_up(x, m):
    return ((x + m - 1) // m) * m


def _cdiv(a, b):
    return -(-a // b)


def _pad_last(x, size):
    pad = size - x.shape[-1]
    if pad == 0:
        return x
    return jnp.pad(x, [(0, 0)] * (x.ndim - 1) + [(0, pad)])


# ----------------------------------------------------------------------------
# Kernel 1: row-tiled matmul + bias (ConvTranspose2d k=2 s=2 as a GEMM)
# ----------------------------------------------------------------------------
def _matmul_bias_kernel(x_ref, w_ref, b_ref, o_ref):
    acc = jnp.dot(x_ref[...], w_ref[...], preferred_element_type=jnp.float32)
    o_ref[...] = (acc + b_ref[...]).astype(o_ref.dtype)


def conv_transpose_2x2_s2(x_nhwc, wm, bm, co_p):
    """x: (N,H,W,cin_p) bf16, wm: (cin_p, 4*co_p) bf16, bm: (1, 4*co_p) f32.
    Returns (N, 2H, 2W, co_p) bf16 (output channels zero-padded to co_p)."""
    n, h, w, cin_p = x_nhwc.shape
    nco = wm.shape[-1]
    m = n * h * w
    tm = min(MM_ROW_TILE, _round_up(m, SUBLANE))
    n_t = _cdiv(m, tm)
    m_p = n_t * tm
    xf = x_nhwc.reshape(m, cin_p)
    if m_p > m:
        xf = jnp.pad(xf, ((0, m_p - m), (0, 0)))

    y = pl.pallas_call(
        _matmul_bias_kernel,
        out_shape=jax.ShapeDtypeStruct((m_p, nco), jnp.bfloat16),
        grid=(n_t,),
        in_specs=[
            pl.BlockSpec((tm, cin_p), lambda i: (i, 0)),
            pl.BlockSpec((cin_p, nco), lambda i: (0, 0)),
            pl.BlockSpec((1, nco), lambda i: (0, 0)),
        ],
        out_specs=pl.BlockSpec((tm, nco), lambda i: (i, 0)),
        compiler_params=pltpu.CompilerParams(
            dimension_semantics=("parallel",), vmem_limit_bytes=VMEM_LIMIT),
    )(xf, wm, bm)

    # 2x2 interleave -> (N, 2H, 2W, co_p).  Single XLA copy pass in bf16.
    # TODO(synk): fold this interleave into conv1 via per-parity fused weights.
    y = y[:m].reshape(n, h, w, 2, 2, co_p)
    y = jnp.transpose(y, (0, 1, 3, 2, 4, 5)).reshape(n, 2 * h, 2 * w, co_p)
    return y


# ----------------------------------------------------------------------------
# Kernel 2: 3x3 / stride-1 / pad-1 conv + bias + ReLU on flat padded rows.
# The conv runs on flat rows r = h*(W+2)+w; the 9 taps are 9 shifted
# (tm, K)@(K, Co) matmuls.  Inputs are read from HBM with manual
# double-buffered DMA windows (BlockSpec cannot express the halo overlap).
# ----------------------------------------------------------------------------
def _make_conv3x3_kernel(tm, wp, win, n_src, ch_off, ch_sz):
    def kernel(*refs):
        x_hbm = refs[:n_src]
        w_ref = refs[n_src]
        b_ref = refs[n_src + 1]
        o_ref = refs[n_src + 2]
        xbuf = refs[n_src + 3]
        sems = refs[n_src + 4]

        b = pl.program_id(0)
        t = pl.program_id(1)
        nt = pl.num_programs(1)
        slot = t & 1

        def dma(tt, sl, s):
            if n_src == 1:
                dst = xbuf.at[sl]
            else:
                # fused torch.cat: each source lands in its own lane range
                dst = xbuf.at[sl, :, pl.ds(ch_off[s], ch_sz[s])]
            return pltpu.make_async_copy(
                x_hbm[s].at[b, pl.ds(tt * tm, win), :], dst, sems.at[sl, s])

        @pl.when(t == 0)                         # prime the pipeline (per image)
        def _():
            for s in range(n_src):
                dma(0, 0, s).start()

        @pl.when(t + 1 < nt)                     # prefetch next row tile
        def _():
            for s in range(n_src):
                dma(t + 1, 1 - slot, s).start()

        for s in range(n_src):                   # wait for this tile's window
            dma(t, slot, s).wait()

        # acc initialised with the first tap + bias (no zeros / extra bias pass)
        acc = jnp.dot(xbuf[slot, pl.ds(0, tm), :], w_ref[0, 0],
                      preferred_element_type=jnp.float32) + b_ref[...]
        for kh in range(3):
            for kw in range(3):
                if kh == 0 and kw == 0:
                    continue
                off = kh * wp + kw               # static flat-row shift of this tap
                acc = acc + jnp.dot(xbuf[slot, pl.ds(off, tm), :], w_ref[kh, kw],
                                    preferred_element_type=jnp.float32)
        o_ref[...] = jnp.maximum(acc, 0.0).astype(o_ref.dtype)

    return kernel


def _flatten_padded(x_nhwc, length):
    """pad=1 conv input in flat-row layout (rows of W+2 columns, zero borders),
    zero-padded/truncated to exactly `length` flat rows."""
    n, h, w, c = x_nhwc.shape
    wp = w + 2
    xp = jnp.pad(x_nhwc, ((0, 0), (1, 2), (1, 1), (0, 0)))
    xf = xp.reshape(n, (h + 3) * wp, c)
    cur = xf.shape[1]
    if cur < length:
        xf = jnp.pad(xf, ((0, 0), (0, length - cur), (0, 0)))
    elif cur > length:
        xf = xf[:, :length, :]
    return xf


def conv3x3_bias_relu(xs, w_cat, bias, out_dtype):
    """relu(conv3x3(cat(xs, channels), pad=1) + bias).
    xs: list of (N,H,W,Ci) bf16 (Ci lane-padded); w_cat: (3,3,sum Ci,co_p) bf16;
    bias: (1, co_p) f32.  Returns (N,H,W,co_p) `out_dtype`."""
    n, h, w, _ = xs[0].shape
    wp = w + 2
    m = h * wp                                   # flat output rows (2 junk cols/row)
    tm = min(CONV_ROW_TILE, _round_up(m, SUBLANE))
    n_t = _cdiv(m, tm)
    halo = _round_up(2 * wp + 2, SUBLANE)        # max tap shift, sublane aligned
    win = tm + halo
    co_p = w_cat.shape[-1]

    ch_sz = tuple(x.shape[-1] for x in xs)
    ch_off, off_acc = [], 0
    for c in ch_sz:
        ch_off.append(off_acc)
        off_acc += c
    k_total = off_acc
    assert w_cat.shape[2] == k_total

    length = n_t * tm + halo
    flats = [_flatten_padded(x, length) for x in xs]

    kernel = _make_conv3x3_kernel(tm, wp, win, len(xs), tuple(ch_off), ch_sz)

    in_specs = [pl.BlockSpec(memory_space=pl.ANY) for _ in xs]
    in_specs += [pl.BlockSpec(w_cat.shape, lambda b, t: (0, 0, 0, 0)),
                 pl.BlockSpec(bias.shape, lambda b, t: (0, 0))]

    out = pl.pallas_call(
        kernel,
        out_shape=jax.ShapeDtypeStruct((n, n_t * tm, co_p), out_dtype),
        grid=(n, n_t),
        in_specs=in_specs,
        out_specs=pl.BlockSpec((None, tm, co_p), lambda b, t: (b, t, 0)),
        scratch_shapes=[pltpu.VMEM((2, win, k_total), jnp.bfloat16),
                        pltpu.SemaphoreType.DMA((2, len(xs)))],
        compiler_params=pltpu.CompilerParams(
            dimension_semantics=("parallel", "arbitrary"),
            vmem_limit_bytes=VMEM_LIMIT),
    )(*flats, w_cat, bias)

    out = out[:, :m, :].reshape(n, h, wp, co_p)[:, :, :w, :]
    return out


# ----------------------------------------------------------------------------
# Up module forward (NCHW in / NCHW out, matching the PyTorch module)
# ----------------------------------------------------------------------------
def up_forward(params, x_nchw, mid_nchw):
    x = jnp.transpose(x_nchw, (0, 2, 3, 1))
    mid = jnp.transpose(mid_nchw, (0, 2, 3, 1))
    cin = x.shape[-1]
    co = params["up_b"].shape[0]
    c_mid = mid.shape[-1]
    cin_p = _round_up(cin, LANE)
    co_p = _round_up(co, LANE)
    c_mid_p = _round_up(c_mid, LANE)

    # ---- weights: bf16 MXU operands (f32 accumulation in-kernel), f32 biases ----
    wup = jnp.transpose(params["up_w"], (0, 2, 3, 1))        # (Cin, 2, 2, Co)
    wup = jnp.pad(wup, ((0, cin_p - cin), (0, 0), (0, 0), (0, co_p - co)))
    wm = wup.reshape(cin_p, 4 * co_p).astype(jnp.bfloat16)
    bm = jnp.broadcast_to(jnp.pad(params["up_b"], (0, co_p - co)),
                          (2, 2, co_p)).reshape(1, 4 * co_p).astype(jnp.float32)

    w1 = jnp.transpose(params["conv1_w"], (2, 3, 1, 0))      # (3, 3, Cin_cat, Co)
    w1_up = jnp.pad(w1[:, :, :co, :],
                    ((0, 0), (0, 0), (0, co_p - co), (0, co_p - co)))
    w1_mid = jnp.pad(w1[:, :, co:, :],
                     ((0, 0), (0, 0), (0, c_mid_p - c_mid), (0, co_p - co)))
    w1_cat = jnp.concatenate([w1_up, w1_mid], axis=2).astype(jnp.bfloat16)
    b1 = jnp.pad(params["conv1_b"], (0, co_p - co)).reshape(1, co_p).astype(jnp.float32)

    w2 = jnp.pad(jnp.transpose(params["conv2_w"], (2, 3, 1, 0)),
                 ((0, 0), (0, 0), (0, co_p - co), (0, co_p - co))).astype(jnp.bfloat16)
    b2 = jnp.pad(params["conv2_b"], (0, co_p - co)).reshape(1, co_p).astype(jnp.float32)

    # 1) ConvTranspose2d(k=2, s=2).  Padded output channels of `up` are exact zeros.
    x_b = _pad_last(x, cin_p).astype(jnp.bfloat16)
    up = conv_transpose_2x2_s2(x_b, wm, bm, co_p)            # (N, 2H, 2W, co_p) bf16

    # 2) conv1 + ReLU; torch.cat([up, mid], dim=1) fused: both sources are DMA'd
    #    into one VMEM window, each tap is a single K=(co_p+c_mid_p) matmul.
    mid_b = _pad_last(mid, c_mid_p).astype(jnp.bfloat16)
    h1 = conv3x3_bias_relu([up, mid_b], w1_cat, b1, jnp.bfloat16)

    # 3) conv2 + ReLU (f32 output, matching the PyTorch module dtype).
    # TODO(synk): hand conv1's output to conv2 in flat padded-row layout to drop
    # the intermediate pad/reshape pass.
    h2 = conv3x3_bias_relu([h1], w2, b2, jnp.float32)

    return jnp.transpose(h2[..., :co], (0, 3, 1, 2))         # strip pad, NCHW


def init_params(key, input_size, output_size):
    ks = jax.random.split(key, 6)
    s = 0.1
    return {
        # ConvTranspose2d weight layout: (Cin, Co, kH, kW)
        "up_w": s * jax.random.normal(ks[0], (input_size, output_size, 2, 2), jnp.float32),
        "up_b": s * jax.random.normal(ks[1], (output_size,), jnp.float32),
        # Conv2d weight layout: (Co, Cin, kH, kW)
        "conv1_w": s * jax.random.normal(ks[2], (output_size, input_size, 3, 3), jnp.float32),
        "conv1_b": s * jax.random.normal(ks[3], (output_size,), jnp.float32),
        "conv2_w": s * jax.random.normal(ks[4], (output_size, output_size, 3, 3), jnp.float32),
        "conv2_b": s * jax.random.normal(ks[5], (output_size,), jnp.float32),
    }


# ----------------------------------------------------------------------------
# Pure-JAX f32 reference (for correctness check)
# ----------------------------------------------------------------------------
def reference_up(params, x, mid):
    N, Cin, H, W = x.shape
    Co = params["up_w"].shape[1]
    t = jnp.einsum("ncij,cokl->noikjl", x, params["up_w"])    # (N,Co,H,2,W,2)
    up = t.reshape(N, Co, 2 * H, 2 * W) + params["up_b"][None, :, None, None]
    cat = jnp.concatenate([up, mid], axis=1)

    def conv3(xin, w, b):
        n, c, h, ww = xin.shape
        o = w.shape[0]
        xp = jnp.pad(xin, ((0, 0), (0, 0), (1, 1), (1, 1)))
        acc = jnp.zeros((n, o, h, ww), jnp.float32)
        for kh in range(3):
            for kw in range(3):
                acc = acc + jnp.einsum(
                    "nchw,oc->nohw", xp[:, :, kh:kh + h, kw:kw + ww], w[:, :, kh, kw])
        return acc + b[None, :, None, None]

    h1 = jnp.maximum(conv3(cat, params["conv1_w"], params["conv1_b"]), 0.0)
    h2 = jnp.maximum(conv3(h1, params["conv2_w"], params["conv2_b"]), 0.0)
    return h2


if __name__ == "__main__":
    key = jax.random.PRNGKey(0)
    input_size, output_size = 8, 4       # standard UNet: input_size = 2*output_size
    N, H, W = 2, 8, 8                    # `mid` has the upsampled spatial size

    k_p, k_x, k_m = jax.random.split(key, 3)
    params = init_params(k_p, input_size, output_size)
    x = jax.random.normal(k_x, (N, input_size, H, W), jnp.float32)
    mid = jax.random.normal(k_m, (N, input_size - output_size, 2 * H, 2 * W), jnp.float32)

    fwd = jax.jit(up_forward)
    out = jax.block_until_ready(fwd(params, x, mid))
    assert out.shape == (N, output_size, 2 * H, 2 * W), out.shape

    ref = jax.block_until_ready(reference_up(params, x, mid))
    # bf16 MXU operands (f32 accumulation) -> relaxed tolerance vs. the f32 reference.
    np.testing.assert_allclose(np.asarray(out), np.asarray(ref), rtol=2e-2, atol=2e-2)

    print("KERNEL_OK")
</pallas_src>

<mosaic_0001>
module attributes {stable_mosaic.version = 11 : i64} {
  func.func @_matmul_bias_kernel(%arg0: i32, %arg1: memref<128x128xbf16, #tpu.memory_space<vmem>>, %arg2: memref<128x512xbf16, #tpu.memory_space<vmem>>, %arg3: memref<1x512xf32, #tpu.memory_space<vmem>>, %arg4: memref<128x512xbf16, #tpu.memory_space<vmem>>) attributes {dimension_semantics = [#tpu.dimension_semantics<parallel>], iteration_bounds = array<i64: 1>, scalar_prefetch = 0 : i64, scratch_operands = 0 : i64, tpu.core_type = #tpu.core_type<tc>, window_params = [{transform_indices = @transform_0, window_bounds = array<i64: 128, 128>}, {pipeline_mode = #tpu.pipeline_mode<synchronous>, transform_indices = @transform_1, window_bounds = array<i64: 128, 512>}, {pipeline_mode = #tpu.pipeline_mode<synchronous>, transform_indices = @transform_2, window_bounds = array<i64: 1, 512>}, {transform_indices = @transform_3, window_bounds = array<i64: 128, 512>}]} {
    %c0 = arith.constant 0 : index
    %c0_0 = arith.constant 0 : index
    %0 = vector.load %arg1[%c0, %c0_0] : memref<128x128xbf16, #tpu.memory_space<vmem>>, vector<128x128xbf16>
    %c0_1 = arith.constant 0 : index
    %c0_2 = arith.constant 0 : index
    %1 = vector.load %arg2[%c0_1, %c0_2] : memref<128x512xbf16, #tpu.memory_space<vmem>>, vector<128x512xbf16>
    %cst = arith.constant dense<0.000000e+00> : vector<128x512xf32>
    %2 = tpu.matmul %0, %1, %cst {dimension_numbers = #tpu.dot_dimension_numbers<[1], [0], [0], [1], [0, 0, 1, 1], [], []>} : vector<128x128xbf16>, vector<128x512xbf16>, vector<128x512xf32> -> vector<128x512xf32>
    %c0_3 = arith.constant 0 : index
    %c0_4 = arith.constant 0 : index
    %3 = vector.load %arg3[%c0_3, %c0_4] : memref<1x512xf32, #tpu.memory_space<vmem>>, vector<1x512xf32>
    %4 = vector.broadcast %3 : vector<1x512xf32> to vector<128x512xf32>
    %5 = arith.addf %2, %4 : vector<128x512xf32>
    %6 = arith.truncf %5 : vector<128x512xf32> to vector<128x512xbf16>
    %c0_5 = arith.constant 0 : index
    %c0_6 = arith.constant 0 : index
    %7 = vector.load %arg4[%c0_5, %c0_6] : memref<128x512xbf16, #tpu.memory_space<vmem>>, vector<128x512xbf16>
    tpu.vector_store %arg4[%c0_5, %c0_6], %6 {strides = array<i32>} : memref<128x512xbf16, #tpu.memory_space<vmem>>, vector<128x512xbf16>,
    return
  }
  func.func @transform_0(%arg0: i32) -> (i32, i32) {
    %c0_i32 = arith.constant 0 : i32
    %c0_i32_0 = arith.constant 0 : i32
    return %arg0, %c0_i32 : i32, i32
  }
  func.func @transform_1(%arg0: i32) -> (i32, i32) {
    %c0_i32 = arith.constant 0 : i32
    %c0_i32_0 = arith.constant 0 : i32
    %c0_i32_1 = arith.constant 0 : i32
    return %c0_i32, %c0_i32_0 : i32, i32
  }
  func.func @transform_2(%arg0: i32) -> (i32, i32) {
    %c0_i32 = arith.constant 0 : i32
    %c0_i32_0 = arith.constant 0 : i32
    %c0_i32_1 = arith.constant 0 : i32
    return %c0_i32, %c0_i32_0 : i32, i32
  }
  func.func @transform_3(%arg0: i32) -> (i32, i32) {
    %c0_i32 = arith.constant 0 : i32
    %c0_i32_0 = arith.constant 0 : i32
    return %arg0, %c0_i32 : i32, i32
  }
}

module attributes {stable_mosaic.version = 11 : i64} {
  func.func @kernel(%arg0: i32, %arg1: i32, %arg2: memref<2x552x128xbf16, #tpu.memory_space<any>>, %arg3: memref<2x552x128xbf16, #tpu.memory_space<any>>, %arg4: memref<3x3x256x128xbf16, #tpu.memory_space<vmem>>, %arg5: memref<1x128xf32, #tpu.memory_space<vmem>>, %arg6: memref<1x256x128xbf16, #tpu.memory_space<vmem>>, %arg7: memref<2x296x256xbf16, #tpu.memory_space<vmem>>, %arg8: memref<2x2x!tpu.dma_semaphore, #tpu.memory_space<semaphore_mem>>) attributes {dimension_semantics = [#tpu.dimension_semantics<parallel>, #tpu.dimension_semantics<arbitrary>], iteration_bounds = array<i64: 2, 2>, scalar_prefetch = 0 : i64, scratch_operands = 2 : i64, tpu.core_type = #tpu.core_type<tc>, window_params = [{}, {}, {pipeline_mode = #tpu.pipeline_mode<synchronous>, transform_indices = @transform_2, window_bounds = array<i64: 3, 3, 256, 128>}, {pipeline_mode = #tpu.pipeline_mode<synchronous>, transform_indices = @transform_3, window_bounds = array<i64: 1, 128>}, {transform_indices = @transform_4, window_bounds = array<i64: 1, 256, 128>}]} {
    %c1_i32 = arith.constant 1 : i32
    %0 = arith.andi %arg1, %c1_i32 : i32
    %c0_i32 = arith.constant 0 : i32
    %1 = arith.cmpi eq, %arg1, %c0_i32 : i32
    %2 = arith.extui %1 : i1 to i32
    %c0_i32_0 = arith.constant 0 : i32
    %3 = arith.cmpi ne, %2, %c0_i32_0 : i32
    scf.if %3 {
      %c0_i32_70 = arith.constant 0 : i32
      %c0_i32_71 = arith.constant 0 : i32
      %c0_i32_72 = arith.constant 0 : i32
      %c0_i32_73 = arith.constant 0 : i32
      %c0_i32_74 = arith.constant 0 : i32
      %93 = tpu.memref_slice %arg2[%arg0, %c0_i32_73, %c0_i32_74] : memref<2x552x128xbf16, #tpu.memory_space<any>> -> memref<1x296x128xbf16, #tpu.memory_space<any>>
      %94 = tpu.memref_squeeze %93 : memref<1x296x128xbf16, #tpu.memory_space<any>> -> memref<296x128xbf16, #tpu.memory_space<any>>
      %c0_i32_75 = arith.constant 0 : i32
      %c0_i32_76 = arith.constant 0 : i32
      %95 = tpu.memref_slice %arg7[%c0_i32_70, %c0_i32_75, %c0_i32_76] : memref<2x296x256xbf16, #tpu.memory_space<vmem>> -> memref<1x296x128xbf16, #tpu.memory_space<vmem>>
      %96 = tpu.memref_squeeze %95 : memref<1x296x128xbf16, #tpu.memory_space<vmem>> -> memref<296x128xbf16, #tpu.memory_space<vmem>>
      %97 = tpu.memref_slice %arg8[%c0_i32_71, %c0_i32_72] : memref<2x2x!tpu.dma_semaphore, #tpu.memory_space<semaphore_mem>> -> memref<1x1x!tpu.dma_semaphore, #tpu.memory_space<semaphore_mem>>
      %98 = tpu.memref_squeeze %97 : memref<1x1x!tpu.dma_semaphore, #tpu.memory_space<semaphore_mem>> -> memref<!tpu.dma_semaphore, #tpu.memory_space<semaphore_mem>>
      tpu.enqueue_dma source(%94 : memref<296x128xbf16, #tpu.memory_space<any>>) target(%96 : memref<296x128xbf16, #tpu.memory_space<vmem>>) target_semaphore(%98 : memref<!tpu.dma_semaphore, #tpu.memory_space<semaphore_mem>>)
      %c0_i32_77 = arith.constant 0 : i32
      %c0_i32_78 = arith.constant 0 : i32
      %c1_i32_79 = arith.constant 1 : i32
      %c0_i32_80 = arith.constant 0 : i32
      %c0_i32_81 = arith.constant 0 : i32
      %99 = tpu.memref_slice %arg3[%arg0, %c0_i32_80, %c0_i32_81] : memref<2x552x128xbf16, #tpu.memory_space<any>> -> memref<1x296x128xbf16, #tpu.memory_space<any>>
      %100 = tpu.memref_squeeze %99 : memref<1x296x128xbf16, #tpu.memory_space<any>> -> memref<296x128xbf16, #tpu.memory_space<any>>
      %c0_i32_82 = arith.constant 0 : i32
      %c128_i32_83 = arith.constant 128 : i32
      %101 = tpu.memref_slice %arg7[%c0_i32_77, %c0_i32_82, %c128_i32_83] : memref<2x296x256xbf16, #tpu.memory_space<vmem>> -> memref<1x296x128xbf16, #tpu.memory_space<vmem>>
      %102 = tpu.memref_squeeze %101 : memref<1x296x128xbf16, #tpu.memory_space<vmem>> -> memref<296x128xbf16, #tpu.memory_space<vmem>>
      %103 = tpu.memref_slice %arg8[%c0_i32_78, %c1_i32_79] : memref<2x2x!tpu.dma_semaphore, #tpu.memory_space<semaphore_mem>> -> memref<1x1x!tpu.dma_semaphore, #tpu.memory_space<semaphore_mem>>
      %104 = tpu.memref_squeeze %103 : memref<1x1x!tpu.dma_semaphore, #tpu.memory_space<semaphore_mem>> -> memref<!tpu.dma_semaphore, #tpu.memory_space<semaphore_mem>>
      tpu.enqueue_dma source(%100 : memref<296x128xbf16, #tpu.memory_space<any>>) target(%102 : memref<296x128xbf16, #tpu.memory_space<vmem>>) target_semaphore(%104 : memref<!tpu.dma_semaphore, #tpu.memory_space<semaphore_mem>>)
    } else {
    }
    %c1_i32_1 = arith.constant 1 : i32
    %4 = arith.addi %arg1, %c1_i32_1 : i32
    %c2_i32 = arith.constant 2 : i32
    %5 = arith.cmpi slt, %4, %c2_i32 : i32
    %6 = arith.extui %5 : i1 to i32
    %c0_i32_2 = arith.constant 0 : i32
    %7 = arith.cmpi ne, %6, %c0_i32_2 : i32
    scf.if %7 {
      %c1_i32_70 = arith.constant 1 : i32
      %93 = arith.addi %arg1, %c1_i32_70 : i32
      %c1_i32_71 = arith.constant 1 : i32
      %94 = arith.subi %c1_i32_71, %0 : i32
      %c256_i32_72 = arith.constant 256 : i32
      %95 = arith.muli %93, %c256_i32_72 : i32
      %c0_i32_73 = arith.constant 0 : i32
      %c0_i32_74 = arith.constant 0 : i32
      %96 = tpu.memref_slice %arg2[%arg0, %95, %c0_i32_74] : memref<2x552x128xbf16, #tpu.memory_space<any>> -> memref<1x296x128xbf16, #tpu.memory_space<any>>
      %97 = tpu.memref_squeeze %96 : memref<1x296x128xbf16, #tpu.memory_space<any>> -> memref<296x128xbf16, #tpu.memory_space<any>>
      %c0_i32_75 = arith.constant 0 : i32
      %c0_i32_76 = arith.constant 0 : i32
      %98 = tpu.memref_slice %arg7[%94, %c0_i32_75, %c0_i32_76] : memref<2x296x256xbf16, #tpu.memory_space<vmem>> -> memref<1x296x128xbf16, #tpu.memory_space<vmem>>
      %99 = tpu.memref_squeeze %98 : memref<1x296x128xbf16, #tpu.memory_space<vmem>> -> memref<296x128xbf16, #tpu.memory_space<vmem>>
      %100 = tpu.memref_slice %arg8[%94, %c0_i32_73] : memref<2x2x!tpu.dma_semaphore, #tpu.memory_space<semaphore_mem>> -> memref<1x1x!tpu.dma_semaphore, #tpu.memory_space<semaphore_mem>>
      %101 = tpu.memref_squeeze %100 : memref<1x1x!tpu.dma_semaphore, #tpu.memory_space<semaphore_mem>> -> memref<!tpu.dma_semaphore, #tpu.memory_space<semaphore_mem>>
      tpu.enqueue_dma source(%97 : memref<296x128xbf16, #tpu.memory_space<any>>) target(%99 : memref<296x128xbf16, #tpu.memory_space<vmem>>) target_semaphore(%101 : memref<!tpu.dma_semaphore, #tpu.memory_space<semaphore_mem>>)
      %c1_i32_77 = arith.constant 1 : i32
      %102 = arith.addi %arg1, %c1_i32_77 : i32
      %c1_i32_78 = arith.constant 1 : i32
      %103 = arith.subi %c1_i32_78, %0 : i32
      %c256_i32_79 = arith.constant 256 : i32
      %104 = arith.muli %102, %c256_i32_79 : i32
      %c1_i32_80 = arith.constant 1 : i32
      %c0_i32_81 = arith.constant 0 : i32
      %105 = tpu.memref_slice %arg3[%arg0, %104, %c0_i32_81] : memref<2x552x128xbf16, #tpu.memory_space<any>> -> memref<1x296x128xbf16, #tpu.memory_space<any>>
      %106 = tpu.memref_squeeze %105 : memref<1x296x128xbf16, #tpu.memory_space<any>> -> memref<296x128xbf16, #tpu.memory_space<any>>
      %c0_i32_82 = arith.constant 0 : i32
      %c128_i32_83 = arith.constant 128 : i32
      %107 = tpu.memref_slice %arg7[%103, %c0_i32_82, %c128_i32_83] : memref<2x296x256xbf16, #tpu.memory_space<vmem>> -> memref<1x296x128xbf16, #tpu.memory_space<vmem>>
      %108 = tpu.memref_squeeze %107 : memref<1x296x128xbf16, #tpu.memory_space<vmem>> -> memref<296x128xbf16, #tpu.memory_space<vmem>>
      %109 = tpu.memref_slice %arg8[%103, %c1_i32_80] : memref<2x2x!tpu.dma_semaphore, #tpu.memory_space<semaphore_mem>> -> memref<1x1x!tpu.dma_semaphore, #tpu.memory_space<semaphore_mem>>
      %110 = tpu.memref_squeeze %109 : memref<1x1x!tpu.dma_semaphore, #tpu.memory_space<semaphore_mem>> -> memref<!tpu.dma_semaphore, #tpu.memory_space<semaphore_mem>>
      tpu.enqueue_dma source(%106 : memref<296x128xbf16, #tpu.memory_space<any>>) target(%108 : memref<296x128xbf16, #tpu.memory_space<vmem>>) target_semaphore(%110 : memref<!tpu.dma_semaphore, #tpu.memory_space<semaphore_mem>>)
    } else {
    }
    %c256_i32 = arith.constant 256 : i32
    %8 = arith.muli %arg1, %c256_i32 : i32
    %c0_i32_3 = arith.constant 0 : i32
    %c0_i32_4 = arith.constant 0 : i32
    %9 = tpu.memref_slice %arg2[%arg0, %8, %c0_i32_4] : memref<2x552x128xbf16, #tpu.memory_space<any>> -> memref<1x296x128xbf16, #tpu.memory_space<any>>
    %10 = tpu.memref_squeeze %9 : memref<1x296x128xbf16, #tpu.memory_space<any>> -> memref<296x128xbf16, #tpu.memory_space<any>>
    %c0_i32_5 = arith.constant 0 : i32
    %c0_i32_6 = arith.constant 0 : i32
    %11 = tpu.memref_slice %arg7[%0, %c0_i32_5, %c0_i32_6] : memref<2x296x256xbf16, #tpu.memory_space<vmem>> -> memref<1x296x128xbf16, #tpu.memory_space<vmem>>
    %12 = tpu.memref_squeeze %11 : memref<1x296x128xbf16, #tpu.memory_space<vmem>> -> memref<296x128xbf16, #tpu.memory_space<vmem>>
    %13 = tpu.memref_slice %arg8[%0, %c0_i32_3] : memref<2x2x!tpu.dma_semaphore, #tpu.memory_space<semaphore_mem>> -> memref<1x1x!tpu.dma_semaphore, #tpu.memory_space<semaphore_mem>>
    %14 = tpu.memref_squeeze %13 : memref<1x1x!tpu.dma_semaphore, #tpu.memory_space<semaphore_mem>> -> memref<!tpu.dma_semaphore, #tpu.memory_space<semaphore_mem>>
    tpu.wait_dma2 semaphore(%14 : memref<!tpu.dma_semaphore, #tpu.memory_space<semaphore_mem>>) src(%10 : memref<296x128xbf16, #tpu.memory_space<any>>) dst(%12 : memref<296x128xbf16, #tpu.memory_space<vmem>>)
    %c256_i32_7 = arith.constant 256 : i32
    %15 = arith.muli %arg1, %c256_i32_7 : i32
    %c1_i32_8 = arith.constant 1 : i32
    %c0_i32_9 = arith.constant 0 : i32
    %16 = tpu.memref_slice %arg3[%arg0, %15, %c0_i32_9] : memref<2x552x128xbf16, #tpu.memory_space<any>> -> memref<1x296x128xbf16, #tpu.memory_space<any>>
    %17 = tpu.memref_squeeze %16 : memref<1x296x128xbf16, #tpu.memory_space<any>> -> memref<296x128xbf16, #tpu.memory_space<any>>
    %c0_i32_10 = arith.constant 0 : i32
    %c128_i32 = arith.constant 128 : i32
    %18 = tpu.memref_slice %arg7[%0, %c0_i32_10, %c128_i32] : memref<2x296x256xbf16, #tpu.memory_space<vmem>> -> memref<1x296x128xbf16, #tpu.memory_space<vmem>>
    %19 = tpu.memref_squeeze %18 : memref<1x296x128xbf16, #tpu.memory_space<vmem>> -> memref<296x128xbf16, #tpu.memory_space<vmem>>
    %20 = tpu.memref_slice %arg8[%0, %c1_i32_8] : memref<2x2x!tpu.dma_semaphore, #tpu.memory_space<semaphore_mem>> -> memref<1x1x!tpu.dma_semaphore, #tpu.memory_space<semaphore_mem>>
    %21 = tpu.memref_squeeze %20 : memref<1x1x!tpu.dma_semaphore, #tpu.memory_space<semaphore_mem>> -> memref<!tpu.dma_semaphore, #tpu.memory_space<semaphore_mem>>
    tpu.wait_dma2 semaphore(%21 : memref<!tpu.dma_semaphore, #tpu.memory_space<semaphore_mem>>) src(%17 : memref<296x128xbf16, #tpu.memory_space<any>>) dst(%19 : memref<296x128xbf16, #tpu.memory_space<vmem>>)
    %22 = arith.index_cast %0 : i32 to index
    %c0 = arith.constant 0 : index
    %c0_11 = arith.constant 0 : index
    %23 = vector.load %arg7[%22, %c0, %c0_11] : memref<2x296x256xbf16, #tpu.memory_space<vmem>>, vector<1x256x256xbf16>
    %24 = vector.shape_cast %23 : vector<1x256x256xbf16> to vector<256x256xbf16>
    %c0_12 = arith.constant 0 : index
    %c0_13 = arith.constant 0 : index
    %c0_14 = arith.constant 0 : index
    %c0_15 = arith.constant 0 : index
    %25 = vector.load %arg4[%c0_12, %c0_13, %c0_14, %c0_15] : memref<3x3x256x128xbf16, #tpu.memory_space<vmem>>, vector<1x1x256x128xbf16>
    %26 = vector.shape_cast %25 : vector<1x1x256x128xbf16> to vector<256x128xbf16>
    %cst = arith.constant dense<0.000000e+00> : vector<256x128xf32>
    %27 = tpu.matmul %24, %26, %cst {dimension_numbers = #tpu.dot_dimension_numbers<[1], [0], [0], [1], [0, 0, 1, 1], [], []>} : vector<256x256xbf16>, vector<256x128xbf16>, vector<256x128xf32> -> vector<256x128xf32>
    %c0_16 = arith.constant 0 : index
    %c0_17 = arith.constant 0 : index
    %28 = vector.load %arg5[%c0_16, %c0_17] : memref<1x128xf32, #tpu.memory_space<vmem>>, vector<1x128xf32>
    %29 = vector.broadcast %28 : vector<1x128xf32> to vector<256x128xf32>
    %30 = arith.addf %27, %29 : vector<256x128xf32>
    %31 = arith.index_cast %0 : i32 to index
    %c1 = arith.constant 1 : index
    %c0_18 = arith.constant 0 : index
    %32 = vector.load %arg7[%31, %c1, %c0_18] : memref<2x296x256xbf16, #tpu.memory_space<vmem>>, vector<1x256x256xbf16>
    %33 = vector.shape_cast %32 : vector<1x256x256xbf16> to vector<256x256xbf16>
    %c0_19 = arith.constant 0 : index
    %c1_20 = arith.constant 1 : index
    %c0_21 = arith.constant 0 : index
    %c0_22 = arith.constant 0 : index
    %34 = vector.load %arg4[%c0_19, %c1_20, %c0_21, %c0_22] : memref<3x3x256x128xbf16, #tpu.memory_space<vmem>>, vector<1x1x256x128xbf16>
    %35 = vector.shape_cast %34 : vector<1x1x256x128xbf16> to vector<256x128xbf16>
    %cst_23 = arith.constant dense<0.000000e+00> : vector<256x128xf32>
    %36 = tpu.matmul %33, %35, %cst_23 {dimension_numbers = #tpu.dot_dimension_numbers<[1], [0], [0], [1], [0, 0, 1, 1], [], []>} : vector<256x256xbf16>, vector<256x128xbf16>, vector<256x128xf32> -> vector<256x128xf32>
    %37 = arith.addf %30, %36 : vector<256x128xf32>
    %38 = arith.index_cast %0 : i32 to index
    %c2 = arith.constant 2 : index
    %c0_24 = arith.constant 0 : index
    %39 = vector.load %arg7[%38, %c2, %c0_24] : memref<2x296x256xbf16, #tpu.memory_space<vmem>>, vector<1x256x256xbf16>
    %40 = vector.shape_cast %39 : vector<1x256x256xbf16> to vector<256x256xbf16>
    %c0_25 = arith.constant 0 : index
    %c2_26 = arith.constant 2 : index
    %c0_27 = arith.constant 0 : index
    %c0_28 = arith.constant 0 : index
    %41 = vector.load %arg4[%c0_25, %c2_26, %c0_27, %c0_28] : memref<3x3x256x128xbf16, #tpu.memory_space<vmem>>, vector<1x1x256x128xbf16>
    %42 = vector.shape_cast %41 : vector<1x1x256x128xbf16> to vector<256x128xbf16>
    %cst_29 = arith.constant dense<0.000000e+00> : vector<256x128xf32>
    %43 = tpu.matmul %40, %42, %cst_29 {dimension_numbers = #tpu.dot_dimension_numbers<[1], [0], [0], [1], [0, 0, 1, 1], [], []>} : vector<256x256xbf16>, vector<256x128xbf16>, vector<256x128xf32> -> vector<256x128xf32>
    %44 = arith.addf %37, %43 : vector<256x128xf32>
    %45 = arith.index_cast %0 : i32 to index
    %c18 = arith.constant 18 : index
    %c0_30 = arith.constant 0 : index
    %46 = vector.load %arg7[%45, %c18, %c0_30] : memref<2x296x256xbf16, #tpu.memory_space<vmem>>, vector<1x256x256xbf16>
    %47 = vector.shape_cast %46 : vector<1x256x256xbf16> to vector<256x256xbf16>
    %c1_31 = arith.constant 1 : index
    %c0_32 = arith.constant 0 : index
    %c0_33 = arith.constant 0 : index
    %c0_34 = arith.constant 0 : index
    %48 = vector.load %arg4[%c1_31, %c0_32, %c0_33, %c0_34] : memref<3x3x256x128xbf16, #tpu.memory_space<vmem>>, vector<1x1x256x128xbf16>
    %49 = vector.shape_cast %48 : vector<1x1x256x128xbf16> to vector<256x128xbf16>
    %cst_35 = arith.constant dense<0.000000e+00> : vector<256x128xf32>
    %50 = tpu.matmul %47, %49, %cst_35 {dimension_numbers = #tpu.dot_dimension_numbers<[1], [0], [0], [1], [0, 0, 1, 1], [], []>} : vector<256x256xbf16>, vector<256x128xbf16>, vector<256x128xf32> -> vector<256x128xf32>
    %51 = arith.addf %44, %50 : vector<256x128xf32>
    %52 = arith.index_cast %0 : i32 to index
    %c19 = arith.constant 19 : index
    %c0_36 = arith.constant 0 : index
    %53 = vector.load %arg7[%52, %c19, %c0_36] : memref<2x296x256xbf16, #tpu.memory_space<vmem>>, vector<1x256x256xbf16>
    %54 = vector.shape_cast %53 : vector<1x256x256xbf16> to vector<256x256xbf16>
    %c1_37 = arith.constant 1 : index
    %c1_38 = arith.constant 1 : index
    %c0_39 = arith.constant 0 : index
    %c0_40 = arith.constant 0 : index
    %55 = vector.load %arg4[%c1_37, %c1_38, %c0_39, %c0_40] : memref<3x3x256x128xbf16, #tpu.memory_space<vmem>>, vector<1x1x256x128xbf16>
    %56 = vector.shape_cast %55 : vector<1x1x256x128xbf16> to vector<256x128xbf16>
    %cst_41 = arith.constant dense<0.000000e+00> : vector<256x128xf32>
    %57 = tpu.matmul %54, %56, %cst_41 {dimension_numbers = #tpu.dot_dimension_numbers<[1], [0], [0], [1], [0, 0, 1, 1], [], []>} : vector<256x256xbf16>, vector<256x128xbf16>, vector<256x128xf32> -> vector<256x128xf32>
    %58 = arith.addf %51, %57 : vector<256x128xf32>
    %59 = arith.index_cast %0 : i32 to index
    %c20 = arith.constant 20 : index
    %c0_42 = arith.constant 0 : index
    %60 = vector.load %arg7[%59, %c20, %c0_42] : memref<2x296x256xbf16, #tpu.memory_space<vmem>>, vector<1x256x256xbf16>
    %61 = vector.shape_cast %60 : vector<1x256x256xbf16> to vector<256x256xbf16>
    %c1_43 = arith.constant 1 : index
    %c2_44 = arith.constant 2 : index
    %c0_45 = arith.constant 0 : index
    %c0_46 = arith.constant 0 : index
    %62 = vector.load %arg4[%c1_43, %c2_44, %c0_45, %c0_46] : memref<3x3x256x128xbf16, #tpu.memory_space<vmem>>, vector<1x1x256x128xbf16>
    %63 = vector.shape_cast %62 : vector<1x1x256x128xbf16> to vector<256x128xbf16>
    %cst_47 = arith.constant dense<0.000000e+00> : vector<256x128xf32>
    %64 = tpu.matmul %61, %63, %cst_47 {dimension_numbers = #tpu.dot_dimension_numbers<[1], [0], [0], [1], [0, 0, 1, 1], [], []>} : vector<256x256xbf16>, vector<256x128xbf16>, vector<256x128xf32> -> vector<256x128xf32>
    %65 = arith.addf %58, %64 : vector<256x128xf32>
    %66 = arith.index_cast %0 : i32 to index
    %c36 = arith.constant 36 : index
    %c0_48 = arith.constant 0 : index
    %67 = vector.load %arg7[%66, %c36, %c0_48] : memref<2x296x256xbf16, #tpu.memory_space<vmem>>, vector<1x256x256xbf16>
    %68 = vector.shape_cast %67 : vector<1x256x256xbf16> to vector<256x256xbf16>
    %c2_49 = arith.constant 2 : index
    %c0_50 = arith.constant 0 : index
    %c0_51 = arith.constant 0 : index
    %c0_52 = arith.constant 0 : index
    %69 = vector.load %arg4[%c2_49, %c0_50, %c0_51, %c0_52] : memref<3x3x256x128xbf16, #tpu.memory_space<vmem>>, vector<1x1x256x128xbf16>
    %70 = vector.shape_cast %69 : vector<1x1x256x128xbf16> to vector<256x128xbf16>
    %cst_53 = arith.constant dense<0.000000e+00> : vector<256x128xf32>
    %71 = tpu.matmul %68, %70, %cst_53 {dimension_numbers = #tpu.dot_dimension_numbers<[1], [0], [0], [1], [0, 0, 1, 1], [], []>} : vector<256x256xbf16>, vector<256x128xbf16>, vector<256x128xf32> -> vector<256x128xf32>
    %72 = arith.addf %65, %71 : vector<256x128xf32>
    %73 = arith.index_cast %0 : i32 to index
    %c37 = arith.constant 37 : index
    %c0_54 = arith.constant 0 : index
    %74 = vector.load %arg7[%73, %c37, %c0_54] : memref<2x296x256xbf16, #tpu.memory_space<vmem>>, vector<1x256x256xbf16>
    %75 = vector.shape_cast %74 : vector<1x256x256xbf16> to vector<256x256xbf16>
    %c2_55 = arith.constant 2 : index
    %c1_56 = arith.constant 1 : index
    %c0_57 = arith.constant 0 : index
    %c0_58 = arith.constant 0 : index
    %76 = vector.load %arg4[%c2_55, %c1_56, %c0_57, %c0_58] : memref<3x3x256x128xbf16, #tpu.memory_space<vmem>>, vector<1x1x256x128xbf16>
    %77 = vector.shape_cast %76 : vector<1x1x256x128xbf16> to vector<256x128xbf16>
    %cst_59 = arith.constant dense<0.000000e+00> : vector<256x128xf32>
    %78 = tpu.matmul %75, %77, %cst_59 {dimension_numbers = #tpu.dot_dimension_numbers<[1], [0], [0], [1], [0, 0, 1, 1], [], []>} : vector<256x256xbf16>, vector<256x128xbf16>, vector<256x128xf32> -> vector<256x128xf32>
    %79 = arith.addf %72, %78 : vector<256x128xf32>
    %80 = arith.index_cast %0 : i32 to index
    %c38 = arith.constant 38 : index
    %c0_60 = arith.constant 0 : index
    %81 = vector.load %arg7[%80, %c38, %c0_60] : memref<2x296x256xbf16, #tpu.memory_space<vmem>>, vector<1x256x256xbf16>
    %82 = vector.shape_cast %81 : vector<1x256x256xbf16> to vector<256x256xbf16>
    %c2_61 = arith.constant 2 : index
    %c2_62 = arith.constant 2 : index
    %c0_63 = arith.constant 0 : index
    %c0_64 = arith.constant 0 : index
    %83 = vector.load %arg4[%c2_61, %c2_62, %c0_63, %c0_64] : memref<3x3x256x128xbf16, #tpu.memory_space<vmem>>, vector<1x1x256x128xbf16>
    %84 = vector.shape_cast %83 : vector<1x1x256x128xbf16> to vector<256x128xbf16>
    %cst_65 = arith.constant dense<0.000000e+00> : vector<256x128xf32>
    %85 = tpu.matmul %82, %84, %cst_65 {dimension_numbers = #tpu.dot_dimension_numbers<[1], [0], [0], [1], [0, 0, 1, 1], [], []>} : vector<256x256xbf16>, vector<256x128xbf16>, vector<256x128xf32> -> vector<256x128xf32>
    %86 = arith.addf %79, %85 : vector<256x128xf32>
    %cst_66 = arith.constant 0.000000e+00 : f32
    %87 = vector.broadcast %cst_66 : f32 to vector<256x128xf32>
    %88 = arith.maximumf %86, %87 : vector<256x128xf32>
    %89 = arith.truncf %88 : vector<256x128xf32> to vector<256x128xbf16>
    %c0_67 = arith.constant 0 : index
    %c0_68 = arith.constant 0 : index
    %c0_69 = arith.constant 0 : index
    %90 = vector.load %arg6[%c0_67, %c0_68, %c0_69] : memref<1x256x128xbf16, #tpu.memory_space<vmem>>, vector<1x256x128xbf16>
    %91 = vector.shape_cast %90 : vector<1x256x128xbf16> to vector<256x128xbf16>
    %92 = vector.shape_cast %89 : vector<256x128xbf16> to vector<1x256x128xbf16>
    tpu.vector_store %arg6[%c0_67, %c0_68, %c0_69], %92 {strides = array<i32>} : memref<1x256x128xbf16, #tpu.memory_space<vmem>>, vector<1x256x128xbf16>,
    return
  }
  func.func @transform_2(%arg0: i32, %arg1: i32) -> (i32, i32, i32, i32) {
    %c0_i32 = arith.constant 0 : i32
    %c0_i32_0 = arith.constant 0 : i32
    %c0_i32_1 = arith.constant 0 : i32
    %c0_i32_2 = arith.constant 0 : i32
    %c0_i32_3 = arith.constant 0 : i32
    return %c0_i32, %c0_i32_0, %c0_i32_1, %c0_i32_2 : i32, i32, i32, i32
  }
  func.func @transform_3(%arg0: i32, %arg1: i32) -> (i32, i32) {
    %c0_i32 = arith.constant 0 : i32
    %c0_i32_0 = arith.constant 0 : i32
    %c0_i32_1 = arith.constant 0 : i32
    return %c0_i32, %c0_i32_0 : i32, i32
  }
  func.func @transform_4(%arg0: i32, %arg1: i32) -> (i32, i32, i32) {
    %c0_i32 = arith.constant 0 : i32
    %c0_i32_0 = arith.constant 0 : i32
    return %arg0, %arg1, %c0_i32 : i32, i32, i32
  }
}

module attributes {stable_mosaic.version = 11 : i64} {
  func.func @kernel(%arg0: i32, %arg1: i32, %arg2: memref<2x552x128xbf16, #tpu.memory_space<any>>, %arg3: memref<3x3x128x128xbf16, #tpu.memory_space<vmem>>, %arg4: memref<1x128xf32, #tpu.memory_space<vmem>>, %arg5: memref<1x256x128xf32, #tpu.memory_space<vmem>>, %arg6: memref<2x296x128xbf16, #tpu.memory_space<vmem>>, %arg7: memref<2x1x!tpu.dma_semaphore, #tpu.memory_space<semaphore_mem>>) attributes {dimension_semantics = [#tpu.dimension_semantics<parallel>, #tpu.dimension_semantics<arbitrary>], iteration_bounds = array<i64: 2, 2>, scalar_prefetch = 0 : i64, scratch_operands = 2 : i64, tpu.core_type = #tpu.core_type<tc>, window_params = [{}, {pipeline_mode = #tpu.pipeline_mode<synchronous>, transform_indices = @transform_1, window_bounds = array<i64: 3, 3, 128, 128>}, {pipeline_mode = #tpu.pipeline_mode<synchronous>, transform_indices = @transform_2, window_bounds = array<i64: 1, 128>}, {transform_indices = @transform_3, window_bounds = array<i64: 1, 256, 128>}]} {
    %c1_i32 = arith.constant 1 : i32
    %0 = arith.andi %arg1, %c1_i32 : i32
    %c0_i32 = arith.constant 0 : i32
    %1 = arith.cmpi eq, %arg1, %c0_i32 : i32
    %2 = arith.extui %1 : i1 to i32
    %c0_i32_0 = arith.constant 0 : i32
    %3 = arith.cmpi ne, %2, %c0_i32_0 : i32
    scf.if %3 {
      %c0_i32_66 = arith.constant 0 : i32
      %c0_i32_67 = arith.constant 0 : i32
      %c0_i32_68 = arith.constant 0 : i32
      %c0_i32_69 = arith.constant 0 : i32
      %c0_i32_70 = arith.constant 0 : i32
      %85 = tpu.memref_slice %arg2[%arg0, %c0_i32_69, %c0_i32_70] : memref<2x552x128xbf16, #tpu.memory_space<any>> -> memref<1x296x128xbf16, #tpu.memory_space<any>>
      %86 = tpu.memref_squeeze %85 : memref<1x296x128xbf16, #tpu.memory_space<any>> -> memref<296x128xbf16, #tpu.memory_space<any>>
      %c0_i32_71 = arith.constant 0 : i32
      %c0_i32_72 = arith.constant 0 : i32
      %87 = tpu.memref_slice %arg6[%c0_i32_66, %c0_i32_71, %c0_i32_72] : memref<2x296x128xbf16, #tpu.memory_space<vmem>> -> memref<1x296x128xbf16, #tpu.memory_space<vmem>>
      %88 = tpu.memref_squeeze %87 : memref<1x296x128xbf16, #tpu.memory_space<vmem>> -> memref<296x128xbf16, #tpu.memory_space<vmem>>
      %89 = tpu.memref_slice %arg7[%c0_i32_67, %c0_i32_68] : memref<2x1x!tpu.dma_semaphore, #tpu.memory_space<semaphore_mem>> -> memref<1x1x!tpu.dma_semaphore, #tpu.memory_space<semaphore_mem>>
      %90 = tpu.memref_squeeze %89 : memref<1x1x!tpu.dma_semaphore, #tpu.memory_space<semaphore_mem>> -> memref<!tpu.dma_semaphore, #tpu.memory_space<semaphore_mem>>
      tpu.enqueue_dma source(%86 : memref<296x128xbf16, #tpu.memory_space<any>>) target(%88 : memref<296x128xbf16, #tpu.memory_space<vmem>>) target_semaphore(%90 : memref<!tpu.dma_semaphore, #tpu.memory_space<semaphore_mem>>)
    } else {
    }
    %c1_i32_1 = arith.constant 1 : i32
    %4 = arith.addi %arg1, %c1_i32_1 : i32
    %c2_i32 = arith.constant 2 : i32
    %5 = arith.cmpi slt, %4, %c2_i32 : i32
    %6 = arith.extui %5 : i1 to i32
    %c0_i32_2 = arith.constant 0 : i32
    %7 = arith.cmpi ne, %6, %c0_i32_2 : i32
    scf.if %7 {
      %c1_i32_66 = arith.constant 1 : i32
      %85 = arith.addi %arg1, %c1_i32_66 : i32
      %c1_i32_67 = arith.constant 1 : i32
      %86 = arith.subi %c1_i32_67, %0 : i32
      %c256_i32_68 = arith.constant 256 : i32
      %87 = arith.muli %85, %c256_i32_68 : i32
      %c0_i32_69 = arith.constant 0 : i32
      %c0_i32_70 = arith.constant 0 : i32
      %88 = tpu.memref_slice %arg2[%arg0, %87, %c0_i32_70] : memref<2x552x128xbf16, #tpu.memory_space<any>> -> memref<1x296x128xbf16, #tpu.memory_space<any>>
      %89 = tpu.memref_squeeze %88 : memref<1x296x128xbf16, #tpu.memory_space<any>> -> memref<296x128xbf16, #tpu.memory_space<any>>
      %c0_i32_71 = arith.constant 0 : i32
      %c0_i32_72 = arith.constant 0 : i32
      %90 = tpu.memref_slice %arg6[%86, %c0_i32_71, %c0_i32_72] : memref<2x296x128xbf16, #tpu.memory_space<vmem>> -> memref<1x296x128xbf16, #tpu.memory_space<vmem>>
      %91 = tpu.memref_squeeze %90 : memref<1x296x128xbf16, #tpu.memory_space<vmem>> -> memref<296x128xbf16, #tpu.memory_space<vmem>>
      %92 = tpu.memref_slice %arg7[%86, %c0_i32_69] : memref<2x1x!tpu.dma_semaphore, #tpu.memory_space<semaphore_mem>> -> memref<1x1x!tpu.dma_semaphore, #tpu.memory_space<semaphore_mem>>
      %93 = tpu.memref_squeeze %92 : memref<1x1x!tpu.dma_semaphore, #tpu.memory_space<semaphore_mem>> -> memref<!tpu.dma_semaphore, #tpu.memory_space<semaphore_mem>>
      tpu.enqueue_dma source(%89 : memref<296x128xbf16, #tpu.memory_space<any>>) target(%91 : memref<296x128xbf16, #tpu.memory_space<vmem>>) target_semaphore(%93 : memref<!tpu.dma_semaphore, #tpu.memory_space<semaphore_mem>>)
    } else {
    }
    %c256_i32 = arith.constant 256 : i32
    %8 = arith.muli %arg1, %c256_i32 : i32
    %c0_i32_3 = arith.constant 0 : i32
    %c0_i32_4 = arith.constant 0 : i32
    %9 = tpu.memref_slice %arg2[%arg0, %8, %c0_i32_4] : memref<2x552x128xbf16, #tpu.memory_space<any>> -> memref<1x296x128xbf16, #tpu.memory_space<any>>
    %10 = tpu.memref_squeeze %9 : memref<1x296x128xbf16, #tpu.memory_space<any>> -> memref<296x128xbf16, #tpu.memory_space<any>>
    %c0_i32_5 = arith.constant 0 : i32
    %c0_i32_6 = arith.constant 0 : i32
    %11 = tpu.memref_slice %arg6[%0, %c0_i32_5, %c0_i32_6] : memref<2x296x128xbf16, #tpu.memory_space<vmem>> -> memref<1x296x128xbf16, #tpu.memory_space<vmem>>
    %12 = tpu.memref_squeeze %11 : memref<1x296x128xbf16, #tpu.memory_space<vmem>> -> memref<296x128xbf16, #tpu.memory_space<vmem>>
    %13 = tpu.memref_slice %arg7[%0, %c0_i32_3] : memref<2x1x!tpu.dma_semaphore, #tpu.memory_space<semaphore_mem>> -> memref<1x1x!tpu.dma_semaphore, #tpu.memory_space<semaphore_mem>>
    %14 = tpu.memref_squeeze %13 : memref<1x1x!tpu.dma_semaphore, #tpu.memory_space<semaphore_mem>> -> memref<!tpu.dma_semaphore, #tpu.memory_space<semaphore_mem>>
    tpu.wait_dma2 semaphore(%14 : memref<!tpu.dma_semaphore, #tpu.memory_space<semaphore_mem>>) src(%10 : memref<296x128xbf16, #tpu.memory_space<any>>) dst(%12 : memref<296x128xbf16, #tpu.memory_space<vmem>>)
    %15 = arith.index_cast %0 : i32 to index
    %c0 = arith.constant 0 : index
    %c0_7 = arith.constant 0 : index
    %16 = vector.load %arg6[%15, %c0, %c0_7] : memref<2x296x128xbf16, #tpu.memory_space<vmem>>, vector<1x256x128xbf16>
    %17 = vector.shape_cast %16 : vector<1x256x128xbf16> to vector<256x128xbf16>
    %c0_8 = arith.constant 0 : index
    %c0_9 = arith.constant 0 : index
    %c0_10 = arith.constant 0 : index
    %c0_11 = arith.constant 0 : index
    %18 = vector.load %arg3[%c0_8, %c0_9, %c0_10, %c0_11] : memref<3x3x128x128xbf16, #tpu.memory_space<vmem>>, vector<1x1x128x128xbf16>
    %19 = vector.shape_cast %18 : vector<1x1x128x128xbf16> to vector<128x128xbf16>
    %cst = arith.constant dense<0.000000e+00> : vector<256x128xf32>
    %20 = tpu.matmul %17, %19, %cst {dimension_numbers = #tpu.dot_dimension_numbers<[1], [0], [0], [1], [0, 0, 1, 1], [], []>} : vector<256x128xbf16>, vector<128x128xbf16>, vector<256x128xf32> -> vector<256x128xf32>
    %c0_12 = arith.constant 0 : index
    %c0_13 = arith.constant 0 : index
    %21 = vector.load %arg4[%c0_12, %c0_13] : memref<1x128xf32, #tpu.memory_space<vmem>>, vector<1x128xf32>
    %22 = vector.broadcast %21 : vector<1x128xf32> to vector<256x128xf32>
    %23 = arith.addf %20, %22 : vector<256x128xf32>
    %24 = arith.index_cast %0 : i32 to index
    %c1 = arith.constant 1 : index
    %c0_14 = arith.constant 0 : index
    %25 = vector.load %arg6[%24, %c1, %c0_14] : memref<2x296x128xbf16, #tpu.memory_space<vmem>>, vector<1x256x128xbf16>
    %26 = vector.shape_cast %25 : vector<1x256x128xbf16> to vector<256x128xbf16>
    %c0_15 = arith.constant 0 : index
    %c1_16 = arith.constant 1 : index
    %c0_17 = arith.constant 0 : index
    %c0_18 = arith.constant 0 : index
    %27 = vector.load %arg3[%c0_15, %c1_16, %c0_17, %c0_18] : memref<3x3x128x128xbf16, #tpu.memory_space<vmem>>, vector<1x1x128x128xbf16>
    %28 = vector.shape_cast %27 : vector<1x1x128x128xbf16> to vector<128x128xbf16>
    %cst_19 = arith.constant dense<0.000000e+00> : vector<256x128xf32>
    %29 = tpu.matmul %26, %28, %cst_19 {dimension_numbers = #tpu.dot_dimension_numbers<[1], [0], [0], [1], [0, 0, 1, 1], [], []>} : vector<256x128xbf16>, vector<128x128xbf16>, vector<256x128xf32> -> vector<256x128xf32>
    %30 = arith.addf %23, %29 : vector<256x128xf32>
    %31 = arith.index_cast %0 : i32 to index
    %c2 = arith.constant 2 : index
    %c0_20 = arith.constant 0 : index
    %32 = vector.load %arg6[%31, %c2, %c0_20] : memref<2x296x128xbf16, #tpu.memory_space<vmem>>, vector<1x256x128xbf16>
    %33 = vector.shape_cast %32 : vector<1x256x128xbf16> to vector<256x128xbf16>
    %c0_21 = arith.constant 0 : index
    %c2_22 = arith.constant 2 : index
    %c0_23 = arith.constant 0 : index
    %c0_24 = arith.constant 0 : index
    %34 = vector.load %arg3[%c0_21, %c2_22, %c0_23, %c0_24] : memref<3x3x128x128xbf16, #tpu.memory_space<vmem>>, vector<1x1x128x128xbf16>
    %35 = vector.shape_cast %34 : vector<1x1x128x128xbf16> to vector<128x128xbf16>
    %cst_25 = arith.constant dense<0.000000e+00> : vector<256x128xf32>
    %36 = tpu.matmul %33, %35, %cst_25 {dimension_numbers = #tpu.dot_dimension_numbers<[1], [0], [0], [1], [0, 0, 1, 1], [], []>} : vector<256x128xbf16>, vector<128x128xbf16>, vector<256x128xf32> -> vector<256x128xf32>
    %37 = arith.addf %30, %36 : vector<256x128xf32>
    %38 = arith.index_cast %0 : i32 to index
    %c18 = arith.constant 18 : index
    %c0_26 = arith.constant 0 : index
    %39 = vector.load %arg6[%38, %c18, %c0_26] : memref<2x296x128xbf16, #tpu.memory_space<vmem>>, vector<1x256x128xbf16>
    %40 = vector.shape_cast %39 : vector<1x256x128xbf16> to vector<256x128xbf16>
    %c1_27 = arith.constant 1 : index
    %c0_28 = arith.constant 0 : index
    %c0_29 = arith.constant 0 : index
    %c0_30 = arith.constant 0 : index
    %41 = vector.load %arg3[%c1_27, %c0_28, %c0_29, %c0_30] : memref<3x3x128x128xbf16, #tpu.memory_space<vmem>>, vector<1x1x128x128xbf16>
    %42 = vector.shape_cast %41 : vector<1x1x128x128xbf16> to vector<128x128xbf16>
    %cst_31 = arith.constant dense<0.000000e+00> : vector<256x128xf32>
    %43 = tpu.matmul %40, %42, %cst_31 {dimension_numbers = #tpu.dot_dimension_numbers<[1], [0], [0], [1], [0, 0, 1, 1], [], []>} : vector<256x128xbf16>, vector<128x128xbf16>, vector<256x128xf32> -> vector<256x128xf32>
    %44 = arith.addf %37, %43 : vector<256x128xf32>
    %45 = arith.index_cast %0 : i32 to index
    %c19 = arith.constant 19 : index
    %c0_32 = arith.constant 0 : index
    %46 = vector.load %arg6[%45, %c19, %c0_32] : memref<2x296x128xbf16, #tpu.memory_space<vmem>>, vector<1x256x128xbf16>
    %47 = vector.shape_cast %46 : vector<1x256x128xbf16> to vector<256x128xbf16>
    %c1_33 = arith.constant 1 : index
    %c1_34 = arith.constant 1 : index
    %c0_35 = arith.constant 0 : index
    %c0_36 = arith.constant 0 : index
    %48 = vector.load %arg3[%c1_33, %c1_34, %c0_35, %c0_36] : memref<3x3x128x128xbf16, #tpu.memory_space<vmem>>, vector<1x1x128x128xbf16>
    %49 = vector.shape_cast %48 : vector<1x1x128x128xbf16> to vector<128x128xbf16>
    %cst_37 = arith.constant dense<0.000000e+00> : vector<256x128xf32>
    %50 = tpu.matmul %47, %49, %cst_37 {dimension_numbers = #tpu.dot_dimension_numbers<[1], [0], [0], [1], [0, 0, 1, 1], [], []>} : vector<256x128xbf16>, vector<128x128xbf16>, vector<256x128xf32> -> vector<256x128xf32>
    %51 = arith.addf %44, %50 : vector<256x128xf32>
    %52 = arith.index_cast %0 : i32 to index
    %c20 = arith.constant 20 : index
    %c0_38 = arith.constant 0 : index
    %53 = vector.load %arg6[%52, %c20, %c0_38] : memref<2x296x128xbf16, #tpu.memory_space<vmem>>, vector<1x256x128xbf16>
    %54 = vector.shape_cast %53 : vector<1x256x128xbf16> to vector<256x128xbf16>
    %c1_39 = arith.constant 1 : index
    %c2_40 = arith.constant 2 : index
    %c0_41 = arith.constant 0 : index
    %c0_42 = arith.constant 0 : index
    %55 = vector.load %arg3[%c1_39, %c2_40, %c0_41, %c0_42] : memref<3x3x128x128xbf16, #tpu.memory_space<vmem>>, vector<1x1x128x128xbf16>
    %56 = vector.shape_cast %55 : vector<1x1x128x128xbf16> to vector<128x128xbf16>
    %cst_43 = arith.constant dense<0.000000e+00> : vector<256x128xf32>
    %57 = tpu.matmul %54, %56, %cst_43 {dimension_numbers = #tpu.dot_dimension_numbers<[1], [0], [0], [1], [0, 0, 1, 1], [], []>} : vector<256x128xbf16>, vector<128x128xbf16>, vector<256x128xf32> -> vector<256x128xf32>
    %58 = arith.addf %51, %57 : vector<256x128xf32>
    %59 = arith.index_cast %0 : i32 to index
    %c36 = arith.constant 36 : index
    %c0_44 = arith.constant 0 : index
    %60 = vector.load %arg6[%59, %c36, %c0_44] : memref<2x296x128xbf16, #tpu.memory_space<vmem>>, vector<1x256x128xbf16>
    %61 = vector.shape_cast %60 : vector<1x256x128xbf16> to vector<256x128xbf16>
    %c2_45 = arith.constant 2 : index
    %c0_46 = arith.constant 0 : index
    %c0_47 = arith.constant 0 : index
    %c0_48 = arith.constant 0 : index
    %62 = vector.load %arg3[%c2_45, %c0_46, %c0_47, %c0_48] : memref<3x3x128x128xbf16, #tpu.memory_space<vmem>>, vector<1x1x128x128xbf16>
    %63 = vector.shape_cast %62 : vector<1x1x128x128xbf16> to vector<128x128xbf16>
    %cst_49 = arith.constant dense<0.000000e+00> : vector<256x128xf32>
    %64 = tpu.matmul %61, %63, %cst_49 {dimension_numbers = #tpu.dot_dimension_numbers<[1], [0], [0], [1], [0, 0, 1, 1], [], []>} : vector<256x128xbf16>, vector<128x128xbf16>, vector<256x128xf32> -> vector<256x128xf32>
    %65 = arith.addf %58, %64 : vector<256x128xf32>
    %66 = arith.index_cast %0 : i32 to index
    %c37 = arith.constant 37 : index
    %c0_50 = arith.constant 0 : index
    %67 = vector.load %arg6[%66, %c37, %c0_50] : memref<2x296x128xbf16, #tpu.memory_space<vmem>>, vector<1x256x128xbf16>
    %68 = vector.shape_cast %67 : vector<1x256x128xbf16> to vector<256x128xbf16>
    %c2_51 = arith.constant 2 : index
    %c1_52 = arith.constant 1 : index
    %c0_53 = arith.constant 0 : index
    %c0_54 = arith.constant 0 : index
    %69 = vector.load %arg3[%c2_51, %c1_52, %c0_53, %c0_54] : memref<3x3x128x128xbf16, #tpu.memory_space<vmem>>, vector<1x1x128x128xbf16>
    %70 = vector.shape_cast %69 : vector<1x1x128x128xbf16> to vector<128x128xbf16>
    %cst_55 = arith.constant dense<0.000000e+00> : vector<256x128xf32>
    %71 = tpu.matmul %68, %70, %cst_55 {dimension_numbers = #tpu.dot_dimension_numbers<[1], [0], [0], [1], [0, 0, 1, 1], [], []>} : vector<256x128xbf16>, vector<128x128xbf16>, vector<256x128xf32> -> vector<256x128xf32>
    %72 = arith.addf %65, %71 : vector<256x128xf32>
    %73 = arith.index_cast %0 : i32 to index
    %c38 = arith.constant 38 : index
    %c0_56 = arith.constant 0 : index
    %74 = vector.load %arg6[%73, %c38, %c0_56] : memref<2x296x128xbf16, #tpu.memory_space<vmem>>, vector<1x256x128xbf16>
    %75 = vector.shape_cast %74 : vector<1x256x128xbf16> to vector<256x128xbf16>
    %c2_57 = arith.constant 2 : index
    %c2_58 = arith.constant 2 : index
    %c0_59 = arith.constant 0 : index
    %c0_60 = arith.constant 0 : index
    %76 = vector.load %arg3[%c2_57, %c2_58, %c0_59, %c0_60] : memref<3x3x128x128xbf16, #tpu.memory_space<vmem>>, vector<1x1x128x128xbf16>
    %77 = vector.shape_cast %76 : vector<1x1x128x128xbf16> to vector<128x128xbf16>
    %cst_61 = arith.constant dense<0.000000e+00> : vector<256x128xf32>
    %78 = tpu.matmul %75, %77, %cst_61 {dimension_numbers = #tpu.dot_dimension_numbers<[1], [0], [0], [1], [0, 0, 1, 1], [], []>} : vector<256x128xbf16>, vector<128x128xbf16>, vector<256x128xf32> -> vector<256x128xf32>
    %79 = arith.addf %72, %78 : vector<256x128xf32>
    %cst_62 = arith.constant 0.000000e+00 : f32
    %80 = vector.broadcast %cst_62 : f32 to vector<256x128xf32>
    %81 = arith.maximumf %79, %80 : vector<256x128xf32>
    %c0_63 = arith.constant 0 : index
    %c0_64 = arith.constant 0 : index
    %c0_65 = arith.constant 0 : index
    %82 = vector.load %arg5[%c0_63, %c0_64, %c0_65] : memref<1x256x128xf32, #tpu.memory_space<vmem>>, vector<1x256x128xf32>
    %83 = vector.shape_cast %82 : vector<1x256x128xf32> to vector<256x128xf32>
    %84 = vector.shape_cast %81 : vector<256x128xf32> to vector<1x256x128xf32>
    tpu.vector_store %arg5[%c0_63, %c0_64, %c0_65], %84 {strides = array<i32>} : memref<1x256x128xf32, #tpu.memory_space<vmem>>, vector<1x256x128xf32>,
    return
  }
  func.func @transform_1(%arg0: i32, %arg1: i32) -> (i32, i32, i32, i32) {
    %c0_i32 = arith.constant 0 : i32
    %c0_i32_0 = arith.constant 0 : i32
    %c0_i32_1 = arith.constant 0 : i32
    %c0_i32_2 = arith.constant 0 : i32
    %c0_i32_3 = arith.constant 0 : i32
    return %c0_i32, %c0_i32_0, %c0_i32_1, %c0_i32_2 : i32, i32, i32, i32
  }
  func.func @transform_2(%arg0: i32, %arg1: i32) -> (i32, i32) {
    %c0_i32 = arith.constant 0 : i32
    %c0_i32_0 = arith.constant 0 : i32
    %c0_i32_1 = arith.constant 0 : i32
    return %c0_i32, %c0_i32_0 : i32, i32
  }
  func.func @transform_3(%arg0: i32, %arg1: i32) -> (i32, i32, i32) {
    %c0_i32 = arith.constant 0 : i32
    %c0_i32_0 = arith.constant 0 : i32
    return %arg0, %arg1, %c0_i32 : i32, i32, i32
  }
}

</mosaic_0001>

<bundles_post_ra>
// kernel: up_forward.3
= control target key start
LH: loop header
LB: loop body
LE: loop exit
PB: predicated region body
PF: predicated region fallthrough
CT: control target
= control target key end

     0   :  { %v908_v1 = vmov 0   ;;  %v65_v41 = vlaneseq  ;;  %s1236_s1 = inlined_call_operand.vmem [shape: bf16[128,512], index: 1, kind: input, shape index: {}]   ;;  %s1237_s0 = inlined_call_operand.vmem [shape: bf16[128,128], index: 0, kind: input, shape index: {}]   ;;  %s1238_s2 = inlined_call_operand.vmem [shape: f32[1,512], index: 2, kind: input, shape index: {}]   ;;  %s1239_s3 = inlined_call_operand.vmem [shape: bf16[128,512], index: 3, kind: output, shape index: {}]  }
   0x1   :  { %v852_v0 = vld [vmem:[%s1236_s1 + $0x4] ss:$16 sps:$4 sm:$0xff]   ;;  %325 = vmatprep.mubr.bf16.mxu0 %v908_v1  ;;  %438 = vmatprep.mubr.bf16.mxu1 %v908_v1  ;;  %v854_v2 = vld [vmem:[%s1236_s1 + $0xc] ss:$16 sps:$4 sm:$0xff]   ;;  %v856_v3 = vld [vmem:[%s1236_s1] ss:$16 sps:$4 sm:$0xff]  }
   0x2   :  { %293 = vmatprep.subr.bf16.mxu0 %v852_v0  ;;  %v857_v4 = vld [vmem:[%s1236_s1 + $0x8] ss:$16 sps:$4 sm:$0xff]   ;;  %406 = vmatprep.subr.bf16.mxu1 %v854_v2  ;;  %v858_v5 = vld [vmem:[%s1236_s1 + $0x24] ss:$16 sps:$4 sm:$0xff]   ;;  %v860_v6 = vld [vmem:[%s1236_s1 + $0x2c] ss:$16 sps:$4 sm:$0xff]  }
   0x3   :  { %294 = vmatpush1.bf16.msra.mxu0 %v856_v3  ;;  %407 = vmatpush1.bf16.msra.mxu1 %v857_v4  ;;  %v862_v7 = vld [vmem:[%s1236_s1 + $0x20] ss:$16 sps:$4 sm:$0xff]   ;;  %v863_v8 = vld [vmem:[%s1236_s1 + $0x28] ss:$16 sps:$4 sm:$0xff]   ;;  %v864_v9 = vld [vmem:[%s1236_s1 + $0x44] ss:$16 sps:$4 sm:$0xff]  }
   0x4   :  { %295 = vmatprep.subr.bf16.mxu0 %v858_v5  ;;  %408 = vmatprep.subr.bf16.mxu1 %v860_v6  ;;  %v866_v10 = vld [vmem:[%s1236_s1 + $0x4c] ss:$16 sps:$4 sm:$0xff]   ;;  %v868_v11 = vld [vmem:[%s1236_s1 + $0x40] ss:$16 sps:$4 sm:$0xff]   ;;  %v869_v12 = vld [vmem:[%s1236_s1 + $0x48] ss:$16 sps:$4 sm:$0xff]  }
   0x5   :  { %v870_v13 = vld [vmem:[%s1236_s1 + $0x64] ss:$16 sps:$4 sm:$0xff]   ;;  %v872_v14 = vld [vmem:[%s1236_s1 + $0x6c] ss:$16 sps:$4 sm:$0xff]   ;;  %v874_v15 = vld [vmem:[%s1236_s1 + $0x60] ss:$16 sps:$4 sm:$0xff]  }
   0x6   :  { %v875_v16 = vld [vmem:[%s1236_s1 + $0x68] ss:$16 sps:$4 sm:$0xff]   ;;  %v876_v17 = vld [vmem:[%s1236_s1 + $0x84] ss:$16 sps:$4 sm:$0xff]   ;;  %v878_v18 = vld [vmem:[%s1236_s1 + $0x8c] ss:$16 sps:$4 sm:$0xff]  }
   0x7   :  { %296 = vmatpush1.bf16.msra.mxu0 %v862_v7  ;;  %409 = vmatpush1.bf16.msra.mxu1 %v863_v8  ;;  %v880_v19 = vld [vmem:[%s1236_s1 + $0x80] ss:$16 sps:$4 sm:$0xff]   ;;  %v881_v20 = vld [vmem:[%s1236_s1 + $0x88] ss:$16 sps:$4 sm:$0xff]   ;;  %v882_v21 = vld [vmem:[%s1236_s1 + $0xa4] ss:$16 sps:$4 sm:$0xff]  }
   0x8   :  { %297 = vmatprep.subr.bf16.mxu0 %v864_v9  ;;  %410 = vmatprep.subr.bf16.mxu1 %v866_v10  ;;  %v884_v22 = vld [vmem:[%s1236_s1 + $0xac] ss:$16 sps:$4 sm:$0xff]   ;;  %v886_v23 = vld [vmem:[%s1236_s1 + $0xa0] ss:$16 sps:$4 sm:$0xff]   ;;  %v887_v24 = vld [vmem:[%s1236_s1 + $0xa8] ss:$16 sps:$4 sm:$0xff]  }
   0x9   :  { %v888_v25 = vld [vmem:[%s1236_s1 + $0xc4] ss:$16 sps:$4 sm:$0xff]   ;;  %v890_v26 = vld [vmem:[%s1236_s1 + $0xcc] ss:$16 sps:$4 sm:$0xff]   ;;  %v892_v27 = vld [vmem:[%s1236_s1 + $0xc0] ss:$16 sps:$4 sm:$0xff]  }
   0xa   :  { %v893_v28 = vld [vmem:[%s1236_s1 + $0xc8] ss:$16 sps:$4 sm:$0xff]   ;;  %v894_v29 = vld [vmem:[%s1236_s1 + $0xe4] ss:$16 sps:$4 sm:$0xff]   ;;  %v896_v30 = vld [vmem:[%s1236_s1 + $0xec] ss:$16 sps:$4 sm:$0xff]  }
   0xb   :  { %298 = vmatpush1.bf16.msra.mxu0 %v868_v11  ;;  %411 = vmatpush1.bf16.msra.mxu1 %v869_v12  ;;  %v898_v31 = vld [vmem:[%s1236_s1 + $0xe0] ss:$16 sps:$4 sm:$0xff]   ;;  %v899_v32 = vld [vmem:[%s1236_s1 + $0xe8] ss:$16 sps:$4 sm:$0xff]   ;;  %v66_v42 = vshrl.u32 %v65_v41, 7 }
   0xc   :  { %299 = vmatprep.subr.bf16.mxu0 %v870_v13  ;;  %412 = vmatprep.subr.bf16.mxu1 %v872_v14  ;;  %v900_v33 = vld [vmem:[%s1237_s0] sm:$0xff]   ;;  %v901_v34 = vld [vmem:[%s1237_s0 + $0x8] sm:$0xff]   ;;  %v902_v35 = vld [vmem:[%s1237_s0 + $0x10] sm:$0xff]  }
   0xd   :  { %v903_v36 = vld [vmem:[%s1237_s0 + $0x18] sm:$0xff]   ;;  %v904_v37 = vld [vmem:[%s1237_s0 + $0x20] sm:$0xff]   ;;  %v905_v38 = vld [vmem:[%s1237_s0 + $0x28] sm:$0xff]   ;;  %v67_v43 = vsub.s32 0, %v66_v42  ;;  %v75_v44 = vsub.s32 2, %v66_v42  ;;  %v71_v46 = vsub.s32 1, %v66_v42 }
   0xe   :  { %v906_v39 = vld [vmem:[%s1237_s0 + $0x30] sm:$0xff]   ;;  %v907_v40 = vld [vmem:[%s1237_s0 + $0x38] sm:$0xff]   ;;  %v63_v45 = vld [vmem:[%s1238_s2] sm:$0xf]  ;;  %v79_v47 = vsub.s32 3, %v66_v42 }
   0xf   :  { %300 = vmatpush1.bf16.msra.mxu0 %v874_v15  ;;  %413 = vmatpush1.bf16.msra.mxu1 %v875_v16  ;;  %v1068_v48 = vrot.slane %v63_v45, %v67_v43  ;;  %v1070_v49 = vrot.slane %v63_v45, %v75_v44  ;;  %v1072_v50 = vrot.slane %v63_v45, %v71_v46 }
  0x10   :  { %301 = vmatprep.subr.bf16.mxu0 %v876_v17  ;;  %414 = vmatprep.subr.bf16.mxu1 %v878_v18  ;;  %v1074_v51 = vrot.slane %v63_v45, %v79_v47 }
  0x13   :  { %302 = vmatpush1.bf16.msra.mxu0 %v880_v19  ;;  %415 = vmatpush1.bf16.msra.mxu1 %v881_v20 }
  0x14   :  { %303 = vmatprep.subr.bf16.mxu0 %v882_v21  ;;  %416 = vmatprep.subr.bf16.mxu1 %v884_v22 }
  0x17   :  { %304 = vmatpush1.bf16.msra.mxu0 %v886_v23  ;;  %417 = vmatpush1.bf16.msra.mxu1 %v887_v24 }
  0x18   :  { %305 = vmatprep.subr.bf16.mxu0 %v888_v25  ;;  %418 = vmatprep.subr.bf16.mxu1 %v890_v26 }
  0x1b   :  { %306 = vmatpush1.bf16.msra.mxu0 %v892_v27  ;;  %419 = vmatpush1.bf16.msra.mxu1 %v893_v28 }
  0x1c   :  { %307 = vmatprep.subr.bf16.mxu0 %v894_v29  ;;  %420 = vmatprep.subr.bf16.mxu1 %v896_v30 }
  0x1f   :  { %308 = vmatpush1.bf16.msra.mxu0 %v898_v31  ;;  %421 = vmatpush1.bf16.msra.mxu1 %v899_v32 }
  0x22   :  { %326 = vmatmul.mubr.bf16.vlgmr.msra.gmra.mrb[0].mxu0 %v900_v33  ;;  %439 = vmatmul.mubr.bf16.vlgmr.msra.gmra.mrb[0].mxu1 %v900_v33 }
  0x23   :  { %335 = vmatprep.mubr.bf16.mxu0 %v908_v1  ;;  %448 = vmatprep.mubr.bf16.mxu1 %v908_v1 }
  0x2a   :  { %336 = vmatmul.mubr.bf16.gmra.mrb[4].mxu0 %v901_v34  ;;  %449 = vmatmul.mubr.bf16.gmra.mrb[4].mxu1 %v901_v34 }
  0x2b   :  { %345 = vmatprep.mubr.bf16.mxu0 %v908_v1  ;;  %458 = vmatprep.mubr.bf16.mxu1 %v908_v1 }
  0x32   :  { %346 = vmatmul.mubr.bf16.gmra.mrb[8].mxu0 %v902_v35  ;;  %459 = vmatmul.mubr.bf16.gmra.mrb[8].mxu1 %v902_v35 }
  0x33   :  { %355 = vmatprep.mubr.bf16.mxu0 %v908_v1  ;;  %468 = vmatprep.mubr.bf16.mxu1 %v908_v1 }
  0x3a   :  { %356 = vmatmul.mubr.bf16.gmra.mrb[12].mxu0 %v903_v36  ;;  %469 = vmatmul.mubr.bf16.gmra.mrb[12].mxu1 %v903_v36 }
  0x3b   :  { %365 = vmatprep.mubr.bf16.mxu0 %v908_v1  ;;  %478 = vmatprep.mubr.bf16.mxu1 %v908_v1 }
  0x42   :  { %366 = vmatmul.mubr.bf16.gmra.mrb[16].mxu0 %v904_v37  ;;  %479 = vmatmul.mubr.bf16.gmra.mrb[16].mxu1 %v904_v37 }
  0x43   :  { %375 = vmatprep.mubr.bf16.mxu0 %v908_v1  ;;  %488 = vmatprep.mubr.bf16.mxu1 %v908_v1 }
  0x4a   :  { %376 = vmatmul.mubr.bf16.gmra.mrb[20].mxu0 %v905_v38  ;;  %489 = vmatmul.mubr.bf16.gmra.mrb[20].mxu1 %v905_v38 }
  0x4b   :  { %385 = vmatprep.mubr.bf16.mxu0 %v908_v1  ;;  %498 = vmatprep.mubr.bf16.mxu1 %v908_v1 }
  0x52   :  { %386 = vmatmul.mubr.bf16.gmra.mrb[24].mxu0 %v906_v39  ;;  %499 = vmatmul.mubr.bf16.gmra.mrb[24].mxu1 %v906_v39 }
  0x53   :  { %395 = vmatprep.mubr.bf16.mxu0 %v908_v1  ;;  %508 = vmatprep.mubr.bf16.mxu1 %v908_v1 }
  0x5a   :  { %396 = vmatmul.mubr.bf16.gmra.mrb[28].mxu0 %v907_v40  ;;  %509 = vmatmul.mubr.bf16.gmra.mrb[28].mxu1 %v907_v40 }
  0xf5   :  { %v327_v52 = vpop.f32.mrb[0].mxu0  ;;  %v440_v53 = vpop.f32.mrb[0].mxu1 }
  0xf6   :  { %v328_v54 = vadd.f32 %v327_v52, %v1068_v48  ;;  %v441_v55 = vadd.f32 %v440_v53, %v1070_v49  ;;  %v329_v56 = vpop.f32.mrb[1].mxu0  ;;  %v442_v57 = vpop.f32.mrb[1].mxu1 }
  0xf7   :  { %v330_v58 = vadd.f32 %v329_v56, %v1072_v50  ;;  %v443_v59 = vadd.f32 %v442_v57, %v1074_v51  ;;  %v331_v60 = vpop.f32.mrb[2].mxu0  ;;  %v444_v61 = vpop.f32.mrb[2].mxu1 }
  0xf8   :  { %v332_v62 = vadd.f32 %v331_v60, %v1068_v48  ;;  %v445_v63 = vadd.f32 %v444_v61, %v1070_v49  ;;  %v333_v0 = vpop.f32.mrb[3].mxu0  ;;  %v446_v1 = vpop.f32.mrb[3].mxu1 }
  0xf9   :  { %v819_v2 = vpack.c.bf16 %v330_v58, %v328_v54  ;;  %v820_v3 = vpack.c.bf16 %v443_v59, %v441_v55  ;;  %v334_v4 = vadd.f32 %v333_v0, %v1072_v50  ;;  %v447_v5 = vadd.f32 %v446_v1, %v1074_v51 }
  0xfb   :  { %711 = vst [vmem:[%s1239_s3] sm:$0xff] %v819_v2  ;;  %712 = vst [vmem:[%s1239_s3 + $0x8] sm:$0xff] %v820_v3  ;;  %v821_v6 = vpack.c.bf16 %v334_v4, %v332_v62  ;;  %v822_v7 = vpack.c.bf16 %v447_v5, %v445_v63 }
  0xfd   :  { %713 = vst [vmem:[%s1239_s3 + $0x10] sm:$0xff] %v821_v6  ;;  %714 = vst [vmem:[%s1239_s3 + $0x18] sm:$0xff] %v822_v7  ;;  %v337_v8 = vpop.f32.mrb[4].mxu0  ;;  %v450_v9 = vpop.f32.mrb[4].mxu1 }
  0xfe   :  { %v338_v10 = vadd.f32 %v337_v8, %v1068_v48  ;;  %v451_v11 = vadd.f32 %v450_v9, %v1070_v49  ;;  %v339_v12 = vpop.f32.mrb[5].mxu0  ;;  %v452_v13 = vpop.f32.mrb[5].mxu1 }
  0xff   :  { %v340_v14 = vadd.f32 %v339_v12, %v1072_v50  ;;  %v453_v15 = vadd.f32 %v452_v13, %v1074_v51  ;;  %v341_v16 = vpop.f32.mrb[6].mxu0  ;;  %v454_v17 = vpop.f32.mrb[6].mxu1 }
 0x100   :  { %v342_v18 = vadd.f32 %v341_v16, %v1068_v48  ;;  %v455_v19 = vadd.f32 %v454_v17, %v1070_v49  ;;  %v343_v20 = vpop.f32.mrb[7].mxu0  ;;  %v456_v21 = vpop.f32.mrb[7].mxu1 }
 0x101   :  { %v823_v22 = vpack.c.bf16 %v340_v14, %v338_v10  ;;  %v824_v23 = vpack.c.bf16 %v453_v15, %v451_v11  ;;  %v344_v24 = vadd.f32 %v343_v20, %v1072_v50  ;;  %v457_v25 = vadd.f32 %v456_v21, %v1074_v51 }
 0x103   :  { %715 = vst [vmem:[%s1239_s3 + $0x20] sm:$0xff] %v823_v22  ;;  %716 = vst [vmem:[%s1239_s3 + $0x28] sm:$0xff] %v824_v23  ;;  %v825_v26 = vpack.c.bf16 %v344_v24, %v342_v18  ;;  %v826_v27 = vpack.c.bf16 %v457_v25, %v455_v19 }
 0x105   :  { %717 = vst [vmem:[%s1239_s3 + $0x30] sm:$0xff] %v825_v26  ;;  %718 = vst [vmem:[%s1239_s3 + $0x38] sm:$0xff] %v826_v27  ;;  %v347_v28 = vpop.f32.mrb[8].mxu0  ;;  %v460_v29 = vpop.f32.mrb[8].mxu1 }
 0x106   :  { %v348_v30 = vadd.f32 %v347_v28, %v1068_v48  ;;  %v461_v31 = vadd.f32 %v460_v29, %v1070_v49  ;;  %v349_v32 = vpop.f32.mrb[9].mxu0  ;;  %v462_v33 = vpop.f32.mrb[9].mxu1 }
 0x107   :  { %v350_v34 = vadd.f32 %v349_v32, %v1072_v50  ;;  %v463_v35 = vadd.f32 %v462_v33, %v1074_v51  ;;  %v351_v36 = vpop.f32.mrb[10].mxu0  ;;  %v464_v37 = vpop.f32.mrb[10].mxu1 }
 0x108   :  { %v352_v38 = vadd.f32 %v351_v36, %v1068_v48  ;;  %v465_v39 = vadd.f32 %v464_v37, %v1070_v49  ;;  %v353_v40 = vpop.f32.mrb[11].mxu0  ;;  %v466_v41 = vpop.f32.mrb[11].mxu1 }
 0x109   :  { %v827_v42 = vpack.c.bf16 %v350_v34, %v348_v30  ;;  %v828_v43 = vpack.c.bf16 %v463_v35, %v461_v31  ;;  %v354_v44 = vadd.f32 %v353_v40, %v1072_v50  ;;  %v467_v45 = vadd.f32 %v466_v41, %v1074_v51 }
 0x10b   :  { %719 = vst [vmem:[%s1239_s3 + $0x40] sm:$0xff] %v827_v42  ;;  %720 = vst [vmem:[%s1239_s3 + $0x48] sm:$0xff] %v828_v43  ;;  %v829_v46 = vpack.c.bf16 %v354_v44, %v352_v38  ;;  %v830_v47 = vpack.c.bf16 %v467_v45, %v465_v39 }
 0x10d   :  { %721 = vst [vmem:[%s1239_s3 + $0x50] sm:$0xff] %v829_v46  ;;  %722 = vst [vmem:[%s1239_s3 + $0x58] sm:$0xff] %v830_v47  ;;  %v357_v52 = vpop.f32.mrb[12].mxu0  ;;  %v470_v53 = vpop.f32.mrb[12].mxu1 }
 0x10e   :  { %v358_v54 = vadd.f32 %v357_v52, %v1068_v48  ;;  %v471_v55 = vadd.f32 %v470_v53, %v1070_v49  ;;  %v359_v56 = vpop.f32.mrb[13].mxu0  ;;  %v472_v57 = vpop.f32.mrb[13].mxu1 }
 0x10f   :  { %v360_v58 = vadd.f32 %v359_v56, %v1072_v50  ;;  %v473_v59 = vadd.f32 %v472_v57, %v1074_v51  ;;  %v361_v60 = vpop.f32.mrb[14].mxu0  ;;  %v474_v61 = vpop.f32.mrb[14].mxu1 }
 0x110   :  { %v362_v62 = vadd.f32 %v361_v60, %v1068_v48  ;;  %v475_v63 = vadd.f32 %v474_v61, %v1070_v49  ;;  %v363_v0 = vpop.f32.mrb[15].mxu0  ;;  %v476_v1 = vpop.f32.mrb[15].mxu1 }
 0x111   :  { %v831_v2 = vpack.c.bf16 %v360_v58, %v358_v54  ;;  %v832_v3 = vpack.c.bf16 %v473_v59, %v471_v55  ;;  %v364_v4 = vadd.f32 %v363_v0, %v1072_v50  ;;  %v477_v5 = vadd.f32 %v476_v1, %v1074_v51 }
 0x113   :  { %723 = vst [vmem:[%s1239_s3 + $0x60] sm:$0xff] %v831_v2  ;;  %724 = vst [vmem:[%s1239_s3 + $0x68] sm:$0xff] %v832_v3  ;;  %v833_v6 = vpack.c.bf16 %v364_v4, %v362_v62  ;;  %v834_v7 = vpack.c.bf16 %v477_v5, %v475_v63 }
 0x115   :  { %725 = vst [vmem:[%s1239_s3 + $0x70] sm:$0xff] %v833_v6  ;;  %726 = vst [vmem:[%s1239_s3 + $0x78] sm:$0xff] %v834_v7  ;;  %v367_v8 = vpop.f32.mrb[16].mxu0  ;;  %v480_v9 = vpop.f32.mrb[16].mxu1 }
 0x116   :  { %v368_v10 = vadd.f32 %v367_v8, %v1068_v48  ;;  %v481_v11 = vadd.f32 %v480_v9, %v1070_v49  ;;  %v369_v12 = vpop.f32.mrb[17].mxu0  ;;  %v482_v13 = vpop.f32.mrb[17].mxu1 }
 0x117   :  { %v370_v14 = vadd.f32 %v369_v12, %v1072_v50  ;;  %v483_v15 = vadd.f32 %v482_v13, %v1074_v51  ;;  %v371_v16 = vpop.f32.mrb[18].mxu0  ;;  %v484_v17 = vpop.f32.mrb[18].mxu1 }
 0x118   :  { %v372_v18 = vadd.f32 %v371_v16, %v1068_v48  ;;  %v485_v19 = vadd.f32 %v484_v17, %v1070_v49  ;;  %v373_v20 = vpop.f32.mrb[19].mxu0  ;;  %v486_v21 = vpop.f32.mrb[19].mxu1 }
 0x119   :  { %v835_v22 = vpack.c.bf16 %v370_v14, %v368_v10  ;;  %v836_v23 = vpack.c.bf16 %v483_v15, %v481_v11  ;;  %v374_v24 = vadd.f32 %v373_v20, %v1072_v50  ;;  %v487_v25 = vadd.f32 %v486_v21, %v1074_v51 }
 0x11b   :  { %727 = vst [vmem:[%s1239_s3 + $0x80] sm:$0xff] %v835_v22  ;;  %728 = vst [vmem:[%s1239_s3 + $0x88] sm:$0xff] %v836_v23  ;;  %v837_v26 = vpack.c.bf16 %v374_v24, %v372_v18  ;;  %v838_v27 = vpack.c.bf16 %v487_v25, %v485_v19 }
 0x11d   :  { %729 = vst [vmem:[%s1239_s3 + $0x90] sm:$0xff] %v837_v26  ;;  %730 = vst [vmem:[%s1239_s3 + $0x98] sm:$0xff] %v838_v27  ;;  %v377_v28 = vpop.f32.mrb[20].mxu0  ;;  %v490_v29 = vpop.f32.mrb[20].mxu1 }
 0x11e   :  { %v378_v30 = vadd.f32 %v377_v28, %v1068_v48  ;;  %v491_v31 = vadd.f32 %v490_v29, %v1070_v49  ;;  %v379_v32 = vpop.f32.mrb[21].mxu0  ;;  %v492_v33 = vpop.f32.mrb[21].mxu1 }
 0x11f   :  { %v380_v34 = vadd.f32 %v379_v32, %v1072_v50  ;;  %v493_v35 = vadd.f32 %v492_v33, %v1074_v51  ;;  %v381_v36 = vpop.f32.mrb[22].mxu0  ;;  %v494_v37 = vpop.f32.mrb[22].mxu1 }
 0x120   :  { %v382_v38 = vadd.f32 %v381_v36, %v1068_v48  ;;  %v495_v39 = vadd.f32 %v494_v37, %v1070_v49  ;;  %v383_v40 = vpop.f32.mrb[23].mxu0  ;;  %v496_v41 = vpop.f32.mrb[23].mxu1 }
 0x121   :  { %v839_v42 = vpack.c.bf16 %v380_v34, %v378_v30  ;;  %v840_v43 = vpack.c.bf16 %v493_v35, %v491_v31  ;;  %v384_v44 = vadd.f32 %v383_v40, %v1072_v50  ;;  %v497_v45 = vadd.f32 %v496_v41, %v1074_v51 }
 0x123   :  { %731 = vst [vmem:[%s1239_s3 + $0xa0] sm:$0xff] %v839_v42  ;;  %732 = vst [vmem:[%s1239_s3 + $0xa8] sm:$0xff] %v840_v43  ;;  %v841_v46 = vpack.c.bf16 %v384_v44, %v382_v38  ;;  %v842_v47 = vpack.c.bf16 %v497_v45, %v495_v39 }
 0x125   :  { %733 = vst [vmem:[%s1239_s3 + $0xb0] sm:$0xff] %v841_v46  ;;  %734 = vst [vmem:[%s1239_s3 + $0xb8] sm:$0xff] %v842_v47  ;;  %v387_v52 = vpop.f32.mrb[24].mxu0  ;;  %v500_v53 = vpop.f32.mrb[24].mxu1 }
 0x126   :  { %v388_v54 = vadd.f32 %v387_v52, %v1068_v48  ;;  %v501_v55 = vadd.f32 %v500_v53, %v1070_v49  ;;  %v389_v56 = vpop.f32.mrb[25].mxu0  ;;  %v502_v57 = vpop.f32.mrb[25].mxu1 }
 0x127   :  { %v390_v58 = vadd.f32 %v389_v56, %v1072_v50  ;;  %v503_v59 = vadd.f32 %v502_v57, %v1074_v51  ;;  %v391_v60 = vpop.f32.mrb[26].mxu0  ;;  %v504_v61 = vpop.f32.mrb[26].mxu1 }
 0x128   :  { %v392_v62 = vadd.f32 %v391_v60, %v1068_v48  ;;  %v505_v63 = vadd.f32 %v504_v61, %v1070_v49  ;;  %v393_v0 = vpop.f32.mrb[27].mxu0  ;;  %v506_v1 = vpop.f32.mrb[27].mxu1 }
 0x129   :  { %v843_v2 = vpack.c.bf16 %v390_v58, %v388_v54  ;;  %v844_v3 = vpack.c.bf16 %v503_v59, %v501_v55  ;;  %v394_v4 = vadd.f32 %v393_v0, %v1072_v50  ;;  %v507_v5 = vadd.f32 %v506_v1, %v1074_v51 }
 0x12b   :  { %735 = vst [vmem:[%s1239_s3 + $0xc0] sm:$0xff] %v843_v2  ;;  %736 = vst [vmem:[%s1239_s3 + $0xc8] sm:$0xff] %v844_v3  ;;  %v845_v6 = vpack.c.bf16 %v394_v4, %v392_v62  ;;  %v846_v7 = vpack.c.bf16 %v507_v5, %v505_v63 }
 0x12d   :  { %737 = vst [vmem:[%s1239_s3 + $0xd0] sm:$0xff] %v845_v6  ;;  %738 = vst [vmem:[%s1239_s3 + $0xd8] sm:$0xff] %v846_v7  ;;  %v397_v8 = vpop.f32.mrb[28].mxu0  ;;  %v510_v9 = vpop.f32.mrb[28].mxu1 }
 0x12e   :  { %v398_v10 = vadd.f32 %v397_v8, %v1068_v48  ;;  %v511_v11 = vadd.f32 %v510_v9, %v1070_v49  ;;  %v399_v12 = vpop.f32.mrb[29].mxu0  ;;  %v512_v13 = vpop.f32.mrb[29].mxu1 }
 0x12f   :  { %v400_v14 = vadd.f32 %v399_v12, %v1072_v50  ;;  %v513_v15 = vadd.f32 %v512_v13, %v1074_v51  ;;  %v401_v16 = vpop.f32.mrb[30].mxu0  ;;  %v514_v17 = vpop.f32.mrb[30].mxu1 }
 0x130   :  { %v402_v18 = vadd.f32 %v401_v16, %v1068_v48  ;;  %v515_v19 = vadd.f32 %v514_v17, %v1070_v49  ;;  %v403_v20 = vpop.f32.mrb[31].mxu0  ;;  %v516_v21 = vpop.f32.mrb[31].mxu1 }
 0x131   :  { %v847_v22 = vpack.c.bf16 %v400_v14, %v398_v10  ;;  %v848_v23 = vpack.c.bf16 %v513_v15, %v511_v11  ;;  %v404_v24 = vadd.f32 %v403_v20, %v1072_v50  ;;  %v517_v25 = vadd.f32 %v516_v21, %v1074_v51 }
 0x133   :  { %739 = vst [vmem:[%s1239_s3 + $0xe0] sm:$0xff] %v847_v22  ;;  %740 = vst [vmem:[%s1239_s3 + $0xe8] sm:$0xff] %v848_v23  ;;  %v849_v26 = vpack.c.bf16 %v404_v24, %v402_v18  ;;  %v850_v48 = vpack.c.bf16 %v517_v25, %v515_v19 }
 0x135   :  { %741 = vst [vmem:[%s1239_s3 + $0xf0] sm:$0xff] %v849_v26  ;;  %742 = vst [vmem:[%s1239_s3 + $0xf8] sm:$0xff] %v850_v48 }

// kernel: up_forward.5
= control target key start
LH: loop header
LB: loop body
LE: loop exit
PB: predicated region body
PF: predicated region fallthrough
CT: control target
= control target key end

     0   :  { %s5595_s12 = smov 0   ;;  %s5597_s13 = smov 0   ;;  %s6636_s0 = inlined_call_operand.vmem [shape: bf16[2,552,128], index: 0, kind: input, shape index: {}]   ;;  %s6637_s1 = inlined_call_operand.vmem [shape: bf16[3,3,128,128], index: 1, kind: input, shape index: {}]   ;;  %s6638_s2 = inlined_call_operand.vmem [shape: f32[1,128], index: 2, kind: input, shape index: {}]   ;;  %s6639_s3 = inlined_call_operand.vmem [shape: f32[2,512,128], index: 3, kind: output, shape index: {}]  }
   0x1   :  { %s5599_s14 = smov 0   ;;  %s5601_s15 = smov 0  }
   0x2   :  { %s5603_s16 = smov 0  }
   0x3 LB: > { %s22_s17 = sadd.s32 1, %s5565_s14  ;;  %s25_s18 = sadd.s32 1, %s5569_s15  ;;  %s5573_s16 = sphi %s5603_s16, %s13_s16   ;;  %s5569_s15 = sphi %s5601_s15, %s6643_s15   ;;  %s5565_s14 = sphi %s5599_s14, %s6642_s14   ;;  %s5561_s13 = sphi %s5597_s13, %s6641_s13   ;;  %s5557_s12 = sphi %s5595_s12, %s6640_s12  }
   0x4   : > { %p23_p0 = scmp.ge.s32.totalorder %s22_s17, 2  ;;  %p4077_p1 = scmp.ge.s32.totalorder %s5573_s16, 1 }
   0x5   : > { %p117_p2 = scmp.lt.s32.totalorder %s5573_s16, 5 }
   0x6   : > { %s6645_s17 = smov (%p23_p0, %s22_s17), 0  ;;  %s6647_s18 = smov (!%p23_p0, %s25_s18), %s5569_s15 }
   0x7   : > { %p118_p3 = pnand %p4077_p1, %p117_p2  ;;  %p27_p4 = scmp.ge.s32.totalorder %s6647_s18, 2 }
   0x8   : > { %s4078_s19 = sshll.u32 (!%p118_p3), %s5557_s12, 5  ;;  %p139_p5 = scmp.lt.s32.totalorder (!%p118_p3), %s5561_s13, 1 }
   0x9   : > { %s6649_s18 = smov (%p27_p4, %s6647_s18), 0  ;;  %121 = sbr.rel (%p118_p3) target bundleno = 593 (0x251), region = 28 }
   0xa   : > { %p141_p6 = scmp.lt.s32.totalorder (!%p118_p3), %s4078_s19, 63  ;;  %s5632_s20 = sand.u32 (!%p118_p3), 1, %s5557_s12 }
   0xb   : > { %p4081_p7 = scmp.ne.s32.totalorder (!%p118_p3), %s5557_s12, 0 }
  0x10   : > { %s140_s21 = scalar_select %p139_p5, %s5561_s13, 1 }
  0x11   : > { %s6651_s19 = smov (!%p141_p6, %s4078_s19), 63  ;;  %153 = sbr.rel (%p4081_p7) target bundleno = 33 (0x21), region = 32 }
  0x12   : > { %s4079_s22 = sshll.u32 %s140_s21, 6  ;;  %s4368_s28 = smul.u32 (!%p4081_p7), 276, %s5561_s13 }
  0x13   : > { %s144_s23 = sadd.s32 %s4079_s22, %s6651_s19 }
  0x14   : > { %s4080_s24 = sshll.u32 %s144_s23, 3  ;;  %s5645_s4 = scalar_lea.vmem (!%p4081_p7), %s6636_s0, %s4368_s28 }
  0x15   : > { %s5638_s27 = scalar_lea.vmem %s6639_s3, %s4080_s24  ;;  %v194_v0 = vld [vmem:[%s5645_s4] sm:$0xff] (!%p4081_p7)  ;;  %v196_v1 = vld [vmem:[%s5645_s4 + $0x8] sm:$0xff] (!%p4081_p7)  ;;  %v198_v2 = vld [vmem:[%s5645_s4 + $0x10] sm:$0xff] (!%p4081_p7) }
  0x16   : > { %195 = vst [vmem:[#allocation2] sm:$0xff] (!%p4081_p7), %v194_v0  ;;  %197 = vst [vmem:[#allocation2 + $0x8] sm:$0xff] (!%p4081_p7), %v196_v1  ;;  %v200_v3 = vld [vmem:[%s5645_s4 + $0x18] sm:$0xff] (!%p4081_p7)  ;;  %v202_v4 = vld [vmem:[%s5645_s4 + $0x20] sm:$0xff] (!%p4081_p7) }
  0x17   : > { %199 = vst [vmem:[#allocation2 + $0x10] sm:$0xff] (!%p4081_p7), %v198_v2  ;;  %v204_v5 = vld [vmem:[%s5645_s4 + $0x28] sm:$0xff] (!%p4081_p7)  ;;  %201 = vst [vmem:[#allocation2 + $0x18] sm:$0xff] (!%p4081_p7), %v200_v3  ;;  %v206_v6 = vld [vmem:[%s5645_s4 + $0x30] sm:$0xff] (!%p4081_p7) }
  0x18   : > { %203 = vst [vmem:[#allocation2 + $0x20] sm:$0xff] %v202_v4  ;;  %205 = vst [vmem:[#allocation2 + $0x28] sm:$0xff] %v204_v5  ;;  %v208_v7 = vld [vmem:[%s5645_s4 + $0x38] sm:$0xff]  ;;  %v210_v8 = vld [vmem:[%s5645_s4 + $0x40] sm:$0xff] }
  0x19   : > { %207 = vst [vmem:[#allocation2 + $0x30] sm:$0xff] %v206_v6  ;;  %209 = vst [vmem:[#allocation2 + $0x38] sm:$0xff] %v208_v7  ;;  %v212_v9 = vld [vmem:[%s5645_s4 + $0x48] sm:$0xff]  ;;  %v214_v10 = vld [vmem:[%s5645_s4 + $0x50] sm:$0xff] }
  0x1a   : > { %211 = vst [vmem:[#allocation2 + $0x40] sm:$0xff] %v210_v8  ;;  %v216_v11 = vld [vmem:[%s5645_s4 + $0x58] sm:$0xff]  ;;  %213 = vst [vmem:[#allocation2 + $0x48] sm:$0xff] %v212_v9  ;;  %v218_v12 = vld [vmem:[%s5645_s4 + $0x60] sm:$0xff] }
  0x1b   : > { %215 = vst [vmem:[#allocation2 + $0x50] sm:$0xff] %v214_v10  ;;  %217 = vst [vmem:[#allocation2 + $0x58] sm:$0xff] %v216_v11  ;;  %v220_v13 = vld [vmem:[%s5645_s4 + $0x68] sm:$0xff]  ;;  %v222_v14 = vld [vmem:[%s5645_s4 + $0x70] sm:$0xff] }
  0x1c   : > { %219 = vst [vmem:[#allocation2 + $0x60] sm:$0xff] %v218_v12  ;;  %221 = vst [vmem:[#allocation2 + $0x68] sm:$0xff] %v220_v13  ;;  %v224_v15 = vld [vmem:[%s5645_s4 + $0x78] sm:$0xff]  ;;  %v226_v16 = vld [vmem:[%s5645_s4 + $0x80] sm:$0xff] }
  0x1d   : > { %223 = vst [vmem:[#allocation2 + $0x70] sm:$0xff] %v222_v14  ;;  %v228_v17 = vld [vmem:[%s5645_s4 + $0x88] sm:$0xff]  ;;  %225 = vst [vmem:[#allocation2 + $0x78] sm:$0xff] %v224_v15  ;;  %v4083_v18 = vld [vmem:[%s5645_s4 + $0x90] sm:$0xf] }
  0x1e   : > { %227 = vst [vmem:[#allocation2 + $0x80] sm:$0xff] %v226_v16  ;;  %229 = vst [vmem:[#allocation2 + $0x88] sm:$0xff] %v228_v17 }
  0x1f   : > { %240 = vst [vmem:[#allocation2 + $0x90] sm:$0xf] %v4083_v18 }
  0x20   : > { %244 = vsyncadd [#allocation3], 2368 }
  0x21 PF: > { %s245_s5 = sadd.s32 1, %s5557_s12 }
  0x22   : > { %p4084_p8 = scmp.ge.s32.totalorder %s245_s5, 2 }
  0x23   : > { %s250_s6 = ssub.s32 (!%p4084_p8), 1, %s5632_s20  ;;  %s4369_s7 = sshll.u32 (!%p4084_p8), %s5557_s12, 8 }
  0x24   : > { %249 = sbr.rel (%p4084_p8) target bundleno = 54 (0x36), region = 73  ;;  %s4370_s8 = sadd.s32 (!%p4084_p8), 256, %s4369_s7 }
  0x25   : > { %s254_s9 = smul.u32 (!%p4084_p8), 69, %s5561_s13  ;;  %s252_s10 = sshra.s32 (!%p4084_p8), %s4370_s8, 3 }
  0x26   : > { %s4371_s11 = smul.u32 (!%p4084_p8), 148, %s250_s6  ;;  %s261_s13 = scalar_lea.sflag (!%p4084_p8), [#allocation3], %s250_s6 }
  0x27   : > { %s255_s19 = sadd.s32 (!%p4084_p8), %s254_s9, %s252_s10 }
  0x28   : > { %s4086_s21 = sshll.u32 (!%p4084_p8), %s255_s19, 2  ;;  %s5680_s12 = scalar_lea.vmem (!%p4084_p8), [#allocation2], %s4371_s11 }
  0x29   : > { %s5675_s24 = scalar_lea.vmem (!%p4084_p8), %s6636_s0, %s4086_s21 }
  0x2a   : > { %v299_v19 = vld [vmem:[%s5675_s24] sm:$0xff] (!%p4084_p8)  ;;  %v301_v20 = vld [vmem:[%s5675_s24 + $0x8] sm:$0xff] (!%p4084_p8)  ;;  %v303_v21 = vld [vmem:[%s5675_s24 + $0x10] sm:$0xff] (!%p4084_p8) }
  0x2b   : > { %300 = vst [vmem:[%s5680_s12] sm:$0xff] %v299_v19  ;;  %302 = vst [vmem:[%s5680_s12 + $0x8] sm:$0xff] %v301_v20  ;;  %v305_v22 = vld [vmem:[%s5675_s24 + $0x18] sm:$0xff]  ;;  %v307_v23 = vld [vmem:[%s5675_s24 + $0x20] sm:$0xff] }
  0x2c   : > { %304 = vst [vmem:[%s5680_s12 + $0x10] sm:$0xff] %v303_v21  ;;  %v309_v24 = vld [vmem:[%s5675_s24 + $0x28] sm:$0xff]  ;;  %306 = vst [vmem:[%s5680_s12 + $0x18] sm:$0xff] %v305_v22  ;;  %v311_v25 = vld [vmem:[%s5675_s24 + $0x30] sm:$0xff] }
  0x2d   : > { %308 = vst [vmem:[%s5680_s12 + $0x20] sm:$0xff] %v307_v23  ;;  %310 = vst [vmem:[%s5680_s12 + $0x28] sm:$0xff] %v309_v24  ;;  %v313_v26 = vld [vmem:[%s5675_s24 + $0x38] sm:$0xff]  ;;  %v315_v27 = vld [vmem:[%s5675_s24 + $0x40] sm:$0xff] }
  0x2e   : > { %312 = vst [vmem:[%s5680_s12 + $0x30] sm:$0xff] %v311_v25  ;;  %314 = vst [vmem:[%s5680_s12 + $0x38] sm:$0xff] %v313_v26  ;;  %v317_v28 = vld [vmem:[%s5675_s24 + $0x48] sm:$0xff]  ;;  %v319_v29 = vld [vmem:[%s5675_s24 + $0x50] sm:$0xff] }
  0x2f   : > { %316 = vst [vmem:[%s5680_s12 + $0x40] sm:$0xff] %v315_v27  ;;  %v321_v30 = vld [vmem:[%s5675_s24 + $0x58] sm:$0xff]  ;;  %318 = vst [vmem:[%s5680_s12 + $0x48] sm:$0xff] %v317_v28  ;;  %v323_v31 = vld [vmem:[%s5675_s24 + $0x60] sm:$0xff] }
  0x30   : > { %320 = vst [vmem:[%s5680_s12 + $0x50] sm:$0xff] %v319_v29  ;;  %322 = vst [vmem:[%s5680_s12 + $0x58] sm:$0xff] %v321_v30  ;;  %v325_v32 = vld [vmem:[%s5675_s24 + $0x68] sm:$0xff]  ;;  %v327_v33 = vld [vmem:[%s5675_s24 + $0x70] sm:$0xff] }
  0x31   : > { %324 = vst [vmem:[%s5680_s12 + $0x60] sm:$0xff] %v323_v31  ;;  %326 = vst [vmem:[%s5680_s12 + $0x68] sm:$0xff] %v325_v32  ;;  %v329_v34 = vld [vmem:[%s5675_s24 + $0x78] sm:$0xff]  ;;  %v331_v35 = vld [vmem:[%s5675_s24 + $0x80] sm:$0xff] }
  0x32   : > { %328 = vst [vmem:[%s5680_s12 + $0x70] sm:$0xff] %v327_v33  ;;  %v333_v36 = vld [vmem:[%s5675_s24 + $0x88] sm:$0xff]  ;;  %330 = vst [vmem:[%s5680_s12 + $0x78] sm:$0xff] %v329_v34  ;;  %v4088_v37 = vld [vmem:[%s5675_s24 + $0x90] sm:$0xf] }
  0x33   : > { %332 = vst [vmem:[%s5680_s12 + $0x80] sm:$0xff] %v331_v35  ;;  %334 = vst [vmem:[%s5680_s12 + $0x88] sm:$0xff] %v333_v36 }
  0x34   : > { %4089 = vst [vmem:[%s5680_s12 + $0x90] sm:$0xf] %v4088_v37 }
  0x35   : > { %349 = vsyncadd %s261_s13, 2368 }
  0x36 PF: > { %s4372_s25 = smul.u32 148, %s5632_s20  ;;  %s353_s28 = scalar_lea.sflag [#allocation3], %s5632_s20 }
  0x38   : > { %s5720_s26 = scalar_lea.vmem [#allocation2], %s4372_s25 }
  0x39   : > { %5553 = dma.done.wait %s353_s28, 2368 }
  0x3a   : > { %5554 = vsyncadd %s353_s28, 4294964928  ;;  %v5365_v38 = vld [vmem:[%s6637_s1] sm:$0xff]   ;;  %v5367_v40 = vld [vmem:[%s6637_s1 + $0x8] sm:$0xff]   ;;  %vm1997_vm0 = vsmask.f32 6400  ;;  %vm2428_vm1 = vcmask 1045504  }
  0x3b   : > { %v5366_v39 = vld [vmem:[%s6637_s1 + $0x100] sm:$0xff]   ;;  %4589 = vmatprep.subr.bf16.mxu1 %v5365_v38  ;;  %v5368_v41 = vld [vmem:[%s6637_s1 + $0x108] sm:$0xff]   ;;  %v5369_v42 = vld [vmem:[%s6637_s1 + $0x10] sm:$0xff]   ;;  %vm851_vm2 = vsmask.f32 7424  ;;  %vm1262_vm3 = vcmask 1046528  }
  0x3c   : > { %4781 = vmatprep.subr.bf16.mxu0 %v5366_v39  ;;  %4590 = vmatpush3.bf16.msra.mxu1 %v5365_v38  ;;  %v5370_v43 = vld [vmem:[%s6637_s1 + $0x110] sm:$0xff]   ;;  %v5371_v44 = vld [vmem:[%s6637_s1 + $0x18] sm:$0xff]   ;;  %v5373_v46 = vld [vmem:[%s6637_s1 + $0x20] sm:$0xff]   ;;  %vm3594_vm4 = vcmask 1044480   ;;  %vm3163_vm5 = vsmask.f32 5376 }
  0x3d   : > { %4782 = vmatpush3.bf16.msra.mxu0 %v5366_v39  ;;  %4591 = vmatprep.subr.bf16.mxu1 %v5367_v40  ;;  %v5372_v45 = vld [vmem:[%s6637_s1 + $0x118] sm:$0xff]   ;;  %v5374_v47 = vld [vmem:[%s6637_s1 + $0x120] sm:$0xff]   ;;  %v5375_v48 = vld [vmem:[%s6637_s1 + $0x28] sm:$0xff]  }
  0x3e   : > { %4783 = vmatprep.subr.bf16.mxu0 %v5368_v41  ;;  %v5376_v49 = vld [vmem:[%s6637_s1 + $0x128] sm:$0xff]   ;;  %v5381_v50 = vld [vmem:[%s5720_s26] sm:$0xff]  }
  0x3f   : > { %v1553_v51 = vld [vmem:[%s5720_s26 + $0x8] sm:$0xe]  ;;  %v5762_v52 = vld [vmem:[%s5720_s26 + $0xc] sm:$0xf]  ;;  %4605 = vmatprep.mubr.bf16.mxu1 %v5381_v50  ;;  %v5768_v54 = vld [vmem:[%s5720_s26 + $0x10] sm:$0xff]  }
  0x40   : > { %4592 = vmatpush3.bf16.msra.mxu1 %v5367_v40  ;;  %v5765_v53 = vcombine.low %v1553_v51, %v5762_v52  ;;  %v5377_v55 = vld [vmem:[%s6637_s1 + $0x30] sm:$0xff]   ;;  %v2007_v58 = vshrl.u32 %v5768_v54, 16  ;;  %v2010_v59 = vshll.u32 %v5768_v54, 16  ;;  %v5379_v2 = vld [vmem:[%s6637_s1 + $0x38] sm:$0xff]   ;;  %v5385_v9 = vld [vmem:[%s6637_s1 + $0x40] sm:$0xff]  }
  0x41   : > { %4784 = vmatpush3.bf16.msra.mxu0 %v5368_v41  ;;  %4593 = vmatprep.subr.bf16.mxu1 %v5369_v42  ;;  %v5378_v60 = vld [vmem:[%s6637_s1 + $0x130] sm:$0xff]   ;;  %v5380_v3 = vld [vmem:[%s6637_s1 + $0x138] sm:$0xff]   ;;  %v5387_v14 = vld [vmem:[%s6637_s1 + $0x140] sm:$0xff]  }
  0x42   : > { %4785 = vmatprep.subr.bf16.mxu0 %v5370_v43  ;;  %v1999_v56 = vshrl.u32 %v5765_v53, 16  ;;  %v2002_v57 = vshll.u32 %v5765_v53, 16  ;;  %v2009_v63 = vrot.slane %v2007_v58, 1  ;;  %v2012_v0 = vrot.slane %v2010_v59, 2  ;;  %v5781_v1 = vld [vmem:[%s5720_s26 + $0x18] sm:$0xff]   ;;  %v5796_v12 = vld [vmem:[%s5720_s26 + $0x20] sm:$0xff]  }
  0x43   : > { %v2016_v6 = vshrl.u32 %v5781_v1, 16  ;;  %v2019_v7 = vshll.u32 %v5781_v1, 16  ;;  %v2025_v15 = vshrl.u32 %v5796_v12, 16  ;;  %v2028_v16 = vshll.u32 %v5796_v12, 16  ;;  %v5804_v17 = vld [vmem:[%s5720_s26 + $0x28] sm:$0xff]   ;;  %v5389_v25 = vld [vmem:[%s5720_s26 + $0x10] sm:$0xff]  }
  0x44   : > { %4594 = vmatpush3.bf16.msra.mxu1 %v5369_v42  ;;  %v2001_v61 = vrot.slane %v1999_v56, 1  ;;  %v2004_v62 = vrot.slane %v2002_v57, 2  ;;  %v2013_v5 = vor.u32 %v2012_v0, %v2009_v63  ;;  %v5384_v18 = vld [vmem:[%s5720_s26 + $0x8] sm:$0xff]   ;;  %v2034_v21 = vshrl.u32 %v5804_v17, 16  ;;  %v5815_v29 = vld [vmem:[%s5720_s26 + $0x30] sm:$0xff]   ;;  %v5391_v34 = vld [vmem:[%s5720_s26 + $0x18] sm:$0xff]  }
  0x45   : > { %4786 = vmatpush3.bf16.msra.mxu0 %v5370_v43  ;;  %4595 = vmatprep.subr.bf16.mxu1 %v5371_v44  ;;  %v2018_v10 = vrot.slane %v2016_v6, 1  ;;  %v2021_v11 = vrot.slane %v2019_v7, 2  ;;  %v2027_v19 = vrot.slane %v2025_v15, 1  ;;  %v2030_v20 = vrot.slane %v2028_v16, 2  ;;  %v5388_v22 = vld [vmem:[%s6637_s1 + $0x148] sm:$0xff]   ;;  %v5399_v36 = vld [vmem:[%s6637_s1 + $0x50] sm:$0xff]  }
  0x46   : > { %4787 = vmatprep.subr.bf16.mxu0 %v5372_v45  ;;  %v2005_v4 = vor.u32 %v2004_v62, %v2001_v61  ;;  %v2037_v23 = vshll.u32 %v5804_v17, 16  ;;  %v2036_v27 = vrot.slane %v2034_v21, 1  ;;  %v5392_v31 = vld [vmem:[%s6637_s1 + $0x48] sm:$0xff]   ;;  %v2043_v32 = vshrl.u32 %v5815_v29, 16  ;;  %v5394_v37 = vld [vmem:[%s6637_s1 + $0x150] sm:$0xff]   ;;  %v5406_v56 = vld [vmem:[%s6637_s1 + $0x58] sm:$0xff]  }
  0x47   : > { %v2022_v13 = vor.u32 %v2021_v11, %v2018_v10  ;;  %v2031_v26 = vor.u32 %v2030_v20, %v2027_v19  ;;  %v2046_v33 = vshll.u32 %v5815_v29, 16  ;;  %v5831_v40 = vld [vmem:[%s5720_s26 + $0x38] sm:$0xff]   ;;  %v5396_v41 = vld [vmem:[%s5720_s26 + $0x20] sm:$0xff]   ;;  %v5850_v57 = vld [vmem:[%s5720_s26 + $0x48] sm:$0xff]   ;;  %v2430_v15 = vrot.slane %v5768_v54, 2 }
  0x48   : > { %4596 = vmatpush3.bf16.msra.mxu1 %v5371_v44  ;;  %v2014_v8 = vsel %vm1997_vm0, %v2005_v4, %v2013_v5  ;;  %v2039_v28 = vrot.slane %v2037_v23, 2  ;;  %v2045_v38 = vrot.slane %v2043_v32, 1  ;;  %v2052_v43 = vshrl.u32 %v5831_v40, 16  ;;  %v5842_v50 = vld [vmem:[%s5720_s26 + $0x40] sm:$0xff]   ;;  %v5398_v63 = vld [vmem:[%s5720_s26 + $0x28] sm:$0xff]  }
  0x49   : > { %4788 = vmatpush3.bf16.msra.mxu0 %v5372_v45  ;;  %4597 = vmatprep.subr.bf16.mxu1 %v5373_v46  ;;  %v2023_v24 = vsel %vm1997_vm0, %v2013_v5, %v2022_v13  ;;  %v2032_v30 = vsel %vm1997_vm0, %v2022_v13, %v2031_v26  ;;  %v2048_v39 = vrot.slane %v2046_v33, 2  ;;  %v2055_v44 = vshll.u32 %v5831_v40, 16  ;;  %v5401_v59 = vld [vmem:[%s6637_s1 + $0x160] sm:$0xff]   ;;  %v2407_v5 = vld [vmem:[%s5720_s26 + $0x8] sm:$0xc]  ;;  %v5422_v32 = vld [vmem:[%s6637_s1 + $0x190] sm:$0xff]  }
  0x4a   : > { %4789 = vmatprep.subr.bf16.mxu0 %v5374_v47  ;;  %4797 = vmatprep.mubr.bf16.mxu0 %v2014_v8  ;;  %v2040_v35 = vor.u32 %v2039_v28, %v2036_v27  ;;  %v2061_v51 = vshrl.u32 %v5842_v50, 16  ;;  %v2070_v62 = vshrl.u32 %v5850_v57, 16  ;;  %v2073_v0 = vshll.u32 %v5850_v57, 16  ;;  %v5413_v11 = vld [vmem:[%s6637_s1 + $0x60] sm:$0xff]   ;;  %v5417_v16 = vld [vmem:[%s6637_s1 + $0x68] sm:$0xff]   ;;  %v5409_v54 = vld [vmem:[%s6637_s1 + $0x178] sm:$0xff]  }
  0x4b   : > { %v2049_v42 = vor.u32 %v2048_v39, %v2045_v38  ;;  %v4264_v10 = vcombine.low %v2407_v5, %v5762_v52  ;;  %v5410_v19 = vld [vmem:[%s5720_s26 + $0x40] sm:$0xff]   ;;  %v5412_v23 = vld [vmem:[%s5720_s26 + $0x48] sm:$0xff]   ;;  %v5415_v28 = vld [vmem:[%s5720_s26 + $0x50] sm:$0xff]   ;;  %v2438_v33 = vrot.slane %v5815_v29, 2 }
  0x4c   : > { %4598 = vmatpush3.bf16.msra.mxu1 %v5373_v46  ;;  %v2041_v45 = vsel %vm1997_vm0, %v2031_v26, %v2040_v35  ;;  %v5395_v46 = vld [vmem:[%s6637_s1 + $0x158] sm:$0xff]   ;;  %v2072_v7 = vrot.slane %v2070_v62, 1  ;;  %v2075_v8 = vrot.slane %v2073_v0, 2  ;;  %v2434_v26 = vrot.slane %v5796_v12, 2 }
  0x4d   : > { %4790 = vmatpush3.bf16.msra.mxu0 %v5374_v47  ;;  %4599 = vmatprep.subr.bf16.mxu1 %v5375_v48  ;;  %v2050_v47 = vsel %vm1997_vm0, %v2040_v35, %v2049_v42  ;;  %v2429_v52 = vrot.slane %v4264_v10, 2  ;;  %v5425_v27 = vld [vmem:[%s6637_s1 + $0x78] sm:$0xff]   ;;  %v2436_v12 = vrot.slane %v5804_v17, 2  ;;  %v5913_v35 = vld [vmem:[%s6637_s1 + $0x80] sm:$0xff]  }
  0x4e   : > { %4791 = vmatprep.subr.bf16.mxu0 %v5376_v49  ;;  %v5869_v13 = vor.u32 %v2075_v8, %v2072_v7  ;;  %v5416_v17 = vld [vmem:[%s5720_s26 + $0x58] sm:$0xff]   ;;  %v5958_v5 = vld [vmem:[%s5720_s26 + $0x20] sm:$0xff]  }
  0x4f   : > { %v2431_v21 = vsel %vm2428_vm1, %v2429_v52, %v2430_v15  ;;  %v2437_v38 = vsel %vm2428_vm1, %v2434_v26, %v2436_v12  ;;  %v2439_v39 = vsel %vm2428_vm1, %v2436_v12, %v2438_v33  ;;  %v5432_v8 = vld [vmem:[%s5720_s26 + $0x58] sm:$0xff]   ;;  %v5438_v52 = vld [vmem:[%s5720_s26 + $0x68] sm:$0xff]  }
  0x50   : > { %4600 = vmatpush3.bf16.msra.mxu1 %v5375_v48  ;;  %v2054_v48 = vrot.slane %v2052_v43, 1  ;;  %v5420_v43 = vld [vmem:[%s5720_s26 + $0x68] sm:$0xff]  }
  0x51   : > { %4792 = vmatpush3.bf16.msra.mxu0 %v5376_v49  ;;  %4601 = vmatprep.subr.bf16.mxu1 %v5377_v55  ;;  %v2057_v49 = vrot.slane %v2055_v44, 2  ;;  %v5930_v44 = vld [vmem:[%s5720_s26 + $0x8] sm:$0xff]  }
  0x52   : > { %4793 = vmatprep.subr.bf16.mxu0 %v5378_v60  ;;  %v5993_v12 = vld [vmem:[%s6637_s1 + $0x1c0] sm:$0xff]  }
  0x53   : > { %v2058_v58 = vor.u32 %v2057_v49, %v2054_v48  ;;  %v5423_v48 = vld [vmem:[%s5720_s26 + $0x70] sm:$0xff]  }
  0x54   : > { %4602 = vmatpush3.bf16.msra.mxu1 %v5377_v55  ;;  %v2064_v55 = vshll.u32 %v5842_v50, 16 }
  0x55   : > { %4794 = vmatpush3.bf16.msra.mxu0 %v5378_v60  ;;  %4603 = vmatprep.subr.bf16.mxu1 %v5379_v2  ;;  %v2063_v60 = vrot.slane %v2061_v51, 1  ;;  %v2059_v6 = vsel %vm1997_vm0, %v2049_v42, %v2058_v58  ;;  %v2440_v42 = vrot.slane %v5831_v40, 2  ;;  %v5429_v51 = vld [vmem:[%s5720_s26 + $0x50] sm:$0xff]  }
  0x56   : > { %4795 = vmatprep.subr.bf16.mxu0 %v5380_v3  ;;  %v2066_v61 = vrot.slane %v2064_v55, 2  ;;  %v2446_v0 = vrot.slane %v5429_v51, 2 }
  0x57   : > { %v2441_v55 = vsel %vm2428_vm1, %v2438_v33, %v2440_v42  ;;  %v888_v33 = vshrl.u32 %v5958_v5, 16 }
  0x58   : > { %4604 = vmatpush3.bf16.msra.mxu1 %v5379_v2  ;;  %v5402_v2 = vld [vmem:[%s6637_s1 + $0x168] sm:$0xff]   ;;  %v2067_v4 = vor.u32 %v2066_v61, %v2063_v60 }
  0x59   : > { %4796 = vmatpush3.bf16.msra.mxu0 %v5380_v3  ;;  %4637 = vmatprep.subr.bf16.mxu1 %v5385_v9  ;;  %v5403_v3 = vld [vmem:[%s5720_s26 + $0x30] sm:$0xff]  }
  0x5a   : > { %4829 = vmatprep.subr.bf16.mxu0 %v5387_v14  ;;  %v2077_v20 = vsel %vm1997_vm0, %v2067_v4, %v5869_v13  ;;  %v5946_v60 = vld [vmem:[%s5720_s26 + $0x10] sm:$0xff]  }
  0x5b   : > { %4606 = vmatmul.mubr.bf16.vlgmr.msra.gmra.mrb[0].mxu1 %v5384_v18  ;;  %v5405_v18 = vld [vmem:[%s5720_s26 + $0x38] sm:$0xff]  }
  0x5c   : > { %4798 = vmatmul.mubr.bf16.vlgmr.msra.gmra.mrb[0].mxu0 %v2023_v24  ;;  %4638 = vmatpush3.bf16.msra.mxu1 %v5385_v9  ;;  %v2068_v9 = vsel %vm1997_vm0, %v2058_v58, %v2067_v4  ;;  %v2432_v24 = vrot.slane %v5781_v1, 2  ;;  %v868_v4 = vshll.u32 %v5946_v60, 16 }
  0x5d   : > { %4830 = vmatpush3.bf16.msra.mxu0 %v5387_v14  ;;  %4609 = vmatprep.mubr.bf16.mxu1 %v5389_v25  ;;  %v5408_v14 = vld [vmem:[%s6637_s1 + $0x170] sm:$0xff]   ;;  %v5414_v25 = vld [vmem:[%s6637_s1 + $0x180] sm:$0xff]  }
  0x5e   : > { %4831 = vmatprep.subr.bf16.mxu0 %v5388_v22  ;;  %4801 = vmatprep.mubr.bf16.mxu0 %v2032_v30  ;;  %v2433_v30 = vsel %vm2428_vm1, %v2430_v15, %v2432_v24  ;;  %v2435_v1 = vsel %vm2428_vm1, %v2432_v24, %v2434_v26  ;;  %v5979_v24 = vld [vmem:[%s5720_s26 + $0x30] sm:$0xff]   ;;  %v2452_v26 = vrot.slane %v5438_v52, 2  ;;  %v6051_v52 = vld [vmem:[%s5720_s26 + $0x18] sm:$0xff]  }
  0x5f   : > { %4639 = vmatprep.subr.bf16.mxu1 %v5392_v31  ;;  %v904_v51 = vshrl.u32 %v5979_v24, 16 }
  0x60   : > { %4640 = vmatpush3.bf16.msra.mxu1 %v5392_v31  ;;  %v5418_v31 = vld [vmem:[%s6637_s1 + $0x188] sm:$0xff]  }
  0x61   : > { %4832 = vmatpush3.bf16.msra.mxu0 %v5388_v22  ;;  %4641 = vmatprep.subr.bf16.mxu1 %v5399_v36  ;;  %v5421_v22 = vld [vmem:[%s6637_s1 + $0x70] sm:$0xff]  }
  0x62   : > { %4833 = vmatprep.subr.bf16.mxu0 %v5394_v37 }
  0x63   : > { %4610 = vmatmul.mubr.bf16.gmra.mrb[4].mxu1 %v5391_v34  ;;  %v718_v34 = vld [vmem:[%s5720_s26] sm:$0xf] }
  0x64   : > { %4802 = vmatmul.mubr.bf16.gmra.mrb[4].mxu0 %v2041_v45  ;;  %4613 = vmatprep.mubr.bf16.mxu1 %v5396_v41  ;;  %v5426_v41 = vld [vmem:[%s6637_s1 + $0x198] sm:$0xff]  }
  0x65   : > { %4834 = vmatpush3.bf16.msra.mxu0 %v5394_v37  ;;  %4805 = vmatprep.mubr.bf16.mxu0 %v2050_v47  ;;  %v5419_v37 = vld [vmem:[%s5720_s26 + $0x60] sm:$0xff]  }
  0x66   : > { %4835 = vmatprep.subr.bf16.mxu0 %v5395_v46  ;;  %4642 = vmatpush3.bf16.msra.mxu1 %v5399_v36  ;;  %v5916_v36 = vld [vmem:[%s5720_s26 + $0x4] sm:$0xf] }
  0x67   : > { %4643 = vmatprep.subr.bf16.mxu1 %v5406_v56  ;;  %v4132_v29 = vcombine.low %v718_v34, %v5916_v36  ;;  %v5433_v47 = vld [vmem:[%s6637_s1 + $0x1a0] sm:$0xff]   ;;  %v5998_v34 = vld [vmem:[%s5720_s26 + $0x38] sm:$0xff]  }
  0x69   : > { %4836 = vmatpush3.bf16.msra.mxu0 %v5395_v46  ;;  %v855_v45 = vshll.u32 %v4132_v29, 16  ;;  %v2442_v46 = vrot.slane %v5842_v50, 2  ;;  %v853_v49 = vshrl.u32 %v4132_v29, 16  ;;  %v5439_v50 = vld [vmem:[%s6637_s1 + $0x1a8] sm:$0xff]   ;;  %v900_v29 = vshll.u32 %v5979_v24, 16 }
  0x6a   : > { %4837 = vmatprep.subr.bf16.mxu0 %v5401_v59  ;;  %4644 = vmatpush3.bf16.msra.mxu1 %v5406_v56  ;;  %v860_v56 = vshll.u32 %v5930_v44, 16 }
  0x6b   : > { %4614 = vmatmul.mubr.bf16.gmra.mrb[8].mxu1 %v5398_v63  ;;  %4645 = vmatprep.subr.bf16.mxu1 %v5413_v11  ;;  %v857_v40 = vrot.slane %v855_v45, 1  ;;  %v2443_v58 = vsel %vm2428_vm1, %v2440_v42, %v2442_v46  ;;  %v5949_v63 = vld [vmem:[%s5720_s26 + $0x18] sm:$0xff]  }
  0x6c   : > { %4806 = vmatmul.mubr.bf16.gmra.mrb[8].mxu0 %v2059_v6  ;;  %4617 = vmatprep.mubr.bf16.mxu1 %v5403_v3  ;;  %v862_v62 = vrot.slane %v860_v56, 1  ;;  %v5424_v3 = vld [vmem:[%s5720_s26 + $0x78] sm:$0xff]   ;;  %v876_v10 = vshll.u32 %v5949_v63, 16 }
  0x6d   : > { %4838 = vmatpush3.bf16.msra.mxu0 %v5401_v59  ;;  %4809 = vmatprep.mubr.bf16.mxu0 %v2068_v9  ;;  %v2444_v59 = vrot.slane %v5850_v57, 2  ;;  %v858_v61 = vor.u32 %v857_v40, %v853_v49  ;;  %v864_v57 = vshrl.u32 %v5930_v44, 16  ;;  %v872_v9 = vshrl.u32 %v5946_v60, 16  ;;  %v5443_v45 = vld [vmem:[%s6637_s1 + $0x90] sm:$0xff]   ;;  %v5449_v56 = vld [vmem:[%s6637_s1 + $0x98] sm:$0xff]  }
  0x6e   : > { %4839 = vmatprep.subr.bf16.mxu0 %v5402_v2  ;;  %4646 = vmatpush3.bf16.msra.mxu1 %v5413_v11  ;;  %v5966_v11 = vld [vmem:[%s5720_s26 + $0x60] sm:$0xff]   ;;  %v902_v49 = vrot.slane %v900_v29, 1 }
  0x6f   : > { %4647 = vmatprep.subr.bf16.mxu1 %v5417_v16  ;;  %v2445_v6 = vsel %vm2428_vm1, %v2442_v46, %v2444_v59  ;;  %v863_v7 = vsel %vm851_vm2, %v858_v61, %v862_v62  ;;  %v2447_v15 = vsel %vm2428_vm1, %v2444_v59, %v2446_v0 }
  0x71   : > { %4840 = vmatpush3.bf16.msra.mxu0 %v5402_v2  ;;  %v5445_v2 = vld [vmem:[%s6637_s1 + $0x1b0] sm:$0xff]  }
  0x72   : > { %4841 = vmatprep.subr.bf16.mxu0 %v5408_v14  ;;  %4648 = vmatpush3.bf16.msra.mxu1 %v5417_v16  ;;  %v5974_v16 = vld [vmem:[%s5720_s26 + $0x28] sm:$0xff]  }
  0x73   : > { %4618 = vmatmul.mubr.bf16.gmra.mrb[12].mxu1 %v5405_v18  ;;  %4649 = vmatprep.subr.bf16.mxu1 %v5421_v22  ;;  %v866_v18 = vor.u32 %v864_v57, %v862_v62 }
  0x74   : > { %4810 = vmatmul.mubr.bf16.gmra.mrb[12].mxu0 %v2077_v20  ;;  %4621 = vmatprep.mubr.bf16.mxu1 %v5410_v19  ;;  %v870_v19 = vrot.slane %v868_v4, 1  ;;  %v884_v20 = vshll.u32 %v5958_v5, 16  ;;  %v5450_v4 = vld [vmem:[%s5720_s26 + $0x88] ss:$0 sps:$4 sm:$0x33]  }
  0x75   : > { %4842 = vmatpush3.bf16.msra.mxu0 %v5408_v14  ;;  %4845 = vmatprep.mubr.bf16.mxu0 %v2431_v21  ;;  %v5451_v14 = vld [vmem:[%s6637_s1 + $0x1b8] sm:$0xff]   ;;  %v878_v21 = vrot.slane %v876_v10, 1  ;;  %v6043_v10 = vld [vmem:[%s5720_s26 + $0x14] sm:$0xf] }
  0x76   : > { %4843 = vmatprep.subr.bf16.mxu0 %v5409_v54  ;;  %4650 = vmatpush3.bf16.msra.mxu1 %v5421_v22  ;;  %v874_v22 = vor.u32 %v872_v9, %v870_v19 }
  0x77   : > { %4651 = vmatprep.subr.bf16.mxu1 %v5425_v27 }
  0x79   : > { %4844 = vmatpush3.bf16.msra.mxu0 %v5409_v54  ;;  %v2448_v54 = vrot.slane %v5432_v8, 2  ;;  %v2719_v8 = vld [vmem:[%s5720_s26 + $0x10] sm:$0xc] }
  0x7a   : > { %4877 = vmatprep.subr.bf16.mxu0 %v5414_v25  ;;  %4652 = vmatpush3.bf16.msra.mxu1 %v5425_v27  ;;  %v892_v27 = vshll.u32 %v5974_v16, 16 }
  0x7b   : > { %4622 = vmatmul.mubr.bf16.gmra.mrb[16].mxu1 %v5412_v23  ;;  %4685 = vmatprep.subr.bf16.mxu1 %v5913_v35  ;;  %v2450_v23 = vrot.slane %v5966_v11, 2 }
  0x7c   : > { %4846 = vmatmul.mubr.bf16.vlgmr.msra.gmra.mrb[0].mxu0 %v2433_v30  ;;  %4625 = vmatprep.mubr.bf16.mxu1 %v5415_v28  ;;  %v5984_v28 = vld [vmem:[%s5720_s26 + $0x70] sm:$0xff]   ;;  %v871_v30 = vsel %vm851_vm2, %v866_v18, %v870_v19 }
  0x7d   : > { %4878 = vmatpush3.bf16.msra.mxu0 %v5414_v25  ;;  %4849 = vmatprep.mubr.bf16.mxu0 %v2435_v1  ;;  %v880_v25 = vshrl.u32 %v5949_v63, 16  ;;  %v886_v1 = vrot.slane %v884_v20, 1  ;;  %v6054_v18 = vld [vmem:[%s5720_s26 + $0x50] sm:$0xff]  }
  0x7e   : > { %4879 = vmatprep.subr.bf16.mxu0 %v5418_v31 }
  0x7f   : > { %v882_v42 = vor.u32 %v880_v25, %v878_v21  ;;  %v890_v46 = vor.u32 %v888_v33, %v886_v1 }
  0x81   : > { %4880 = vmatpush3.bf16.msra.mxu0 %v5418_v31  ;;  %v5437_v31 = vld [vmem:[%s6637_s1 + $0x88] sm:$0xff]   ;;  %v887_v40 = vsel %vm851_vm2, %v882_v42, %v886_v1 }
  0x82   : > { %4881 = vmatprep.subr.bf16.mxu0 %v5422_v32  ;;  %v5462_v1 = vld [vmem:[%s6637_s1 + $0xa8] sm:$0xff]  }
  0x83   : > { %4626 = vmatmul.mubr.bf16.gmra.mrb[20].mxu1 %v5416_v17  ;;  %v879_v17 = vsel %vm851_vm2, %v874_v22, %v878_v21  ;;  %v6060_v21 = vcombine.low %v2719_v8, %v6043_v10  ;;  %v1274_v8 = vrot.slane %v5979_v24, 1 }
  0x84   : > { %4850 = vmatmul.mubr.bf16.gmra.mrb[4].mxu0 %v2437_v38  ;;  %4629 = vmatprep.mubr.bf16.mxu1 %v5419_v37  ;;  %v2451_v37 = vsel %vm2428_vm1, %v2448_v54, %v2450_v23  ;;  %v896_v38 = vshrl.u32 %v5974_v16, 16 }
  0x85   : > { %4853 = vmatprep.mubr.bf16.mxu0 %v2439_v39  ;;  %4882 = vmatpush3.bf16.msra.mxu0 %v5422_v32  ;;  %v2449_v32 = vsel %vm2428_vm1, %v2446_v0, %v2448_v54  ;;  %v894_v39 = vrot.slane %v892_v27, 1  ;;  %v6065_v27 = vld [vmem:[%s5720_s26 + $0x20] sm:$0xff]  }
  0x86   : > { %4883 = vmatprep.subr.bf16.mxu0 %v5426_v41  ;;  %v2855_v29 = vrot.slane %v6065_v27, 2 }
  0x87   : > { %v895_v59 = vsel %vm851_vm2, %v890_v46, %v894_v39 }
  0x89   : > { %4884 = vmatpush3.bf16.msra.mxu0 %v5426_v41  ;;  %v5444_v41 = vld [vmem:[%s5720_s26 + $0x78] sm:$0xff]  }
  0x8a   : > { %4885 = vmatprep.subr.bf16.mxu0 %v5433_v47 }
  0x8b   : > { %4630 = vmatmul.mubr.bf16.gmra.mrb[24].mxu1 %v5420_v43  ;;  %v2454_v43 = vrot.slane %v5984_v28, 2 }
  0x8c   : > { %4854 = vmatmul.mubr.bf16.gmra.mrb[8].mxu0 %v2441_v55  ;;  %4633 = vmatprep.mubr.bf16.mxu1 %v5423_v48  ;;  %v6013_v48 = vld [vmem:[%s5720_s26 + $0x80] sm:$0xff]  }
  0x8d   : > { %4857 = vmatprep.mubr.bf16.mxu0 %v2443_v58  ;;  %4886 = vmatpush3.bf16.msra.mxu0 %v5433_v47  ;;  %v908_v47 = vshll.u32 %v5998_v34, 16  ;;  %v6017_v55 = vld [vmem:[%s5720_s26 + $0x40] sm:$0xff]   ;;  %v1264_v58 = vrot.slane %v5930_v44, 1  ;;  %v2458_v62 = vrot.slane %v6013_v48, 2  ;;  %v2455_v0 = vsel %vm2428_vm1, %v2452_v26, %v2454_v43 }
  0x8e   : > { %4887 = vmatprep.subr.bf16.mxu0 %v5439_v50  ;;  %v916_v57 = vshll.u32 %v6017_v55, 16  ;;  %v920_v25 = vshrl.u32 %v6017_v55, 16 }
  0x8f   : > { %v910_v61 = vrot.slane %v908_v47, 1  ;;  %v6086_v47 = vld [vmem:[%s5720_s26 + $0x28] sm:$0xff]  }
  0x90   : > { %v918_v22 = vrot.slane %v916_v57, 1 }
  0x91   : > { %4888 = vmatpush3.bf16.msra.mxu0 %v5439_v50  ;;  %v2453_v50 = vsel %vm2428_vm1, %v2450_v23, %v2452_v26  ;;  %v2460_v23 = vrot.slane %v5450_v4, 2  ;;  %v2857_v4 = vrot.slane %v6086_v47, 2 }
  0x92   : > { %4889 = vmatprep.subr.bf16.mxu0 %v5445_v2 }
  0x93   : > { %4634 = vmatmul.mubr.bf16.gmra.mrb[28].mxu1 %v5424_v3  ;;  %v1266_v3 = vrot.slane %v5946_v60, 1 }
  0x94   : > { %4858 = vmatmul.mubr.bf16.gmra.mrb[12].mxu0 %v2445_v6  ;;  %4653 = vmatprep.mubr.bf16.mxu1 %v863_v7  ;;  %v898_v6 = vor.u32 %v896_v38, %v894_v39  ;;  %v906_v7 = vor.u32 %v904_v51, %v902_v49  ;;  %v922_v38 = vor.u32 %v920_v25, %v918_v22  ;;  %v5468_v39 = vld [vmem:[%s6637_s1 + $0xb0] sm:$0xff]  }
  0x95   : > { %4861 = vmatprep.mubr.bf16.mxu0 %v2447_v15  ;;  %4890 = vmatpush3.bf16.msra.mxu0 %v5445_v2  ;;  %v6029_v2 = vld [vmem:[%s5720_s26 + $0x48] sm:$0xff]   ;;  %v6040_v9 = vsel %vm1262_vm3, %v1264_v58, %v1266_v3  ;;  %v912_v15 = vshrl.u32 %v5998_v34, 16 }
  0x96   : > { %4891 = vmatprep.subr.bf16.mxu0 %v5451_v14  ;;  %v924_v11 = vshll.u32 %v6029_v2, 16  ;;  %v903_v19 = vsel %vm851_vm2, %v898_v6, %v902_v49  ;;  %v911_v54 = vsel %vm851_vm2, %v906_v7, %v910_v61  ;;  %v928_v26 = vshrl.u32 %v6029_v2, 16  ;;  %v6116_v6 = vld [vmem:[%s5720_s26 + $0x68] sm:$0xff]  }
  0x97   : > { %v914_v33 = vor.u32 %v912_v15, %v910_v61  ;;  %v2461_v49 = vsel %vm2428_vm1, %v2458_v62, %v2460_v23  ;;  %v6126_v7 = vld [vmem:[%s6637_s1 + $0xc0] sm:$0xff]   ;;  %v956_v24 = vshll.u32 %v6116_v6, 16  ;;  %v2858_v23 = vsel %vm2428_vm1, %v2855_v29, %v2857_v4 }
  0x99   : > { %4892 = vmatpush3.bf16.msra.mxu0 %v5451_v14  ;;  %v5456_v14 = vld [vmem:[%s6637_s1 + $0xa0] sm:$0xff]   ;;  %v919_v46 = vsel %vm851_vm2, %v914_v33, %v918_v22  ;;  %v1276_v22 = vrot.slane %v5998_v34, 1 }
  0x9a   : > { %4925 = vmatprep.subr.bf16.mxu0 %v5993_v12 }
  0x9b   : > { %4654 = vmatmul.mubr.bf16.vlgmr.msra.gmra.mrb[0].mxu1 %v871_v30  ;;  %v926_v30 = vrot.slane %v924_v11, 1 }
  0x9c   : > { %4862 = vmatmul.mubr.bf16.gmra.mrb[16].mxu0 %v2449_v32  ;;  %4686 = vmatpush3.bf16.msra.mxu1 %v5913_v35  ;;  %v2456_v35 = vrot.slane %v5444_v41, 2  ;;  %v6073_v32 = vld [vmem:[%s5720_s26 + $0x58] sm:$0xff]   ;;  %v1241_v41 = vld [vmem:[%s5720_s26] sm:$0xe] }
  0x9d   : > { %4657 = vmatprep.mubr.bf16.mxu1 %v879_v17  ;;  %4865 = vmatprep.mubr.bf16.mxu0 %v2451_v37  ;;  %v2852_v17 = vrot.slane %v6060_v21, 2  ;;  %v2853_v37 = vrot.slane %v6051_v52, 2  ;;  %v4173_v42 = vcombine.low %v1241_v41, %v5916_v36  ;;  %v927_v51 = vsel %vm851_vm2, %v922_v38, %v926_v30  ;;  %v6094_v36 = vld [vmem:[%s5720_s26 + $0x60] sm:$0xff]   ;;  %v6162_v38 = vld [vmem:[%s5720_s26 + $0x78] sm:$0xff]  }
  0x9e   : > { %4687 = vmatprep.subr.bf16.mxu1 %v5437_v31  ;;  %v2457_v20 = vsel %vm2428_vm1, %v2454_v43, %v2456_v35  ;;  %v2459_v28 = vsel %vm2428_vm1, %v2456_v35, %v2458_v62  ;;  %v936_v35 = vshrl.u32 %v6054_v18, 16  ;;  %v948_v60 = vshll.u32 %v6094_v36, 16 }
  0x9f   : > { %v1263_v48 = vrot.slane %v4173_v42, 1  ;;  %v952_v15 = vshrl.u32 %v6094_v36, 16 }
  0xa0   : > { %4688 = vmatpush3.bf16.msra.mxu1 %v5437_v31  ;;  %v932_v31 = vshll.u32 %v6054_v18, 16  ;;  %v950_v25 = vrot.slane %v948_v60, 1 }
  0xa1   : > { %4689 = vmatprep.subr.bf16.mxu1 %v5443_v45  ;;  %v6103_v61 = vsel %vm1262_vm3, %v1263_v48, %v1264_v58 }
  0xa2   : > { %v934_v43 = vrot.slane %v932_v31, 1 }
  0xa3   : > { %4658 = vmatmul.mubr.bf16.gmra.mrb[4].mxu1 %v887_v40  ;;  %v1268_v40 = vrot.slane %v5949_v63, 1  ;;  %v1270_v63 = vrot.slane %v5958_v5, 1  ;;  %v1272_v5 = vrot.slane %v5974_v16, 1  ;;  %v5464_v16 = vld [vmem:[%s6637_s1 + $0x1c8] sm:$0xff]  }
  0xa4   : > { %4866 = vmatmul.mubr.bf16.gmra.mrb[20].mxu0 %v2453_v50  ;;  %4661 = vmatprep.mubr.bf16.mxu1 %v895_v59  ;;  %v944_v50 = vshrl.u32 %v6073_v32, 16  ;;  %v5474_v59 = vld [vmem:[%s6637_s1 + $0xb8] sm:$0xff]   ;;  %v938_v58 = vor.u32 %v936_v35, %v934_v43 }
  0xa5   : > { %4869 = vmatprep.mubr.bf16.mxu0 %v2455_v0  ;;  %4690 = vmatpush3.bf16.msra.mxu1 %v5443_v45  ;;  %v940_v45 = vshll.u32 %v6073_v32, 16  ;;  %v6109_v62 = vsel %vm1262_vm3, %v1266_v3, %v1268_v40  ;;  %v930_v0 = vor.u32 %v928_v26, %v926_v30  ;;  %v6113_v44 = vsel %vm1262_vm3, %v1268_v40, %v1270_v63  ;;  %v6121_v3 = vld [vmem:[%s5720_s26 + $0x30] sm:$0xff]   ;;  %v6146_v26 = vld [vmem:[%s5720_s26 + $0x38] sm:$0xff]  }
  0xa6   : > { %4691 = vmatprep.subr.bf16.mxu1 %v5449_v56  ;;  %v6130_v11 = vsel %vm1262_vm3, %v1270_v63, %v1272_v5  ;;  %v1278_v30 = vrot.slane %v6017_v55, 1  ;;  %v2859_v34 = vrot.slane %v6121_v3, 2  ;;  %v1280_v55 = vrot.slane %v6029_v2, 1 }
  0xa7   : > { %v942_v57 = vrot.slane %v940_v45, 1  ;;  %v960_v2 = vshrl.u32 %v6116_v6, 16 }
  0xa8   : > { %v6158_v33 = vsel %vm1262_vm3, %v1276_v22, %v1278_v30  ;;  %v6171_v42 = vsel %vm1262_vm3, %v1278_v30, %v1280_v55  ;;  %v2860_v45 = vsel %vm2428_vm1, %v2857_v4, %v2859_v34  ;;  %v5473_v4 = vld [vmem:[%s5720_s26 + $0x80] ss:$0 sps:$4 sm:$0x11]  }
  0xa9   : > { %4692 = vmatpush3.bf16.msra.mxu1 %v5449_v56  ;;  %v2854_v56 = vsel %vm2428_vm1, %v2852_v17, %v2853_v37  ;;  %v946_v31 = vor.u32 %v944_v50, %v942_v57  ;;  %v954_v17 = vor.u32 %v952_v15, %v950_v25  ;;  %v5476_v50 = vld [vmem:[%s6637_s1 + $0x1d8] sm:$0xff]  }
  0xaa   : > { %4693 = vmatprep.subr.bf16.mxu1 %v5456_v14 }
  0xab   : > { %4662 = vmatmul.mubr.bf16.gmra.mrb[8].mxu1 %v903_v19  ;;  %v6138_v19 = vsel %vm1262_vm3, %v1272_v5, %v1274_v8 }
  0xac   : > { %4870 = vmatmul.mubr.bf16.gmra.mrb[24].mxu0 %v2457_v20  ;;  %4665 = vmatprep.mubr.bf16.mxu1 %v911_v54  ;;  %v2856_v20 = vsel %vm2428_vm1, %v2853_v37, %v2855_v29  ;;  %v943_v54 = vsel %vm851_vm2, %v938_v58, %v942_v57  ;;  %v958_v37 = vrot.slane %v956_v24, 1  ;;  %v2861_v29 = vrot.slane %v6146_v26, 2 }
  0xad   : > { %4873 = vmatprep.mubr.bf16.mxu0 %v2459_v28  ;;  %4694 = vmatpush3.bf16.msra.mxu1 %v5456_v14  ;;  %v935_v14 = vsel %vm851_vm2, %v930_v0, %v934_v43  ;;  %v6149_v28 = vld [vmem:[%s5720_s26 + $0x70] sm:$0xff]   ;;  %v951_v43 = vsel %vm851_vm2, %v946_v31, %v950_v25  ;;  %v1286_v0 = vrot.slane %v6094_v36, 1  ;;  %v980_v24 = vshll.u32 %v5473_v4, 16  ;;  %v6220_v25 = vld [vmem:[%s5720_s26 + $0x58] sm:$0xff]  }
  0xae   : > { %4695 = vmatprep.subr.bf16.mxu1 %v5462_v1  ;;  %v964_v41 = vshll.u32 %v6149_v28, 16  ;;  %v968_v48 = vshrl.u32 %v6149_v28, 16  ;;  %v2862_v40 = vsel %vm2428_vm1, %v2859_v34, %v2861_v29  ;;  %v962_v57 = vor.u32 %v960_v2, %v958_v37  ;;  %v5481_v36 = vld [vmem:[%s6637_s1 + $0x1e0] sm:$0xff]   ;;  %v5485_v34 = vld [vmem:[%s6637_s1 + $0x1e8] sm:$0xff]  }
  0xaf   : > { %v1290_v15 = vrot.slane %v6149_v28, 1  ;;  %v1292_v31 = vrot.slane %v6162_v38, 1  ;;  %v6244_v2 = vld [vmem:[%s5720_s26 + $0x60] sm:$0xff]  }
  0xb1   : > { %4696 = vmatpush3.bf16.msra.mxu1 %v5462_v1  ;;  %v6154_v1 = vsel %vm1262_vm3, %v1274_v8, %v1276_v22  ;;  %v1288_v8 = vrot.slane %v6116_v6, 1 }
  0xb2   : > { %4697 = vmatprep.subr.bf16.mxu1 %v5468_v39 }
  0xb3   : > { %4666 = vmatmul.mubr.bf16.gmra.mrb[12].mxu1 %v919_v46  ;;  %v6178_v46 = vld [vmem:[%s5720_s26 + $0x40] sm:$0xff]   ;;  %v6223_v30 = vsel %vm1262_vm3, %v1288_v8, %v1290_v15 }
  0xb4   : > { %4874 = vmatmul.mubr.bf16.gmra.mrb[28].mxu0 %v2461_v49  ;;  %4669 = vmatprep.mubr.bf16.mxu1 %v927_v51  ;;  %v959_v49 = vsel %vm851_vm2, %v954_v17, %v958_v37  ;;  %v972_v51 = vshll.u32 %v6162_v38, 16  ;;  %v6231_v17 = vsel %vm1262_vm3, %v1290_v15, %v1292_v31  ;;  %v1294_v37 = vrot.slane %v5473_v4, 1 }
  0xb5   : > { %4893 = vmatprep.mubr.bf16.mxu0 %v2854_v56  ;;  %4698 = vmatpush3.bf16.msra.mxu1 %v5468_v39  ;;  %v5470_v39 = vld [vmem:[%s6637_s1 + $0x1d0] sm:$0xff]   ;;  %v6189_v56 = vld [vmem:[%s5720_s26 + $0x48] sm:$0xff]  }
  0xb6   : > { %4699 = vmatprep.subr.bf16.mxu1 %v5474_v59  ;;  %v974_v5 = vrot.slane %v972_v51, 1  ;;  %v5493_v51 = vld [vmem:[%s6637_s1 + $0x1f8] sm:$0xff]  }
  0xb9   : > { %4700 = vmatpush3.bf16.msra.mxu1 %v5474_v59  ;;  %v966_v59 = vrot.slane %v964_v41, 1  ;;  %v2869_v41 = vrot.slane %v6220_v25, 2 }
  0xba   : > { %4733 = vmatprep.subr.bf16.mxu1 %v6126_v7 }
  0xbb   : > { %4670 = vmatmul.mubr.bf16.gmra.mrb[16].mxu1 %v935_v14  ;;  %v970_v58 = vor.u32 %v968_v48, %v966_v59  ;;  %v2865_v14 = vrot.slane %v6189_v56, 2 }
  0xbc   : > { %4894 = vmatmul.mubr.bf16.vlgmr.msra.gmra.mrb[0].mxu0 %v2856_v20  ;;  %4673 = vmatprep.mubr.bf16.mxu1 %v943_v54  ;;  %v967_v20 = vsel %vm851_vm2, %v962_v57, %v966_v59  ;;  %v976_v54 = vshrl.u32 %v6162_v38, 16  ;;  %v5483_v57 = vld [vmem:[%s6637_s1 + $0xc8] sm:$0xff]  }
  0xbd   : > { %4926 = vmatpush3.bf16.msra.mxu0 %v5993_v12  ;;  %4897 = vmatprep.mubr.bf16.mxu0 %v2858_v23  ;;  %v1282_v12 = vrot.slane %v6054_v18, 1  ;;  %v1284_v18 = vrot.slane %v6073_v32, 1  ;;  %v2863_v32 = vrot.slane %v6178_v46, 2  ;;  %v975_v6 = vsel %vm851_vm2, %v970_v58, %v974_v5  ;;  %v6217_v23 = vld [vmem:[%s5720_s26 + $0x50] sm:$0xff]  }
  0xbe   : > { %4927 = vmatprep.subr.bf16.mxu0 %v5464_v16  ;;  %v2867_v38 = vrot.slane %v6217_v23, 2  ;;  %v5487_v58 = vld [vmem:[%s6637_s1 + $0xd0] sm:$0xff]  }
  0xbf   : > { %v6184_v35 = vsel %vm1262_vm3, %v1280_v55, %v1282_v12  ;;  %v6195_v63 = vsel %vm1262_vm3, %v1282_v12, %v1284_v18  ;;  %v6201_v60 = vsel %vm1262_vm3, %v1284_v18, %v1286_v0  ;;  %v2864_v22 = vsel %vm2428_vm1, %v2861_v29, %v2863_v32  ;;  %v5489_v12 = vld [vmem:[%s6637_s1 + $0x1f0] sm:$0xff]  }
  0xc0   : > { %v2866_v28 = vsel %vm2428_vm1, %v2863_v32, %v2865_v14  ;;  %v978_v55 = vor.u32 %v976_v54, %v974_v5  ;;  %v982_v29 = vrot.slane %v980_v24, 1  ;;  %v2870_v48 = vsel %vm2428_vm1, %v2867_v38, %v2869_v41  ;;  %v6270_v32 = vld [vmem:[%s5720_s26 + $0x78] sm:$0xff]  }
  0xc1   : > { %4928 = vmatpush3.bf16.msra.mxu0 %v5464_v16  ;;  %v6209_v16 = vsel %vm1262_vm3, %v1286_v0, %v1288_v8  ;;  %v2871_v18 = vrot.slane %v6244_v2, 2  ;;  %v6263_v0 = vld [vmem:[%s5720_s26 + $0x70] sm:$0xff]   ;;  %v2877_v5 = vrot.slane %v6270_v32, 2  ;;  %v6282_v8 = vld [vmem:[%s5720_s26 + $0x80] sm:$0xff]   ;;  %v3165_v54 = vshrl.u32 %v6060_v21, 16 }
  0xc2   : > { %4929 = vmatprep.subr.bf16.mxu0 %v5470_v39  ;;  %v2875_v4 = vrot.slane %v6263_v0, 2  ;;  %v3168_v24 = vshll.u32 %v6060_v21, 16 }
  0xc3   : > { %4674 = vmatmul.mubr.bf16.gmra.mrb[20].mxu1 %v951_v43  ;;  %v983_v43 = vsel %vm851_vm2, %v978_v55, %v982_v29  ;;  %v2872_v59 = vsel %vm2428_vm1, %v2869_v41, %v2871_v18  ;;  %v3612_v29 = vrot.slane %v6220_v25, 3 }
  0xc4   : > { %4898 = vmatmul.mubr.bf16.gmra.mrb[4].mxu0 %v2860_v45  ;;  %4677 = vmatprep.mubr.bf16.mxu1 %v959_v49  ;;  %v2868_v45 = vsel %vm2428_vm1, %v2865_v14, %v2867_v38  ;;  %v6248_v49 = vld [vmem:[%s5720_s26 + $0x68] sm:$0xff]  }
  0xc5   : > { %4901 = vmatprep.mubr.bf16.mxu0 %v2862_v40  ;;  %4930 = vmatpush3.bf16.msra.mxu0 %v5470_v39  ;;  %v6235_v39 = vsel %vm1262_vm3, %v1292_v31, %v1294_v37  ;;  %v2873_v40 = vrot.slane %v6248_v49, 2  ;;  %v6285_v14 = vld [vmem:[%s5720_s26 + $0x88] sm:$0xff]   ;;  %v5492_v37 = vld [vmem:[%s5720_s26 + $0x90] ss:$0 sps:$4 sm:$0x33]  }
  0xc6   : > { %4931 = vmatprep.subr.bf16.mxu0 %v5476_v50  ;;  %v2881_v15 = vrot.slane %v6285_v14, 2  ;;  %v5494_v31 = vld [vmem:[%s6637_s1 + $0xe0] sm:$0xff]  }
  0xc9   : > { %4932 = vmatpush3.bf16.msra.mxu0 %v5476_v50  ;;  %v6259_v50 = vld [vmem:[%s6637_s1 + $0x200] sm:$0xff]  }
  0xca   : > { %4933 = vmatprep.subr.bf16.mxu0 %v5481_v36 }
  0xcb   : > { %4678 = vmatmul.mubr.bf16.gmra.mrb[24].mxu1 %v967_v20  ;;  %v3604_v20 = vrot.slane %v6146_v26, 3 }
  0xcc   : > { %4902 = vmatmul.mubr.bf16.gmra.mrb[8].mxu0 %v2864_v22  ;;  %4681 = vmatprep.mubr.bf16.mxu1 %v975_v6  ;;  %v3606_v22 = vrot.slane %v6178_v46, 3  ;;  %v3176_v6 = vshll.u32 %v6051_v52, 16 }
  0xcd   : > { %4905 = vmatprep.mubr.bf16.mxu0 %v2866_v28  ;;  %4934 = vmatpush3.bf16.msra.mxu0 %v5481_v36  ;;  %v2879_v36 = vrot.slane %v6282_v8, 2  ;;  %v3610_v28 = vrot.slane %v6217_v23, 3 }
  0xce   : > { %4935 = vmatprep.subr.bf16.mxu0 %v5485_v34  ;;  %v6310_v21 = vsel %vm3594_vm4, %v3604_v20, %v3606_v22 }
  0xcf   : > { %v2880_v38 = vsel %vm2428_vm1, %v2877_v5, %v2879_v36  ;;  %v2882_v41 = vsel %vm2428_vm1, %v2879_v36, %v2881_v15  ;;  %v3194_v36 = vshll.u32 %v6086_v47, 16 }
  0xd1   : > { %4936 = vmatpush3.bf16.msra.mxu0 %v5485_v34 }
  0xd2   : > { %4937 = vmatprep.subr.bf16.mxu0 %v5489_v12 }
  0xd3   : > { %4682 = vmatmul.mubr.bf16.gmra.mrb[28].mxu1 %v983_v43  ;;  %v3614_v43 = vrot.slane %v6244_v2, 3 }
  0xd4   : > { %4906 = vmatmul.mubr.bf16.gmra.mrb[12].mxu0 %v2868_v45  ;;  %4701 = vmatprep.mubr.bf16.mxu1 %v6103_v61  ;;  %v2874_v61 = vsel %vm2428_vm1, %v2871_v18, %v2873_v40  ;;  %v3170_v45 = vrot.slane %v3168_v24, 3  ;;  %v5496_v18 = vld [vmem:[%s6637_s1 + $0xe8] sm:$0xff]   ;;  %v3620_v24 = vrot.slane %v6270_v32, 3 }
  0xd5   : > { %4909 = vmatprep.mubr.bf16.mxu0 %v2870_v48  ;;  %4938 = vmatpush3.bf16.msra.mxu0 %v5489_v12  ;;  %v3167_v12 = vrot.slane %v3165_v54, 2 }
  0xd6   : > { %4939 = vmatprep.subr.bf16.mxu0 %v5493_v51 }
  0xd9   : > { %4940 = vmatpush3.bf16.msra.mxu0 %v5493_v51  ;;  %v3178_v51 = vrot.slane %v3176_v6, 3  ;;  %v3622_v6 = vrot.slane %v6282_v8, 3 }
  0xda   : > { %4973 = vmatprep.subr.bf16.mxu0 %v6259_v50 }
  0xdb   : > { %4702 = vmatmul.mubr.bf16.vlgmr.msra.gmra.mrb[0].mxu1 %v6040_v9  ;;  %v2876_v9 = vsel %vm2428_vm1, %v2873_v40, %v2875_v4  ;;  %v6327_v40 = vsel %vm3594_vm4, %v3610_v28, %v3612_v29 }
  0xdc   : > { %4910 = vmatmul.mubr.bf16.gmra.mrb[16].mxu0 %v2872_v59  ;;  %4734 = vmatpush3.bf16.msra.mxu1 %v6126_v7  ;;  %v5491_v7 = vld [vmem:[%s6637_s1 + $0xd8] sm:$0xff]   ;;  %v6331_v59 = vsel %vm3594_vm4, %v3612_v29, %v3614_v43 }
  0xdd   : > { %4705 = vmatprep.mubr.bf16.mxu1 %v6109_v62  ;;  %4913 = vmatprep.mubr.bf16.mxu0 %v2874_v61  ;;  %v2878_v62 = vsel %vm2428_vm1, %v2875_v4, %v2877_v5  ;;  %v3616_v61 = vrot.slane %v6248_v49, 3  ;;  %v3182_v4 = vshrl.u32 %v6065_v27, 16  ;;  %v5500_v29 = vld [vmem:[%s6637_s1 + $0xf8] sm:$0xff]  }
  0xde   : > { %4735 = vmatprep.subr.bf16.mxu1 %v5483_v57 }
  0xdf   : > { %v6338_v5 = vsel %vm3594_vm4, %v3614_v43, %v3616_v61 }
  0xe0   : > { %4736 = vmatpush3.bf16.msra.mxu1 %v5483_v57  ;;  %v2883_v57 = vrot.slane %v5492_v37, 2  ;;  %v3196_v37 = vrot.slane %v3194_v36, 3 }
  0xe1   : > { %4737 = vmatprep.subr.bf16.mxu1 %v5487_v58 }
  0xe3   : > { %4706 = vmatmul.mubr.bf16.gmra.mrb[4].mxu1 %v6113_v44  ;;  %v3608_v44 = vrot.slane %v6189_v56, 3 }
  0xe4   : > { %4914 = vmatmul.mubr.bf16.gmra.mrb[20].mxu0 %v2876_v9  ;;  %4709 = vmatprep.mubr.bf16.mxu1 %v6130_v11  ;;  %v3173_v11 = vshrl.u32 %v6051_v52, 16  ;;  %v3171_v9 = vor.u32 %v3170_v45, %v3167_v12  ;;  %v3624_v12 = vrot.slane %v6285_v14, 3  ;;  %v3200_v45 = vshrl.u32 %v6121_v3, 16 }
  0xe5   : > { %4917 = vmatprep.mubr.bf16.mxu0 %v2878_v62  ;;  %4738 = vmatpush3.bf16.msra.mxu1 %v5487_v58  ;;  %v6313_v34 = vsel %vm3594_vm4, %v3606_v22, %v3608_v44  ;;  %v6317_v55 = vsel %vm3594_vm4, %v3608_v44, %v3610_v28  ;;  %v3185_v58 = vshll.u32 %v6065_v27, 16  ;;  %v2884_v22 = vsel %vm2428_vm1, %v2881_v15, %v2883_v57  ;;  %v6361_v15 = vld [vmem:[%s5720_s26 + $0x90] ss:$0 sps:$4 sm:$0x77]  }
  0xe6   : > { %4739 = vmatprep.subr.bf16.mxu1 %v5491_v7  ;;  %v3175_v48 = vrot.slane %v3173_v11, 2  ;;  %v3184_v44 = vrot.slane %v3182_v4, 2  ;;  %v6374_v57 = vsel %vm3594_vm4, %v3622_v6, %v3624_v12 }
  0xe7   : > { %v3187_v11 = vrot.slane %v3185_v58, 3  ;;  %v3202_v58 = vrot.slane %v3200_v45, 2  ;;  %v3239_v45 = vshll.u32 %v6217_v23, 16 }
  0xe8   : > { %v3179_v62 = vor.u32 %v3178_v51, %v3175_v48  ;;  %v3203_v48 = vshll.u32 %v6121_v3, 16  ;;  %v3626_v51 = vrot.slane %v6361_v15, 3 }
  0xe9   : > { %4740 = vmatpush3.bf16.msra.mxu1 %v5491_v7  ;;  %v3191_v7 = vshrl.u32 %v6086_v47, 16  ;;  %v3188_v43 = vor.u32 %v3187_v11, %v3184_v44  ;;  %v3221_v44 = vshll.u32 %v6178_v46, 16 }
  0xea   : > { %4741 = vmatprep.subr.bf16.mxu1 %v5494_v31 }
  0xeb   : > { %4710 = vmatmul.mubr.bf16.gmra.mrb[8].mxu1 %v6138_v19  ;;  %v3618_v19 = vrot.slane %v6263_v0, 3  ;;  %v3193_v28 = vrot.slane %v3191_v7, 2  ;;  %v3189_v4 = vsel %vm3163_vm5, %v3179_v62, %v3188_v43  ;;  %v5497_v7 = vld [vmem:[%s6637_s1 + $0x208] sm:$0xff]  }
  0xec   : > { %4918 = vmatmul.mubr.bf16.gmra.mrb[24].mxu0 %v2880_v38  ;;  %4713 = vmatprep.mubr.bf16.mxu1 %v6154_v1  ;;  %v5498_v1 = vld [vmem:[%s6637_s1 + $0xf0] sm:$0xff]  }
  0xed   : > { %4921 = vmatprep.mubr.bf16.mxu0 %v2882_v41  ;;  %4742 = vmatpush3.bf16.msra.mxu1 %v5494_v31  ;;  %v6347_v54 = vsel %vm3594_vm4, %v3616_v61, %v3618_v19  ;;  %v3180_v31 = vsel %vm3163_vm5, %v3171_v9, %v3179_v62  ;;  %v6357_v38 = vsel %vm3594_vm4, %v3618_v19, %v3620_v24  ;;  %v3212_v61 = vshll.u32 %v6146_v26, 16 }
  0xee   : > { %4743 = vmatprep.subr.bf16.mxu1 %v5496_v18  ;;  %v6364_v41 = vsel %vm3594_vm4, %v3620_v24, %v3622_v6  ;;  %v3205_v19 = vrot.slane %v3203_v48, 3  ;;  %v6387_v24 = vld [vmem:[%s6637_s1 + $0x100] sm:$0xff]   ;;  %v5499_v6 = vld [vmem:[%s6637_s1 + $0x210] sm:$0xff]  }
  0xf0   : > { %v3206_v62 = vor.u32 %v3205_v19, %v3202_v58  ;;  %v5503_v19 = vld [vmem:[%s6637_s1 + $0x228] sm:$0xff]  }
  0xf1   : > { %4744 = vmatpush3.bf16.msra.mxu1 %v5496_v18  ;;  %v3209_v18 = vshrl.u32 %v6146_v26, 16 }
  0xf2   : > { %4745 = vmatprep.subr.bf16.mxu1 %v5498_v1 }
  0xf3   : > { %4714 = vmatmul.mubr.bf16.gmra.mrb[12].mxu1 %v6158_v33  ;;  %v3197_v33 = vor.u32 %v3196_v37, %v3193_v28  ;;  %v3211_v36 = vrot.slane %v3209_v18, 2  ;;  %v3223_v28 = vrot.slane %v3221_v44, 3  ;;  %v3263_v44 = vshrl.u32 %v6248_v49, 16 }
  0xf4   : > { %4922 = vmatmul.mubr.bf16.gmra.mrb[28].mxu0 %v2884_v22  ;;  %4717 = vmatprep.mubr.bf16.mxu1 %v6171_v42  ;;  %v6377_v42 = vsel %vm3594_vm4, %v3624_v12, %v3626_v51  ;;  %v3218_v22 = vshrl.u32 %v6178_v46, 16  ;;  %v5501_v12 = vld [vmem:[%s6637_s1 + $0x218] sm:$0xff]   ;;  %v3245_v51 = vshrl.u32 %v6220_v25, 16 }
  0xf5   : > { %4941 = vmatprep.mubr.bf16.mxu0 %v3180_v31  ;;  %4746 = vmatpush3.bf16.msra.mxu1 %v5498_v1  ;;  %v3198_v9 = vsel %vm3163_vm5, %v3188_v43, %v3197_v33  ;;  %v3214_v1 = vrot.slane %v3212_v61, 3  ;;  %v3227_v31 = vshrl.u32 %v6189_v56, 16  ;;  %v3236_v43 = vshrl.u32 %v6217_v23, 16 }
  0xf6   : > { %4747 = vmatprep.subr.bf16.mxu1 %v5500_v29  ;;  %v3241_v61 = vrot.slane %v3239_v45, 3  ;;  %v3247_v58 = vrot.slane %v3245_v51, 2  ;;  %v3281_v45 = vshrl.u32 %v6270_v32, 16 }
  0xf7   : > { %v3215_v11 = vor.u32 %v3214_v1, %v3211_v36  ;;  %v3238_v18 = vrot.slane %v3236_v43, 2  ;;  %v3254_v1 = vshrl.u32 %v6244_v2, 16 }
  0xf9   : > { %4748 = vmatpush3.bf16.msra.mxu1 %v5500_v29  ;;  %v3216_v37 = vsel %vm3163_vm5, %v3206_v62, %v3215_v11  ;;  %v3229_v29 = vrot.slane %v3227_v31, 2 }
  0xfa   : > { %5021 = vmatprep.subr.bf16.mxu1 %v6387_v24 }
  0xfb   : > { %4718 = vmatmul.mubr.bf16.gmra.mrb[16].mxu1 %v6184_v35  ;;  %v3230_v35 = vshll.u32 %v6189_v56, 16 }
  0xfc   : > { %4942 = vmatmul.mubr.bf16.vlgmr.msra.gmra.mrb[0].mxu0 %v3189_v4  ;;  %4721 = vmatprep.mubr.bf16.mxu1 %v6195_v63  ;;  %v3207_v63 = vsel %vm3163_vm5, %v3197_v33, %v3206_v62  ;;  %v3248_v33 = vshll.u32 %v6220_v25, 16  ;;  %v1686_v25 = vrot.slane %v5765_v53, 1  ;;  %v3257_v62 = vshll.u32 %v6244_v2, 16  ;;  %v5504_v53 = vld [vmem:[%s6637_s1 + $0x230] sm:$0xff]  }
  0xfd   : > { %4974 = vmatpush3.bf16.msra.mxu0 %v6259_v50  ;;  %4945 = vmatprep.mubr.bf16.mxu0 %v3198_v9  ;;  %v3220_v50 = vrot.slane %v3218_v22, 2  ;;  %v3232_v46 = vrot.slane %v3230_v35, 3  ;;  %v3242_v9 = vor.u32 %v3241_v61, %v3238_v18  ;;  %v3265_v35 = vrot.slane %v3263_v44, 2 }
  0xfe   : > { %4975 = vmatprep.subr.bf16.mxu0 %v5497_v7  ;;  %v3250_v23 = vrot.slane %v3248_v33, 3  ;;  %v3259_v31 = vrot.slane %v3257_v62, 3  ;;  %v3283_v18 = vrot.slane %v3281_v45, 2 }
  0xff   : > { %v3224_v56 = vor.u32 %v3223_v28, %v3220_v50  ;;  %v3233_v48 = vor.u32 %v3232_v46, %v3229_v29  ;;  %v5511_v50 = vld [vmem:[%s5720_s26 + $0x18] sm:$0xff]   ;;  %v3272_v29 = vshrl.u32 %v6263_v0, 16  ;;  %v3275_v46 = vshll.u32 %v6263_v0, 16 }
 0x100   : > { %v3251_v22 = vor.u32 %v3250_v23, %v3247_v58  ;;  %v1689_v28 = vrot.slane %v5511_v50, 1  ;;  %v5514_v23 = vld [vmem:[%s5720_s26 + $0x30] sm:$0xff]   ;;  %v3311_v50 = vshll.u32 %v6361_v15, 16 }
 0x101   : > { %4976 = vmatpush3.bf16.msra.mxu0 %v5497_v7  ;;  %v3234_v4 = vsel %vm3163_vm5, %v3224_v56, %v3233_v48  ;;  %v5510_v7 = vld [vmem:[%s5720_s26 + $0x10] sm:$0xff]   ;;  %v3274_v33 = vrot.slane %v3272_v29, 2 }
 0x102   : > { %4977 = vmatprep.subr.bf16.mxu0 %v5499_v6  ;;  %v1687_v36 = vrot.slane %v5510_v7, 1  ;;  %v3252_v2 = vsel %vm3163_vm5, %v3242_v9, %v3251_v22  ;;  %v5515_v7 = vld [vmem:[%s6637_s1 + $0x108] sm:$0xff]   ;;  %v3573_v29 = vld [vmem:[%s5720_s26 + $0x10] sm:$0x8]  ;;  %v3313_v45 = vrot.slane %v3311_v50, 3 }
 0x103   : > { %4722 = vmatmul.mubr.bf16.gmra.mrb[20].mxu1 %v6201_v60  ;;  %v5502_v60 = vld [vmem:[%s6637_s1 + $0x220] sm:$0xff]  }
 0x104   : > { %4946 = vmatmul.mubr.bf16.gmra.mrb[4].mxu0 %v3207_v63  ;;  %4725 = vmatprep.mubr.bf16.mxu1 %v6209_v16  ;;  %v3225_v16 = vsel %vm3163_vm5, %v3215_v11, %v3224_v56  ;;  %v3266_v11 = vshll.u32 %v6248_v49, 16  ;;  %v5506_v49 = vld [vmem:[%s6637_s1 + $0x238] sm:$0xff]  }
 0x105   : > { %4949 = vmatprep.mubr.bf16.mxu0 %v3216_v37  ;;  %4978 = vmatpush3.bf16.msra.mxu0 %v5499_v6  ;;  %v3256_v6 = vrot.slane %v3254_v1, 2  ;;  %v3299_v1 = vshrl.u32 %v6285_v14, 16 }
 0x106   : > { %4979 = vmatprep.subr.bf16.mxu0 %v5501_v12  ;;  %v3268_v63 = vrot.slane %v3266_v11, 3 }
 0x107   : > { %v3260_v37 = vor.u32 %v3259_v31, %v3256_v6 }
 0x108   : > { %v3269_v43 = vor.u32 %v3268_v63, %v3265_v35  ;;  %v5518_v35 = vld [vmem:[%s5720_s26 + $0x40] sm:$0xff]  }
 0x109   : > { %4980 = vmatpush3.bf16.msra.mxu0 %v5501_v12  ;;  %v5512_v12 = vld [vmem:[%s5720_s26 + $0x20] sm:$0xff]   ;;  %v3261_v51 = vsel %vm3163_vm5, %v3251_v22, %v3260_v37  ;;  %v1699_v63 = vrot.slane %v5518_v35, 1 }
 0x10a   : > { %4981 = vmatprep.subr.bf16.mxu0 %v5502_v60  ;;  %v1691_v56 = vrot.slane %v5512_v12, 1 }
 0x10b   : > { %4726 = vmatmul.mubr.bf16.gmra.mrb[24].mxu1 %v6223_v30  ;;  %v3243_v30 = vsel %vm3163_vm5, %v3233_v48, %v3242_v9  ;;  %v3284_v48 = vshll.u32 %v6270_v32, 16  ;;  %v5513_v32 = vld [vmem:[%s5720_s26 + $0x28] sm:$0xff]   ;;  %v3293_v9 = vshll.u32 %v6282_v8, 16 }
 0x10c   : > { %4950 = vmatmul.mubr.bf16.gmra.mrb[8].mxu0 %v3225_v16  ;;  %4729 = vmatprep.mubr.bf16.mxu1 %v6231_v17  ;;  %v1688_v17 = vsel %vm1262_vm3, %v1686_v25, %v1687_v36  ;;  %v1692_v0 = vsel %vm1262_vm3, %v1689_v28, %v1691_v56  ;;  %v3270_v16 = vsel %vm3163_vm5, %v3260_v37, %v3269_v43  ;;  %v3290_v25 = vshrl.u32 %v6282_v8, 16  ;;  %v5516_v8 = vld [vmem:[%s6637_s1 + $0x110] sm:$0xff]   ;;  %v5519_v37 = vld [vmem:[%s6637_s1 + $0x118] sm:$0xff]  }
 0x10d   : > { %4953 = vmatprep.mubr.bf16.mxu0 %v3234_v4  ;;  %4982 = vmatpush3.bf16.msra.mxu0 %v5502_v60  ;;  %v3277_v60 = vrot.slane %v3275_v46, 3  ;;  %v3286_v61 = vrot.slane %v3284_v48, 3  ;;  %v1693_v4 = vrot.slane %v5513_v32, 1  ;;  %v4355_v48 = vcombine.low %v3573_v29, %v6043_v10  ;;  %v5523_v10 = vld [vmem:[%s6637_s1 + $0x128] sm:$0xff]  }
 0x10e   : > { %4983 = vmatprep.subr.bf16.mxu0 %v5503_v19  ;;  %v3292_v11 = vrot.slane %v3290_v25, 2 }
 0x10f   : > { %v3278_v58 = vor.u32 %v3277_v60, %v3274_v33  ;;  %v1694_v62 = vsel %vm1262_vm3, %v1691_v56, %v1693_v4 }
 0x111   : > { %4984 = vmatpush3.bf16.msra.mxu0 %v5503_v19  ;;  %v1695_v19 = vrot.slane %v5514_v23, 1  ;;  %v3279_v22 = vsel %vm3163_vm5, %v3269_v43, %v3278_v58 }
 0x112   : > { %4985 = vmatprep.subr.bf16.mxu0 %v5504_v53 }
 0x113   : > { %4730 = vmatmul.mubr.bf16.gmra.mrb[28].mxu1 %v6235_v39  ;;  %v1690_v39 = vsel %vm1262_vm3, %v1687_v36, %v1689_v28  ;;  %v3287_v36 = vor.u32 %v3286_v61, %v3283_v18  ;;  %v1696_v44 = vsel %vm1262_vm3, %v1693_v4, %v1695_v19  ;;  %v3595_v18 = vrot.slane %v4355_v48, 3 }
 0x114   : > { %4954 = vmatmul.mubr.bf16.gmra.mrb[12].mxu0 %v3243_v30  ;;  %4749 = vmatprep.mubr.bf16.mxu1 %v1688_v17  ;;  %v3301_v17 = vrot.slane %v3299_v1, 2  ;;  %v3596_v61 = vrot.slane %v6051_v52, 3  ;;  %v5525_v52 = vld [vmem:[%s5720_s26 + $0x58] sm:$0xff]   ;;  %v3600_v1 = vrot.slane %v6086_v47, 3 }
 0x115   : > { %4957 = vmatprep.mubr.bf16.mxu0 %v3252_v2  ;;  %4986 = vmatpush3.bf16.msra.mxu0 %v5504_v53  ;;  %v3295_v53 = vrot.slane %v3293_v9, 3  ;;  %v3288_v30 = vsel %vm3163_vm5, %v3278_v58, %v3287_v36  ;;  %v1705_v25 = vrot.slane %v5525_v52, 1  ;;  %v3598_v9 = vrot.slane %v6065_v27, 3 }
 0x116   : > { %4987 = vmatprep.subr.bf16.mxu0 %v5506_v49  ;;  %v3597_v23 = vsel %vm3594_vm4, %v3595_v18, %v3596_v61 }
 0x117   : > { %v3296_v2 = vor.u32 %v3295_v53, %v3292_v11  ;;  %v3601_v27 = vsel %vm3594_vm4, %v3598_v9, %v3600_v1  ;;  %v3602_v11 = vrot.slane %v6121_v3, 3  ;;  %v5529_v53 = vld [vmem:[%s5720_s26 + $0x70] sm:$0xff]   ;;  %v5531_v3 = vld [vmem:[%s5720_s26 + $0x80] sm:$0xff]  }
 0x119   : > { %4988 = vmatpush3.bf16.msra.mxu0 %v5506_v49  ;;  %v3308_v49 = vshrl.u32 %v6361_v15, 16  ;;  %v3297_v12 = vsel %vm3163_vm5, %v3287_v36, %v3296_v2 }
 0x11b   : > { %4750 = vmatmul.mubr.bf16.vlgmr.msra.gmra.mrb[0].mxu1 %v1690_v39  ;;  %v3310_v43 = vrot.slane %v3308_v49, 2  ;;  %v5520_v39 = vld [vmem:[%s6637_s1 + $0x120] sm:$0xff]  }
 0x11c   : > { %4958 = vmatmul.mubr.bf16.gmra.mrb[16].mxu0 %v3261_v51  ;;  %5029 = vmatpush3.bf16.msra.mxu1 %v6387_v24  ;;  %v3302_v24 = vshll.u32 %v6285_v14, 16  ;;  %v5517_v14 = vld [vmem:[%s5720_s26 + $0x38] sm:$0xff]   ;;  %v5521_v51 = vld [vmem:[%s5720_s26 + $0x48] sm:$0xff]  }
 0x11d   : > { %4753 = vmatprep.mubr.bf16.mxu1 %v1692_v0  ;;  %4961 = vmatprep.mubr.bf16.mxu0 %v3270_v16  ;;  %v1697_v31 = vrot.slane %v5517_v14, 1  ;;  %v1701_v33 = vrot.slane %v5521_v51, 1  ;;  %v3314_v60 = vor.u32 %v3313_v45, %v3310_v43  ;;  %v5522_v0 = vld [vmem:[%s5720_s26 + $0x50] sm:$0xff]  }
 0x11e   : > { %5022 = vmatprep.subr.bf16.mxu1 %v5515_v7  ;;  %v3304_v6 = vrot.slane %v3302_v24, 3  ;;  %v1703_v16 = vrot.slane %v5522_v0, 1  ;;  %v5527_v24 = vld [vmem:[%s6637_s1 + $0x138] sm:$0xff]   ;;  %v2079_v49 = vshrl.u32 %v5522_v0, 16  ;;  %v2082_v50 = vshll.u32 %v5522_v0, 16 }
 0x11f   : > { %v1698_v46 = vsel %vm1262_vm3, %v1695_v19, %v1697_v31  ;;  %v1700_v56 = vsel %vm1262_vm3, %v1697_v31, %v1699_v63  ;;  %v1702_v32 = vsel %vm1262_vm3, %v1699_v63, %v1701_v33  ;;  %v5524_v19 = vld [vmem:[%s6637_s1 + $0x130] sm:$0xff]   ;;  %v3605_v31 = vsel %vm3594_vm4, %v3602_v11, %v3604_v20 }
 0x120   : > { %5030 = vmatpush3.bf16.msra.mxu1 %v5515_v7  ;;  %v3305_v28 = vor.u32 %v3304_v6, %v3301_v17  ;;  %v1704_v58 = vsel %vm1262_vm3, %v1701_v33, %v1703_v16  ;;  %v5526_v7 = vld [vmem:[%s5720_s26 + $0x60] sm:$0xff]   ;;  %v3603_v6 = vsel %vm3594_vm4, %v3600_v1, %v3602_v11  ;;  %v1715_v63 = vrot.slane %v5531_v3, 1 }
 0x121   : > { %5023 = vmatprep.subr.bf16.mxu1 %v5516_v8  ;;  %v1707_v36 = vrot.slane %v5526_v7, 1  ;;  %v2088_v20 = vshrl.u32 %v5525_v52, 16  ;;  %v2097_v45 = vshrl.u32 %v5526_v7, 16 }
 0x122   : > { %v3306_v15 = vsel %vm3163_vm5, %v3296_v2, %v3305_v28  ;;  %v3315_v4 = vsel %vm3163_vm5, %v3305_v28, %v3314_v60  ;;  %v5530_v2 = vld [vmem:[%s5720_s26 + $0x78] sm:$0xff]  }
 0x123   : > { %4754 = vmatmul.mubr.bf16.gmra.mrb[4].mxu1 %v1694_v62  ;;  %v1706_v62 = vsel %vm1262_vm3, %v1703_v16, %v1705_v25  ;;  %v1713_v35 = vrot.slane %v5530_v2, 1  ;;  %v2099_v60 = vrot.slane %v2097_v45, 1 }
 0x124   : > { %4962 = vmatmul.mubr.bf16.gmra.mrb[20].mxu0 %v3279_v22  ;;  %4757 = vmatprep.mubr.bf16.mxu1 %v1696_v44  ;;  %v3599_v22 = vsel %vm3594_vm4, %v3596_v61, %v3598_v9  ;;  %v1708_v44 = vsel %vm1262_vm3, %v1705_v25, %v1707_v36  ;;  %v2115_v61 = vshrl.u32 %v5529_v53, 16  ;;  %v2127_v25 = vshll.u32 %v5530_v2, 16 }
 0x125   : > { %4965 = vmatprep.mubr.bf16.mxu0 %v3288_v30  ;;  %5031 = vmatpush3.bf16.msra.mxu1 %v5516_v8  ;;  %v5528_v8 = vld [vmem:[%s5720_s26 + $0x68] sm:$0xff]   ;;  %v1711_v30 = vrot.slane %v5529_v53, 1  ;;  %v1716_v29 = vsel %vm1262_vm3, %v1713_v35, %v1715_v63  ;;  %v2133_v9 = vshrl.u32 %v5531_v3, 16 }
 0x126   : > { %5024 = vmatprep.subr.bf16.mxu1 %v5519_v37  ;;  %v1709_v47 = vrot.slane %v5528_v8, 1  ;;  %v2106_v16 = vshrl.u32 %v5528_v8, 16  ;;  %v2109_v18 = vshll.u32 %v5528_v8, 16 }
 0x127   : > { %v1714_v28 = vsel %vm1262_vm3, %v1711_v30, %v1713_v35 }
 0x128   : > { %v1710_v17 = vsel %vm1262_vm3, %v1707_v36, %v1709_v47  ;;  %v1712_v14 = vsel %vm1262_vm3, %v1709_v47, %v1711_v30 }
 0x129   : > { %5032 = vmatpush3.bf16.msra.mxu1 %v5519_v37  ;;  %v5508_v37 = vld [vmem:[%s5720_s26 + $0x88] ss:$0 sps:$4 sm:$0x11]  }
 0x12a   : > { %5025 = vmatprep.subr.bf16.mxu1 %v5520_v39  ;;  %v1717_v26 = vrot.slane %v5508_v37, 1 }
 0x12b   : > { %4758 = vmatmul.mubr.bf16.gmra.mrb[8].mxu1 %v1698_v46  ;;  %v2081_v46 = vrot.slane %v2079_v49, 1 }
 0x12c   : > { %4966 = vmatmul.mubr.bf16.gmra.mrb[24].mxu0 %v3297_v12  ;;  %4761 = vmatprep.mubr.bf16.mxu1 %v1700_v56  ;;  %v2084_v12 = vrot.slane %v2082_v50, 2  ;;  %v2091_v56 = vshll.u32 %v5525_v52, 16  ;;  %v1718_v48 = vsel %vm1262_vm3, %v1715_v63, %v1717_v26  ;;  %v2124_v52 = vshrl.u32 %v5530_v2, 16 }
 0x12d   : > { %4969 = vmatprep.mubr.bf16.mxu0 %v3306_v15  ;;  %5033 = vmatpush3.bf16.msra.mxu1 %v5520_v39  ;;  %v2100_v15 = vshll.u32 %v5526_v7, 16  ;;  %v2090_v39 = vrot.slane %v2088_v20, 1  ;;  %v2136_v7 = vshll.u32 %v5531_v3, 16 }
 0x12e   : > { %5026 = vmatprep.subr.bf16.mxu1 %v5523_v10  ;;  %v2085_v43 = vor.u32 %v2084_v12, %v2081_v46  ;;  %v2093_v51 = vrot.slane %v2091_v56, 2  ;;  %v2126_v1 = vrot.slane %v2124_v52, 1 }
 0x12f   : > { %v2102_v0 = vrot.slane %v2100_v15, 2 }
 0x130   : > { %v2086_v33 = vsel %vm1997_vm0, %v5869_v13, %v2085_v43 }
 0x131   : > { %5034 = vmatpush3.bf16.msra.mxu1 %v5523_v10  ;;  %v2118_v10 = vshll.u32 %v5529_v53, 16 }
 0x132   : > { %5027 = vmatprep.subr.bf16.mxu1 %v5524_v19 }
 0x133   : > { %4762 = vmatmul.mubr.bf16.gmra.mrb[12].mxu1 %v1702_v32 }
 0x134   : > { %4970 = vmatmul.mubr.bf16.gmra.mrb[28].mxu0 %v3315_v4  ;;  %4765 = vmatprep.mubr.bf16.mxu1 %v1704_v58  ;;  %v2108_v4 = vrot.slane %v2106_v16, 1  ;;  %v2111_v58 = vrot.slane %v2109_v18, 2 }
 0x135   : > { %4989 = vmatprep.mubr.bf16.mxu0 %v3597_v23  ;;  %5035 = vmatpush3.bf16.msra.mxu1 %v5524_v19  ;;  %v2117_v23 = vrot.slane %v2115_v61, 1  ;;  %v2120_v19 = vrot.slane %v2118_v10, 2 }
 0x136   : > { %5028 = vmatprep.subr.bf16.mxu1 %v5527_v24 }
 0x139   : > { %5036 = vmatpush3.bf16.msra.mxu1 %v5527_v24  ;;  %v2129_v24 = vrot.slane %v2127_v25, 2 }
 0x13b   : > { %4766 = vmatmul.mubr.bf16.gmra.mrb[16].mxu1 %v1706_v62 }
 0x13c   : > { %4990 = vmatmul.mubr.bf16.vlgmr.msra.gmra.mrb[0].mxu0 %v3599_v22  ;;  %4769 = vmatprep.mubr.bf16.mxu1 %v1708_v44  ;;  %v2135_v22 = vrot.slane %v2133_v9, 1  ;;  %v2138_v44 = vrot.slane %v2136_v7, 2 }
 0x13d   : > { %4993 = vmatprep.mubr.bf16.mxu0 %v3601_v27  ;;  %v5532_v27 = vld [vmem:[%s5720_s26 + $0x88] ss:$0 sps:$4 sm:$0x33]  }
 0x13e   : > { %v2142_v8 = vshrl.u32 %v5532_v27, 16  ;;  %v2145_v47 = vshll.u32 %v5532_v27, 16 }
 0x140   : > { %v2144_v53 = vrot.slane %v2142_v8, 1  ;;  %v2147_v30 = vrot.slane %v2145_v47, 2 }
 0x143   : > { %4770 = vmatmul.mubr.bf16.gmra.mrb[20].mxu1 %v1710_v17 }
 0x144   : > { %4994 = vmatmul.mubr.bf16.gmra.mrb[4].mxu0 %v3603_v6  ;;  %4773 = vmatprep.mubr.bf16.mxu1 %v1712_v14  ;;  %v2148_v6 = vor.u32 %v2147_v30, %v2144_v53 }
 0x145   : > { %4997 = vmatprep.mubr.bf16.mxu0 %v3605_v31 }
 0x14b   : > { %4774 = vmatmul.mubr.bf16.gmra.mrb[24].mxu1 %v1714_v28 }
 0x14c   : > { %4998 = vmatmul.mubr.bf16.gmra.mrb[8].mxu0 %v6310_v21  ;;  %4777 = vmatprep.mubr.bf16.mxu1 %v1716_v29  ;;  %v2094_v21 = vor.u32 %v2093_v51, %v2090_v39 }
 0x14d   : > { %5001 = vmatprep.mubr.bf16.mxu0 %v6313_v34  ;;  %v2103_v34 = vor.u32 %v2102_v0, %v2099_v60 }
 0x14e   : > { %v2095_v32 = vsel %vm1997_vm0, %v2085_v43, %v2094_v21 }
 0x14f   : > { %v2104_v13 = vsel %vm1997_vm0, %v2094_v21, %v2103_v34 }
 0x153   : > { %4778 = vmatmul.mubr.bf16.gmra.mrb[28].mxu1 %v1718_v48 }
 0x154   : > { %5002 = vmatmul.mubr.bf16.gmra.mrb[12].mxu0 %v6317_v55  ;;  %4813 = vmatprep.mubr.bf16.mxu1 %v2086_v33  ;;  %v2112_v55 = vor.u32 %v2111_v58, %v2108_v4 }
 0x155   : > { %5005 = vmatprep.mubr.bf16.mxu0 %v6327_v40  ;;  %v2121_v40 = vor.u32 %v2120_v19, %v2117_v23 }
 0x156   : > { %v2113_v36 = vsel %vm1997_vm0, %v2103_v34, %v2112_v55 }
 0x157   : > { %v2122_v62 = vsel %vm1997_vm0, %v2112_v55, %v2121_v40 }
 0x15b   : > { %4814 = vmatmul.mubr.bf16.vlgmr.msra.gmra.mrb[16].mxu1 %v2095_v32 }
 0x15c   : > { %5006 = vmatmul.mubr.bf16.gmra.mrb[16].mxu0 %v6331_v59  ;;  %4817 = vmatprep.mubr.bf16.mxu1 %v2104_v13  ;;  %v2130_v59 = vor.u32 %v2129_v24, %v2126_v1 }
 0x15d   : > { %5009 = vmatprep.mubr.bf16.mxu0 %v6338_v5  ;;  %v2139_v5 = vor.u32 %v2138_v44, %v2135_v22 }
 0x15e   : > { %v2131_v11 = vsel %vm1997_vm0, %v2121_v40, %v2130_v59 }
 0x15f   : > { %v2140_v17 = vsel %vm1997_vm0, %v2130_v59, %v2139_v5 }
 0x163   : > { %4818 = vmatmul.mubr.bf16.gmra.mrb[20].mxu1 %v2113_v36 }
 0x164   : > { %5010 = vmatmul.mubr.bf16.gmra.mrb[20].mxu0 %v6347_v54  ;;  %4821 = vmatprep.mubr.bf16.mxu1 %v2122_v62  ;;  %v2149_v54 = vsel %vm1997_vm0, %v2139_v5, %v2148_v6 }
 0x165   : > { %5013 = vmatprep.mubr.bf16.mxu0 %v6357_v38 }
 0x16b   : > { %4822 = vmatmul.mubr.bf16.gmra.mrb[24].mxu1 %v2131_v11 }
 0x16c   : > { %5014 = vmatmul.mubr.bf16.gmra.mrb[24].mxu0 %v6364_v41  ;;  %4825 = vmatprep.mubr.bf16.mxu1 %v2140_v17 }
 0x16d   : > { %5017 = vmatprep.mubr.bf16.mxu0 %v6374_v57 }
 0x173   : > { %4826 = vmatmul.mubr.bf16.gmra.mrb[28].mxu1 %v2149_v54 }
 0x174   : > { %5018 = vmatmul.mubr.bf16.gmra.mrb[28].mxu0 %v6377_v42  ;;  %v6551_v42 = vld [vmem:[%s6638_s2] ss:$0 sm:$0xff] }
 0x1ee   : > { %v4751_v38 = vpop.f32.mrb[0].mxu1 }
 0x1ef   : > { %v1817_v14 = vpop.f32.mrb[1].mxu1  ;;  %v5037_v26 = vadd.f32 %v4751_v38, %v6551_v42 }
 0x1f0   : > { %v4752_v31 = vpop.f32.mrb[2].mxu1  ;;  %v5039_v20 = vadd.f32 %v6551_v42, %v1817_v14 }
 0x1f1   : > { %v1820_v2 = vpop.f32.mrb[3].mxu1  ;;  %v5041_v43 = vadd.f32 %v4752_v31, %v6551_v42 }
 0x1f2   : > { %v5043_v48 = vadd.f32 %v6551_v42, %v1820_v2 }
 0x1f6   : > { %v4755_v35 = vpop.f32.mrb[4].mxu1 }
 0x1f7   : > { %v1833_v3 = vpop.f32.mrb[5].mxu1  ;;  %v5045_v61 = vadd.f32 %v4755_v35, %v6551_v42 }
 0x1f8   : > { %v4756_v63 = vpop.f32.mrb[6].mxu1  ;;  %v5047_v10 = vadd.f32 %v6551_v42, %v1833_v3 }
 0x1f9   : > { %v1836_v49 = vpop.f32.mrb[7].mxu1  ;;  %v5049_v4 = vadd.f32 %v4756_v63, %v6551_v42 }
 0x1fa   : > { %v5051_v23 = vadd.f32 %v6551_v42, %v1836_v49 }
 0x1fe   : > { %v4759_v50 = vpop.f32.mrb[8].mxu1 }
 0x1ff   : > { %v1849_v28 = vpop.f32.mrb[9].mxu1  ;;  %v5053_v24 = vadd.f32 %v4759_v50, %v6551_v42 }
 0x200   : > { %v4760_v41 = vpop.f32.mrb[10].mxu1  ;;  %v5055_v62 = vadd.f32 %v6551_v42, %v1849_v28 }
 0x201   : > { %v1852_v37 = vpop.f32.mrb[11].mxu1  ;;  %v5057_v44 = vadd.f32 %v4760_v41, %v6551_v42 }
 0x202   : > { %v5059_v8 = vadd.f32 %v6551_v42, %v1852_v37 }
 0x206   : > { %v6540_v29 = vpop.f32.mrb[12].mxu1 }
 0x207   : > { %v6542_v57 = vpop.f32.mrb[13].mxu1  ;;  %v5061_v14 = vadd.f32 %v6540_v29, %v6551_v42 }
 0x208   : > { %v6544_v46 = vpop.f32.mrb[14].mxu1  ;;  %v5063_v31 = vadd.f32 %v6551_v42, %v6542_v57 }
 0x209   : > { %v6546_v12 = vpop.f32.mrb[15].mxu1  ;;  %v5065_v35 = vadd.f32 %v6544_v46, %v6551_v42 }
 0x20a   : > { %v5067_v49 = vadd.f32 %v6551_v42, %v6546_v12 }
 0x20f   : > { %v4991_v56 = vpop.f32.mrb[0].mxu0 }
 0x210   : > { %v5038_v45 = vadd.f32 %v5037_v26, %v4991_v56  ;;  %v3726_v15 = vpop.f32.mrb[1].mxu0 }
 0x211   : > { %v5040_v39 = vadd.f32 %v5039_v20, %v3726_v15  ;;  %v4992_v51 = vpop.f32.mrb[2].mxu0 }
 0x212   : > { %v3887_v33 = vmax.f32 %v5038_v45, 0.0  ;;  %v5042_v60 = vadd.f32 %v5041_v43, %v4992_v51  ;;  %v3729_v0 = vpop.f32.mrb[3].mxu0 }
 0x213   : > { %v3885_v21 = vmax.f32 %v5040_v39, 0.0  ;;  %v5044_v16 = vadd.f32 %v5043_v48, %v3729_v0 }
 0x214   : > { %3919 = vst [vmem:[%s5638_s27 + $0x10] sm:$0xff] %v3887_v33  ;;  %v3888_v18 = vmax.f32 %v5042_v60, 0.0 }
 0x215   : > { %3917 = vst [vmem:[%s5638_s27] sm:$0xff] %v3885_v21  ;;  %v3886_v34 = vmax.f32 %v5044_v16, 0.0 }
 0x216   : > { %3920 = vst [vmem:[%s5638_s27 + $0x18] sm:$0xff] %v3888_v18 }
 0x217   : > { %3918 = vst [vmem:[%s5638_s27 + $0x8] sm:$0xff] %v3886_v34  ;;  %v4995_v32 = vpop.f32.mrb[4].mxu0 }
 0x218   : > { %v5046_v58 = vadd.f32 %v5045_v61, %v4995_v32  ;;  %v3742_v13 = vpop.f32.mrb[5].mxu0 }
 0x219   : > { %v5048_v19 = vadd.f32 %v5047_v10, %v3742_v13  ;;  %v4996_v55 = vpop.f32.mrb[6].mxu0 }
 0x21a   : > { %v3891_v52 = vmax.f32 %v5046_v58, 0.0  ;;  %v5050_v25 = vadd.f32 %v5049_v4, %v4996_v55  ;;  %v3745_v40 = vpop.f32.mrb[7].mxu0 }
 0x21b   : > { %v3889_v9 = vmax.f32 %v5048_v19, 0.0  ;;  %v5052_v7 = vadd.f32 %v5051_v23, %v3745_v40 }
 0x21c   : > { %3923 = vst [vmem:[%s5638_s27 + $0x30] sm:$0xff] %v3891_v52  ;;  %v3892_v36 = vmax.f32 %v5050_v25, 0.0 }
 0x21d   : > { %3921 = vst [vmem:[%s5638_s27 + $0x20] sm:$0xff] %v3889_v9  ;;  %v3890_v1 = vmax.f32 %v5052_v7, 0.0 }
 0x21e   : > { %3924 = vst [vmem:[%s5638_s27 + $0x38] sm:$0xff] %v3892_v36 }
 0x21f   : > { %3922 = vst [vmem:[%s5638_s27 + $0x28] sm:$0xff] %v3890_v1  ;;  %v4999_v22 = vpop.f32.mrb[8].mxu0 }
 0x220   : > { %v5054_v59 = vadd.f32 %v5053_v24, %v4999_v22  ;;  %v3758_v27 = vpop.f32.mrb[9].mxu0 }
 0x221   : > { %v5056_v47 = vadd.f32 %v5055_v62, %v3758_v27  ;;  %v5000_v5 = vpop.f32.mrb[10].mxu0 }
 0x222   : > { %v3895_v11 = vmax.f32 %v5054_v59, 0.0  ;;  %v5058_v53 = vadd.f32 %v5057_v44, %v5000_v5  ;;  %v3761_v30 = vpop.f32.mrb[11].mxu0 }
 0x223   : > { %v3893_v17 = vmax.f32 %v5056_v47, 0.0  ;;  %v5060_v6 = vadd.f32 %v5059_v8, %v3761_v30 }
 0x224   : > { %3927 = vst [vmem:[%s5638_s27 + $0x50] sm:$0xff] %v3895_v11  ;;  %v3896_v54 = vmax.f32 %v5058_v53, 0.0 }
 0x225   : > { %3925 = vst [vmem:[%s5638_s27 + $0x40] sm:$0xff] %v3893_v17  ;;  %v3894_v38 = vmax.f32 %v5060_v6, 0.0 }
 0x226   : > { %3928 = vst [vmem:[%s5638_s27 + $0x58] sm:$0xff] %v3896_v54 }
 0x227   : > { %3926 = vst [vmem:[%s5638_s27 + $0x48] sm:$0xff] %v3894_v38  ;;  %v5003_v2 = vpop.f32.mrb[12].mxu0 }
 0x228   : > { %v5062_v3 = vadd.f32 %v5061_v14, %v5003_v2  ;;  %v3774_v63 = vpop.f32.mrb[13].mxu0 }
 0x229   : > { %v5064_v50 = vadd.f32 %v5063_v31, %v3774_v63  ;;  %v5004_v28 = vpop.f32.mrb[14].mxu0 }
 0x22a   : > { %v3899_v41 = vmax.f32 %v5062_v3, 0.0  ;;  %v5066_v37 = vadd.f32 %v5065_v35, %v5004_v28  ;;  %v3777_v29 = vpop.f32.mrb[15].mxu0 }
 0x22b   : > { %v3897_v26 = vmax.f32 %v5064_v50, 0.0  ;;  %v5068_v57 = vadd.f32 %v5067_v49, %v3777_v29 }
 0x22c   : > { %3931 = vst [vmem:[%s5638_s27 + $0x70] sm:$0xff] %v3899_v41  ;;  %v3900_v20 = vmax.f32 %v5066_v37, 0.0 }
 0x22d   : > { %3929 = vst [vmem:[%s5638_s27 + $0x60] sm:$0xff] %v3897_v26  ;;  %v3898_v56 = vmax.f32 %v5068_v57, 0.0 }
 0x22e   : > { %3932 = vst [vmem:[%s5638_s27 + $0x78] sm:$0xff] %v3900_v20  ;;  %v4815_v43 = vpop.f32.mrb[16].mxu1 }
 0x22f   : > { %3930 = vst [vmem:[%s5638_s27 + $0x68] sm:$0xff] %v3898_v56  ;;  %v5069_v46 = vadd.f32 %v4815_v43, %v6551_v42  ;;  %v5007_v45 = vpop.f32.mrb[16].mxu0  ;;  %v2312_v15 = vpop.f32.mrb[17].mxu1 }
 0x230   : > { %v5071_v12 = vadd.f32 %v6551_v42, %v2312_v15  ;;  %v3790_v48 = vpop.f32.mrb[17].mxu0  ;;  %v4816_v39 = vpop.f32.mrb[18].mxu1 }
 0x231   : > { %v5070_v51 = vadd.f32 %v5069_v46, %v5007_v45  ;;  %v5073_v33 = vadd.f32 %v4816_v39, %v6551_v42  ;;  %v5008_v60 = vpop.f32.mrb[18].mxu0  ;;  %v2315_v0 = vpop.f32.mrb[19].mxu1 }
 0x232   : > { %v5072_v21 = vadd.f32 %v5071_v12, %v3790_v48  ;;  %v5075_v16 = vadd.f32 %v6551_v42, %v2315_v0  ;;  %v3793_v18 = vpop.f32.mrb[19].mxu0 }
 0x233   : > { %v3903_v34 = vmax.f32 %v5070_v51, 0.0  ;;  %v5074_v61 = vadd.f32 %v5073_v33, %v5008_v60 }
 0x234   : > { %v3901_v10 = vmax.f32 %v5072_v21, 0.0  ;;  %v5076_v32 = vadd.f32 %v5075_v16, %v3793_v18 }
 0x235   : > { %3935 = vst [vmem:[%s5638_s27 + $0x90] sm:$0xff] %v3903_v34  ;;  %v3904_v4 = vmax.f32 %v5074_v61, 0.0 }
 0x236   : > { %3933 = vst [vmem:[%s5638_s27 + $0x80] sm:$0xff] %v3901_v10  ;;  %v3902_v58 = vmax.f32 %v5076_v32, 0.0  ;;  %v4819_v13 = vpop.f32.mrb[20].mxu1 }
 0x237   : > { %3936 = vst [vmem:[%s5638_s27 + $0x98] sm:$0xff] %v3904_v4  ;;  %v5077_v23 = vadd.f32 %v4819_v13, %v6551_v42  ;;  %v5011_v19 = vpop.f32.mrb[20].mxu0  ;;  %v2328_v55 = vpop.f32.mrb[21].mxu1 }
 0x238   : > { %3934 = vst [vmem:[%s5638_s27 + $0x88] sm:$0xff] %v3902_v58  ;;  %v5079_v52 = vadd.f32 %v6551_v42, %v2328_v55  ;;  %v3806_v25 = vpop.f32.mrb[21].mxu0  ;;  %v4820_v40 = vpop.f32.mrb[22].mxu1 }
 0x239   : > { %v5078_v9 = vadd.f32 %v5077_v23, %v5011_v19  ;;  %v5081_v7 = vadd.f32 %v4820_v40, %v6551_v42  ;;  %v5012_v36 = vpop.f32.mrb[22].mxu0  ;;  %v2331_v1 = vpop.f32.mrb[23].mxu1 }
 0x23a   : > { %v5080_v24 = vadd.f32 %v5079_v52, %v3806_v25  ;;  %v5083_v62 = vadd.f32 %v6551_v42, %v2331_v1  ;;  %v3809_v22 = vpop.f32.mrb[23].mxu0 }
 0x23b   : > { %v3907_v44 = vmax.f32 %v5078_v9, 0.0  ;;  %v5082_v59 = vadd.f32 %v5081_v7, %v5012_v36 }
 0x23c   : > { %v3905_v27 = vmax.f32 %v5080_v24, 0.0  ;;  %v5084_v8 = vadd.f32 %v5083_v62, %v3809_v22 }
 0x23d   : > { %3939 = vst [vmem:[%s5638_s27 + $0xb0] sm:$0xff] %v3907_v44  ;;  %v3908_v47 = vmax.f32 %v5082_v59, 0.0 }
 0x23e   : > { %3937 = vst [vmem:[%s5638_s27 + $0xa0] sm:$0xff] %v3905_v27  ;;  %v3906_v5 = vmax.f32 %v5084_v8, 0.0  ;;  %v4823_v11 = vpop.f32.mrb[24].mxu1 }
 0x23f   : > { %3940 = vst [vmem:[%s5638_s27 + $0xb8] sm:$0xff] %v3908_v47  ;;  %v5085_v53 = vadd.f32 %v4823_v11, %v6551_v42  ;;  %v5015_v30 = vpop.f32.mrb[24].mxu0  ;;  %v2344_v17 = vpop.f32.mrb[25].mxu1 }
 0x240   : > { %3938 = vst [vmem:[%s5638_s27 + $0xa8] sm:$0xff] %v3906_v5  ;;  %v5087_v6 = vadd.f32 %v6551_v42, %v2344_v17  ;;  %v3822_v54 = vpop.f32.mrb[25].mxu0  ;;  %v4824_v38 = vpop.f32.mrb[26].mxu1 }
 0x241   : > { %v5086_v14 = vadd.f32 %v5085_v53, %v5015_v30  ;;  %v5089_v31 = vadd.f32 %v4824_v38, %v6551_v42  ;;  %v5016_v2 = vpop.f32.mrb[26].mxu0  ;;  %v2347_v35 = vpop.f32.mrb[27].mxu1 }
 0x242   : > { %v5088_v3 = vadd.f32 %v5087_v6, %v3822_v54  ;;  %v5091_v63 = vadd.f32 %v6551_v42, %v2347_v35  ;;  %v3825_v49 = vpop.f32.mrb[27].mxu0 }
 0x243   : > { %v3911_v50 = vmax.f32 %v5086_v14, 0.0  ;;  %v5090_v28 = vadd.f32 %v5089_v31, %v5016_v2 }
 0x244   : > { %v3909_v41 = vmax.f32 %v5088_v3, 0.0  ;;  %v5092_v37 = vadd.f32 %v5091_v63, %v3825_v49 }
 0x245   : > { %3943 = vst [vmem:[%s5638_s27 + $0xd0] sm:$0xff] %v3911_v50  ;;  %v3912_v29 = vmax.f32 %v5090_v28, 0.0 }
 0x246   : > { %3941 = vst [vmem:[%s5638_s27 + $0xc0] sm:$0xff] %v3909_v41  ;;  %v3910_v26 = vmax.f32 %v5092_v37, 0.0  ;;  %v4827_v57 = vpop.f32.mrb[28].mxu1 }
 0x247   : > { %3944 = vst [vmem:[%s5638_s27 + $0xd8] sm:$0xff] %v3912_v29  ;;  %v5093_v20 = vadd.f32 %v4827_v57, %v6551_v42  ;;  %v5019_v56 = vpop.f32.mrb[28].mxu0  ;;  %v2360_v43 = vpop.f32.mrb[29].mxu1 }
 0x248   : > { %3942 = vst [vmem:[%s5638_s27 + $0xc8] sm:$0xff] %v3910_v26  ;;  %v5095_v46 = vadd.f32 %v6551_v42, %v2360_v43  ;;  %v3838_v45 = vpop.f32.mrb[29].mxu0  ;;  %v4828_v15 = vpop.f32.mrb[30].mxu1 }
 0x249   : > { %v5094_v12 = vadd.f32 %v5093_v20, %v5019_v56  ;;  %v5097_v48 = vadd.f32 %v4828_v15, %v6551_v42  ;;  %v5020_v39 = vpop.f32.mrb[30].mxu0  ;;  %v2363_v51 = vpop.f32.mrb[31].mxu1 }
 0x24a   : > { %v5096_v33 = vadd.f32 %v5095_v46, %v3838_v45  ;;  %v5099_v60 = vadd.f32 %v6551_v42, %v2363_v51  ;;  %v3841_v0 = vpop.f32.mrb[31].mxu0 }
 0x24b   : > { %v3915_v21 = vmax.f32 %v5094_v12, 0.0  ;;  %v5098_v16 = vadd.f32 %v5097_v48, %v5020_v39 }
 0x24c   : > { %v3913_v18 = vmax.f32 %v5096_v33, 0.0  ;;  %v5100_v34 = vadd.f32 %v5099_v60, %v3841_v0 }
 0x24d   : > { %3947 = vst [vmem:[%s5638_s27 + $0xf0] sm:$0xff] %v3915_v21  ;;  %v3916_v61 = vmax.f32 %v5098_v16, 0.0 }
 0x24e   : > { %3945 = vst [vmem:[%s5638_s27 + $0xe0] sm:$0xff] %v3913_v18  ;;  %v3914_v10 = vmax.f32 %v5100_v34, 0.0 }
 0x24f   : > { %3948 = vst [vmem:[%s5638_s27 + $0xf8] sm:$0xff] %v3916_v61 }
 0x250   : > { %3946 = vst [vmem:[%s5638_s27 + $0xe8] sm:$0xff] %v3914_v10 }
 0x251 PF: > { %s13_s16 = sadd.s32 1, %s5573_s16   ;;  %s6640_s12 = smov %s5565_s14 }
 0x252   : > { %p10_p9 = scmp.ge.s32.totalorder %s13_s16, 6   ;;  %s6641_s13 = smov %s5569_s15 }
 0x253   : > { %s6642_s14 = smov %s6645_s17  ;;  %s6643_s15 = smov %s6649_s18 }
 0x254   :  { %12 = sbr.rel (!%p10_p9) target bundleno = 3 (0x3), region = 180 }
 0x25b   :  { %3979 = vsyncmov [#allocation3] }
 0x25e   :  { %s3980_s27 = vpop.sfrf %3979 }
 0x25f   :  { %p4366_p10 = scmp.ne.s32.totalorder %s3980_s27, 0 }
 0x261   :  { %3984 = shalt.err (%p4366_p10)  }
 0x262   :  { %3986 = vsyncmov [#allocation3 + $0x1] }
 0x265   :  { %s3987_s30 = vpop.sfrf %3986 }
 0x266   :  { %p4367_p11 = scmp.ne.s32.totalorder %s3987_s30, 0 }
 0x268   :  { %3991 = shalt.err (%p4367_p11)  }

// kernel: up_forward.4
= control target key start
LH: loop header
LB: loop body
LE: loop exit
PB: predicated region body
PF: predicated region fallthrough
CT: control target
= control target key end

     0   :  { %s8729_s15 = smov 0   ;;  %s8731_s16 = smov 0   ;;  %s11381_s0 = inlined_call_operand.vmem [shape: bf16[2,552,128], index: 0, kind: input, shape index: {}]   ;;  %s11382_s1 = inlined_call_operand.vmem [shape: bf16[2,552,128], index: 1, kind: input, shape index: {}]   ;;  %s11383_s2 = inlined_call_operand.vmem [shape: bf16[3,3,256,128], index: 2, kind: input, shape index: {}]   ;;  %s11384_s3 = inlined_call_operand.vmem [shape: f32[1,128], index: 3, kind: input, shape index: {}]   ;;  %s11385_s4 = inlined_call_operand.vmem [shape: bf16[2,512,128], index: 4, kind: output, shape index: {}]  }
   0x1   :  { %s8733_s17 = smov 0   ;;  %s8735_s18 = smov 0  }
   0x2   :  { %s8737_s19 = smov 0  }
   0x3 LB: > { %s23_s20 = sadd.s32 1, %s8694_s17  ;;  %s26_s21 = sadd.s32 1, %s8698_s18  ;;  %s8702_s19 = sphi %s8737_s19, %s14_s19   ;;  %s8698_s18 = sphi %s8735_s18, %s11447_s18   ;;  %s8694_s17 = sphi %s8733_s17, %s11446_s17   ;;  %s8690_s16 = sphi %s8731_s16, %s11445_s16   ;;  %s8686_s15 = sphi %s8729_s15, %s11444_s15  }
   0x4   : > { %p24_p0 = scmp.ge.s32.totalorder %s23_s20, 2  ;;  %p6422_p1 = scmp.ge.s32.totalorder %s8702_s19, 1 }
   0x5   : > { %p118_p2 = scmp.lt.s32.totalorder %s8702_s19, 5 }
   0x6   : > { %s11449_s20 = smov (%p24_p0, %s23_s20), 0  ;;  %s11451_s21 = smov (!%p24_p0, %s26_s21), %s8698_s18 }
   0x7   : > { %p119_p3 = pnand %p6422_p1, %p118_p2  ;;  %p28_p4 = scmp.ge.s32.totalorder %s11451_s21, 2 }
   0x9   : > { %s11453_s21 = smov (%p28_p4, %s11451_s21), 0  ;;  %122 = sbr.rel (%p119_p3) target bundleno = 968 (0x3c8), region = 28 }
  0x10   : > { %s6423_s22 = sshll.u32 %s8686_s15, 5  ;;  %p140_p5 = scmp.lt.s32.totalorder %s8690_s16, 1 }
  0x11   : > { %p142_p6 = scmp.lt.s32.totalorder %s6423_s22, 63  ;;  %s8766_s23 = sand.u32 1, %s8686_s15 }
  0x12   : > { %s141_s24 = scalar_select %p140_p5, %s8690_s16, 1 }
  0x13   : > { %s11455_s22 = smov (!%p142_p6, %s6423_s22), 63  ;;  %p6426_p7 = scmp.ne.s32.totalorder %s8686_s15, 0 }
  0x14   : > { %s6424_s25 = sshll.u32 %s141_s24, 6  ;;  %s7097_s5 = smul.u32 (!%p6426_p7), 276, %s8690_s16 }
  0x15   : > { %s145_s26 = sadd.s32 %s6424_s25, %s11455_s22  ;;  %154 = sbr.rel (%p6426_p7) target bundleno = 75 (0x4b), region = 32 }
  0x16   : > { %s6425_s27 = sshll.u32 %s145_s26, 2  ;;  %s8781_s8 = scalar_lea.vmem (!%p6426_p7), %s11381_s0, %s7097_s5 }
  0x17   : > { %s8772_s30 = scalar_lea.vmem %s11385_s4, %s6425_s27  ;;  %v175_v0 = vld [vmem:[%s8781_s8] sm:$0xf] (!%p6426_p7)  ;;  %v177_v1 = vld [vmem:[%s8781_s8 + $0x4] sm:$0xf] (!%p6426_p7)  ;;  %v179_v2 = vld [vmem:[%s8781_s8 + $0x8] sm:$0xf] (!%p6426_p7) }
  0x18   : > { %176 = vst [vmem:[#allocation2] sm:$0xf] (!%p6426_p7), %v175_v0  ;;  %178 = vst [vmem:[#allocation2 + $0x8] sm:$0xf] (!%p6426_p7), %v177_v1  ;;  %v181_v3 = vld [vmem:[%s8781_s8 + $0xc] sm:$0xf] (!%p6426_p7) }
  0x19   : > { %180 = vst [vmem:[#allocation2 + $0x10] sm:$0xf] (!%p6426_p7), %v179_v2  ;;  %v183_v4 = vld [vmem:[%s8781_s8 + $0x10] sm:$0xf] (!%p6426_p7)  ;;  %v185_v5 = vld [vmem:[%s8781_s8 + $0x14] sm:$0xf] (!%p6426_p7) }
  0x1a   : > { %182 = vst [vmem:[#allocation2 + $0x18] sm:$0xf] (!%p6426_p7), %v181_v3  ;;  %184 = vst [vmem:[#allocation2 + $0x20] sm:$0xf] (!%p6426_p7), %v183_v4  ;;  %v187_v6 = vld [vmem:[%s8781_s8 + $0x18] sm:$0xf] (!%p6426_p7) }
  0x1b   : > { %186 = vst [vmem:[#allocation2 + $0x28] sm:$0xf] (!%p6426_p7), %v185_v5  ;;  %v189_v7 = vld [vmem:[%s8781_s8 + $0x1c] sm:$0xf] (!%p6426_p7)  ;;  %v191_v8 = vld [vmem:[%s8781_s8 + $0x20] sm:$0xf] (!%p6426_p7) }
  0x1c   : > { %188 = vst [vmem:[#allocation2 + $0x30] sm:$0xf] %v187_v6  ;;  %190 = vst [vmem:[#allocation2 + $0x38] sm:$0xf] %v189_v7  ;;  %v193_v9 = vld [vmem:[%s8781_s8 + $0x24] sm:$0xf] }
  0x1d   : > { %192 = vst [vmem:[#allocation2 + $0x40] sm:$0xf] %v191_v8  ;;  %v195_v10 = vld [vmem:[%s8781_s8 + $0x28] sm:$0xf]  ;;  %v197_v11 = vld [vmem:[%s8781_s8 + $0x2c] sm:$0xf] }
  0x1e   : > { %194 = vst [vmem:[#allocation2 + $0x48] sm:$0xf] %v193_v9  ;;  %196 = vst [vmem:[#allocation2 + $0x50] sm:$0xf] %v195_v10  ;;  %v199_v12 = vld [vmem:[%s8781_s8 + $0x30] sm:$0xf] }
  0x1f   : > { %198 = vst [vmem:[#allocation2 + $0x58] sm:$0xf] %v197_v11  ;;  %v201_v13 = vld [vmem:[%s8781_s8 + $0x34] sm:$0xf]  ;;  %v203_v14 = vld [vmem:[%s8781_s8 + $0x38] sm:$0xf] }
  0x20   : > { %200 = vst [vmem:[#allocation2 + $0x60] sm:$0xf] %v199_v12  ;;  %202 = vst [vmem:[#allocation2 + $0x68] sm:$0xf] %v201_v13  ;;  %v205_v15 = vld [vmem:[%s8781_s8 + $0x3c] sm:$0xf] }
  0x21   : > { %204 = vst [vmem:[#allocation2 + $0x70] sm:$0xf] %v203_v14  ;;  %v207_v16 = vld [vmem:[%s8781_s8 + $0x40] sm:$0xf]  ;;  %v209_v17 = vld [vmem:[%s8781_s8 + $0x44] sm:$0xf] }
  0x22   : > { %206 = vst [vmem:[#allocation2 + $0x78] sm:$0xf] %v205_v15  ;;  %208 = vst [vmem:[#allocation2 + $0x80] sm:$0xf] %v207_v16  ;;  %v211_v18 = vld [vmem:[%s8781_s8 + $0x48] sm:$0xf] }
  0x23   : > { %210 = vst [vmem:[#allocation2 + $0x88] sm:$0xf] %v209_v17  ;;  %v213_v19 = vld [vmem:[%s8781_s8 + $0x4c] sm:$0xf]  ;;  %v215_v20 = vld [vmem:[%s8781_s8 + $0x50] sm:$0xf] }
  0x24   : > { %212 = vst [vmem:[#allocation2 + $0x90] sm:$0xf] %v211_v18  ;;  %214 = vst [vmem:[#allocation2 + $0x98] sm:$0xf] %v213_v19  ;;  %v217_v21 = vld [vmem:[%s8781_s8 + $0x54] sm:$0xf] }
  0x25   : > { %216 = vst [vmem:[#allocation2 + $0xa0] sm:$0xf] %v215_v20  ;;  %v219_v22 = vld [vmem:[%s8781_s8 + $0x58] sm:$0xf]  ;;  %v221_v23 = vld [vmem:[%s8781_s8 + $0x5c] sm:$0xf] }
  0x26   : > { %218 = vst [vmem:[#allocation2 + $0xa8] sm:$0xf] %v217_v21  ;;  %220 = vst [vmem:[#allocation2 + $0xb0] sm:$0xf] %v219_v22  ;;  %v223_v24 = vld [vmem:[%s8781_s8 + $0x60] sm:$0xf] }
  0x27   : > { %222 = vst [vmem:[#allocation2 + $0xb8] sm:$0xf] %v221_v23  ;;  %v225_v25 = vld [vmem:[%s8781_s8 + $0x64] sm:$0xf]  ;;  %v227_v26 = vld [vmem:[%s8781_s8 + $0x68] sm:$0xf] }
  0x28   : > { %224 = vst [vmem:[#allocation2 + $0xc0] sm:$0xf] %v223_v24  ;;  %226 = vst [vmem:[#allocation2 + $0xc8] sm:$0xf] %v225_v25  ;;  %v229_v27 = vld [vmem:[%s8781_s8 + $0x6c] sm:$0xf] }
  0x29   : > { %228 = vst [vmem:[#allocation2 + $0xd0] sm:$0xf] %v227_v26  ;;  %v231_v28 = vld [vmem:[%s8781_s8 + $0x70] sm:$0xf]  ;;  %v233_v29 = vld [vmem:[%s8781_s8 + $0x74] sm:$0xf] }
  0x2a   : > { %230 = vst [vmem:[#allocation2 + $0xd8] sm:$0xf] %v229_v27  ;;  %232 = vst [vmem:[#allocation2 + $0xe0] sm:$0xf] %v231_v28  ;;  %v235_v30 = vld [vmem:[%s8781_s8 + $0x78] sm:$0xf] }
  0x2b   : > { %234 = vst [vmem:[#allocation2 + $0xe8] sm:$0xf] %v233_v29  ;;  %v237_v31 = vld [vmem:[%s8781_s8 + $0x7c] sm:$0xf]  ;;  %v239_v32 = vld [vmem:[%s8781_s8 + $0x80] sm:$0xf] }
  0x2c   : > { %236 = vst [vmem:[#allocation2 + $0xf0] sm:$0xf] %v235_v30  ;;  %238 = vst [vmem:[#allocation2 + $0xf8] sm:$0xf] %v237_v31  ;;  %v241_v33 = vld [vmem:[%s8781_s8 + $0x84] sm:$0xf] }
  0x2d   : > { %240 = vst [vmem:[#allocation2 + $0x100] sm:$0xf] %v239_v32  ;;  %v243_v34 = vld [vmem:[%s8781_s8 + $0x88] sm:$0xf]  ;;  %v245_v35 = vld [vmem:[%s8781_s8 + $0x8c] sm:$0xf] }
  0x2e   : > { %242 = vst [vmem:[#allocation2 + $0x108] sm:$0xf] %v241_v33  ;;  %244 = vst [vmem:[#allocation2 + $0x110] sm:$0xf] %v243_v34  ;;  %v247_v36 = vld [vmem:[%s8781_s8 + $0x90] sm:$0xf] }
  0x2f   : > { %246 = vst [vmem:[#allocation2 + $0x118] sm:$0xf] %v245_v35  ;;  %248 = vst [vmem:[#allocation2 + $0x120] sm:$0xf] %v247_v36 }
  0x30   : > { %353 = vsyncadd [#allocation3], 2368  ;;  %s8825_s11 = scalar_lea.vmem %s11382_s1, %s7097_s5 }
  0x31   : > { %v375_v37 = vld [vmem:[%s8825_s11] sm:$0xf]  ;;  %v377_v38 = vld [vmem:[%s8825_s11 + $0x4] sm:$0xf]  ;;  %v379_v39 = vld [vmem:[%s8825_s11 + $0x8] sm:$0xf] }
  0x32   : > { %376 = vst [vmem:[#allocation2 + $0x4] sm:$0xf] %v375_v37  ;;  %378 = vst [vmem:[#allocation2 + $0xc] sm:$0xf] %v377_v38  ;;  %v381_v40 = vld [vmem:[%s8825_s11 + $0xc] sm:$0xf] }
  0x33   : > { %380 = vst [vmem:[#allocation2 + $0x14] sm:$0xf] %v379_v39  ;;  %v383_v41 = vld [vmem:[%s8825_s11 + $0x10] sm:$0xf]  ;;  %v385_v42 = vld [vmem:[%s8825_s11 + $0x14] sm:$0xf] }
  0x34   : > { %382 = vst [vmem:[#allocation2 + $0x1c] sm:$0xf] %v381_v40  ;;  %384 = vst [vmem:[#allocation2 + $0x24] sm:$0xf] %v383_v41  ;;  %v387_v43 = vld [vmem:[%s8825_s11 + $0x18] sm:$0xf] }
  0x35   : > { %386 = vst [vmem:[#allocation2 + $0x2c] sm:$0xf] %v385_v42  ;;  %v389_v44 = vld [vmem:[%s8825_s11 + $0x1c] sm:$0xf]  ;;  %v391_v45 = vld [vmem:[%s8825_s11 + $0x20] sm:$0xf] }
  0x36   : > { %388 = vst [vmem:[#allocation2 + $0x34] sm:$0xf] %v387_v43  ;;  %390 = vst [vmem:[#allocation2 + $0x3c] sm:$0xf] %v389_v44  ;;  %v393_v46 = vld [vmem:[%s8825_s11 + $0x24] sm:$0xf] }
  0x37   : > { %392 = vst [vmem:[#allocation2 + $0x44] sm:$0xf] %v391_v45  ;;  %v395_v47 = vld [vmem:[%s8825_s11 + $0x28] sm:$0xf]  ;;  %v397_v48 = vld [vmem:[%s8825_s11 + $0x2c] sm:$0xf] }
  0x38   : > { %394 = vst [vmem:[#allocation2 + $0x4c] sm:$0xf] %v393_v46  ;;  %396 = vst [vmem:[#allocation2 + $0x54] sm:$0xf] %v395_v47  ;;  %v399_v49 = vld [vmem:[%s8825_s11 + $0x30] sm:$0xf] }
  0x39   : > { %398 = vst [vmem:[#allocation2 + $0x5c] sm:$0xf] %v397_v48  ;;  %v401_v50 = vld [vmem:[%s8825_s11 + $0x34] sm:$0xf]  ;;  %v403_v51 = vld [vmem:[%s8825_s11 + $0x38] sm:$0xf] }
  0x3a   : > { %400 = vst [vmem:[#allocation2 + $0x64] sm:$0xf] %v399_v49  ;;  %402 = vst [vmem:[#allocation2 + $0x6c] sm:$0xf] %v401_v50  ;;  %v405_v52 = vld [vmem:[%s8825_s11 + $0x3c] sm:$0xf] }
  0x3b   : > { %404 = vst [vmem:[#allocation2 + $0x74] sm:$0xf] %v403_v51  ;;  %v407_v53 = vld [vmem:[%s8825_s11 + $0x40] sm:$0xf]  ;;  %v409_v54 = vld [vmem:[%s8825_s11 + $0x44] sm:$0xf] }
  0x3c   : > { %406 = vst [vmem:[#allocation2 + $0x7c] sm:$0xf] %v405_v52  ;;  %408 = vst [vmem:[#allocation2 + $0x84] sm:$0xf] %v407_v53  ;;  %v411_v55 = vld [vmem:[%s8825_s11 + $0x48] sm:$0xf] }
  0x3d   : > { %410 = vst [vmem:[#allocation2 + $0x8c] sm:$0xf] %v409_v54  ;;  %v413_v56 = vld [vmem:[%s8825_s11 + $0x4c] sm:$0xf]  ;;  %v415_v57 = vld [vmem:[%s8825_s11 + $0x50] sm:$0xf] }
  0x3e   : > { %412 = vst [vmem:[#allocation2 + $0x94] sm:$0xf] %v411_v55  ;;  %414 = vst [vmem:[#allocation2 + $0x9c] sm:$0xf] %v413_v56  ;;  %v417_v58 = vld [vmem:[%s8825_s11 + $0x54] sm:$0xf] }
  0x3f   : > { %416 = vst [vmem:[#allocation2 + $0xa4] sm:$0xf] %v415_v57  ;;  %v419_v59 = vld [vmem:[%s8825_s11 + $0x58] sm:$0xf]  ;;  %v421_v60 = vld [vmem:[%s8825_s11 + $0x5c] sm:$0xf] }
  0x40   : > { %418 = vst [vmem:[#allocation2 + $0xac] sm:$0xf] %v417_v58  ;;  %420 = vst [vmem:[#allocation2 + $0xb4] sm:$0xf] %v419_v59  ;;  %v423_v61 = vld [vmem:[%s8825_s11 + $0x60] sm:$0xf] }
  0x41   : > { %422 = vst [vmem:[#allocation2 + $0xbc] sm:$0xf] %v421_v60  ;;  %v425_v62 = vld [vmem:[%s8825_s11 + $0x64] sm:$0xf]  ;;  %v427_v63 = vld [vmem:[%s8825_s11 + $0x68] sm:$0xf] }
  0x42   : > { %424 = vst [vmem:[#allocation2 + $0xc4] sm:$0xf] %v423_v61  ;;  %426 = vst [vmem:[#allocation2 + $0xcc] sm:$0xf] %v425_v62  ;;  %v429_v0 = vld [vmem:[%s8825_s11 + $0x6c] sm:$0xf] }
  0x43   : > { %428 = vst [vmem:[#allocation2 + $0xd4] sm:$0xf] %v427_v63  ;;  %v431_v1 = vld [vmem:[%s8825_s11 + $0x70] sm:$0xf]  ;;  %v433_v2 = vld [vmem:[%s8825_s11 + $0x74] sm:$0xf] }
  0x44   : > { %430 = vst [vmem:[#allocation2 + $0xdc] sm:$0xf] %v429_v0  ;;  %432 = vst [vmem:[#allocation2 + $0xe4] sm:$0xf] %v431_v1  ;;  %v435_v3 = vld [vmem:[%s8825_s11 + $0x78] sm:$0xf] }
  0x45   : > { %434 = vst [vmem:[#allocation2 + $0xec] sm:$0xf] %v433_v2  ;;  %v437_v4 = vld [vmem:[%s8825_s11 + $0x7c] sm:$0xf]  ;;  %v439_v5 = vld [vmem:[%s8825_s11 + $0x80] sm:$0xf] }
  0x46   : > { %436 = vst [vmem:[#allocation2 + $0xf4] sm:$0xf] %v435_v3  ;;  %438 = vst [vmem:[#allocation2 + $0xfc] sm:$0xf] %v437_v4  ;;  %v441_v6 = vld [vmem:[%s8825_s11 + $0x84] sm:$0xf] }
  0x47   : > { %440 = vst [vmem:[#allocation2 + $0x104] sm:$0xf] %v439_v5  ;;  %v443_v7 = vld [vmem:[%s8825_s11 + $0x88] sm:$0xf]  ;;  %v445_v8 = vld [vmem:[%s8825_s11 + $0x8c] sm:$0xf] }
  0x48   : > { %442 = vst [vmem:[#allocation2 + $0x10c] sm:$0xf] %v441_v6  ;;  %444 = vst [vmem:[#allocation2 + $0x114] sm:$0xf] %v443_v7  ;;  %v447_v9 = vld [vmem:[%s8825_s11 + $0x90] sm:$0xf] }
  0x49   : > { %446 = vst [vmem:[#allocation2 + $0x11c] sm:$0xf] %v445_v8  ;;  %448 = vst [vmem:[#allocation2 + $0x124] sm:$0xf] %v447_v9 }
  0x4a   : > { %553 = vsyncadd [#allocation3 + $0x1], 2368 }
  0x4b PF: > { %s554_s12 = sadd.s32 1, %s8686_s15 }
  0x4c   : > { %p6429_p8 = scmp.ge.s32.totalorder %s554_s12, 2 }
  0x4d   : > { %s559_s13 = ssub.s32 (!%p6429_p8), 1, %s8766_s23  ;;  %s7099_s14 = sshll.u32 (!%p6429_p8), %s8686_s15, 8 }
  0x4e   : > { %558 = sbr.rel (%p6429_p8) target bundleno = 136 (0x88), region = 110  ;;  %s7100_s22 = sadd.s32 (!%p6429_p8), 256, %s7099_s14 }
  0x4f   : > { %s563_s24 = smul.u32 (!%p6429_p8), 69, %s8690_s16  ;;  %s561_s25 = sshra.s32 (!%p6429_p8), %s7100_s22, 3 }
  0x50   : > { %s7101_s26 = smul.u32 (!%p6429_p8), 296, %s559_s13  ;;  %s8870_s28 = sshll.u32 (!%p6429_p8), %s559_s13, 1 }
  0x51   : > { %s8868_s27 = sadd.s32 (!%p6429_p8), %s563_s24, %s561_s25  ;;  %s571_s16 = scalar_lea.sflag (!%p6429_p8), [#allocation3], %s8870_s28 }
  0x52   : > { %s6431_s29 = sshll.u32 (!%p6429_p8), %s8868_s27, 2  ;;  %s8883_s15 = scalar_lea.vmem (!%p6429_p8), [#allocation2], %s7101_s26 }
  0x53   : > { %s8878_s7 = scalar_lea.vmem (!%p6429_p8), %s11381_s0, %s6431_s29 }
  0x54   : > { %v589_v10 = vld [vmem:[%s8878_s7] sm:$0xf] (!%p6429_p8)  ;;  %v591_v11 = vld [vmem:[%s8878_s7 + $0x4] sm:$0xf] (!%p6429_p8)  ;;  %v593_v12 = vld [vmem:[%s8878_s7 + $0x8] sm:$0xf] (!%p6429_p8) }
  0x55   : > { %590 = vst [vmem:[%s8883_s15] sm:$0xf] %v589_v10  ;;  %592 = vst [vmem:[%s8883_s15 + $0x8] sm:$0xf] %v591_v11  ;;  %v595_v13 = vld [vmem:[%s8878_s7 + $0xc] sm:$0xf] }
  0x56   : > { %594 = vst [vmem:[%s8883_s15 + $0x10] sm:$0xf] %v593_v12  ;;  %v597_v14 = vld [vmem:[%s8878_s7 + $0x10] sm:$0xf]  ;;  %v599_v15 = vld [vmem:[%s8878_s7 + $0x14] sm:$0xf] }
  0x57   : > { %596 = vst [vmem:[%s8883_s15 + $0x18] sm:$0xf] %v595_v13  ;;  %598 = vst [vmem:[%s8883_s15 + $0x20] sm:$0xf] %v597_v14  ;;  %v601_v16 = vld [vmem:[%s8878_s7 + $0x18] sm:$0xf] }
  0x58   : > { %600 = vst [vmem:[%s8883_s15 + $0x28] sm:$0xf] %v599_v15  ;;  %v603_v17 = vld [vmem:[%s8878_s7 + $0x1c] sm:$0xf]  ;;  %v605_v18 = vld [vmem:[%s8878_s7 + $0x20] sm:$0xf] }
  0x59   : > { %602 = vst [vmem:[%s8883_s15 + $0x30] sm:$0xf] %v601_v16  ;;  %604 = vst [vmem:[%s8883_s15 + $0x38] sm:$0xf] %v603_v17  ;;  %v607_v19 = vld [vmem:[%s8878_s7 + $0x24] sm:$0xf] }
  0x5a   : > { %606 = vst [vmem:[%s8883_s15 + $0x40] sm:$0xf] %v605_v18  ;;  %v609_v20 = vld [vmem:[%s8878_s7 + $0x28] sm:$0xf]  ;;  %v611_v21 = vld [vmem:[%s8878_s7 + $0x2c] sm:$0xf] }
  0x5b   : > { %608 = vst [vmem:[%s8883_s15 + $0x48] sm:$0xf] %v607_v19  ;;  %610 = vst [vmem:[%s8883_s15 + $0x50] sm:$0xf] %v609_v20  ;;  %v613_v22 = vld [vmem:[%s8878_s7 + $0x30] sm:$0xf] }
  0x5c   : > { %612 = vst [vmem:[%s8883_s15 + $0x58] sm:$0xf] %v611_v21  ;;  %v615_v23 = vld [vmem:[%s8878_s7 + $0x34] sm:$0xf]  ;;  %v617_v24 = vld [vmem:[%s8878_s7 + $0x38] sm:$0xf] }
  0x5d   : > { %614 = vst [vmem:[%s8883_s15 + $0x60] sm:$0xf] %v613_v22  ;;  %616 = vst [vmem:[%s8883_s15 + $0x68] sm:$0xf] %v615_v23  ;;  %v619_v25 = vld [vmem:[%s8878_s7 + $0x3c] sm:$0xf] }
  0x5e   : > { %618 = vst [vmem:[%s8883_s15 + $0x70] sm:$0xf] %v617_v24  ;;  %v621_v26 = vld [vmem:[%s8878_s7 + $0x40] sm:$0xf]  ;;  %v623_v27 = vld [vmem:[%s8878_s7 + $0x44] sm:$0xf] }
  0x5f   : > { %620 = vst [vmem:[%s8883_s15 + $0x78] sm:$0xf] %v619_v25  ;;  %622 = vst [vmem:[%s8883_s15 + $0x80] sm:$0xf] %v621_v26  ;;  %v625_v28 = vld [vmem:[%s8878_s7 + $0x48] sm:$0xf] }
  0x60   : > { %624 = vst [vmem:[%s8883_s15 + $0x88] sm:$0xf] %v623_v27  ;;  %v627_v29 = vld [vmem:[%s8878_s7 + $0x4c] sm:$0xf]  ;;  %v629_v30 = vld [vmem:[%s8878_s7 + $0x50] sm:$0xf] }
  0x61   : > { %626 = vst [vmem:[%s8883_s15 + $0x90] sm:$0xf] %v625_v28  ;;  %628 = vst [vmem:[%s8883_s15 + $0x98] sm:$0xf] %v627_v29  ;;  %v631_v31 = vld [vmem:[%s8878_s7 + $0x54] sm:$0xf] }
  0x62   : > { %630 = vst [vmem:[%s8883_s15 + $0xa0] sm:$0xf] %v629_v30  ;;  %v633_v32 = vld [vmem:[%s8878_s7 + $0x58] sm:$0xf]  ;;  %v635_v33 = vld [vmem:[%s8878_s7 + $0x5c] sm:$0xf] }
  0x63   : > { %632 = vst [vmem:[%s8883_s15 + $0xa8] sm:$0xf] %v631_v31  ;;  %634 = vst [vmem:[%s8883_s15 + $0xb0] sm:$0xf] %v633_v32  ;;  %v637_v34 = vld [vmem:[%s8878_s7 + $0x60] sm:$0xf] }
  0x64   : > { %636 = vst [vmem:[%s8883_s15 + $0xb8] sm:$0xf] %v635_v33  ;;  %v639_v35 = vld [vmem:[%s8878_s7 + $0x64] sm:$0xf]  ;;  %v641_v36 = vld [vmem:[%s8878_s7 + $0x68] sm:$0xf] }
  0x65   : > { %638 = vst [vmem:[%s8883_s15 + $0xc0] sm:$0xf] %v637_v34  ;;  %640 = vst [vmem:[%s8883_s15 + $0xc8] sm:$0xf] %v639_v35  ;;  %v643_v37 = vld [vmem:[%s8878_s7 + $0x6c] sm:$0xf] }
  0x66   : > { %642 = vst [vmem:[%s8883_s15 + $0xd0] sm:$0xf] %v641_v36  ;;  %v645_v38 = vld [vmem:[%s8878_s7 + $0x70] sm:$0xf]  ;;  %v647_v39 = vld [vmem:[%s8878_s7 + $0x74] sm:$0xf] }
  0x67   : > { %644 = vst [vmem:[%s8883_s15 + $0xd8] sm:$0xf] %v643_v37  ;;  %646 = vst [vmem:[%s8883_s15 + $0xe0] sm:$0xf] %v645_v38  ;;  %v649_v40 = vld [vmem:[%s8878_s7 + $0x78] sm:$0xf] }
  0x68   : > { %648 = vst [vmem:[%s8883_s15 + $0xe8] sm:$0xf] %v647_v39  ;;  %v651_v41 = vld [vmem:[%s8878_s7 + $0x7c] sm:$0xf]  ;;  %v653_v42 = vld [vmem:[%s8878_s7 + $0x80] sm:$0xf] }
  0x69   : > { %650 = vst [vmem:[%s8883_s15 + $0xf0] sm:$0xf] %v649_v40  ;;  %652 = vst [vmem:[%s8883_s15 + $0xf8] sm:$0xf] %v651_v41  ;;  %v655_v43 = vld [vmem:[%s8878_s7 + $0x84] sm:$0xf] }
  0x6a   : > { %654 = vst [vmem:[%s8883_s15 + $0x100] sm:$0xf] %v653_v42  ;;  %v657_v44 = vld [vmem:[%s8878_s7 + $0x88] sm:$0xf]  ;;  %v659_v45 = vld [vmem:[%s8878_s7 + $0x8c] sm:$0xf] }
  0x6b   : > { %656 = vst [vmem:[%s8883_s15 + $0x108] sm:$0xf] %v655_v43  ;;  %658 = vst [vmem:[%s8883_s15 + $0x110] sm:$0xf] %v657_v44  ;;  %v661_v46 = vld [vmem:[%s8878_s7 + $0x90] sm:$0xf] }
  0x6c   : > { %660 = vst [vmem:[%s8883_s15 + $0x118] sm:$0xf] %v659_v45  ;;  %662 = vst [vmem:[%s8883_s15 + $0x120] sm:$0xf] %v661_v46 }
  0x6d   : > { %767 = vsyncadd %s571_s16, 2368  ;;  %s8962_s10 = scalar_lea.vmem %s11382_s1, %s6431_s29  ;;  %s8964_s11 = scalar_lea.sflag %s571_s16, 1 [#allocation3] }
  0x6e   : > { %v792_v47 = vld [vmem:[%s8962_s10] sm:$0xf]  ;;  %v794_v48 = vld [vmem:[%s8962_s10 + $0x4] sm:$0xf]  ;;  %v796_v49 = vld [vmem:[%s8962_s10 + $0x8] sm:$0xf] }
  0x6f   : > { %6474 = vst [vmem:[%s8883_s15 + $0x4] sm:$0xf] %v792_v47  ;;  %6475 = vst [vmem:[%s8883_s15 + $0xc] sm:$0xf] %v794_v48  ;;  %v798_v50 = vld [vmem:[%s8962_s10 + $0xc] sm:$0xf] }
  0x70   : > { %6476 = vst [vmem:[%s8883_s15 + $0x14] sm:$0xf] %v796_v49  ;;  %v800_v51 = vld [vmem:[%s8962_s10 + $0x10] sm:$0xf]  ;;  %v802_v52 = vld [vmem:[%s8962_s10 + $0x14] sm:$0xf] }
  0x71   : > { %6477 = vst [vmem:[%s8883_s15 + $0x1c] sm:$0xf] %v798_v50  ;;  %6478 = vst [vmem:[%s8883_s15 + $0x24] sm:$0xf] %v800_v51  ;;  %v804_v53 = vld [vmem:[%s8962_s10 + $0x18] sm:$0xf] }
  0x72   : > { %6479 = vst [vmem:[%s8883_s15 + $0x2c] sm:$0xf] %v802_v52  ;;  %v806_v54 = vld [vmem:[%s8962_s10 + $0x1c] sm:$0xf]  ;;  %v808_v55 = vld [vmem:[%s8962_s10 + $0x20] sm:$0xf] }
  0x73   : > { %6480 = vst [vmem:[%s8883_s15 + $0x34] sm:$0xf] %v804_v53  ;;  %6481 = vst [vmem:[%s8883_s15 + $0x3c] sm:$0xf] %v806_v54  ;;  %v810_v56 = vld [vmem:[%s8962_s10 + $0x24] sm:$0xf] }
  0x74   : > { %6482 = vst [vmem:[%s8883_s15 + $0x44] sm:$0xf] %v808_v55  ;;  %v812_v57 = vld [vmem:[%s8962_s10 + $0x28] sm:$0xf]  ;;  %v814_v58 = vld [vmem:[%s8962_s10 + $0x2c] sm:$0xf] }
  0x75   : > { %6483 = vst [vmem:[%s8883_s15 + $0x4c] sm:$0xf] %v810_v56  ;;  %6484 = vst [vmem:[%s8883_s15 + $0x54] sm:$0xf] %v812_v57  ;;  %v816_v59 = vld [vmem:[%s8962_s10 + $0x30] sm:$0xf] }
  0x76   : > { %6485 = vst [vmem:[%s8883_s15 + $0x5c] sm:$0xf] %v814_v58  ;;  %v818_v60 = vld [vmem:[%s8962_s10 + $0x34] sm:$0xf]  ;;  %v820_v61 = vld [vmem:[%s8962_s10 + $0x38] sm:$0xf] }
  0x77   : > { %6486 = vst [vmem:[%s8883_s15 + $0x64] sm:$0xf] %v816_v59  ;;  %6487 = vst [vmem:[%s8883_s15 + $0x6c] sm:$0xf] %v818_v60  ;;  %v822_v62 = vld [vmem:[%s8962_s10 + $0x3c] sm:$0xf] }
  0x78   : > { %6488 = vst [vmem:[%s8883_s15 + $0x74] sm:$0xf] %v820_v61  ;;  %v824_v63 = vld [vmem:[%s8962_s10 + $0x40] sm:$0xf]  ;;  %v826_v0 = vld [vmem:[%s8962_s10 + $0x44] sm:$0xf] }
  0x79   : > { %6489 = vst [vmem:[%s8883_s15 + $0x7c] sm:$0xf] %v822_v62  ;;  %6490 = vst [vmem:[%s8883_s15 + $0x84] sm:$0xf] %v824_v63  ;;  %v828_v1 = vld [vmem:[%s8962_s10 + $0x48] sm:$0xf] }
  0x7a   : > { %6491 = vst [vmem:[%s8883_s15 + $0x8c] sm:$0xf] %v826_v0  ;;  %v830_v2 = vld [vmem:[%s8962_s10 + $0x4c] sm:$0xf]  ;;  %v832_v3 = vld [vmem:[%s8962_s10 + $0x50] sm:$0xf] }
  0x7b   : > { %6492 = vst [vmem:[%s8883_s15 + $0x94] sm:$0xf] %v828_v1  ;;  %6493 = vst [vmem:[%s8883_s15 + $0x9c] sm:$0xf] %v830_v2  ;;  %v834_v4 = vld [vmem:[%s8962_s10 + $0x54] sm:$0xf] }
  0x7c   : > { %6494 = vst [vmem:[%s8883_s15 + $0xa4] sm:$0xf] %v832_v3  ;;  %v836_v5 = vld [vmem:[%s8962_s10 + $0x58] sm:$0xf]  ;;  %v838_v6 = vld [vmem:[%s8962_s10 + $0x5c] sm:$0xf] }
  0x7d   : > { %6495 = vst [vmem:[%s8883_s15 + $0xac] sm:$0xf] %v834_v4  ;;  %6496 = vst [vmem:[%s8883_s15 + $0xb4] sm:$0xf] %v836_v5  ;;  %v840_v7 = vld [vmem:[%s8962_s10 + $0x60] sm:$0xf] }
  0x7e   : > { %6497 = vst [vmem:[%s8883_s15 + $0xbc] sm:$0xf] %v838_v6  ;;  %v842_v8 = vld [vmem:[%s8962_s10 + $0x64] sm:$0xf]  ;;  %v844_v9 = vld [vmem:[%s8962_s10 + $0x68] sm:$0xf] }
  0x7f   : > { %6498 = vst [vmem:[%s8883_s15 + $0xc4] sm:$0xf] %v840_v7  ;;  %6499 = vst [vmem:[%s8883_s15 + $0xcc] sm:$0xf] %v842_v8  ;;  %v846_v10 = vld [vmem:[%s8962_s10 + $0x6c] sm:$0xf] }
  0x80   : > { %6500 = vst [vmem:[%s8883_s15 + $0xd4] sm:$0xf] %v844_v9  ;;  %v848_v11 = vld [vmem:[%s8962_s10 + $0x70] sm:$0xf]  ;;  %v850_v12 = vld [vmem:[%s8962_s10 + $0x74] sm:$0xf] }
  0x81   : > { %6501 = vst [vmem:[%s8883_s15 + $0xdc] sm:$0xf] %v846_v10  ;;  %6502 = vst [vmem:[%s8883_s15 + $0xe4] sm:$0xf] %v848_v11  ;;  %v852_v13 = vld [vmem:[%s8962_s10 + $0x78] sm:$0xf] }
  0x82   : > { %6503 = vst [vmem:[%s8883_s15 + $0xec] sm:$0xf] %v850_v12  ;;  %v854_v14 = vld [vmem:[%s8962_s10 + $0x7c] sm:$0xf]  ;;  %v856_v15 = vld [vmem:[%s8962_s10 + $0x80] sm:$0xf] }
  0x83   : > { %6504 = vst [vmem:[%s8883_s15 + $0xf4] sm:$0xf] %v852_v13  ;;  %6505 = vst [vmem:[%s8883_s15 + $0xfc] sm:$0xf] %v854_v14  ;;  %v858_v16 = vld [vmem:[%s8962_s10 + $0x84] sm:$0xf] }
  0x84   : > { %6506 = vst [vmem:[%s8883_s15 + $0x104] sm:$0xf] %v856_v15  ;;  %v860_v17 = vld [vmem:[%s8962_s10 + $0x88] sm:$0xf]  ;;  %v862_v18 = vld [vmem:[%s8962_s10 + $0x8c] sm:$0xf] }
  0x85   : > { %6507 = vst [vmem:[%s8883_s15 + $0x10c] sm:$0xf] %v858_v16  ;;  %6508 = vst [vmem:[%s8883_s15 + $0x114] sm:$0xf] %v860_v17  ;;  %v864_v19 = vld [vmem:[%s8962_s10 + $0x90] sm:$0xf] }
  0x86   : > { %6509 = vst [vmem:[%s8883_s15 + $0x11c] sm:$0xf] %v862_v18  ;;  %6510 = vst [vmem:[%s8883_s15 + $0x124] sm:$0xf] %v864_v19 }
  0x87   : > { %970 = vsyncadd %s8964_s11, 2368 }
  0x88 PF: > { %s6511_s12 = sshll.u32 %s8766_s23, 1 }
  0x89   : > { %s972_s13 = scalar_lea.sflag [#allocation3], %s6511_s12 }
  0x8a   : > { %8680 = dma.done.wait %s972_s13, 2368 }
  0x8b   : > { %8681 = vsyncadd %s972_s13, 4294964928  ;;  %s6334_s14 = scalar_lea.sflag %s972_s13, 1 [#allocation3] }
  0x8c   : > { %8682 = dma.done.wait %s6334_s14, 2368 }
  0x8d   : > { %8683 = vsyncadd %s6334_s14, 4294964928  ;;  %v8294_v20 = vld [vmem:[%s11383_s2 + $0x40] sm:$0xff]   ;;  %v8296_v22 = vld [vmem:[%s11383_s2 + $0x48] sm:$0xff]   ;;  %s7102_s10 = smul.u32 296, %s8766_s23  ;;  %vm1671_vm0 = vsmask.f32 7424 }
  0x8e   : > { %v8295_v21 = vld [vmem:[%s11383_s2] sm:$0xff]   ;;  %7230 = vmatprep.subr.bf16.mxu0 %v8294_v20  ;;  %8238 = vmatprep.subr.bf16.mxu1 %v8294_v20  ;;  %v8297_v23 = vld [vmem:[%s11383_s2 + $0x8] sm:$0xff]   ;;  %v8298_v24 = vld [vmem:[%s11383_s2 + $0x50] sm:$0xff]   ;;  %vm2296_vm1 = vcmask 1046528   ;;  %vm3309_vm2 = vsmask.f32 6400 }
  0x8f   : > { %7231 = vmatpush3.bf16.msra.mxu0 %v8295_v21  ;;  %8246 = vmatpush3.bf16.msra.mxu1 %v8295_v21  ;;  %v8299_v25 = vld [vmem:[%s11383_s2 + $0x10] sm:$0xff]   ;;  %v8300_v26 = vld [vmem:[%s11383_s2 + $0x58] sm:$0xff]   ;;  %v8302_v28 = vld [vmem:[%s11383_s2 + $0x60] sm:$0xff]   ;;  %s9076_s26 = scalar_lea.vmem [#allocation2], %s7102_s10  ;;  %vm3974_vm3 = vcmask 1045504   ;;  %vm5652_vm5 = vcmask 1044480  }
  0x90   : > { %7232 = vmatprep.subr.bf16.mxu0 %v8296_v22  ;;  %8239 = vmatprep.subr.bf16.mxu1 %v8296_v22  ;;  %v8301_v27 = vld [vmem:[%s11383_s2 + $0x18] sm:$0xff]   ;;  %v8303_v29 = vld [vmem:[%s11383_s2 + $0x20] sm:$0xff]   ;;  %v8304_v30 = vld [vmem:[%s11383_s2 + $0x68] sm:$0xff]   ;;  %vm4987_vm4 = vsmask.f32 5376 }
  0x91   : > { %v984_v31 = vld [vmem:[%s9076_s26] sm:$0xff]  ;;  %v9080_v32 = vld [vmem:[%s9076_s26 + $0x8] sm:$0xff]  ;;  %v8308_v38 = vld [vmem:[%s11383_s2 + $0x78] sm:$0xff]  }
  0x92   : > { %v9083_v33 = vcombine.high %v984_v31, %v9080_v32  ;;  %v9086_v34 = vld [vmem:[%s9076_s26 + $0x84] ss:$8 sps:$4 sm:$0xff]   ;;  %v8309_v39 = vld [vmem:[%s11383_s2 + $0x38] sm:$0xff]   ;;  %v9109_v41 = vld [vmem:[%s9076_s26 + $0x80] ss:$8 sps:$4 sm:$0xff]   ;;  %v9118_v44 = vcombine.low %v984_v31, %v9080_v32 }
  0x93   : > { %7233 = vmatpush3.bf16.msra.mxu0 %v8297_v23  ;;  %8247 = vmatpush3.bf16.msra.mxu1 %v8297_v23  ;;  %v8305_v35 = vld [vmem:[%s11383_s2 + $0x28] sm:$0xff]   ;;  %v8306_v36 = vld [vmem:[%s11383_s2 + $0x70] sm:$0xff]   ;;  %v8315_v40 = vld [vmem:[%s11383_s2 + $0xc0] sm:$0xff]   ;;  %v1804_v21 = vshll.u32 %v9086_v34, 16  ;;  %v11386_v31 = vrot.slane %v9086_v34, 1 }
  0x94   : > { %7234 = vmatprep.subr.bf16.mxu0 %v8298_v24  ;;  %8240 = vmatprep.subr.bf16.mxu1 %v8298_v24  ;;  %v8307_v37 = vld [vmem:[%s11383_s2 + $0x30] sm:$0xff]   ;;  %v8317_v42 = vld [vmem:[%s11383_s2 + $0x140] sm:$0xff]   ;;  %v8325_v48 = vld [vmem:[%s11383_s2 + $0xc8] sm:$0xff]   ;;  %v1687_v14 = vshll.u32 %v9083_v33, 16  ;;  %v1685_v17 = vshrl.u32 %v9083_v33, 16  ;;  %v1673_v19 = vshrl.u32 %v9118_v44, 16 }
  0x95   : > { %1343 = vmatprep.mubr.bf16.mxu0 %v9083_v33  ;;  %1407 = vmatprep.mubr.bf16.mxu1 %v9086_v34  ;;  %v8316_v43 = vld [vmem:[%s11383_s2 + $0x80] sm:$0xff]   ;;  %v8326_v49 = vld [vmem:[%s11383_s2 + $0x88] sm:$0xff]   ;;  %v8335_v52 = vld [vmem:[%s11383_s2 + $0xd0] sm:$0xff]   ;;  %v1675_v20 = vshll.u32 %v9118_v44, 16 }
  0x96   : > { %v8318_v45 = vld [vmem:[%s11383_s2 + $0x100] sm:$0xff]   ;;  %v8327_v50 = vld [vmem:[%s11383_s2 + $0x148] sm:$0xff]   ;;  %v8337_v54 = vld [vmem:[%s11383_s2 + $0x150] sm:$0xff]   ;;  %v9239_v18 = vrot.slane %v1687_v14, 1 }
  0x97   : > { %7235 = vmatpush3.bf16.msra.mxu0 %v8299_v25  ;;  %8248 = vmatpush3.bf16.msra.mxu1 %v8299_v25  ;;  %v9124_v46 = vld [vmem:[%s9076_s26 + $0x14] ss:$8 sps:$4 sm:$0xff]   ;;  %v8328_v51 = vld [vmem:[%s11383_s2 + $0x108] sm:$0xff]   ;;  %v9149_v53 = vld [vmem:[%s9076_s26 + $0x10] ss:$8 sps:$4 sm:$0xff]  }
  0x98   : > { %7236 = vmatprep.subr.bf16.mxu0 %v8300_v26  ;;  %8241 = vmatprep.subr.bf16.mxu1 %v8300_v26  ;;  %v9127_v47 = vld [vmem:[%s9076_s26 + $0x94] ss:$8 sps:$4 sm:$0xff]   ;;  %v9155_v55 = vld [vmem:[%s9076_s26 + $0x90] ss:$8 sps:$4 sm:$0xff]   ;;  %v9158_v56 = vld [vmem:[%s9076_s26 + $0x24] ss:$8 sps:$4 sm:$0xff]  }
  0x99   : > { %v9161_v57 = vld [vmem:[%s9076_s26 + $0xa4] ss:$8 sps:$4 sm:$0xff]   ;;  %v8345_v60 = vld [vmem:[%s11383_s2 + $0xd8] sm:$0xff]   ;;  %v9180_v62 = vld [vmem:[%s9076_s26 + $0x20] ss:$8 sps:$4 sm:$0xff]   ;;  %v1692_v23 = vshll.u32 %v9124_v46, 16 }
  0x9a   : > { %v8336_v58 = vld [vmem:[%s11383_s2 + $0x90] sm:$0xff]   ;;  %v8347_v61 = vld [vmem:[%s11383_s2 + $0x158] sm:$0xff]   ;;  %v8355_v4 = vld [vmem:[%s11383_s2 + $0xe0] sm:$0xff]   ;;  %v1680_v25 = vshll.u32 %v9149_v53, 16 }
  0x9b   : > { %7237 = vmatpush3.bf16.msra.mxu0 %v8301_v27  ;;  %8249 = vmatpush3.bf16.msra.mxu1 %v8301_v27  ;;  %v8338_v59 = vld [vmem:[%s11383_s2 + $0x110] sm:$0xff]   ;;  %v8346_v0 = vld [vmem:[%s11383_s2 + $0x98] sm:$0xff]   ;;  %v8356_v5 = vld [vmem:[%s11383_s2 + $0xa0] sm:$0xff]  }
  0x9c   : > { %7238 = vmatprep.subr.bf16.mxu0 %v8302_v28  ;;  %8242 = vmatprep.subr.bf16.mxu1 %v8302_v28  ;;  %v9183_v63 = vld [vmem:[%s9076_s26 + $0xa0] ss:$8 sps:$4 sm:$0xff]   ;;  %v8348_v1 = vld [vmem:[%s11383_s2 + $0x118] sm:$0xff]   ;;  %v9223_v11 = vld [vmem:[%s9076_s26 + $0x44] ss:$8 sps:$4 sm:$0xff]  }
  0x9d   : > { %v9192_v2 = vld [vmem:[%s9076_s26 + $0x34] ss:$8 sps:$4 sm:$0xff]   ;;  %v9214_v8 = vld [vmem:[%s9076_s26 + $0x30] ss:$8 sps:$4 sm:$0xff]   ;;  %v8365_v10 = vld [vmem:[%s11383_s2 + $0xe8] sm:$0xff]  }
  0x9e   : > { %v9195_v3 = vld [vmem:[%s9076_s26 + $0xb4] ss:$8 sps:$4 sm:$0xff]   ;;  %v9217_v9 = vld [vmem:[%s9076_s26 + $0xb0] ss:$8 sps:$4 sm:$0xff]   ;;  %v9226_v12 = vld [vmem:[%s9076_s26 + $0xc4] ss:$8 sps:$4 sm:$0xff]  }
  0x9f   : > { %7239 = vmatpush3.bf16.msra.mxu0 %v8303_v29  ;;  %8250 = vmatpush3.bf16.msra.mxu1 %v8303_v29  ;;  %v8357_v6 = vld [vmem:[%s11383_s2 + $0x160] sm:$0xff]   ;;  %v8366_v13 = vld [vmem:[%s11383_s2 + $0xa8] sm:$0xff]   ;;  %v8375_v22 = vld [vmem:[%s11383_s2 + $0xf0] sm:$0xff]   ;;  %v1708_v29 = vshll.u32 %v9158_v56, 16  ;;  %v11388_v14 = vrot.slane %v9192_v2, 1 }
  0xa0   : > { %7240 = vmatprep.subr.bf16.mxu0 %v8304_v30  ;;  %8243 = vmatprep.subr.bf16.mxu1 %v8304_v30  ;;  %v8358_v7 = vld [vmem:[%s11383_s2 + $0x120] sm:$0xff]   ;;  %v8367_v15 = vld [vmem:[%s11383_s2 + $0x168] sm:$0xff]   ;;  %v8376_v24 = vld [vmem:[%s11383_s2 + $0xb0] sm:$0xff]  }
  0xa1   : > { %v8368_v16 = vld [vmem:[%s11383_s2 + $0x128] sm:$0xff]   ;;  %v8377_v28 = vld [vmem:[%s11383_s2 + $0x170] sm:$0xff]  }
  0xa2   : > { %v9257_v26 = vld [vmem:[%s9076_s26 + $0x40] ss:$8 sps:$4 sm:$0xff]  }
  0xa3   : > { %7241 = vmatpush3.bf16.msra.mxu0 %v8305_v35  ;;  %8251 = vmatpush3.bf16.msra.mxu1 %v8305_v35  ;;  %v9260_v27 = vld [vmem:[%s9076_s26 + $0xc0] ss:$8 sps:$4 sm:$0xff]   ;;  %v9271_v35 = vld [vmem:[%s9076_s26 + $0x54] ss:$8 sps:$4 sm:$0xff]  }
  0xa4   : > { %7242 = vmatprep.subr.bf16.mxu0 %v8306_v36  ;;  %8244 = vmatprep.subr.bf16.mxu1 %v8306_v36  ;;  %v8378_v30 = vld [vmem:[%s11383_s2 + $0x130] sm:$0xff]   ;;  %v1694_v36 = vrot.slane %v1692_v23, 1 }
  0xa5   : > { %v9335_v23 = vld [vmem:[%s9076_s26 + $0x60] ss:$8 sps:$4 sm:$0xff]  }
  0xa7   : > { %7243 = vmatpush3.bf16.msra.mxu0 %v8307_v37  ;;  %8252 = vmatpush3.bf16.msra.mxu1 %v8307_v37  ;;  %v2301_v37 = vrot.slane %v9124_v46, 1 }
  0xa8   : > { %7244 = vmatprep.subr.bf16.mxu0 %v8308_v38  ;;  %8245 = vmatprep.subr.bf16.mxu1 %v8308_v38  ;;  %v9275_v38 = vld [vmem:[%s9076_s26 + $0xd4] ss:$8 sps:$4 sm:$0xff]  }
  0xab   : > { %7245 = vmatpush3.bf16.msra.mxu0 %v8309_v39  ;;  %8253 = vmatpush3.bf16.msra.mxu1 %v8309_v39  ;;  %v1677_v39 = vrot.slane %v1675_v20, 1  ;;  %v1690_v20 = vor.u32 %v9239_v18, %v1685_v17  ;;  %v9352_v17 = vrot.slane %v1804_v21, 1 }
  0xac   : > { %7342 = vmatprep.subr.bf16.mxu1 %v8315_v40  ;;  %7454 = vmatprep.subr.bf16.mxu0 %v8317_v42  ;;  %v2298_v40 = vrot.slane %v9149_v53, 1  ;;  %v1682_v42 = vrot.slane %v1680_v25, 1 }
  0xad   : > { %v1678_v25 = vor.u32 %v1677_v39, %v1673_v19  ;;  %v1695_v18 = vsel %vm1671_vm0, %v1690_v20, %v1694_v36  ;;  %v1808_v20 = vshrl.u32 %v9109_v41, 16 }
  0xae   : > { %1344 = vmatmul.mubr.bf16.vlgmr.msra.gmra.mrb[0].mxu0 %v9118_v44  ;;  %1408 = vmatmul.mubr.bf16.vlgmr.msra.gmra.mrb[0].mxu1 %v9109_v41  ;;  %v1816_v44 = vshrl.u32 %v9086_v34, 16 }
  0xaf   : > { %7343 = vmatpush3.bf16.msra.mxu1 %v8316_v43  ;;  %7455 = vmatpush3.bf16.msra.mxu0 %v8318_v45  ;;  %v1704_v43 = vshrl.u32 %v9124_v46, 16  ;;  %v9279_v45 = vrot.slane %v1708_v29, 1  ;;  %v9346_v29 = vld [vmem:[%s9076_s26 + $0xf4] ss:$8 sps:$4 sm:$0xff]   ;;  %v9359_v39 = vsel %vm1671_vm0, %v1678_v25, %v1682_v42  ;;  %v9395_v25 = vld [vmem:[%s9076_s26 + $0xf0] ss:$8 sps:$4 sm:$0xff]  }
  0xb0   : > { %1351 = vmatprep.mubr.bf16.mxu0 %v9124_v46  ;;  %1415 = vmatprep.mubr.bf16.mxu1 %v9127_v47  ;;  %v1818_v21 = vor.u32 %v1816_v44, %v9352_v17  ;;  %v11389_v44 = vrot.slane %v9109_v41, 1 }
  0xb1   : > { %7344 = vmatprep.subr.bf16.mxu1 %v8325_v48  ;;  %7456 = vmatprep.subr.bf16.mxu0 %v8327_v50  ;;  %v2305_v48 = vrot.slane %v9158_v56, 1  ;;  %v1696_v50 = vshrl.u32 %v9149_v53, 16 }
  0xb3   : > { %7345 = vmatpush3.bf16.msra.mxu1 %v8326_v49  ;;  %7457 = vmatpush3.bf16.msra.mxu0 %v8328_v51  ;;  %v8385_v49 = vld [vmem:[%s11383_s2 + $0xf8] sm:$0xff]  }
  0xb4   : > { %7346 = vmatprep.subr.bf16.mxu1 %v8335_v52  ;;  %7458 = vmatprep.subr.bf16.mxu0 %v8337_v54  ;;  %v8386_v51 = vld [vmem:[%s11383_s2 + $0xb8] sm:$0xff]   ;;  %v1700_v52 = vshll.u32 %v9180_v62, 16 }
  0xb5   : > { %v8387_v54 = vld [vmem:[%s11383_s2 + $0x178] sm:$0xff]  }
  0xb6   : > { %1352 = vmatmul.mubr.bf16.gmra.mrb[4].mxu0 %v9149_v53  ;;  %1416 = vmatmul.mubr.bf16.gmra.mrb[4].mxu1 %v9155_v55  ;;  %v2335_v53 = vrot.slane %v9183_v63, 1 }
  0xb7   : > { %1359 = vmatprep.mubr.bf16.mxu0 %v9158_v56  ;;  %1423 = vmatprep.mubr.bf16.mxu1 %v9161_v57 }
  0xb8   : > { %7347 = vmatpush3.bf16.msra.mxu1 %v8336_v58  ;;  %7459 = vmatpush3.bf16.msra.mxu0 %v8338_v59  ;;  %v11387_v58 = vrot.slane %v9180_v62, 1  ;;  %v9299_v59 = vld [vmem:[%s9076_s26 + $0x50] ss:$8 sps:$4 sm:$0xff]  }
  0xb9   : > { %7348 = vmatprep.subr.bf16.mxu1 %v8345_v60  ;;  %7460 = vmatprep.subr.bf16.mxu0 %v8347_v61  ;;  %v9302_v60 = vld [vmem:[%s9076_s26 + $0xd0] ss:$8 sps:$4 sm:$0xff]  }
  0xba   : > { %v8388_v61 = vld [vmem:[%s11383_s2 + $0x138] sm:$0xff]  }
  0xbc   : > { %7349 = vmatpush3.bf16.msra.mxu1 %v8346_v0  ;;  %7461 = vmatpush3.bf16.msra.mxu0 %v8348_v1  ;;  %v1720_v0 = vshrl.u32 %v9158_v56, 16  ;;  %v8391_v1 = vld [vmem:[%s11383_s2 + $0x1c0] sm:$0xff]   ;;  %v1832_v56 = vshrl.u32 %v9127_v47, 16 }
  0xbd   : > { %7350 = vmatprep.subr.bf16.mxu1 %v8355_v4  ;;  %7462 = vmatprep.subr.bf16.mxu0 %v8357_v6  ;;  %v1724_v4 = vshll.u32 %v9192_v2, 16  ;;  %v9316_v6 = vld [vmem:[%s9076_s26 + $0xe4] ss:$8 sps:$4 sm:$0xff]  }
  0xbe   : > { %1360 = vmatmul.mubr.bf16.gmra.mrb[8].mxu0 %v9180_v62  ;;  %1424 = vmatmul.mubr.bf16.gmra.mrb[8].mxu1 %v9183_v63 }
  0xbf   : > { %1367 = vmatprep.mubr.bf16.mxu0 %v9192_v2  ;;  %1431 = vmatprep.mubr.bf16.mxu1 %v9195_v3 }
  0xc0   : > { %7351 = vmatpush3.bf16.msra.mxu1 %v8356_v5  ;;  %7463 = vmatpush3.bf16.msra.mxu0 %v8358_v7  ;;  %v9313_v5 = vld [vmem:[%s9076_s26 + $0x64] ss:$8 sps:$4 sm:$0xff]  }
  0xc1   : > { %7352 = vmatprep.subr.bf16.mxu1 %v8365_v10  ;;  %7464 = vmatprep.subr.bf16.mxu0 %v8367_v15  ;;  %v8393_v7 = vld [vmem:[%s11383_s2 + $0x240] sm:$0xff]   ;;  %v1712_v10 = vshrl.u32 %v9180_v62, 16  ;;  %v9325_v15 = vrot.slane %v1724_v4, 1  ;;  %v1722_v4 = vor.u32 %v1720_v0, %v9279_v45 }
  0xc4   : > { %7353 = vmatpush3.bf16.msra.mxu1 %v8366_v13  ;;  %7465 = vmatpush3.bf16.msra.mxu0 %v8368_v16  ;;  %v1702_v13 = vrot.slane %v1700_v52, 1  ;;  %v1716_v16 = vshll.u32 %v9214_v8, 16 }
  0xc5   : > { %7354 = vmatprep.subr.bf16.mxu1 %v8375_v22  ;;  %7466 = vmatprep.subr.bf16.mxu0 %v8377_v28  ;;  %v2257_v22 = vld [vmem:[%s9076_s26] sm:$0xee]  ;;  %v9343_v28 = vld [vmem:[%s9076_s26 + $0x74] ss:$8 sps:$4 sm:$0xff]  }
  0xc6   : > { %1368 = vmatmul.mubr.bf16.gmra.mrb[12].mxu0 %v9214_v8  ;;  %1432 = vmatmul.mubr.bf16.gmra.mrb[12].mxu1 %v9217_v9  ;;  %v6678_v19 = vcombine.high %v2257_v22, %v9080_v32 }
  0xc7   : > { %1375 = vmatprep.mubr.bf16.mxu0 %v9223_v11  ;;  %1439 = vmatprep.mubr.bf16.mxu1 %v9226_v12 }
  0xc8   : > { %7355 = vmatpush3.bf16.msra.mxu1 %v8376_v24  ;;  %7467 = vmatpush3.bf16.msra.mxu0 %v8378_v30  ;;  %v9338_v24 = vld [vmem:[%s9076_s26 + $0xe0] ss:$8 sps:$4 sm:$0xff]   ;;  %v6677_v30 = vcombine.low %v2257_v22, %v9080_v32  ;;  %v9392_v22 = vld [vmem:[%s9076_s26 + $0x70] ss:$8 sps:$4 sm:$0xff]  }
  0xc9   : > { %7356 = vmatprep.subr.bf16.mxu1 %v8385_v49  ;;  %7468 = vmatprep.subr.bf16.mxu0 %v8387_v54  ;;  %v1706_v49 = vor.u32 %v1704_v43, %v1694_v36  ;;  %v1820_v43 = vshll.u32 %v9127_v47, 16  ;;  %v1698_v54 = vor.u32 %v1696_v50, %v1682_v42  ;;  %v2333_v36 = vrot.slane %v9127_v47, 1 }
  0xca   : > { %v2297_v32 = vrot.slane %v6677_v30, 1  ;;  %v9378_v42 = vsel %vm2296_vm1, %v2301_v37, %v2305_v48  ;;  %v2300_v30 = vrot.slane %v6678_v19, 1  ;;  %v2331_v19 = vrot.slane %v9155_v55, 1 }
  0xcb   : > { %v1822_v50 = vrot.slane %v1820_v43, 1  ;;  %v1828_v47 = vshll.u32 %v9183_v63, 16 }
  0xcc   : > { %7357 = vmatpush3.bf16.msra.mxu1 %v8386_v51  ;;  %7469 = vmatpush3.bf16.msra.mxu0 %v8388_v61  ;;  %v1796_v51 = vshll.u32 %v9109_v41, 16  ;;  %v9363_v61 = vrot.slane %v1716_v16, 1  ;;  %v9388_v16 = vsel %vm2296_vm1, %v11386_v31, %v2333_v36  ;;  %v9419_v31 = vsel %vm2296_vm1, %v2305_v48, %v11388_v14 }
  0xcd   : > { %7566 = vmatprep.subr.bf16.mxu1 %v8391_v1  ;;  %7678 = vmatprep.subr.bf16.mxu0 %v8393_v7  ;;  %v9371_v1 = vsel %vm1671_vm0, %v1706_v49, %v9279_v45  ;;  %v9402_v45 = vsel %vm2296_vm1, %v2298_v40, %v11387_v58  ;;  %v9405_v0 = vsel %vm1671_vm0, %v1818_v21, %v1822_v50  ;;  %v1812_v49 = vshll.u32 %v9155_v55, 16 }
  0xce   : > { %1376 = vmatmul.mubr.bf16.gmra.mrb[16].mxu0 %v9257_v26  ;;  %1440 = vmatmul.mubr.bf16.gmra.mrb[16].mxu1 %v9260_v27  ;;  %v9383_v7 = vrot.slane %v1796_v51, 1  ;;  %v9409_v51 = vsel %vm1671_vm0, %v1698_v54, %v1702_v13  ;;  %v9421_v21 = vor.u32 %v1712_v10, %v1702_v13  ;;  %v9426_v54 = vsel %vm1671_vm0, %v1722_v4, %v9325_v15 }
  0xcf   : > { %1383 = vmatprep.mubr.bf16.mxu0 %v9271_v35  ;;  %1447 = vmatprep.mubr.bf16.mxu1 %v9275_v38  ;;  %v1814_v33 = vrot.slane %v1812_v49, 1  ;;  %v9432_v52 = vsel %vm2296_vm1, %v11389_v44, %v2331_v19  ;;  %v2302_v48 = vsel %vm2296_vm1, %v2300_v30, %v2301_v37  ;;  %v2299_v10 = vsel %vm2296_vm1, %v2297_v32, %v2298_v40 }
  0xd0   : > { %v1810_v43 = vor.u32 %v1808_v20, %v9383_v7  ;;  %v1836_v4 = vshll.u32 %v9161_v57, 16  ;;  %v1834_v49 = vor.u32 %v1832_v56, %v1822_v50  ;;  %v2337_v14 = vrot.slane %v9161_v57, 1 }
  0xd1   : > { %v1824_v44 = vshrl.u32 %v9155_v55, 16  ;;  %v1848_v37 = vshrl.u32 %v9161_v57, 16  ;;  %v1852_v40 = vshll.u32 %v9195_v3, 16  ;;  %v1830_v55 = vrot.slane %v1828_v47, 1  ;;  %v8392_v57 = vld [vmem:[%s11383_s2 + $0x180] sm:$0xff]  }
  0xd2   : > { %v9442_v13 = vsel %vm1671_vm0, %v1810_v43, %v1814_v33  ;;  %v1838_v46 = vrot.slane %v1836_v4, 1  ;;  %v9454_v32 = vsel %vm2296_vm1, %v2333_v36, %v2337_v14  ;;  %v2341_v30 = vrot.slane %v9195_v3, 1 }
  0xd3   : > { %v1826_v50 = vor.u32 %v1824_v44, %v1814_v33  ;;  %v9461_v56 = vsel %vm2296_vm1, %v2331_v19, %v2335_v53  ;;  %v1854_v20 = vrot.slane %v1852_v40, 1  ;;  %v1840_v36 = vshrl.u32 %v9183_v63, 16  ;;  %v8394_v19 = vld [vmem:[%s11383_s2 + $0x200] sm:$0xff]   ;;  %v8397_v63 = vld [vmem:[%s11383_s2 + $0x248] sm:$0xff]  }
  0xd4   : > { %v9458_v43 = vsel %vm1671_vm0, %v1834_v49, %v1838_v46  ;;  %11395 = vst [vmem:[#allocation10_spill] sm:$0xff] %v9461_v56  ;;  %v1850_v4 = vor.u32 %v1848_v37, %v1838_v46  ;;  %v9470_v33 = vsel %vm2296_vm1, %v2337_v14, %v2341_v30  ;;  %v1844_v44 = vshll.u32 %v9217_v9, 16  ;;  %v8395_v14 = vld [vmem:[%s11383_s2 + $0x1c8] sm:$0xff]  }
  0xd5   : > { %11396 = vst [vmem:[#allocation11_spill] sm:$0xff] %v9470_v33  ;;  %v2339_v49 = vrot.slane %v9217_v9, 1  ;;  %v1864_v47 = vshrl.u32 %v9195_v3, 16  ;;  %v1868_v46 = vshll.u32 %v9226_v12, 16  ;;  %v1842_v37 = vor.u32 %v1840_v36, %v1830_v55  ;;  %v8396_v56 = vld [vmem:[%s11383_s2 + $0x188] sm:$0xff]  }
  0xd6   : > { %1384 = vmatmul.mubr.bf16.gmra.mrb[20].mxu0 %v9299_v59  ;;  %1448 = vmatmul.mubr.bf16.gmra.mrb[20].mxu1 %v9302_v60  ;;  %v1846_v40 = vrot.slane %v1844_v44, 1  ;;  %v8399_v44 = vld [vmem:[%s11383_s2 + $0x1d0] sm:$0xff]  }
  0xd7   : > { %1391 = vmatprep.mubr.bf16.mxu0 %v9313_v5  ;;  %1455 = vmatprep.mubr.bf16.mxu1 %v9316_v6  ;;  %v9492_v58 = vsel %vm2296_vm1, %v2335_v53, %v2339_v49  ;;  %v1866_v3 = vor.u32 %v1864_v47, %v1854_v20  ;;  %v1870_v33 = vrot.slane %v1868_v46, 1 }
  0xd8   : > { %11398 = vst [vmem:[#allocation13_spill] sm:$0xff] %v9492_v58  ;;  %v9502_v36 = vsel %vm1671_vm0, %v1842_v37, %v1846_v40  ;;  %v1880_v37 = vshrl.u32 %v9226_v12, 16  ;;  %v1884_v58 = vshll.u32 %v9275_v38, 16 }
  0xd9   : > { %v9513_v47 = vsel %vm1671_vm0, %v1866_v3, %v1870_v33 }
  0xde   : > { %1392 = vmatmul.mubr.bf16.gmra.mrb[24].mxu0 %v9335_v23  ;;  %1456 = vmatmul.mubr.bf16.gmra.mrb[24].mxu1 %v9338_v24 }
  0xdf   : > { %1399 = vmatprep.mubr.bf16.mxu0 %v9343_v28  ;;  %1463 = vmatprep.mubr.bf16.mxu1 %v9346_v29 }
  0xe6   : > { %1400 = vmatmul.mubr.bf16.gmra.mrb[28].mxu0 %v9392_v22  ;;  %1464 = vmatmul.mubr.bf16.gmra.mrb[28].mxu1 %v9395_v25 }
  0xe7   : > { %2096 = vmatprep.mubr.bf16.mxu1 %v1695_v18  ;;  %2523 = vmatprep.mubr.bf16.mxu0 %v2302_v48  ;;  %v9467_v18 = vsel %vm1671_vm0, %v1826_v50, %v1830_v55  ;;  %v9478_v48 = vsel %vm1671_vm0, %v1850_v4, %v1854_v20  ;;  %v2345_v50 = vrot.slane %v9226_v12, 1  ;;  %v1856_v4 = vshrl.u32 %v9217_v9, 16  ;;  %v8398_v55 = vld [vmem:[%s11383_s2 + $0x208] sm:$0xff]  }
  0xe8   : > { %11397 = vst [vmem:[#allocation12_spill] sm:$0xff] %v9478_v48  ;;  %v1860_v48 = vshll.u32 %v9260_v27, 16  ;;  %v2343_v20 = vrot.slane %v9260_v27, 1 }
  0xe9   : > { %v9505_v9 = vsel %vm2296_vm1, %v2341_v30, %v2345_v50  ;;  %v1858_v53 = vor.u32 %v1856_v4, %v1846_v40  ;;  %v8401_v30 = vld [vmem:[%s11383_s2 + $0x250] sm:$0xff]   ;;  %v1872_v40 = vshrl.u32 %v9260_v27, 16  ;;  %v1876_v4 = vshll.u32 %v9302_v60, 16 }
  0xea   : > { %v1862_v46 = vrot.slane %v1860_v48, 1  ;;  %v2347_v48 = vrot.slane %v9302_v60, 1 }
  0xeb   : > { %v1878_v27 = vrot.slane %v1876_v4, 1 }
  0xec   : > { %v9529_v12 = vsel %vm1671_vm0, %v1858_v53, %v1862_v46  ;;  %v1874_v3 = vor.u32 %v1872_v40, %v1862_v46  ;;  %v1888_v53 = vshrl.u32 %v9302_v60, 16  ;;  %v1892_v46 = vshll.u32 %v9338_v24, 16  ;;  %v8405_v60 = vld [vmem:[%s11383_s2 + $0x258] sm:$0xff]  }
  0xee   : > { %2097 = vmatmul.mubr.bf16.vlgmr.msra.gmra.mrb[32].mxu1 %v9359_v39  ;;  %2524 = vmatmul.mubr.bf16.vlgmr.msra.gmra.mrb[32].mxu0 %v2299_v10  ;;  %v9521_v39 = vsel %vm2296_vm1, %v2339_v49, %v2343_v20  ;;  %v2349_v10 = vrot.slane %v9275_v38, 1  ;;  %v1894_v4 = vrot.slane %v1892_v46, 1 }
  0xef   : > { %7567 = vmatpush3.bf16.msra.mxu1 %v8392_v57  ;;  %7679 = vmatpush3.bf16.msra.mxu0 %v8394_v19  ;;  %11399 = vst [vmem:[#allocation14_spill] sm:$0xff] %v9521_v39  ;;  %v1882_v57 = vor.u32 %v1880_v37, %v1870_v33  ;;  %v1886_v19 = vrot.slane %v1884_v58, 1  ;;  %v1896_v39 = vshrl.u32 %v9275_v38, 16  ;;  %v9546_v33 = vsel %vm2296_vm1, %v2343_v20, %v2347_v48  ;;  %v8403_v20 = vld [vmem:[%s11383_s2 + $0x1d8] sm:$0xff]  }
  0xf0   : > { %2104 = vmatprep.mubr.bf16.mxu1 %v9371_v1  ;;  %2531 = vmatprep.mubr.bf16.mxu0 %v9378_v42  ;;  %v9533_v49 = vsel %vm2296_vm1, %v2345_v50, %v2349_v10  ;;  %v8400_v1 = vld [vmem:[%s11383_s2 + $0x190] sm:$0xff]   ;;  %v9551_v38 = vsel %vm1671_vm0, %v1874_v3, %v1878_v27 }
  0xf1   : > { %7568 = vmatprep.subr.bf16.mxu1 %v8395_v14  ;;  %7680 = vmatprep.subr.bf16.mxu0 %v8397_v63  ;;  %v8402_v42 = vld [vmem:[%s11383_s2 + $0x210] sm:$0xff]   ;;  %v9543_v58 = vsel %vm1671_vm0, %v1882_v57, %v1886_v19  ;;  %v1900_v14 = vshll.u32 %v9316_v6, 16  ;;  %v2353_v63 = vrot.slane %v9316_v6, 1  ;;  %v1898_v50 = vor.u32 %v1896_v39, %v1886_v19 }
  0xf2   : > { %v1890_v39 = vor.u32 %v1888_v53, %v1878_v27  ;;  %v1904_v19 = vshrl.u32 %v9338_v24, 16  ;;  %v2355_v53 = vrot.slane %v9395_v25, 1 }
  0xf3   : > { %7569 = vmatpush3.bf16.msra.mxu1 %v8396_v56  ;;  %7681 = vmatpush3.bf16.msra.mxu0 %v8398_v55  ;;  %v1902_v37 = vrot.slane %v1900_v14, 1  ;;  %v9559_v40 = vsel %vm2296_vm1, %v2349_v10, %v2353_v63  ;;  %v2351_v56 = vrot.slane %v9338_v24, 1  ;;  %v1912_v55 = vshrl.u32 %v9316_v6, 16 }
  0xf4   : > { %7570 = vmatprep.subr.bf16.mxu1 %v8399_v44  ;;  %7682 = vmatprep.subr.bf16.mxu0 %v8401_v30  ;;  %v1916_v44 = vshll.u32 %v9346_v29, 16  ;;  %v2357_v30 = vrot.slane %v9346_v29, 1  ;;  %v9580_v3 = vsel %vm1671_vm0, %v1890_v39, %v1894_v4  ;;  %v11402_v39 = vrot.slane %v9214_v8, 1 }
  0xf5   : > { %v9571_v10 = vsel %vm1671_vm0, %v1898_v50, %v1902_v37  ;;  %v9574_v57 = vsel %vm2296_vm1, %v2347_v48, %v2351_v56  ;;  %v1914_v6 = vor.u32 %v1912_v55, %v1902_v37  ;;  %v11400_v48 = vshrl.u32 %v9192_v2, 16 }
  0xf6   : > { %2105 = vmatmul.mubr.bf16.gmra.mrb[36].mxu1 %v9409_v51  ;;  %2532 = vmatmul.mubr.bf16.gmra.mrb[36].mxu0 %v9402_v45  ;;  %v9582_v27 = vrot.slane %v1916_v44, 1  ;;  %v9587_v45 = vsel %vm2296_vm1, %v2353_v63, %v2357_v30  ;;  %v1908_v51 = vshll.u32 %v9395_v25, 16  ;;  %v8406_v63 = vld [vmem:[%s11383_s2 + $0x218] sm:$0xff]   ;;  %v1906_v50 = vor.u32 %v1904_v19, %v1894_v4  ;;  %v8408_v19 = vld [vmem:[%s11383_s2 + $0x1a0] sm:$0xff]  }
  0xf7   : > { %2112 = vmatprep.mubr.bf16.mxu1 %v9426_v54  ;;  %2539 = vmatprep.mubr.bf16.mxu0 %v9419_v31  ;;  %v1738_v24 = vor.u32 %v11400_v48, %v9325_v15  ;;  %v11401_v54 = vshll.u32 %v9223_v11, 16  ;;  %v8404_v31 = vld [vmem:[%s11383_s2 + $0x198] sm:$0xff]   ;;  %v8407_v15 = vld [vmem:[%s11383_s2 + $0x1e0] sm:$0xff]   ;;  %v1728_v37 = vshrl.u32 %v9214_v8, 16  ;;  %v1732_v55 = vshll.u32 %v9257_v26, 16 }
  0xf8   : > { %7571 = vmatpush3.bf16.msra.mxu1 %v8400_v1  ;;  %7683 = vmatpush3.bf16.msra.mxu0 %v8402_v42  ;;  %v8409_v1 = vld [vmem:[%s11383_s2 + $0x260] sm:$0xff]   ;;  %v9610_v42 = vsel %vm1671_vm0, %v1914_v6, %v9582_v27  ;;  %v9612_v46 = vrot.slane %v1908_v51, 1  ;;  %v11403_v4 = vrot.slane %v9180_v62, 1  ;;  %v1752_v6 = vshrl.u32 %v9223_v11, 16 }
  0xf9   : > { %v1742_v14 = vrot.slane %v11401_v54, 1  ;;  %7572 = vmatprep.subr.bf16.mxu1 %v8403_v20  ;;  %7684 = vmatprep.subr.bf16.mxu0 %v8405_v60  ;;  %v9619_v20 = vsel %vm2296_vm1, %v2351_v56, %v2355_v53  ;;  %v1719_v60 = vsel %vm1671_vm0, %v9421_v21, %v9363_v61  ;;  %v11404_v21 = vrot.slane %v9223_v11, 1 }
  0xfa   : > { %v2308_v44 = vsel %vm2296_vm1, %v11403_v4, %v11402_v39  ;;  %v9635_v56 = vsel %vm1671_vm0, %v1906_v50, %v9612_v46  ;;  %v11405_v48 = vrot.slane %v9192_v2, 1  ;;  %v1756_v54 = vshll.u32 %v9271_v35, 16  ;;  %v8410_v39 = vld [vmem:[%s11383_s2 + $0x220] sm:$0xff]   ;;  %v8413_v2 = vld [vmem:[%s11383_s2 + $0x268] sm:$0xff]  }
  0xfb   : > { %v1743_v51 = vsel %vm1671_vm0, %v1738_v24, %v1742_v14  ;;  %v8411_v24 = vld [vmem:[%s11383_s2 + $0x1e8] sm:$0xff]   ;;  %v2311_v50 = vrot.slane %v9257_v26, 1  ;;  %v1754_v4 = vor.u32 %v1752_v6, %v1742_v14  ;;  %v8417_v14 = vld [vmem:[%s11383_s2 + $0x270] sm:$0xff]   ;;  %v1744_v6 = vshrl.u32 %v9257_v26, 16 }
  0xfc   : > { %v2314_v62 = vsel %vm2296_vm1, %v11405_v48, %v11404_v21  ;;  %7573 = vmatpush3.bf16.msra.mxu1 %v8404_v31  ;;  %7685 = vmatpush3.bf16.msra.mxu0 %v8406_v63  ;;  %v1730_v31 = vor.u32 %v1728_v37, %v9363_v61  ;;  %v1734_v63 = vrot.slane %v1732_v55, 1  ;;  %v8412_v21 = vld [vmem:[%s11383_s2 + $0x1a8] sm:$0xff]   ;;  %v8415_v61 = vld [vmem:[%s11383_s2 + $0x1f0] sm:$0xff]   ;;  %v11406_v55 = vrot.slane %v9214_v8, 1 }
  0xfd   : > { %7574 = vmatprep.subr.bf16.mxu1 %v8407_v15  ;;  %7686 = vmatprep.subr.bf16.mxu0 %v8409_v1  ;;  %v1758_v15 = vrot.slane %v1756_v54, 1  ;;  %v2317_v1 = vrot.slane %v9271_v35, 1  ;;  %v1772_v8 = vshll.u32 %v9313_v5, 16  ;;  %v8418_v26 = vld [vmem:[%s11383_s2 + $0x230] sm:$0xff]  }
  0xfe   : > { %2113 = vmatmul.mubr.bf16.gmra.mrb[40].mxu1 %v1719_v60  ;;  %2540 = vmatmul.mubr.bf16.gmra.mrb[40].mxu0 %v2308_v44  ;;  %v8414_v60 = vld [vmem:[%s11383_s2 + $0x228] sm:$0xff]   ;;  %v1735_v37 = vsel %vm1671_vm0, %v1730_v31, %v1734_v63  ;;  %v2312_v44 = vsel %vm2296_vm1, %v11406_v55, %v2311_v50  ;;  %v2315_v31 = vrot.slane %v9299_v59, 1 }
  0xff   : > { %2120 = vmatprep.mubr.bf16.mxu1 %v1743_v51  ;;  %2547 = vmatprep.mubr.bf16.mxu0 %v2314_v62  ;;  %v8416_v51 = vld [vmem:[%s11383_s2 + $0x1b0] sm:$0xff]   ;;  %v1759_v48 = vsel %vm1671_vm0, %v1754_v4, %v1758_v15  ;;  %v11407_v62 = vrot.slane %v9223_v11, 1  ;;  %v8421_v11 = vld [vmem:[%s11383_s2 + $0x278] sm:$0xff]  }
 0x100   : > { %7575 = vmatpush3.bf16.msra.mxu1 %v8408_v19  ;;  %7687 = vmatpush3.bf16.msra.mxu0 %v8410_v39  ;;  %v1748_v19 = vshll.u32 %v9299_v59, 16  ;;  %v1768_v39 = vshrl.u32 %v9271_v35, 16  ;;  %v1746_v35 = vor.u32 %v1744_v6, %v1734_v63  ;;  %v8420_v4 = vld [vmem:[%s11383_s2 + $0x1b8] sm:$0xff]   ;;  %v8430_v63 = vld [vmem:[%s11383_s2 + $0x2c0] sm:$0xff]   ;;  %v2316_v55 = vsel %vm2296_vm1, %v2311_v50, %v2315_v31 }
 0x101   : > { %7576 = vmatprep.subr.bf16.mxu1 %v8411_v24  ;;  %7688 = vmatprep.subr.bf16.mxu0 %v8413_v2  ;;  %v2318_v54 = vsel %vm2296_vm1, %v11407_v62, %v2317_v1  ;;  %v8419_v24 = vld [vmem:[%s11383_s2 + $0x1f8] sm:$0xff]   ;;  %v1764_v6 = vshll.u32 %v9335_v23, 16  ;;  %v1788_v62 = vshll.u32 %v9343_v28, 16 }
 0x102   : > { %v1750_v2 = vrot.slane %v1748_v19, 1 }
 0x104   : > { %7577 = vmatpush3.bf16.msra.mxu1 %v8412_v21  ;;  %7689 = vmatpush3.bf16.msra.mxu0 %v8414_v60  ;;  %v1770_v21 = vor.u32 %v1768_v39, %v1758_v15  ;;  %v1774_v60 = vrot.slane %v1772_v8, 1  ;;  %v1751_v15 = vsel %vm1671_vm0, %v1746_v35, %v1750_v2  ;;  %v1790_v8 = vrot.slane %v1788_v62, 1 }
 0x105   : > { %7578 = vmatprep.subr.bf16.mxu1 %v8415_v61  ;;  %7690 = vmatprep.subr.bf16.mxu0 %v8417_v14  ;;  %v2321_v61 = vrot.slane %v9313_v5, 1  ;;  %v8422_v14 = vld [vmem:[%s11383_s2 + $0x238] sm:$0xff]  }
 0x106   : > { %2121 = vmatmul.mubr.bf16.gmra.mrb[44].mxu1 %v1735_v37  ;;  %2548 = vmatmul.mubr.bf16.gmra.mrb[44].mxu0 %v2312_v44  ;;  %v8432_v37 = vld [vmem:[%s11383_s2 + $0x340] sm:$0xff]   ;;  %v1760_v44 = vshrl.u32 %v9299_v59, 16  ;;  %v1775_v19 = vsel %vm1671_vm0, %v1770_v21, %v1774_v60  ;;  %v1766_v59 = vrot.slane %v1764_v6, 1  ;;  %v11409_v6 = vrot.slane %v9109_v41, 1 }
 0x107   : > { %2128 = vmatprep.mubr.bf16.mxu1 %v1759_v48  ;;  %2555 = vmatprep.mubr.bf16.mxu0 %v2318_v54  ;;  %v1784_v48 = vshrl.u32 %v9313_v5, 16  ;;  %v2319_v54 = vrot.slane %v9335_v23, 1  ;;  %v11411_v41 = vld [vmem:[#allocation12_spill] sm:$0xff] }
 0x108   : > { %7579 = vmatpush3.bf16.msra.mxu1 %v8416_v51  ;;  %7691 = vmatpush3.bf16.msra.mxu0 %v8418_v26  ;;  %v2322_v51 = vsel %vm2296_vm1, %v2317_v1, %v2321_v61  ;;  %v1762_v50 = vor.u32 %v1760_v44, %v1750_v2  ;;  %v2325_v1 = vrot.slane %v9343_v28, 1  ;;  %v1800_v2 = vshrl.u32 %v9343_v28, 16 }
 0x109   : > { %7580 = vmatprep.subr.bf16.mxu1 %v8419_v24  ;;  %7692 = vmatprep.subr.bf16.mxu0 %v8421_v11  ;;  %v1786_v39 = vor.u32 %v1784_v48, %v1774_v60  ;;  %v2320_v26 = vsel %vm2296_vm1, %v2315_v31, %v2319_v54  ;;  %v1776_v24 = vshrl.u32 %v9335_v23, 16  ;;  %v1780_v11 = vshll.u32 %v9392_v22, 16 }
 0x10a   : > { %v1767_v5 = vsel %vm1671_vm0, %v1762_v50, %v1766_v59  ;;  %v11408_v28 = vrot.slane %v9086_v34, 1  ;;  %v11410_v34 = vld [vmem:[#allocation10_spill] sm:$0xff] }
 0x10b   : > { %v1791_v35 = vsel %vm1671_vm0, %v1786_v39, %v1790_v8  ;;  %v1778_v21 = vor.u32 %v1776_v24, %v1766_v59  ;;  %v1782_v60 = vrot.slane %v1780_v11, 1  ;;  %v9782_v39 = vld [vmem:[%s9076_s26 + $0x34] ss:$8 sps:$4 sm:$0xff]  }
 0x10c   : > { %7581 = vmatpush3.bf16.msra.mxu1 %v8420_v4  ;;  %7693 = vmatpush3.bf16.msra.mxu0 %v8422_v14  ;;  %v2326_v4 = vsel %vm2296_vm1, %v2321_v61, %v2325_v1  ;;  %v2323_v14 = vrot.slane %v9392_v22, 1 }
 0x10d   : > { %7790 = vmatprep.subr.bf16.mxu1 %v8430_v63  ;;  %7902 = vmatprep.subr.bf16.mxu0 %v8432_v37  ;;  %v1802_v63 = vor.u32 %v1800_v2, %v1790_v8  ;;  %v1783_v31 = vsel %vm1671_vm0, %v1778_v21, %v1782_v60  ;;  %v1792_v37 = vshrl.u32 %v9392_v22, 16 }
 0x10e   : > { %2129 = vmatmul.mubr.bf16.gmra.mrb[48].mxu1 %v1751_v15  ;;  %2556 = vmatmul.mubr.bf16.gmra.mrb[48].mxu0 %v2316_v55  ;;  %v2324_v23 = vsel %vm2296_vm1, %v2319_v54, %v2323_v14  ;;  %v2330_v15 = vsel %vm2296_vm1, %v2325_v1, %v11408_v28  ;;  %v9802_v28 = vld [vmem:[%s9076_s26 + $0x44] ss:$8 sps:$4 sm:$0xff]  }
 0x10f   : > { %2136 = vmatprep.mubr.bf16.mxu1 %v1775_v19  ;;  %2563 = vmatprep.mubr.bf16.mxu0 %v2322_v51  ;;  %v1807_v61 = vsel %vm1671_vm0, %v1802_v63, %v9352_v17  ;;  %v1794_v55 = vor.u32 %v1792_v37, %v1782_v60  ;;  %v2328_v19 = vsel %vm2296_vm1, %v2323_v14, %v11409_v6  ;;  %v11412_v17 = vld [vmem:[#allocation11_spill] sm:$0xff] }
 0x111   : > { %v1799_v44 = vsel %vm1671_vm0, %v1794_v55, %v9383_v7  ;;  %v11413_v7 = vld [vmem:[#allocation13_spill] sm:$0xff] }
 0x116   : > { %2137 = vmatmul.mubr.bf16.gmra.mrb[52].mxu1 %v1767_v5  ;;  %2564 = vmatmul.mubr.bf16.gmra.mrb[52].mxu0 %v2320_v26 }
 0x117   : > { %2144 = vmatprep.mubr.bf16.mxu1 %v1791_v35  ;;  %2571 = vmatprep.mubr.bf16.mxu0 %v2326_v4 }
 0x11e   : > { %2145 = vmatmul.mubr.bf16.gmra.mrb[56].mxu1 %v1783_v31  ;;  %2572 = vmatmul.mubr.bf16.gmra.mrb[56].mxu0 %v2324_v23  ;;  %v9797_v23 = vld [vmem:[%s9076_s26 + $0x30] ss:$8 sps:$4 sm:$0xff]  }
 0x11f   : > { %2152 = vmatprep.mubr.bf16.mxu1 %v1807_v61  ;;  %2579 = vmatprep.mubr.bf16.mxu0 %v2330_v15 }
 0x126   : > { %2153 = vmatmul.mubr.bf16.gmra.mrb[60].mxu1 %v1799_v44  ;;  %2580 = vmatmul.mubr.bf16.gmra.mrb[60].mxu0 %v2328_v19  ;;  %v3345_v19 = vshrl.u32 %v9797_v23, 16 }
 0x127   : > { %2160 = vmatprep.mubr.bf16.mxu1 %v9405_v0  ;;  %2587 = vmatprep.mubr.bf16.mxu0 %v9388_v16  ;;  %v1504_v16 = vld [vmem:[%s9076_s26 + $0x100] sm:$0x11]  ;;  %v2684_v0 = vld [vmem:[%s9076_s26 + $0x10] sm:$0xee] }
 0x128   : > { %v6628_v22 = vcombine.high %v1504_v16, %v1504_v16 }
 0x12e   : > { %2161 = vmatmul.mubr.bf16.gmra.mrb[64].mxu1 %v9442_v13  ;;  %2588 = vmatmul.mubr.bf16.gmra.mrb[64].mxu0 %v9432_v52  ;;  %v11414_v52 = vld [vmem:[#allocation14_spill] sm:$0xff]  ;;  %v2685_v13 = vld [vmem:[%s9076_s26 + $0x18] sm:$0xff] }
 0x12f   : > { %2168 = vmatprep.mubr.bf16.mxu1 %v9458_v43  ;;  %2595 = vmatprep.mubr.bf16.mxu0 %v9454_v32  ;;  %v1932_v32 = vshll.u32 %v6628_v22, 16  ;;  %v8595_v43 = vld [vmem:[%s9076_s26 + $0xf4] ss:$8 sps:$4 sm:$0xff]   ;;  %v6727_v62 = vcombine.low %v2684_v0, %v2685_v13 }
 0x131   : > { %v3311_v29 = vshrl.u32 %v6727_v62, 16  ;;  %v2883_v44 = vrot.slane %v6727_v62, 1 }
 0x133   : > { %v3313_v60 = vrot.slane %v3311_v29, 1 }
 0x136   : > { %2169 = vmatmul.mubr.bf16.gmra.mrb[68].mxu1 %v9467_v18  ;;  %2596 = vmatmul.mubr.bf16.gmra.mrb[68].mxu0 %v11410_v34  ;;  %v1928_v18 = vshrl.u32 %v8595_v43, 16  ;;  %v3348_v34 = vshll.u32 %v9797_v23, 16 }
 0x137   : > { %2176 = vmatprep.mubr.bf16.mxu1 %v11411_v41  ;;  %2603 = vmatprep.mubr.bf16.mxu0 %v11412_v17  ;;  %v3372_v41 = vshrl.u32 %v9802_v28, 16  ;;  %v3375_v17 = vshll.u32 %v9802_v28, 16 }
 0x138   : > { %v3350_v43 = vrot.slane %v3348_v34, 2 }
 0x13e   : > { %2177 = vmatmul.mubr.bf16.gmra.mrb[72].mxu1 %v9502_v36  ;;  %2604 = vmatmul.mubr.bf16.gmra.mrb[72].mxu0 %v11413_v7  ;;  %v6728_v36 = vcombine.high %v2684_v0, %v2685_v13  ;;  %v2891_v7 = vrot.slane %v9782_v39, 1  ;;  %v8431_v0 = vld [vmem:[%s11383_s2 + $0x280] sm:$0xff]  }
 0x13f   : > { %2184 = vmatprep.mubr.bf16.mxu1 %v9513_v47  ;;  %2611 = vmatprep.mubr.bf16.mxu0 %v9505_v9  ;;  %v9764_v9 = vld [vmem:[%s9076_s26 + $0x24] ss:$8 sps:$4 sm:$0xff]   ;;  %v1934_v47 = vrot.slane %v1932_v32, 1  ;;  %v3347_v32 = vrot.slane %v3345_v19, 1 }
 0x140   : > { %v2886_v11 = vrot.slane %v6728_v36, 1  ;;  %v2887_v35 = vrot.slane %v9764_v9, 1  ;;  %v8433_v13 = vld [vmem:[%s11383_s2 + $0x300] sm:$0xff]  }
 0x142   : > { %v2888_v37 = vsel %vm2296_vm1, %v2886_v11, %v2887_v35  ;;  %v8451_v11 = vld [vmem:[%s11383_s2 + $0x290] sm:$0xff]  }
 0x146   : > { %2185 = vmatmul.mubr.bf16.gmra.mrb[76].mxu1 %v9529_v12  ;;  %2612 = vmatmul.mubr.bf16.gmra.mrb[76].mxu0 %v11414_v52  ;;  %v2361_v12 = vrot.slane %v6628_v22, 1 }
 0x147   : > { %2192 = vmatprep.mubr.bf16.mxu1 %v9543_v58  ;;  %2619 = vmatprep.mubr.bf16.mxu0 %v9533_v49  ;;  %v6627_v49 = vcombine.low %v1504_v16, %v1504_v16  ;;  %v1930_v58 = vor.u32 %v1928_v18, %v9582_v27  ;;  %v9819_v18 = vld [vmem:[%s9076_s26 + $0x40] ss:$8 sps:$4 sm:$0xff]  }
 0x149   : > { %v1935_v48 = vsel %vm1671_vm0, %v1930_v58, %v1934_v47  ;;  %v2359_v5 = vrot.slane %v6627_v49, 1  ;;  %v9822_v47 = vld [vmem:[%s9076_s26 + $0x54] ss:$8 sps:$4 sm:$0xff]   ;;  %v8440_v58 = vld [vmem:[%s11383_s2 + $0x2c8] sm:$0xff]  }
 0x14b   : > { %v2360_v21 = vsel %vm2296_vm1, %v2355_v53, %v2359_v5 }
 0x14e   : > { %2193 = vmatmul.mubr.bf16.gmra.mrb[80].mxu1 %v9551_v38  ;;  %2620 = vmatmul.mubr.bf16.gmra.mrb[80].mxu0 %v9546_v33  ;;  %v3328_v33 = vshrl.u32 %v6728_v36, 16  ;;  %v3331_v38 = vshll.u32 %v6728_v36, 16  ;;  %v3374_v36 = vrot.slane %v3372_v41, 1 }
 0x14f   : > { %2200 = vmatprep.mubr.bf16.mxu1 %v9571_v10  ;;  %2627 = vmatprep.mubr.bf16.mxu0 %v9559_v40  ;;  %v3336_v40 = vshrl.u32 %v9764_v9, 16  ;;  %v3339_v10 = vshll.u32 %v9764_v9, 16  ;;  %v3377_v9 = vrot.slane %v3375_v17, 2  ;;  %v9908_v17 = vld [vmem:[%s9076_s26 + $0x74] ss:$8 sps:$4 sm:$0xff]  }
 0x150   : > { %v3330_v27 = vrot.slane %v3328_v33, 1  ;;  %v3333_v50 = vrot.slane %v3331_v38, 2  ;;  %v8442_v33 = vld [vmem:[%s11383_s2 + $0x348] sm:$0xff]   ;;  %v2889_v38 = vrot.slane %v9797_v23, 1  ;;  %v8461_v23 = vld [vmem:[%s11383_s2 + $0x298] sm:$0xff]  }
 0x151   : > { %v3338_v59 = vrot.slane %v3336_v40, 1  ;;  %v3341_v54 = vrot.slane %v3339_v10, 2  ;;  %v3351_v40 = vor.u32 %v3350_v43, %v3347_v32  ;;  %v3363_v10 = vshrl.u32 %v9819_v18, 16 }
 0x153   : > { %v3342_v4 = vor.u32 %v3341_v54, %v3338_v59 }
 0x156   : > { %2201 = vmatmul.mubr.bf16.gmra.mrb[84].mxu1 %v9580_v3  ;;  %2628 = vmatmul.mubr.bf16.gmra.mrb[84].mxu0 %v9574_v57  ;;  %v8596_v3 = vld [vmem:[%s9076_s26 + $0xf0] ss:$8 sps:$4 sm:$0xff]   ;;  %v1924_v57 = vshll.u32 %v6627_v49, 16 }
 0x157   : > { %2208 = vmatprep.mubr.bf16.mxu1 %v9610_v42  ;;  %2635 = vmatprep.mubr.bf16.mxu0 %v9587_v45  ;;  %v1920_v51 = vshrl.u32 %v8596_v3, 16  ;;  %v2362_v42 = vsel %vm2296_vm1, %v2357_v30, %v2361_v12  ;;  %v9779_v45 = vld [vmem:[%s9076_s26 + $0x20] ss:$8 sps:$4 sm:$0xff]   ;;  %v3314_v30 = vshll.u32 %v6727_v62, 16  ;;  %v2892_v12 = vsel %vm2296_vm1, %v2887_v35, %v2891_v7 }
 0x158   : > { %v1926_v1 = vrot.slane %v1924_v57, 1  ;;  %v3319_v26 = vshrl.u32 %v9779_v45, 16  ;;  %v3322_v24 = vshll.u32 %v9779_v45, 16  ;;  %v2884_v25 = vrot.slane %v9779_v45, 1  ;;  %v8443_v57 = vld [vmem:[%s11383_s2 + $0x308] sm:$0xff]   ;;  %v8453_v35 = vld [vmem:[%s11383_s2 + $0x310] sm:$0xff]  }
 0x159   : > { %v1922_v8 = vor.u32 %v1920_v51, %v9612_v46  ;;  %v3354_v46 = vshrl.u32 %v9782_v39, 16  ;;  %v3316_v14 = vrot.slane %v3314_v30, 2  ;;  %v3366_v3 = vshll.u32 %v9819_v18, 16  ;;  %v8441_v51 = vld [vmem:[%s11383_s2 + $0x288] sm:$0xff]  }
 0x15a   : > { %v3321_v63 = vrot.slane %v3319_v26, 1  ;;  %v3324_v31 = vrot.slane %v3322_v24, 2  ;;  %v2885_v16 = vsel %vm2296_vm1, %v2883_v44, %v2884_v25  ;;  %v3390_v62 = vshrl.u32 %v9822_v47, 16  ;;  %v9858_v24 = vld [vmem:[%s9076_s26 + $0x64] ss:$8 sps:$4 sm:$0xff]  }
 0x15b   : > { %v1927_v2 = vsel %vm1671_vm0, %v1922_v8, %v1926_v1  ;;  %v3356_v15 = vrot.slane %v3354_v46, 1  ;;  %v3317_v53 = vor.u32 %v3316_v14, %v3313_v60  ;;  %v3393_v45 = vshll.u32 %v9822_v47, 16  ;;  %v9853_v1 = vld [vmem:[%s9076_s26 + $0x50] ss:$8 sps:$4 sm:$0xff]  }
 0x15c   : > { %v3325_v6 = vor.u32 %v3324_v31, %v3321_v63  ;;  %v2890_v59 = vsel %vm2296_vm1, %v2884_v25, %v2889_v38  ;;  %v3368_v8 = vrot.slane %v3366_v3, 2  ;;  %v3392_v30 = vrot.slane %v3390_v62, 1  ;;  %v8492_v3 = vld [vmem:[%s11383_s2 + $0x370] sm:$0xff]  }
 0x15d   : > { %v3395_v26 = vrot.slane %v3393_v45, 2  ;;  %v2893_v46 = vrot.slane %v9819_v18, 1  ;;  %v2899_v60 = vrot.slane %v9822_v47, 1  ;;  %v3408_v63 = vshrl.u32 %v9858_v24, 16  ;;  %v9945_v62 = vld [vmem:[%s9076_s26 + $0x70] ss:$8 sps:$4 sm:$0xff]  }
 0x15e   : > { %2209 = vmatmul.mubr.bf16.gmra.mrb[88].mxu1 %v9635_v56  ;;  %2636 = vmatmul.mubr.bf16.gmra.mrb[88].mxu0 %v9619_v20  ;;  %v3334_v56 = vor.u32 %v3333_v50, %v3330_v27  ;;  %v3357_v20 = vshll.u32 %v9782_v39, 16  ;;  %v3326_v22 = vsel %vm3309_vm2, %v3317_v53, %v3325_v6  ;;  %v8450_v27 = vld [vmem:[%s11383_s2 + $0x2d0] sm:$0xff]   ;;  %v3352_v54 = vsel %vm3309_vm2, %v3325_v6, %v3351_v40 }
 0x15f   : > { %2216 = vmatprep.mubr.bf16.mxu1 %v1935_v48  ;;  %2643 = vmatprep.mubr.bf16.mxu0 %v2362_v42  ;;  %v2895_v48 = vrot.slane %v9802_v28, 1  ;;  %v3378_v42 = vor.u32 %v3377_v9, %v3374_v36  ;;  %v8452_v50 = vld [vmem:[%s11383_s2 + $0x350] sm:$0xff]   ;;  %v3365_v39 = vrot.slane %v3363_v10, 1  ;;  %v9878_v14 = vor.u32 %v3395_v26, %v3392_v30  ;;  %v8472_v28 = vld [vmem:[%s11383_s2 + $0x360] sm:$0xff]  }
 0x160   : > { %v3343_v61 = vsel %vm3309_vm2, %v3334_v56, %v3342_v4  ;;  %v3359_v55 = vrot.slane %v3357_v20, 2  ;;  %v8460_v56 = vld [vmem:[%s11383_s2 + $0x2d8] sm:$0xff]   ;;  %v3411_v31 = vshll.u32 %v9858_v24, 16  ;;  %v3410_v34 = vrot.slane %v3408_v63, 1  ;;  %v8490_v10 = vld [vmem:[%s11383_s2 + $0x2f0] sm:$0xff]  }
 0x161   : > { %v2896_v5 = vsel %vm2296_vm1, %v2891_v7, %v2895_v48  ;;  %v9873_v20 = vor.u32 %v3368_v8, %v3365_v39  ;;  %v2900_v6 = vsel %vm2296_vm1, %v2895_v48, %v2899_v60  ;;  %v3397_v19 = vsel %vm3309_vm2, %v3378_v42, %v9878_v14  ;;  %v8471_v7 = vld [vmem:[%s11383_s2 + $0x2a0] sm:$0xff]  }
 0x162   : > { %v3360_v52 = vor.u32 %v3359_v55, %v3356_v15  ;;  %v9895_v15 = vld [vmem:[%s9076_s26 + $0x60] ss:$8 sps:$4 sm:$0xff]   ;;  %v2894_v55 = vsel %vm2296_vm1, %v2889_v38, %v2893_v46  ;;  %v3413_v41 = vrot.slane %v3411_v31, 2  ;;  %v2897_v32 = vrot.slane %v9853_v1, 1  ;;  %v9958_v8 = vld [vmem:[%s9076_s26 + $0x84] ss:$8 sps:$4 sm:$0xff]  }
 0x163   : > { %v3370_v44 = vsel %vm3309_vm2, %v3351_v40, %v9873_v20  ;;  %v2903_v36 = vrot.slane %v9858_v24, 1  ;;  %v3417_v63 = vshrl.u32 %v9945_v62, 16  ;;  %v3420_v31 = vshll.u32 %v9945_v62, 16 }
 0x164   : > { %v3361_v49 = vsel %vm3309_vm2, %v3342_v4, %v3360_v52  ;;  %v3379_v29 = vsel %vm3309_vm2, %v3360_v52, %v3378_v42  ;;  %v8462_v4 = vld [vmem:[%s11383_s2 + $0x358] sm:$0xff]   ;;  %v8473_v52 = vld [vmem:[%s11383_s2 + $0x320] sm:$0xff]   ;;  %v9928_v9 = vor.u32 %v3413_v41, %v3410_v34  ;;  %v2905_v24 = vrot.slane %v9945_v62, 1 }
 0x165   : > { %v2904_v18 = vsel %vm2296_vm1, %v2899_v60, %v2903_v36  ;;  %v8517_v34 = vld [vmem:[%s11383_s2 + $0x440] sm:$0xff]  }
 0x166   : > { %2217 = vmatmul.mubr.bf16.gmra.mrb[92].mxu1 %v1927_v2  ;;  %2644 = vmatmul.mubr.bf16.gmra.mrb[92].mxu0 %v2360_v21  ;;  %v3381_v2 = vshrl.u32 %v9853_v1, 16  ;;  %v3384_v21 = vshll.u32 %v9853_v1, 16  ;;  %v3415_v26 = vsel %vm3309_vm2, %v9878_v14, %v9928_v9 }
 0x167   : > { %3109 = vmatprep.mubr.bf16.mxu1 %v2888_v37  ;;  %3774 = vmatprep.mubr.bf16.mxu0 %v3343_v61  ;;  %v8463_v37 = vld [vmem:[%s11383_s2 + $0x318] sm:$0xff]   ;;  %v8470_v61 = vld [vmem:[%s11383_s2 + $0x2e0] sm:$0xff]  }
 0x168   : > { %v3383_v25 = vrot.slane %v3381_v2, 1  ;;  %v3386_v53 = vrot.slane %v3384_v21, 2  ;;  %v8502_v2 = vld [vmem:[%s11383_s2 + $0x378] sm:$0xff]   ;;  %v2901_v21 = vrot.slane %v9895_v15, 1 }
 0x16a   : > { %v9925_v43 = vor.u32 %v3386_v53, %v3383_v25  ;;  %v8503_v25 = vld [vmem:[%s11383_s2 + $0x338] sm:$0xff]  }
 0x16c   : > { %v3388_v39 = vsel %vm3309_vm2, %v9873_v20, %v9925_v43  ;;  %v8500_v20 = vld [vmem:[%s11383_s2 + $0x2f8] sm:$0xff]  }
 0x16e   : > { %3110 = vmatmul.mubr.bf16.vlgmr.msra.gmra.mrb[96].mxu1 %v2885_v16  ;;  %3775 = vmatmul.mubr.bf16.vlgmr.msra.gmra.mrb[96].mxu0 %v3326_v22  ;;  %v8480_v16 = vld [vmem:[%s11383_s2 + $0x2e8] sm:$0xff]  }
 0x16f   : > { %7791 = vmatpush3.bf16.msra.mxu1 %v8431_v0  ;;  %7903 = vmatpush3.bf16.msra.mxu0 %v8433_v13  ;;  %v8482_v22 = vld [vmem:[%s11383_s2 + $0x368] sm:$0xff]   ;;  %v3399_v0 = vshrl.u32 %v9895_v15, 16  ;;  %v3402_v13 = vshll.u32 %v9895_v15, 16 }
 0x170   : > { %3117 = vmatprep.mubr.bf16.mxu1 %v2892_v12  ;;  %3782 = vmatprep.mubr.bf16.mxu0 %v3361_v49  ;;  %v3426_v12 = vshrl.u32 %v9908_v17, 16  ;;  %v3429_v49 = vshll.u32 %v9908_v17, 16 }
 0x171   : > { %7792 = vmatprep.subr.bf16.mxu1 %v8440_v58  ;;  %7904 = vmatprep.subr.bf16.mxu0 %v8442_v33  ;;  %v8481_v58 = vld [vmem:[%s11383_s2 + $0x2a8] sm:$0xff]   ;;  %v3401_v48 = vrot.slane %v3399_v0, 1  ;;  %v3404_v42 = vrot.slane %v3402_v13, 2 }
 0x172   : > { %v8483_v33 = vld [vmem:[%s11383_s2 + $0x328] sm:$0xff]  }
 0x173   : > { %7793 = vmatpush3.bf16.msra.mxu1 %v8441_v51  ;;  %7905 = vmatpush3.bf16.msra.mxu0 %v8443_v57  ;;  %v9988_v60 = vor.u32 %v3404_v42, %v3401_v48 }
 0x174   : > { %7794 = vmatprep.subr.bf16.mxu1 %v8450_v27  ;;  %7906 = vmatprep.subr.bf16.mxu0 %v8452_v50 }
 0x176   : > { %3118 = vmatmul.mubr.bf16.gmra.mrb[100].mxu1 %v2890_v59  ;;  %3783 = vmatmul.mubr.bf16.gmra.mrb[100].mxu0 %v3352_v54  ;;  %v2898_v54 = vsel %vm2296_vm1, %v2893_v46, %v2897_v32 }
 0x177   : > { %3125 = vmatprep.mubr.bf16.mxu1 %v2896_v5  ;;  %3790 = vmatprep.mubr.bf16.mxu0 %v3379_v29  ;;  %v9963_v5 = vld [vmem:[%s11384_s3] ss:$0 sm:$0xff] }
 0x178   : > { %7795 = vmatpush3.bf16.msra.mxu1 %v8451_v11  ;;  %7907 = vmatpush3.bf16.msra.mxu0 %v8453_v35  ;;  %v3428_v11 = vrot.slane %v3426_v12, 1  ;;  %v3431_v35 = vrot.slane %v3429_v49, 2 }
 0x179   : > { %7796 = vmatprep.subr.bf16.mxu1 %v8460_v56  ;;  %7908 = vmatprep.subr.bf16.mxu0 %v8462_v4  ;;  %v8491_v56 = vld [vmem:[%s11383_s2 + $0x2b0] sm:$0xff]  }
 0x17a   : > { %v8493_v4 = vld [vmem:[%s11383_s2 + $0x330] sm:$0xff]  }
 0x17c   : > { %7797 = vmatpush3.bf16.msra.mxu1 %v8461_v23  ;;  %7909 = vmatpush3.bf16.msra.mxu0 %v8463_v37  ;;  %v2907_v37 = vrot.slane %v9908_v17, 1 }
 0x17d   : > { %7798 = vmatprep.subr.bf16.mxu1 %v8470_v61  ;;  %7910 = vmatprep.subr.bf16.mxu0 %v8472_v28  ;;  %v9999_v61 = vor.u32 %v3431_v35, %v3428_v11  ;;  %v3444_v28 = vshrl.u32 %v9958_v8, 16  ;;  %v10057_v35 = vld [vmem:[%s9076_s26 + $0x90] ss:$8 sps:$4 sm:$0xff]  }
 0x17e   : > { %3126 = vmatmul.mubr.bf16.gmra.mrb[104].mxu1 %v2894_v55  ;;  %3791 = vmatmul.mubr.bf16.gmra.mrb[104].mxu0 %v3370_v44  ;;  %v3447_v55 = vshll.u32 %v9958_v8, 16  ;;  %v8501_v44 = vld [vmem:[%s11383_s2 + $0x2b8] sm:$0xff]   ;;  %v2908_v1 = vsel %vm2296_vm1, %v2903_v36, %v2907_v37  ;;  %v3456_v17 = vshll.u32 %v10057_v35, 16 }
 0x17f   : > { %3133 = vmatprep.mubr.bf16.mxu1 %v2900_v6  ;;  %3798 = vmatprep.mubr.bf16.mxu0 %v3397_v19  ;;  %v8515_v19 = vld [vmem:[%s11383_s2 + $0x3c0] sm:$0xff]  }
 0x180   : > { %7799 = vmatpush3.bf16.msra.mxu1 %v8471_v7  ;;  %7911 = vmatpush3.bf16.msra.mxu0 %v8473_v52  ;;  %v2902_v52 = vsel %vm2296_vm1, %v2897_v32, %v2901_v21  ;;  %v3433_v32 = vsel %vm3309_vm2, %v9928_v9, %v9999_v61 }
 0x181   : > { %v7246_v38 = vpop.f32.mrb[0].mxu0  ;;  %v7294_v40 = vpop.f32.mrb[0].mxu1  ;;  %7800 = vmatprep.subr.bf16.mxu1 %v8480_v16  ;;  %7912 = vmatprep.subr.bf16.mxu0 %v8482_v22  ;;  %v3406_v16 = vsel %vm3309_vm2, %v9925_v43, %v9988_v60  ;;  %v10024_v22 = vld [vmem:[%s9076_s26 + $0x80] ss:$8 sps:$4 sm:$0xff]   ;;  %v3446_v43 = vrot.slane %v3444_v28, 1 }
 0x182   : > { %v7247_v51 = vpop.f32.mrb[1].mxu0  ;;  %v7295_v57 = vpop.f32.mrb[1].mxu1  ;;  %v3435_v36 = vshrl.u32 %v10024_v22, 16  ;;  %v3438_v42 = vshll.u32 %v10024_v22, 16 }
 0x183   : > { %v9947_v45 = vadd.f32 %v7247_v51, %v7246_v38  ;;  %v7296_v27 = vadd.f32 %v7295_v57, %v7294_v40  ;;  %v7249_v50 = vpop.f32.mrb[2].mxu0  ;;  %v7297_v59 = vpop.f32.mrb[2].mxu1 }
 0x184   : > { %v7250_v29 = vpop.f32.mrb[3].mxu0  ;;  %v7298_v30 = vpop.f32.mrb[3].mxu1  ;;  %7801 = vmatpush3.bf16.msra.mxu1 %v8481_v58  ;;  %7913 = vmatpush3.bf16.msra.mxu0 %v8483_v33  ;;  %v3419_v58 = vrot.slane %v3417_v63, 1  ;;  %v3422_v33 = vrot.slane %v3420_v31, 2  ;;  %v3437_v11 = vrot.slane %v3435_v36, 1 }
 0x185   : > { %v9979_v46 = vadd.f32 %v7250_v29, %v7249_v50  ;;  %v7299_v47 = vadd.f32 %v7298_v30, %v7297_v59  ;;  %7802 = vmatprep.subr.bf16.mxu1 %v8490_v10  ;;  %7914 = vmatprep.subr.bf16.mxu0 %v8492_v3  ;;  %v9991_v14 = vadd.f32 %v7296_v27, %v9963_v5  ;;  %v3449_v10 = vrot.slane %v3447_v55, 2  ;;  %v10037_v3 = vld [vmem:[%s9076_s26 + $0x94] ss:$8 sps:$4 sm:$0xff]  }
 0x186   : > { %3134 = vmatmul.mubr.bf16.gmra.mrb[108].mxu1 %v2898_v54  ;;  %3799 = vmatmul.mubr.bf16.gmra.mrb[108].mxu0 %v3388_v39  ;;  %v3423_v9 = vor.u32 %v3422_v33, %v3419_v58  ;;  %v2911_v50 = vrot.slane %v9958_v8, 1  ;;  %v3462_v54 = vshrl.u32 %v10037_v3, 16  ;;  %v3465_v62 = vshll.u32 %v10037_v3, 16 }
 0x187   : > { %3141 = vmatprep.mubr.bf16.mxu1 %v2904_v18  ;;  %3806 = vmatprep.mubr.bf16.mxu0 %v3415_v26  ;;  %v9996_v23 = vadd.f32 %v7299_v47, %v9963_v5  ;;  %v3450_v59 = vor.u32 %v3449_v10, %v3446_v43  ;;  %v2906_v26 = vsel %vm2296_vm1, %v2901_v21, %v2905_v24  ;;  %v3458_v33 = vrot.slane %v3456_v17, 2  ;;  %v10090_v10 = vld [vmem:[%s9076_s26 + $0xa0] ss:$8 sps:$4 sm:$0xff]  }
 0x188   : > { %7803 = vmatpush3.bf16.msra.mxu1 %v8491_v56  ;;  %7915 = vmatpush3.bf16.msra.mxu0 %v8493_v4  ;;  %v2912_v15 = vsel %vm2296_vm1, %v2907_v37, %v2911_v50  ;;  %v3464_v28 = vrot.slane %v3462_v54, 1  ;;  %v3467_v55 = vrot.slane %v3465_v62, 2  ;;  %v2909_v37 = vrot.slane %v10024_v22, 1 }
 0x189   : > { %v7252_v53 = vpop.f32.mrb[4].mxu0  ;;  %v7300_v6 = vpop.f32.mrb[4].mxu1  ;;  %7804 = vmatprep.subr.bf16.mxu1 %v8500_v20  ;;  %7916 = vmatprep.subr.bf16.mxu0 %v8502_v2  ;;  %v3424_v20 = vsel %vm3309_vm2, %v9988_v60, %v3423_v9  ;;  %v3440_v2 = vrot.slane %v3438_v42, 2  ;;  %v3451_v21 = vsel %vm3309_vm2, %v9999_v61, %v3450_v59  ;;  %v3453_v60 = vshrl.u32 %v10057_v35, 16 }
 0x18a   : > { %v7253_v41 = vpop.f32.mrb[5].mxu0  ;;  %v7301_v7 = vpop.f32.mrb[5].mxu1 }
 0x18b   : > { %v10026_v0 = vadd.f32 %v7253_v41, %v7252_v53  ;;  %v7302_v13 = vadd.f32 %v7301_v7, %v7300_v6  ;;  %v7255_v12 = vpop.f32.mrb[6].mxu0  ;;  %v7303_v49 = vpop.f32.mrb[6].mxu1  ;;  %v3441_v61 = vor.u32 %v3440_v2, %v3437_v11  ;;  %v3468_v41 = vor.u32 %v3467_v55, %v3464_v28 }
 0x18c   : > { %v7256_v38 = vpop.f32.mrb[7].mxu0  ;;  %v7304_v40 = vpop.f32.mrb[7].mxu1  ;;  %7805 = vmatpush3.bf16.msra.mxu1 %v8501_v44  ;;  %7917 = vmatpush3.bf16.msra.mxu0 %v8503_v25  ;;  %v10069_v44 = vld [vmem:[%s9076_s26 + $0xa4] ss:$8 sps:$4 sm:$0xff]   ;;  %v3455_v58 = vrot.slane %v3453_v60, 1 }
 0x18d   : > { %v10039_v51 = vadd.f32 %v7256_v38, %v7255_v12  ;;  %v7305_v57 = vadd.f32 %v7304_v40, %v7303_v49  ;;  %8014 = vmatprep.subr.bf16.mxu1 %v8515_v19  ;;  %8126 = vmatprep.subr.bf16.mxu0 %v8517_v34  ;;  %v10044_v48 = vadd.f32 %v7302_v13, %v9963_v5  ;;  %v2915_v34 = vrot.slane %v10037_v3, 1 }
 0x18e   : > { %3142 = vmatmul.mubr.bf16.gmra.mrb[112].mxu1 %v2902_v52  ;;  %3807 = vmatmul.mubr.bf16.gmra.mrb[112].mxu0 %v3406_v16  ;;  %v3480_v7 = vshrl.u32 %v10069_v44, 16  ;;  %v3483_v52 = vshll.u32 %v10069_v44, 16  ;;  %v3442_v43 = vsel %vm3309_vm2, %v3423_v9, %v3441_v61  ;;  %v3469_v42 = vsel %vm3309_vm2, %v3450_v59, %v3468_v41 }
 0x18f   : > { %3149 = vmatprep.mubr.bf16.mxu1 %v2908_v1  ;;  %3814 = vmatprep.mubr.bf16.mxu0 %v3433_v32  ;;  %v10048_v27 = vadd.f32 %v7305_v57, %v9963_v5  ;;  %v2910_v32 = vsel %vm2296_vm1, %v2905_v24, %v2909_v37  ;;  %v2916_v36 = vsel %vm2296_vm1, %v2911_v50, %v2915_v34  ;;  %v2913_v24 = vrot.slane %v10057_v35, 1 }
 0x190   : > { %v3482_v54 = vrot.slane %v3480_v7, 1  ;;  %v3485_v62 = vrot.slane %v3483_v52, 2  ;;  %v3459_v9 = vor.u32 %v3458_v33, %v3455_v58  ;;  %v3471_v50 = vshrl.u32 %v10090_v10, 16 }
 0x191   : > { %v7258_v39 = vpop.f32.mrb[8].mxu0  ;;  %v7306_v29 = vpop.f32.mrb[8].mxu1  ;;  %v3474_v59 = vshll.u32 %v10090_v10, 16  ;;  %v2919_v11 = vrot.slane %v10069_v44, 1 }
 0x192   : > { %v7259_v30 = vpop.f32.mrb[9].mxu0  ;;  %v7307_v18 = vpop.f32.mrb[9].mxu1  ;;  %v3473_v60 = vrot.slane %v3471_v50, 1 }
 0x193   : > { %v10059_v56 = vadd.f32 %v7259_v30, %v7258_v39  ;;  %v7308_v8 = vadd.f32 %v7307_v18, %v7306_v29  ;;  %v7261_v4 = vpop.f32.mrb[10].mxu0  ;;  %v7309_v47 = vpop.f32.mrb[10].mxu1  ;;  %v10095_v39 = vld [vmem:[%s9076_s26 + $0xb4] ss:$8 sps:$4 sm:$0xff]   ;;  %v3476_v17 = vrot.slane %v3474_v59, 2 }
 0x194   : > { %v7262_v63 = vpop.f32.mrb[11].mxu0  ;;  %v7310_v31 = vpop.f32.mrb[11].mxu1 }
 0x195   : > { %v10071_v25 = vadd.f32 %v7262_v63, %v7261_v4  ;;  %v7311_v53 = vadd.f32 %v7310_v31, %v7309_v47  ;;  %v10074_v6 = vadd.f32 %v7308_v8, %v9963_v5  ;;  %v3486_v8 = vor.u32 %v3485_v62, %v3482_v54 }
 0x196   : > { %3150 = vmatmul.mubr.bf16.gmra.mrb[116].mxu1 %v2906_v26  ;;  %3815 = vmatmul.mubr.bf16.gmra.mrb[116].mxu0 %v3424_v20  ;;  %v3498_v4 = vshrl.u32 %v10095_v39, 16  ;;  %v3501_v47 = vshll.u32 %v10095_v39, 16  ;;  %v2914_v31 = vsel %vm2296_vm1, %v2909_v37, %v2913_v24  ;;  %v10121_v37 = vld [vmem:[%s9076_s26 + $0xc4] ss:$8 sps:$4 sm:$0xff]  }
 0x197   : > { %3157 = vmatprep.mubr.bf16.mxu1 %v2912_v15  ;;  %3822 = vmatprep.mubr.bf16.mxu0 %v3451_v21  ;;  %v10080_v19 = vadd.f32 %v7311_v53, %v9963_v5  ;;  %v3460_v15 = vsel %vm3309_vm2, %v3441_v61, %v3459_v9  ;;  %v10114_v21 = vld [vmem:[%s9076_s26 + $0xb0] ss:$8 sps:$4 sm:$0xff]  }
 0x199   : > { %v7264_v16 = vpop.f32.mrb[12].mxu0  ;;  %v7312_v13 = vpop.f32.mrb[12].mxu1 }
 0x19a   : > { %v7265_v12 = vpop.f32.mrb[13].mxu0  ;;  %v7313_v49 = vpop.f32.mrb[13].mxu1 }
 0x19b   : > { %v10085_v22 = vadd.f32 %v7265_v12, %v7264_v16  ;;  %v7314_v38 = vadd.f32 %v7313_v49, %v7312_v13  ;;  %v7267_v40 = vpop.f32.mrb[14].mxu0  ;;  %v7315_v1 = vpop.f32.mrb[14].mxu1  ;;  %v2920_v16 = vsel %vm2296_vm1, %v2915_v34, %v2919_v11  ;;  %v3487_v13 = vsel %vm3309_vm2, %v3468_v41, %v3486_v8 }
 0x19c   : > { %v7268_v3 = vpop.f32.mrb[15].mxu0  ;;  %v7316_v57 = vpop.f32.mrb[15].mxu1  ;;  %v3500_v12 = vrot.slane %v3498_v4, 1  ;;  %v3503_v49 = vrot.slane %v3501_v47, 2  ;;  %v2917_v34 = vrot.slane %v10090_v10, 1  ;;  %v3477_v41 = vor.u32 %v3476_v17, %v3473_v60 }
 0x19d   : > { %v10097_v29 = vadd.f32 %v7268_v3, %v7267_v40  ;;  %v7317_v30 = vadd.f32 %v7316_v57, %v7315_v1  ;;  %v10100_v18 = vadd.f32 %v7314_v38, %v9963_v5  ;;  %v3489_v38 = vshrl.u32 %v10114_v21, 16 }
 0x19e   : > { %3158 = vmatmul.mubr.bf16.gmra.mrb[120].mxu1 %v2910_v32  ;;  %3823 = vmatmul.mubr.bf16.gmra.mrb[120].mxu0 %v3442_v43  ;;  %v3492_v40 = vshll.u32 %v10114_v21, 16  ;;  %v2923_v32 = vrot.slane %v10095_v39, 1  ;;  %v3504_v43 = vor.u32 %v3503_v49, %v3500_v12  ;;  %v3516_v3 = vshrl.u32 %v10121_v37, 16 }
 0x19f   : > { %3165 = vmatprep.mubr.bf16.mxu1 %v2916_v36  ;;  %3830 = vmatprep.mubr.bf16.mxu0 %v3469_v42  ;;  %v10106_v26 = vadd.f32 %v7317_v30, %v9963_v5  ;;  %v3519_v57 = vshll.u32 %v10121_v37, 16  ;;  %v3491_v30 = vrot.slane %v3489_v38, 1  ;;  %v2918_v39 = vsel %vm2296_vm1, %v2913_v24, %v2917_v34 }
 0x1a0   : > { %v3494_v50 = vrot.slane %v3492_v40, 2  ;;  %v2921_v24 = vrot.slane %v10114_v21, 1 }
 0x1a1   : > { %v7270_v20 = vpop.f32.mrb[16].mxu0  ;;  %v7318_v35 = vpop.f32.mrb[16].mxu1 }
 0x1a2   : > { %v7271_v2 = vpop.f32.mrb[17].mxu0  ;;  %v7319_v63 = vpop.f32.mrb[17].mxu1 }
 0x1a3   : > { %v10116_v28 = vadd.f32 %v7271_v2, %v7270_v20  ;;  %v7320_v55 = vadd.f32 %v7319_v63, %v7318_v35  ;;  %v7273_v44 = vpop.f32.mrb[18].mxu0  ;;  %v7321_v53 = vpop.f32.mrb[18].mxu1  ;;  %v3478_v20 = vsel %vm3309_vm2, %v3459_v9, %v3477_v41  ;;  %v10142_v35 = vld [vmem:[%s9076_s26 + $0xc0] ss:$8 sps:$4 sm:$0xff]   ;;  %v3495_v9 = vor.u32 %v3494_v50, %v3491_v30 }
 0x1a4   : > { %v7274_v7 = vpop.f32.mrb[19].mxu0  ;;  %v7322_v52 = vpop.f32.mrb[19].mxu1 }
 0x1a5   : > { %v10123_v61 = vadd.f32 %v7274_v7, %v7273_v44  ;;  %v7323_v58 = vadd.f32 %v7322_v52, %v7321_v53  ;;  %v10126_v33 = vadd.f32 %v7320_v55, %v9963_v5  ;;  %v3518_v55 = vrot.slane %v3516_v3, 1  ;;  %v10147_v53 = vld [vmem:[%s9076_s26 + $0xd4] ss:$8 sps:$4 sm:$0xff]  }
 0x1a6   : > { %3166 = vmatmul.mubr.bf16.gmra.mrb[124].mxu1 %v2914_v31  ;;  %3831 = vmatmul.mubr.bf16.gmra.mrb[124].mxu0 %v3460_v15  ;;  %v2924_v31 = vsel %vm2296_vm1, %v2919_v11, %v2923_v32  ;;  %v3505_v15 = vsel %vm3309_vm2, %v3486_v8, %v3504_v43  ;;  %v3521_v44 = vrot.slane %v3519_v57, 2  ;;  %v3507_v11 = vshrl.u32 %v10142_v35, 16 }
 0x1a7   : > { %3173 = vmatprep.mubr.bf16.mxu1 %v2920_v16  ;;  %3838 = vmatprep.mubr.bf16.mxu0 %v3487_v13  ;;  %v10132_v1 = vadd.f32 %v7323_v58, %v9963_v5  ;;  %v3510_v8 = vshll.u32 %v10142_v35, 16  ;;  %v2927_v16 = vrot.slane %v10121_v37, 1  ;;  %v3534_v12 = vshrl.u32 %v10147_v53, 16 }
 0x1a8   : > { %v3522_v13 = vor.u32 %v3521_v44, %v3518_v55  ;;  %v3537_v49 = vshll.u32 %v10147_v53, 16  ;;  %v2922_v3 = vsel %vm2296_vm1, %v2917_v34, %v2921_v24  ;;  %v3496_v57 = vsel %vm3309_vm2, %v3477_v41, %v3495_v9  ;;  %v10173_v34 = vld [vmem:[%s9076_s26 + $0xe4] ss:$8 sps:$4 sm:$0xff]  }
 0x1a9   : > { %v7276_v36 = vpop.f32.mrb[20].mxu0  ;;  %v7324_v42 = vpop.f32.mrb[20].mxu1  ;;  %v3509_v30 = vrot.slane %v3507_v11, 1  ;;  %v3512_v50 = vrot.slane %v3510_v8, 2  ;;  %v3552_v8 = vshrl.u32 %v10173_v34, 16 }
 0x1aa   : > { %v7277_v54 = vpop.f32.mrb[21].mxu0  ;;  %v7325_v62 = vpop.f32.mrb[21].mxu1 }
 0x1ab   : > { %v10137_v10 = vadd.f32 %v7277_v54, %v7276_v36  ;;  %v7326_v59 = vadd.f32 %v7325_v62, %v7324_v42  ;;  %v7279_v4 = vpop.f32.mrb[22].mxu0  ;;  %v7327_v47 = vpop.f32.mrb[22].mxu1  ;;  %v10166_v36 = vld [vmem:[%s9076_s26 + $0xd0] ss:$8 sps:$4 sm:$0xff]  }
 0x1ac   : > { %v7280_v2 = vpop.f32.mrb[23].mxu0  ;;  %v7328_v63 = vpop.f32.mrb[23].mxu1  ;;  %v3528_v55 = vshll.u32 %v10166_v36, 16 }
 0x1ad   : > { %v10149_v60 = vadd.f32 %v7280_v2, %v7279_v4  ;;  %v7329_v17 = vadd.f32 %v7328_v63, %v7327_v47  ;;  %v10152_v7 = vadd.f32 %v7326_v59, %v9963_v5  ;;  %v2928_v47 = vsel %vm2296_vm1, %v2923_v32, %v2927_v16 }
 0x1ae   : > { %3174 = vmatmul.mubr.bf16.gmra.mrb[128].mxu1 %v2918_v39  ;;  %3839 = vmatmul.mubr.bf16.gmra.mrb[128].mxu0 %v3478_v20  ;;  %v3523_v39 = vsel %vm3309_vm2, %v3504_v43, %v3522_v13  ;;  %v3536_v20 = vrot.slane %v3534_v12, 1  ;;  %v3539_v2 = vrot.slane %v3537_v49, 2  ;;  %v2925_v32 = vrot.slane %v10142_v35, 1 }
 0x1af   : > { %3181 = vmatprep.mubr.bf16.mxu1 %v2924_v31  ;;  %3846 = vmatprep.mubr.bf16.mxu0 %v3505_v15  ;;  %v10158_v52 = vadd.f32 %v7329_v17, %v9963_v5  ;;  %v3525_v15 = vshrl.u32 %v10166_v36, 16  ;;  %v3513_v43 = vor.u32 %v3512_v50, %v3509_v30  ;;  %v2931_v17 = vrot.slane %v10147_v53, 1 }
 0x1b0   : > { %v3540_v11 = vor.u32 %v3539_v2, %v3536_v20  ;;  %v3555_v12 = vshll.u32 %v10173_v34, 16  ;;  %v2926_v53 = vsel %vm2296_vm1, %v2921_v24, %v2925_v32  ;;  %v10199_v2 = vld [vmem:[%s9076_s26 + $0xf4] ss:$8 sps:$4 sm:$0xff]   ;;  %v2929_v24 = vrot.slane %v10166_v36, 1 }
 0x1b1   : > { %v7282_v58 = vpop.f32.mrb[24].mxu0  ;;  %v7330_v21 = vpop.f32.mrb[24].mxu1  ;;  %v3514_v30 = vsel %vm3309_vm2, %v3495_v9, %v3513_v43 }
 0x1b2   : > { %v7283_v38 = vpop.f32.mrb[25].mxu0  ;;  %v7331_v40 = vpop.f32.mrb[25].mxu1  ;;  %v3557_v20 = vrot.slane %v3555_v12, 2  ;;  %v2935_v12 = vrot.slane %v10173_v34, 1 }
 0x1b3   : > { %v10168_v42 = vadd.f32 %v7283_v38, %v7282_v58  ;;  %v7332_v54 = vadd.f32 %v7331_v40, %v7330_v21  ;;  %v7285_v37 = vpop.f32.mrb[26].mxu0  ;;  %v7333_v62 = vpop.f32.mrb[26].mxu1  ;;  %v3527_v40 = vrot.slane %v3525_v15, 1 }
 0x1b4   : > { %v7286_v59 = vpop.f32.mrb[27].mxu0  ;;  %v7334_v4 = vpop.f32.mrb[27].mxu1 }
 0x1b5   : > { %v10175_v41 = vadd.f32 %v7286_v59, %v7285_v37  ;;  %v7335_v63 = vadd.f32 %v7334_v4, %v7333_v62  ;;  %v10178_v31 = vadd.f32 %v7332_v54, %v9963_v5  ;;  %v2932_v4 = vsel %vm2296_vm1, %v2927_v16, %v2931_v17 }
 0x1b6   : > { %3182 = vmatmul.mubr.bf16.gmra.mrb[132].mxu1 %v2922_v3  ;;  %3847 = vmatmul.mubr.bf16.gmra.mrb[132].mxu0 %v3496_v57  ;;  %v3530_v3 = vrot.slane %v3528_v55, 2  ;;  %v10190_v57 = vld [vmem:[%s9076_s26 + $0xe0] ss:$8 sps:$4 sm:$0xff]  }
 0x1b7   : > { %3189 = vmatprep.mubr.bf16.mxu1 %v2928_v47  ;;  %3854 = vmatprep.mubr.bf16.mxu0 %v3523_v39  ;;  %v10184_v44 = vadd.f32 %v7335_v63, %v9963_v5  ;;  %v3541_v47 = vsel %vm3309_vm2, %v3522_v13, %v3540_v11  ;;  %v3554_v39 = vrot.slane %v3552_v8, 1  ;;  %v3543_v16 = vshrl.u32 %v10190_v57, 16  ;;  %v10210_v13 = vld [vmem:[%s9076_s26 + $0xf0] ss:$8 sps:$4 sm:$0xff]  }
 0x1b8   : > { %v3531_v9 = vor.u32 %v3530_v3, %v3527_v40 }
 0x1b9   : > { %11415 = vst [vmem:[#allocation10_spill] sm:$0xff] %v10184_v44  ;;  %v7288_v49 = vpop.f32.mrb[28].mxu0  ;;  %v7336_v58 = vpop.f32.mrb[28].mxu1 }
 0x1ba   : > { %v7289_v21 = vpop.f32.mrb[29].mxu0  ;;  %v7337_v38 = vpop.f32.mrb[29].mxu1 }
 0x1bb   : > { %v10192_v35 = vadd.f32 %v7289_v21, %v7288_v49  ;;  %v7338_v54 = vadd.f32 %v7337_v38, %v7336_v58  ;;  %v7291_v37 = vpop.f32.mrb[30].mxu0  ;;  %v7339_v62 = vpop.f32.mrb[30].mxu1  ;;  %v3546_v49 = vshll.u32 %v10190_v57, 16  ;;  %v3558_v58 = vor.u32 %v3557_v20, %v3554_v39 }
 0x1bc   : > { %v7292_v50 = vpop.f32.mrb[31].mxu0  ;;  %v7340_v59 = vpop.f32.mrb[31].mxu1  ;;  %v3570_v21 = vshrl.u32 %v10199_v2, 16  ;;  %v3573_v38 = vshll.u32 %v10199_v2, 16  ;;  %v3561_v39 = vshrl.u32 %v10210_v13, 16 }
 0x1bd   : > { %v10201_v63 = vadd.f32 %v7292_v50, %v7291_v37  ;;  %v7341_v15 = vadd.f32 %v7340_v59, %v7339_v62  ;;  %v10204_v55 = vadd.f32 %v7338_v54, %v9963_v5  ;;  %v2930_v37 = vsel %vm2296_vm1, %v2925_v32, %v2929_v24 }
 0x1be   : > { %3190 = vmatmul.mubr.bf16.gmra.mrb[136].mxu1 %v2926_v53  ;;  %3855 = vmatmul.mubr.bf16.gmra.mrb[136].mxu0 %v3514_v30  ;;  %v3532_v62 = vsel %vm3309_vm2, %v3513_v43, %v3531_v9  ;;  %v3545_v53 = vrot.slane %v3543_v16, 1  ;;  %v3548_v30 = vrot.slane %v3546_v49, 2  ;;  %v1346_v50 = vadd.f32 %v9947_v45, %v9963_v5  ;;  %v10226_v43 = vld [vmem:[%s9076_s26 + $0x104] ss:$8 sps:$4 sm:$0xff]  }
 0x1bf   : > { %11416 = vst [vmem:[#allocation12_spill] sm:$0xff] %v10204_v55  ;;  %3197 = vmatprep.mubr.bf16.mxu1 %v2932_v4  ;;  %3862 = vmatprep.mubr.bf16.mxu0 %v3541_v47  ;;  %v10213_v8 = vadd.f32 %v7341_v15, %v9963_v5  ;;  %v3559_v32 = vsel %vm3309_vm2, %v3540_v11, %v3558_v58  ;;  %v3572_v55 = vrot.slane %v3570_v21, 1  ;;  %v3575_v44 = vrot.slane %v3573_v38, 2 }
 0x1c0   : > { %v1349_v45 = vadd.f32 %v9979_v46, %v9963_v5  ;;  %v2939_v21 = vrot.slane %v10199_v2, 1  ;;  %v3588_v46 = vshrl.u32 %v10226_v43, 16  ;;  %v1357_v2 = vadd.f32 %v10039_v51, %v9963_v5 }
 0x1c1   : > { %11417 = vst [vmem:[#allocation11_spill] sm:$0xff] %v10213_v8  ;;  %v7358_v36 = vpop.f32.mrb[32].mxu1  ;;  %v7470_v40 = vpop.f32.mrb[32].mxu0  ;;  %v2936_v8 = vsel %vm2296_vm1, %v2931_v17, %v2935_v12  ;;  %v3564_v17 = vshll.u32 %v10210_v13, 16  ;;  %v10235_v38 = vor.u32 %v3575_v44, %v3572_v55  ;;  %v10246_v55 = vld [vmem:[%s9076_s26 + $0x100] ss:$8 sps:$4 sm:$0xff]  }
 0x1c2   : > { %v7359_v3 = vpop.f32.mrb[33].mxu1  ;;  %v7471_v54 = vpop.f32.mrb[33].mxu0 }
 0x1c3   : > { %v7360_v34 = vadd.f32 %v7359_v3, %v7358_v36  ;;  %v7472_v59 = vadd.f32 %v7471_v54, %v7470_v40  ;;  %v7361_v4 = vpop.f32.mrb[34].mxu1  ;;  %v7473_v47 = vpop.f32.mrb[34].mxu0  ;;  %v2933_v40 = vrot.slane %v10190_v57, 1  ;;  %v3549_v3 = vor.u32 %v3548_v30, %v3545_v53 }
 0x1c4   : > { %v7362_v20 = vpop.f32.mrb[35].mxu1  ;;  %v7474_v15 = vpop.f32.mrb[35].mxu0  ;;  %v3563_v30 = vrot.slane %v3561_v39, 1  ;;  %v3566_v44 = vrot.slane %v3564_v17, 2  ;;  %v2940_v39 = vsel %vm2296_vm1, %v2935_v12, %v2939_v21  ;;  %v3579_v12 = vshrl.u32 %v10246_v55, 16 }
 0x1c5   : > { %v2225_v16 = vadd.f32 %v7360_v34, %v1346_v50  ;;  %v7363_v49 = vadd.f32 %v7362_v20, %v7361_v4  ;;  %v7475_v36 = vadd.f32 %v7474_v15, %v7473_v47  ;;  %v3270_v50 = vld [vmem:[%s9076_s26 + $0x110] sm:$0x33]  ;;  %v3550_v4 = vsel %vm3309_vm2, %v3531_v9, %v3549_v3 }
 0x1c6   : > { %3198 = vmatmul.mubr.bf16.gmra.mrb[140].mxu1 %v2930_v37  ;;  %3863 = vmatmul.mubr.bf16.gmra.mrb[140].mxu0 %v3532_v62  ;;  %v3591_v37 = vshll.u32 %v10226_v43, 16  ;;  %v1354_v47 = vadd.f32 %v10026_v0, %v9963_v5  ;;  %v3590_v9 = vrot.slane %v3588_v46, 1 }
 0x1c7   : > { %v10232_v54 = vadd.f32 %v7472_v59, %v2225_v16  ;;  %v2226_v11 = vadd.f32 %v7363_v49, %v1349_v45  ;;  %3205 = vmatprep.mubr.bf16.mxu1 %v2936_v8  ;;  %3870 = vmatprep.mubr.bf16.mxu0 %v3559_v32  ;;  %v2934_v8 = vsel %vm2296_vm1, %v2929_v24, %v2933_v40 }
 0x1c8   : > { %v3577_v24 = vsel %vm3309_vm2, %v3558_v58, %v10235_v38 }
 0x1c9   : > { %v10239_v62 = vadd.f32 %v7475_v36, %v2226_v11  ;;  %v7364_v57 = vpop.f32.mrb[36].mxu1  ;;  %v7476_v53 = vpop.f32.mrb[36].mxu0  ;;  %v3593_v36 = vrot.slane %v3591_v37, 2  ;;  %v10253_v11 = vcombine.high %v3270_v50, %v3270_v50  ;;  %v2943_v37 = vrot.slane %v10226_v43, 1 }
 0x1ca   : > { %v7365_v34 = vpop.f32.mrb[37].mxu1  ;;  %v7477_v59 = vpop.f32.mrb[37].mxu0 }
 0x1cb   : > { %v7366_v20 = vadd.f32 %v7365_v34, %v7364_v57  ;;  %v7478_v15 = vadd.f32 %v7477_v59, %v7476_v53  ;;  %v7367_v32 = vpop.f32.mrb[38].mxu1  ;;  %v7479_v16 = vpop.f32.mrb[38].mxu0  ;;  %11418 = vst [vmem:[#allocation13_spill] sm:$0xff] %v10253_v11  ;;  %v10257_v53 = vor.u32 %v3566_v44, %v3563_v30  ;;  %v3582_v34 = vshll.u32 %v10246_v55, 16 }
 0x1cc   : > { %v7368_v45 = vpop.f32.mrb[39].mxu1  ;;  %v7480_v49 = vpop.f32.mrb[39].mxu0  ;;  %v10264_v59 = vor.u32 %v3593_v36, %v3590_v9  ;;  %v3606_v51 = vshrl.u32 %v10253_v11, 16 }
 0x1cd   : > { %v2227_v17 = vadd.f32 %v7366_v20, %v1354_v47  ;;  %v7369_v0 = vadd.f32 %v7368_v45, %v7367_v32  ;;  %v7481_v57 = vadd.f32 %v7480_v49, %v7479_v16  ;;  %v11419_v47 = vrot.slane %v10210_v13, 1 }
 0x1ce   : > { %3206 = vmatmul.mubr.bf16.gmra.mrb[144].mxu1 %v2934_v8  ;;  %3871 = vmatmul.mubr.bf16.gmra.mrb[144].mxu0 %v3550_v4  ;;  %v3609_v8 = vshll.u32 %v10253_v11, 16  ;;  %v3568_v16 = vsel %vm3309_vm2, %v3549_v3, %v10257_v53  ;;  %v3584_v45 = vrot.slane %v3582_v34, 2  ;;  %v10278_v49 = vcombine.low %v3270_v50, %v3270_v50 }
 0x1cf   : > { %v10261_v58 = vadd.f32 %v7478_v15, %v2227_v17  ;;  %v2228_v46 = vadd.f32 %v7369_v0, %v1357_v2  ;;  %3213 = vmatprep.mubr.bf16.mxu1 %v2940_v39  ;;  %3878 = vmatprep.mubr.bf16.mxu0 %v3577_v24  ;;  %v2938_v20 = vsel %vm2296_vm1, %v2933_v40, %v11419_v47  ;;  %v10274_v15 = vld [vmem:[%s9076_s26 + $0x110] sm:$0x11]  ;;  %v3581_v39 = vrot.slane %v3579_v12, 1 }
 0x1d0   : > { %11420 = vst [vmem:[#allocation14_spill] sm:$0xff] %v10278_v49  ;;  %v1362_v24 = vadd.f32 %v10059_v56, %v9963_v5  ;;  %v2944_v40 = vsel %vm2296_vm1, %v2939_v21, %v2943_v37  ;;  %v3595_v3 = vsel %vm3309_vm2, %v10235_v38, %v10264_v59  ;;  %v6760_v50 = vcombine.high %v10274_v15, %v10274_v15 }
 0x1d1   : > { %v10268_v4 = vadd.f32 %v7481_v57, %v2228_v46  ;;  %v7370_v30 = vpop.f32.mrb[40].mxu1  ;;  %v7482_v44 = vpop.f32.mrb[40].mxu0  ;;  %v3608_v12 = vrot.slane %v3606_v51, 1  ;;  %v3611_v34 = vrot.slane %v3609_v8, 2  ;;  %v2941_v21 = vrot.slane %v10246_v55, 1  ;;  %v4363_v55 = vld [vmem:[%s9076_s26 + $0x28] sm:$0xff] }
 0x1d2   : > { %v7371_v2 = vpop.f32.mrb[41].mxu1  ;;  %v7483_v32 = vpop.f32.mrb[41].mxu0  ;;  %v3597_v38 = vshrl.u32 %v10278_v49, 16  ;;  %v3585_v8 = vor.u32 %v3584_v45, %v3581_v39  ;;  %v6759_v39 = vcombine.low %v10274_v15, %v10274_v15 }
 0x1d3   : > { %v7372_v9 = vadd.f32 %v7371_v2, %v7370_v30  ;;  %v7484_v36 = vadd.f32 %v7483_v32, %v7482_v44  ;;  %v7373_v17 = vpop.f32.mrb[42].mxu1  ;;  %v7485_v0 = vpop.f32.mrb[42].mxu0  ;;  %v1365_v30 = vadd.f32 %v10071_v25, %v9963_v5  ;;  %v3600_v2 = vshll.u32 %v10278_v49, 16 }
 0x1d4   : > { %v7374_v57 = vpop.f32.mrb[43].mxu1  ;;  %v7486_v46 = vpop.f32.mrb[43].mxu0  ;;  %v3612_v25 = vor.u32 %v3611_v34, %v3608_v12  ;;  %v3599_v45 = vrot.slane %v3597_v38, 1  ;;  %v8597_v38 = vld [vmem:[%s9076_s26 + $0x18] sm:$0xff]  ;;  %v2945_v43 = vrot.slane %v6759_v39, 1 }
 0x1d5   : > { %v2229_v56 = vadd.f32 %v7372_v9, %v1362_v24  ;;  %v7375_v44 = vadd.f32 %v7374_v57, %v7373_v17  ;;  %v7487_v47 = vadd.f32 %v7486_v46, %v7485_v0  ;;  %v2947_v24 = vrot.slane %v6760_v50, 1  ;;  %v10298_v9 = vld [vmem:[%s9076_s26 + $0x10] sm:$0xcc]  ;;  %v4362_v0 = vld [vmem:[%s9076_s26 + $0x20] sm:$0xcc] }
 0x1d6   : > { %3214 = vmatmul.mubr.bf16.gmra.mrb[148].mxu1 %v2938_v20  ;;  %3879 = vmatmul.mubr.bf16.gmra.mrb[148].mxu0 %v3568_v16  ;;  %v3613_v15 = vsel %vm3309_vm2, %v10264_v59, %v3612_v25 }
 0x1d7   : > { %v10295_v32 = vadd.f32 %v7484_v36, %v2229_v56  ;;  %v2230_v51 = vadd.f32 %v7375_v44, %v1365_v30  ;;  %3221 = vmatprep.mubr.bf16.mxu1 %v2944_v40  ;;  %3886 = vmatprep.mubr.bf16.mxu0 %v3595_v3  ;;  %v11421_v36 = vrot.slane %v10210_v13, 1  ;;  %v3602_v40 = vrot.slane %v3600_v2, 2 }
 0x1d8   : > { %v1370_v3 = vadd.f32 %v10085_v22, %v9963_v5  ;;  %v3586_v44 = vsel %vm3309_vm2, %v10257_v53, %v3585_v8  ;;  %v6860_v2 = vcombine.high %v10298_v9, %v8597_v38  ;;  %v10320_v22 = vcombine.high %v4362_v0, %v4363_v55 }
 0x1d9   : > { %v10300_v20 = vadd.f32 %v7487_v47, %v2230_v51  ;;  %v7376_v16 = vpop.f32.mrb[44].mxu1  ;;  %v7488_v17 = vpop.f32.mrb[44].mxu0  ;;  %v2942_v56 = vsel %vm2296_vm1, %v11421_v36, %v2941_v21  ;;  %v2948_v51 = vsel %vm2296_vm1, %v2943_v37, %v2947_v24  ;;  %v1373_v53 = vadd.f32 %v10097_v29, %v9963_v5  ;;  %v8598_v36 = vld [vmem:[%s9076_s26 + $0x24] ss:$8 sps:$4 sm:$0xff]  }
 0x1da   : > { %v7377_v57 = vpop.f32.mrb[45].mxu1  ;;  %v7489_v46 = vpop.f32.mrb[45].mxu0  ;;  %v3603_v37 = vor.u32 %v3602_v40, %v3599_v45  ;;  %v3978_v25 = vrot.slane %v6860_v2, 2  ;;  %v3979_v49 = vrot.slane %v8598_v36, 2  ;;  %v4564_v11 = vrot.slane %v10320_v22, 2 }
 0x1db   : > { %v7378_v50 = vadd.f32 %v7377_v57, %v7376_v16  ;;  %v7490_v12 = vadd.f32 %v7489_v46, %v7488_v17  ;;  %v7379_v34 = vpop.f32.mrb[46].mxu1  ;;  %v7491_v30 = vpop.f32.mrb[46].mxu0  ;;  %v10323_v16 = vld [vmem:[%s9076_s26 + $0x34] ss:$8 sps:$4 sm:$0xff]   ;;  %v2946_v40 = vsel %vm2296_vm1, %v2941_v21, %v2945_v43  ;;  %v10342_v2 = vld [vmem:[%s9076_s26 + $0x30] ss:$8 sps:$4 sm:$0xff]  }
 0x1dc   : > { %v7380_v47 = vpop.f32.mrb[47].mxu1  ;;  %v7492_v13 = vpop.f32.mrb[47].mxu0  ;;  %v3980_v21 = vsel %vm3974_vm3, %v3978_v25, %v3979_v49 }
 0x1dd   : > { %v2231_v17 = vadd.f32 %v7378_v50, %v1370_v3  ;;  %v7381_v57 = vadd.f32 %v7380_v47, %v7379_v34  ;;  %v7493_v46 = vadd.f32 %v7492_v13, %v7491_v30  ;;  %v4565_v3 = vrot.slane %v10323_v16, 2 }
 0x1de   : > { %3222 = vmatmul.mubr.bf16.gmra.mrb[152].mxu1 %v2942_v56  ;;  %3887 = vmatmul.mubr.bf16.gmra.mrb[152].mxu0 %v3586_v44  ;;  %v6859_v34 = vcombine.low %v10298_v9, %v8597_v38  ;;  %v1378_v30 = vadd.f32 %v10116_v28, %v9963_v5  ;;  %v1381_v28 = vadd.f32 %v10123_v61, %v9963_v5  ;;  %v10360_v61 = vld [vmem:[%s9076_s26 + $0x34] ss:$8 sps:$4 sm:$0xff]  }
 0x1df   : > { %v10327_v24 = vadd.f32 %v7490_v12, %v2231_v17  ;;  %v2232_v59 = vadd.f32 %v7381_v57, %v1373_v53  ;;  %3229 = vmatprep.mubr.bf16.mxu1 %v2948_v51  ;;  %3894 = vmatprep.mubr.bf16.mxu0 %v3613_v15  ;;  %v3604_v12 = vsel %vm3309_vm2, %v3585_v8, %v3603_v37  ;;  %v10347_v53 = vld [vmem:[%s9076_s26 + $0x44] ss:$8 sps:$4 sm:$0xff]   ;;  %v3983_v25 = vrot.slane %v10360_v61, 2 }
 0x1e0   : > { %v10339_v15 = vcombine.low %v4362_v0, %v4363_v55  ;;  %v4566_v8 = vsel %vm3974_vm3, %v4564_v11, %v4565_v3  ;;  %v3975_v0 = vrot.slane %v6859_v34, 2  ;;  %v10352_v55 = vld [vmem:[%s9076_s26 + $0x20] ss:$8 sps:$4 sm:$0xff]   ;;  %v11392_v36 = vrot.slane %v10347_v53, 2 }
 0x1e1   : > { %v10332_v29 = vadd.f32 %v7493_v46, %v2232_v59  ;;  %v7382_v50 = vpop.f32.mrb[48].mxu1  ;;  %v7494_v56 = vpop.f32.mrb[48].mxu0  ;;  %v3976_v46 = vrot.slane %v10352_v55, 2  ;;  %v4562_v59 = vrot.slane %v10342_v2, 2  ;;  %v10370_v34 = vld [vmem:[%s9076_s26 + $0x40] ss:$8 sps:$4 sm:$0xff]  }
 0x1e2   : > { %v7383_v39 = vpop.f32.mrb[49].mxu1  ;;  %v7495_v45 = vpop.f32.mrb[49].mxu0  ;;  %v4561_v37 = vrot.slane %v10339_v15, 2  ;;  %v8538_v61 = vld [vmem:[%s11383_s2 + $0x410] sm:$0xff]  }
 0x1e3   : > { %v7384_v44 = vadd.f32 %v7383_v39, %v7382_v50  ;;  %v7496_v47 = vadd.f32 %v7495_v45, %v7494_v56  ;;  %v7385_v13 = vpop.f32.mrb[50].mxu1  ;;  %v7497_v51 = vpop.f32.mrb[50].mxu0 }
 0x1e4   : > { %v7386_v16 = vpop.f32.mrb[51].mxu1  ;;  %v7498_v17 = vpop.f32.mrb[51].mxu0  ;;  %v4563_v2 = vsel %vm3974_vm3, %v4561_v37, %v4562_v59  ;;  %v10404_v37 = vld [vmem:[%s9076_s26 + $0x30] ss:$8 sps:$4 sm:$0xff]  }
 0x1e5   : > { %v2233_v9 = vadd.f32 %v7384_v44, %v1378_v30  ;;  %v7387_v38 = vadd.f32 %v7386_v16, %v7385_v13  ;;  %v7499_v57 = vadd.f32 %v7498_v17, %v7497_v51  ;;  %v1386_v30 = vadd.f32 %v10137_v10, %v9963_v5  ;;  %v8516_v16 = vld [vmem:[%s11383_s2 + $0x380] sm:$0xff]  }
 0x1e6   : > { %3230 = vmatmul.mubr.bf16.gmra.mrb[156].mxu1 %v2946_v40  ;;  %3895 = vmatmul.mubr.bf16.gmra.mrb[156].mxu0 %v3604_v12  ;;  %v3977_v12 = vsel %vm3974_vm3, %v3975_v0, %v3976_v46  ;;  %v8518_v17 = vld [vmem:[%s11383_s2 + $0x400] sm:$0xff]   ;;  %v3984_v5 = vsel %vm3974_vm3, %v3979_v49, %v3983_v25  ;;  %v4570_v10 = vsel %vm3974_vm3, %v4565_v3, %v11392_v36  ;;  %v8525_v49 = vld [vmem:[%s11383_s2 + $0x3c8] sm:$0xff]  }
 0x1e7   : > { %v10355_v43 = vadd.f32 %v7496_v47, %v2233_v9  ;;  %v2234_v11 = vadd.f32 %v7387_v38, %v1381_v28  ;;  %4201 = vmatprep.mubr.bf16.mxu1 %v3980_v21  ;;  %4787 = vmatprep.mubr.bf16.mxu0 %v4566_v8  ;;  %v10388_v9 = vld [vmem:[%s9076_s26 + $0x54] ss:$8 sps:$4 sm:$0xff]   ;;  %v10393_v38 = vld [vmem:[%s11384_s3] ss:$0 sm:$0xff]  ;;  %v8527_v3 = vld [vmem:[%s11383_s2 + $0x448] sm:$0xff]  }
 0x1e9   : > { %v10364_v50 = vadd.f32 %v7499_v57, %v2234_v11  ;;  %v7388_v56 = vpop.f32.mrb[52].mxu1  ;;  %v7500_v39 = vpop.f32.mrb[52].mxu0  ;;  %v1389_v57 = vadd.f32 %v10393_v38, %v10149_v60 }
 0x1ea   : > { %v7389_v45 = vpop.f32.mrb[53].mxu1  ;;  %v7501_v40 = vpop.f32.mrb[53].mxu0 }
 0x1eb   : > { %v7390_v44 = vadd.f32 %v7389_v45, %v7388_v56  ;;  %v7502_v47 = vadd.f32 %v7501_v40, %v7500_v39  ;;  %v7391_v13 = vpop.f32.mrb[54].mxu1  ;;  %v7503_v51 = vpop.f32.mrb[54].mxu0  ;;  %v3981_v56 = vrot.slane %v10404_v37, 2  ;;  %v4567_v39 = vrot.slane %v10370_v34, 2  ;;  %v8526_v40 = vld [vmem:[%s11383_s2 + $0x388] sm:$0xff]  }
 0x1ec   : > { %v7392_v21 = vpop.f32.mrb[55].mxu1  ;;  %v7504_v8 = vpop.f32.mrb[55].mxu0  ;;  %v1405_v37 = vadd.f32 %v10393_v38, %v10201_v63  ;;  %v8556_v63 = vld [vmem:[%s11383_s2 + $0x3a0] sm:$0xff]  }
 0x1ed   : > { %v2235_v28 = vadd.f32 %v7390_v44, %v1386_v30  ;;  %v7393_v0 = vadd.f32 %v7392_v21, %v7391_v13  ;;  %v7505_v11 = vadd.f32 %v7504_v8, %v7503_v51  ;;  %v10417_v30 = vld [vmem:[%s9076_s26 + $0x44] ss:$8 sps:$4 sm:$0xff]  }
 0x1ee   : > { %4202 = vmatmul.mubr.bf16.vlgmr.msra.gmra.mrb[160].mxu1 %v3977_v12  ;;  %4788 = vmatmul.mubr.bf16.vlgmr.msra.gmra.mrb[160].mxu0 %v4563_v2  ;;  %v8528_v12 = vld [vmem:[%s11383_s2 + $0x408] sm:$0xff]   ;;  %v3987_v44 = vrot.slane %v10417_v30, 2  ;;  %v8535_v13 = vld [vmem:[%s11383_s2 + $0x3d0] sm:$0xff]  }
 0x1ef   : > { %v10408_v60 = vadd.f32 %v7502_v47, %v2235_v28  ;;  %v2236_v45 = vadd.f32 %v7393_v0, %v1389_v57  ;;  %8015 = vmatpush3.bf16.msra.mxu1 %v8516_v16  ;;  %8127 = vmatpush3.bf16.msra.mxu0 %v8518_v17  ;;  %v11393_v47 = vrot.slane %v10388_v9, 2  ;;  %v8537_v51 = vld [vmem:[%s11383_s2 + $0x450] sm:$0xff]   ;;  %v1394_v28 = vadd.f32 %v10393_v38, %v10168_v42 }
 0x1f0   : > { %4209 = vmatprep.mubr.bf16.mxu1 %v3984_v5  ;;  %4795 = vmatprep.mubr.bf16.mxu0 %v4570_v10  ;;  %v3982_v5 = vsel %vm3974_vm3, %v3976_v46, %v3981_v56  ;;  %v4568_v10 = vsel %vm3974_vm3, %v4562_v59, %v4567_v39  ;;  %v3988_v55 = vsel %vm3974_vm3, %v3983_v25, %v3987_v44  ;;  %v11422_v42 = vrot.slane %v10347_v53, 2  ;;  %v10453_v59 = vld [vmem:[%s9076_s26 + $0x64] ss:$8 sps:$4 sm:$0xff]  }
 0x1f1   : > { %v10427_v2 = vadd.f32 %v7505_v11, %v2236_v45  ;;  %v7394_v16 = vpop.f32.mrb[56].mxu1  ;;  %v7506_v17 = vpop.f32.mrb[56].mxu0  ;;  %8016 = vmatprep.subr.bf16.mxu1 %v8525_v49  ;;  %8128 = vmatprep.subr.bf16.mxu0 %v8527_v3  ;;  %v10440_v3 = vld [vmem:[%s9076_s26 + $0x50] ss:$8 sps:$4 sm:$0xff]  }
 0x1f2   : > { %v7395_v21 = vpop.f32.mrb[57].mxu1  ;;  %v7507_v8 = vpop.f32.mrb[57].mxu0  ;;  %v4574_v46 = vsel %vm3974_vm3, %v11422_v42, %v11393_v47  ;;  %v8557_v42 = vld [vmem:[%s11383_s2 + $0x460] sm:$0xff]  }
 0x1f3   : > { %v7396_v57 = vadd.f32 %v7395_v21, %v7394_v16  ;;  %v7508_v0 = vadd.f32 %v7507_v8, %v7506_v17  ;;  %v7397_v11 = vpop.f32.mrb[58].mxu1  ;;  %v7509_v49 = vpop.f32.mrb[58].mxu0  ;;  %8017 = vmatpush3.bf16.msra.mxu1 %v8526_v40  ;;  %8129 = vmatpush3.bf16.msra.mxu0 %v8528_v12  ;;  %v8536_v40 = vld [vmem:[%s11383_s2 + $0x390] sm:$0xff]   ;;  %v1397_v12 = vadd.f32 %v10393_v38, %v10175_v41  ;;  %v8547_v17 = vld [vmem:[%s11383_s2 + $0x458] sm:$0xff]   ;;  %v4571_v41 = vrot.slane %v10440_v3, 2 }
 0x1f4   : > { %v7398_v45 = vpop.f32.mrb[59].mxu1  ;;  %v7510_v36 = vpop.f32.mrb[59].mxu0  ;;  %8018 = vmatprep.subr.bf16.mxu1 %v8535_v13  ;;  %8130 = vmatprep.subr.bf16.mxu0 %v8537_v51  ;;  %v8545_v13 = vld [vmem:[%s11383_s2 + $0x3d8] sm:$0xff]   ;;  %v10470_v51 = vld [vmem:[%s9076_s26 + $0x40] ss:$8 sps:$4 sm:$0xff]  }
 0x1f5   : > { %v2237_v25 = vadd.f32 %v7396_v57, %v1394_v28  ;;  %v7399_v53 = vadd.f32 %v7398_v45, %v7397_v11  ;;  %v7511_v16 = vadd.f32 %v7510_v36, %v7509_v49  ;;  %v3985_v21 = vrot.slane %v10470_v51, 2  ;;  %v10477_v36 = vld [vmem:[%s9076_s26 + $0x54] ss:$8 sps:$4 sm:$0xff]  }
 0x1f6   : > { %4210 = vmatmul.mubr.bf16.gmra.mrb[164].mxu1 %v3982_v5  ;;  %4796 = vmatmul.mubr.bf16.gmra.mrb[164].mxu0 %v4568_v10  ;;  %v3991_v57 = vrot.slane %v10477_v36, 2  ;;  %v4577_v11 = vrot.slane %v10453_v59, 2  ;;  %v8546_v5 = vld [vmem:[%s11383_s2 + $0x398] sm:$0xff]   ;;  %v8576_v3 = vld [vmem:[%s11383_s2 + $0x3b0] sm:$0xff]  }
 0x1f7   : > { %v10473_v8 = vadd.f32 %v7508_v0, %v2237_v25  ;;  %v2238_v28 = vadd.f32 %v7399_v53, %v1397_v12  ;;  %4217 = vmatprep.mubr.bf16.mxu1 %v3988_v55  ;;  %4803 = vmatprep.mubr.bf16.mxu0 %v4574_v46  ;;  %v8548_v10 = vld [vmem:[%s11383_s2 + $0x418] sm:$0xff]   ;;  %v8555_v55 = vld [vmem:[%s11383_s2 + $0x3e0] sm:$0xff]   ;;  %v1402_v25 = vadd.f32 %v10393_v38, %v10192_v35 }
 0x1f8   : > { %8019 = vmatpush3.bf16.msra.mxu1 %v8536_v40  ;;  %8131 = vmatpush3.bf16.msra.mxu0 %v8538_v61  ;;  %v3986_v61 = vsel %vm3974_vm3, %v3981_v56, %v3985_v21  ;;  %v3992_v35 = vsel %vm3974_vm3, %v3987_v44, %v3991_v57  ;;  %v8558_v38 = vld [vmem:[%s11383_s2 + $0x420] sm:$0xff]  }
 0x1f9   : > { %v10487_v0 = vadd.f32 %v7511_v16, %v2238_v28  ;;  %v7400_v49 = vpop.f32.mrb[60].mxu1  ;;  %v7512_v45 = vpop.f32.mrb[60].mxu0  ;;  %8020 = vmatprep.subr.bf16.mxu1 %v8545_v13  ;;  %8132 = vmatprep.subr.bf16.mxu0 %v8547_v17  ;;  %v4572_v17 = vsel %vm3974_vm3, %v4567_v39, %v4571_v41  ;;  %v10508_v28 = vld [vmem:[%s9076_s26 + $0x60] ss:$8 sps:$4 sm:$0xff]   ;;  %v10523_v39 = vld [vmem:[%s9076_s26 + $0x74] ss:$8 sps:$4 sm:$0xff]  }
 0x1fa   : > { %v7401_v46 = vpop.f32.mrb[61].mxu1  ;;  %v7513_v40 = vpop.f32.mrb[61].mxu0 }
 0x1fb   : > { %v7402_v12 = vadd.f32 %v7401_v46, %v7400_v49  ;;  %v7514_v53 = vadd.f32 %v7513_v40, %v7512_v45  ;;  %v7403_v16 = vpop.f32.mrb[62].mxu1  ;;  %v7515_v13 = vpop.f32.mrb[62].mxu0  ;;  %v11423_v49 = vrot.slane %v10388_v9, 2  ;;  %v8565_v9 = vld [vmem:[%s11383_s2 + $0x3e8] sm:$0xff]   ;;  %v10540_v40 = vld [vmem:[%s9076_s26 + $0x50] ss:$8 sps:$4 sm:$0xff]  }
 0x1fc   : > { %v7404_v47 = vpop.f32.mrb[63].mxu1  ;;  %v7516_v56 = vpop.f32.mrb[63].mxu0  ;;  %8021 = vmatpush3.bf16.msra.mxu1 %v8546_v5  ;;  %8133 = vmatpush3.bf16.msra.mxu0 %v8548_v10  ;;  %v8567_v5 = vld [vmem:[%s11383_s2 + $0x468] sm:$0xff]  }
 0x1fd   : > { %v4578_v34 = vsel %vm3974_vm3, %v11423_v49, %v4577_v11  ;;  %v2239_v30 = vadd.f32 %v7402_v12, %v1402_v25  ;;  %v7405_v44 = vadd.f32 %v7404_v47, %v7403_v16  ;;  %v7517_v45 = vadd.f32 %v7516_v56, %v7515_v13  ;;  %8022 = vmatprep.subr.bf16.mxu1 %v8555_v55  ;;  %v8577_v56 = vld [vmem:[%s11383_s2 + $0x470] sm:$0xff]  }
 0x1fe   : > { %8134 = vmatprep.subr.bf16.mxu0 %v8557_v42  ;;  %4218 = vmatmul.mubr.bf16.gmra.mrb[168].mxu1 %v3986_v61  ;;  %v3989_v47 = vrot.slane %v10540_v40, 2  ;;  %v4575_v55 = vrot.slane %v10508_v28, 2  ;;  %v10545_v42 = vld [vmem:[%s9076_s26 + $0x64] ss:$8 sps:$4 sm:$0xff]   ;;  %v4581_v12 = vrot.slane %v10523_v39, 2 }
 0x1ff   : > { %4804 = vmatmul.mubr.bf16.gmra.mrb[168].mxu0 %v4572_v17  ;;  %v10537_v10 = vadd.f32 %v7514_v53, %v2239_v30  ;;  %v2240_v46 = vadd.f32 %v7405_v44, %v1405_v37  ;;  %4225 = vmatprep.mubr.bf16.mxu1 %v3992_v35  ;;  %v3995_v25 = vrot.slane %v10545_v42, 2  ;;  %v8566_v61 = vld [vmem:[%s11383_s2 + $0x3a8] sm:$0xff]   ;;  %v8575_v37 = vld [vmem:[%s11383_s2 + $0x3f0] sm:$0xff]  }
 0x200   : > { %4811 = vmatprep.mubr.bf16.mxu0 %v4578_v34  ;;  %8023 = vmatpush3.bf16.msra.mxu1 %v8556_v63  ;;  %v8568_v53 = vld [vmem:[%s11383_s2 + $0x428] sm:$0xff]   ;;  %v3990_v44 = vsel %vm3974_vm3, %v3985_v21, %v3989_v47  ;;  %v4582_v51 = vsel %vm3974_vm3, %v4577_v11, %v4581_v12  ;;  %v8585_v11 = vld [vmem:[%s11383_s2 + $0x3f8] sm:$0xff]  }
 0x201   : > { %8135 = vmatpush3.bf16.msra.mxu0 %v8558_v38  ;;  %v10555_v16 = vadd.f32 %v7517_v45, %v2240_v46  ;;  %v7406_v13 = vpop.f32.mrb[64].mxu1  ;;  %v7518_v17 = vpop.f32.mrb[64].mxu0  ;;  %8024 = vmatprep.subr.bf16.mxu1 %v8565_v9  ;;  %v4576_v45 = vsel %vm3974_vm3, %v4571_v41, %v4575_v55  ;;  %v10574_v9 = vld [vmem:[%s9076_s26 + $0x70] ss:$8 sps:$4 sm:$0xff]   ;;  %v10587_v21 = vld [vmem:[%s9076_s26 + $0x84] ss:$8 sps:$4 sm:$0xff]  }
 0x202   : > { %8136 = vmatprep.subr.bf16.mxu0 %v8567_v5  ;;  %v7407_v35 = vpop.f32.mrb[65].mxu1  ;;  %v7519_v49 = vpop.f32.mrb[65].mxu0  ;;  %v8578_v41 = vld [vmem:[%s11383_s2 + $0x430] sm:$0xff]  }
 0x203   : > { %v7408_v34 = vadd.f32 %v7407_v35, %v7406_v13  ;;  %v7520_v63 = vadd.f32 %v7519_v49, %v7518_v17  ;;  %v7409_v38 = vpop.f32.mrb[66].mxu1  ;;  %v7521_v30 = vpop.f32.mrb[66].mxu0  ;;  %v3996_v13 = vsel %vm3974_vm3, %v3991_v57, %v3995_v25  ;;  %v10633_v40 = vld [vmem:[%s9076_s26 + $0x94] ss:$8 sps:$4 sm:$0xff]   ;;  %v8610_v39 = vld [vmem:[%s9076_s26 + $0x70] ss:$8 sps:$4 sm:$0xff]  }
 0x204   : > { %v7410_v5 = vpop.f32.mrb[67].mxu1  ;;  %v7522_v46 = vpop.f32.mrb[67].mxu0  ;;  %8025 = vmatpush3.bf16.msra.mxu1 %v8566_v61  ;;  %v8587_v61 = vld [vmem:[%s11383_s2 + $0x478] sm:$0xff]  }
 0x205   : > { %8137 = vmatpush3.bf16.msra.mxu0 %v8568_v53  ;;  %v2241_v36 = vadd.f32 %v7408_v34, %v9991_v14  ;;  %v7411_v57 = vadd.f32 %v7410_v5, %v7409_v38  ;;  %v7523_v59 = vadd.f32 %v7522_v46, %v7521_v30  ;;  %8026 = vmatprep.subr.bf16.mxu1 %v8575_v37  ;;  %v8608_v14 = vld [vmem:[%s9076_s26 + $0x60] ss:$8 sps:$4 sm:$0xff]   ;;  %v4579_v37 = vrot.slane %v10574_v9, 2 }
 0x206   : > { %8138 = vmatprep.subr.bf16.mxu0 %v8577_v56  ;;  %4226 = vmatmul.mubr.bf16.gmra.mrb[172].mxu1 %v3990_v44  ;;  %v3993_v35 = vrot.slane %v8608_v14, 2  ;;  %v8609_v56 = vld [vmem:[%s9076_s26 + $0x74] ss:$8 sps:$4 sm:$0xff]   ;;  %v4585_v34 = vrot.slane %v10587_v21, 2 }
 0x207   : > { %4812 = vmatmul.mubr.bf16.gmra.mrb[172].mxu0 %v4576_v45  ;;  %v10602_v53 = vadd.f32 %v7520_v63, %v2241_v36  ;;  %v2242_v17 = vadd.f32 %v7411_v57, %v9996_v23  ;;  %4233 = vmatprep.mubr.bf16.mxu1 %v3996_v13  ;;  %v3999_v49 = vrot.slane %v8609_v56, 2  ;;  %v8586_v63 = vld [vmem:[%s11383_s2 + $0x3b8] sm:$0xff]   ;;  %v4589_v56 = vrot.slane %v10633_v40, 2 }
 0x208   : > { %4819 = vmatprep.mubr.bf16.mxu0 %v4582_v51  ;;  %8027 = vmatpush3.bf16.msra.mxu1 %v8576_v3  ;;  %v8588_v23 = vld [vmem:[%s11383_s2 + $0x438] sm:$0xff]   ;;  %v3994_v21 = vsel %vm3974_vm3, %v3989_v47, %v3993_v35  ;;  %v4580_v3 = vsel %vm3974_vm3, %v4575_v55, %v4579_v37 }
 0x209   : > { %8139 = vmatpush3.bf16.msra.mxu0 %v8578_v41  ;;  %v10615_v38 = vadd.f32 %v7523_v59, %v2242_v17  ;;  %v7412_v30 = vpop.f32.mrb[68].mxu1  ;;  %v7524_v44 = vpop.f32.mrb[68].mxu0  ;;  %8028 = vmatprep.subr.bf16.mxu1 %v8585_v11  ;;  %v10624_v41 = vld [vmem:[%s9076_s26 + $0x80] ss:$8 sps:$4 sm:$0xff]   ;;  %v4000_v59 = vsel %vm3974_vm3, %v3995_v25, %v3999_v49  ;;  %v4586_v11 = vsel %vm3974_vm3, %v4581_v12, %v4585_v34  ;;  %v3997_v25 = vrot.slane %v8610_v39, 2 }
 0x20a   : > { %8140 = vmatprep.subr.bf16.mxu0 %v8587_v61  ;;  %v7413_v45 = vpop.f32.mrb[69].mxu1  ;;  %v7525_v9 = vpop.f32.mrb[69].mxu0  ;;  %v4583_v12 = vrot.slane %v10624_v41, 2  ;;  %v8611_v17 = vld [vmem:[%s9076_s26 + $0x84] ss:$8 sps:$4 sm:$0xff]  }
 0x20b   : > { %v7414_v5 = vadd.f32 %v7413_v45, %v7412_v30  ;;  %v7526_v46 = vadd.f32 %v7525_v9, %v7524_v44  ;;  %v7415_v13 = vpop.f32.mrb[70].mxu1  ;;  %v7527_v51 = vpop.f32.mrb[70].mxu0  ;;  %v4003_v14 = vrot.slane %v8611_v17, 2 }
 0x20c   : > { %v7416_v36 = vpop.f32.mrb[71].mxu1  ;;  %v7528_v57 = vpop.f32.mrb[71].mxu0  ;;  %8029 = vmatpush3.bf16.msra.mxu1 %v8586_v63 }
 0x20d   : > { %8141 = vmatpush3.bf16.msra.mxu0 %v8588_v23  ;;  %v2243_v28 = vadd.f32 %v7414_v5, %v10044_v48  ;;  %v7417_v47 = vadd.f32 %v7416_v36, %v7415_v13  ;;  %v7529_v55 = vadd.f32 %v7528_v57, %v7527_v51  ;;  %v4584_v13 = vsel %vm3974_vm3, %v4579_v37, %v4583_v12  ;;  %v10648_v51 = vld [vmem:[%s9076_s26 + $0x90] ss:$8 sps:$4 sm:$0xff]   ;;  %v10653_v57 = vld [vmem:[%s9076_s26 + $0xa4] ss:$8 sps:$4 sm:$0xff]  }
 0x20e   : > { %4234 = vmatmul.mubr.bf16.gmra.mrb[176].mxu1 %v3994_v21  ;;  %v4004_v41 = vsel %vm3974_vm3, %v3999_v49, %v4003_v14  ;;  %v4590_v36 = vsel %vm3974_vm3, %v4585_v34, %v4589_v56  ;;  %v4587_v49 = vrot.slane %v10648_v51, 2  ;;  %v8613_v34 = vld [vmem:[%s9076_s26 + $0x94] ss:$8 sps:$4 sm:$0xff]  }
 0x20f   : > { %4820 = vmatmul.mubr.bf16.gmra.mrb[176].mxu0 %v4580_v3  ;;  %v10636_v61 = vadd.f32 %v7526_v46, %v2243_v28  ;;  %v2244_v42 = vadd.f32 %v7417_v47, %v10048_v27  ;;  %4241 = vmatprep.mubr.bf16.mxu1 %v4000_v59  ;;  %v3998_v46 = vsel %vm3974_vm3, %v3993_v35, %v3997_v25  ;;  %v8612_v28 = vld [vmem:[%s9076_s26 + $0x80] ss:$8 sps:$4 sm:$0xff]  }
 0x210   : > { %4827 = vmatprep.mubr.bf16.mxu0 %v4586_v11  ;;  %v4001_v47 = vrot.slane %v8612_v28, 2 }
 0x211   : > { %v10643_v48 = vadd.f32 %v7529_v55, %v2244_v42  ;;  %v7418_v63 = vpop.f32.mrb[72].mxu1  ;;  %v7530_v23 = vpop.f32.mrb[72].mxu0  ;;  %v4007_v55 = vrot.slane %v8613_v34, 2  ;;  %v4593_v42 = vrot.slane %v10653_v57, 2 }
 0x212   : > { %v7419_v30 = vpop.f32.mrb[73].mxu1  ;;  %v7531_v44 = vpop.f32.mrb[73].mxu0 }
 0x213   : > { %v7420_v45 = vadd.f32 %v7419_v30, %v7418_v63  ;;  %v7532_v27 = vadd.f32 %v7531_v44, %v7530_v23  ;;  %v7421_v9 = vpop.f32.mrb[74].mxu1  ;;  %v7533_v5 = vpop.f32.mrb[74].mxu0  ;;  %v4008_v51 = vsel %vm3974_vm3, %v4003_v14, %v4007_v55 }
 0x214   : > { %v7422_v21 = vpop.f32.mrb[75].mxu1  ;;  %v7534_v3 = vpop.f32.mrb[75].mxu0 }
 0x215   : > { %v2245_v59 = vadd.f32 %v7420_v45, %v10074_v6  ;;  %v7423_v11 = vadd.f32 %v7422_v21, %v7421_v9  ;;  %v7535_v40 = vadd.f32 %v7534_v3, %v7533_v5  ;;  %v4588_v9 = vsel %vm3974_vm3, %v4583_v12, %v4587_v49  ;;  %v10668_v5 = vld [vmem:[%s9076_s26 + $0xa0] ss:$8 sps:$4 sm:$0xff]   ;;  %v10673_v3 = vld [vmem:[%s9076_s26 + $0xb4] ss:$8 sps:$4 sm:$0xff]  }
 0x216   : > { %4242 = vmatmul.mubr.bf16.gmra.mrb[180].mxu1 %v3998_v46  ;;  %v4594_v21 = vsel %vm3974_vm3, %v4589_v56, %v4593_v42  ;;  %v4591_v14 = vrot.slane %v10668_v5, 2  ;;  %v8615_v56 = vld [vmem:[%s9076_s26 + $0xa4] ss:$8 sps:$4 sm:$0xff]  }
 0x217   : > { %4828 = vmatmul.mubr.bf16.gmra.mrb[180].mxu0 %v4584_v13  ;;  %v10656_v35 = vadd.f32 %v7532_v27, %v2245_v59  ;;  %v2246_v37 = vadd.f32 %v7423_v11, %v10080_v19  ;;  %4249 = vmatprep.mubr.bf16.mxu1 %v4004_v41  ;;  %v4002_v27 = vsel %vm3974_vm3, %v3997_v25, %v4001_v47  ;;  %v8614_v59 = vld [vmem:[%s9076_s26 + $0x90] ss:$8 sps:$4 sm:$0xff]  }
 0x218   : > { %4835 = vmatprep.mubr.bf16.mxu0 %v4590_v36  ;;  %v4005_v11 = vrot.slane %v8614_v59, 2 }
 0x219   : > { %v10663_v6 = vadd.f32 %v7535_v40, %v2246_v37  ;;  %v7424_v39 = vpop.f32.mrb[76].mxu1  ;;  %v7536_v17 = vpop.f32.mrb[76].mxu0  ;;  %v4011_v40 = vrot.slane %v8615_v56, 2  ;;  %v4597_v37 = vrot.slane %v10673_v3, 2 }
 0x21a   : > { %v7425_v63 = vpop.f32.mrb[77].mxu1  ;;  %v7537_v23 = vpop.f32.mrb[77].mxu0 }
 0x21b   : > { %v7426_v30 = vadd.f32 %v7425_v63, %v7424_v39  ;;  %v7538_v19 = vadd.f32 %v7537_v23, %v7536_v17  ;;  %v7427_v44 = vpop.f32.mrb[78].mxu1  ;;  %v7539_v45 = vpop.f32.mrb[78].mxu0  ;;  %v4012_v5 = vsel %vm3974_vm3, %v4007_v55, %v4011_v40 }
 0x21c   : > { %v7428_v46 = vpop.f32.mrb[79].mxu1  ;;  %v7540_v13 = vpop.f32.mrb[79].mxu0 }
 0x21d   : > { %v2247_v41 = vadd.f32 %v7426_v30, %v10100_v18  ;;  %v7429_v36 = vadd.f32 %v7428_v46, %v7427_v44  ;;  %v7541_v57 = vadd.f32 %v7540_v13, %v7539_v45  ;;  %v4592_v44 = vsel %vm3974_vm3, %v4587_v49, %v4591_v14  ;;  %v10688_v45 = vld [vmem:[%s9076_s26 + $0xb0] ss:$8 sps:$4 sm:$0xff]   ;;  %v10693_v13 = vld [vmem:[%s9076_s26 + $0xc4] ss:$8 sps:$4 sm:$0xff]  }
 0x21e   : > { %4250 = vmatmul.mubr.bf16.gmra.mrb[184].mxu1 %v4002_v27  ;;  %v4598_v46 = vsel %vm3974_vm3, %v4593_v42, %v4597_v37  ;;  %v4595_v55 = vrot.slane %v10688_v45, 2  ;;  %v8617_v42 = vld [vmem:[%s9076_s26 + $0xb4] ss:$8 sps:$4 sm:$0xff]  }
 0x21f   : > { %4836 = vmatmul.mubr.bf16.gmra.mrb[184].mxu0 %v4588_v9  ;;  %v10676_v25 = vadd.f32 %v7538_v19, %v2247_v41  ;;  %v2248_v12 = vadd.f32 %v7429_v36, %v10106_v26  ;;  %4257 = vmatprep.mubr.bf16.mxu1 %v4008_v51  ;;  %v4006_v19 = vsel %vm3974_vm3, %v4001_v47, %v4005_v11  ;;  %v8616_v41 = vld [vmem:[%s9076_s26 + $0xa0] ss:$8 sps:$4 sm:$0xff]  }
 0x220   : > { %4843 = vmatprep.mubr.bf16.mxu0 %v4594_v21  ;;  %v4009_v36 = vrot.slane %v8616_v41, 2 }
 0x221   : > { %v10683_v18 = vadd.f32 %v7541_v57, %v2248_v12  ;;  %v7430_v28 = vpop.f32.mrb[80].mxu1  ;;  %v7542_v34 = vpop.f32.mrb[80].mxu0  ;;  %v4015_v57 = vrot.slane %v8617_v42, 2  ;;  %v4601_v12 = vrot.slane %v10693_v13, 2 }
 0x222   : > { %v7431_v39 = vpop.f32.mrb[81].mxu1  ;;  %v7543_v17 = vpop.f32.mrb[81].mxu0 }
 0x223   : > { %v7432_v63 = vadd.f32 %v7431_v39, %v7430_v28  ;;  %v7544_v26 = vadd.f32 %v7543_v17, %v7542_v34  ;;  %v7433_v23 = vpop.f32.mrb[82].mxu1  ;;  %v7545_v30 = vpop.f32.mrb[82].mxu0  ;;  %v4016_v45 = vsel %vm3974_vm3, %v4011_v40, %v4015_v57 }
 0x224   : > { %v7434_v27 = vpop.f32.mrb[83].mxu1  ;;  %v7546_v9 = vpop.f32.mrb[83].mxu0 }
 0x225   : > { %v2249_v51 = vadd.f32 %v7432_v63, %v10126_v33  ;;  %v7435_v21 = vadd.f32 %v7434_v27, %v7433_v23  ;;  %v7547_v3 = vadd.f32 %v7546_v9, %v7545_v30  ;;  %v4596_v23 = vsel %vm3974_vm3, %v4591_v14, %v4595_v55  ;;  %v10708_v30 = vld [vmem:[%s9076_s26 + $0xc0] ss:$8 sps:$4 sm:$0xff]   ;;  %v10713_v9 = vld [vmem:[%s9076_s26 + $0xd4] ss:$8 sps:$4 sm:$0xff]  }
 0x226   : > { %4258 = vmatmul.mubr.bf16.gmra.mrb[188].mxu1 %v4006_v19  ;;  %v4602_v27 = vsel %vm3974_vm3, %v4597_v37, %v4601_v12  ;;  %v4599_v40 = vrot.slane %v10708_v30, 2  ;;  %v8619_v37 = vld [vmem:[%s9076_s26 + $0xc4] ss:$8 sps:$4 sm:$0xff]  }
 0x227   : > { %4844 = vmatmul.mubr.bf16.gmra.mrb[188].mxu0 %v4592_v44  ;;  %v10696_v47 = vadd.f32 %v7544_v26, %v2249_v51  ;;  %v2250_v49 = vadd.f32 %v7435_v21, %v10132_v1  ;;  %4265 = vmatprep.mubr.bf16.mxu1 %v4012_v5  ;;  %v4010_v26 = vsel %vm3974_vm3, %v4005_v11, %v4009_v36  ;;  %v8618_v51 = vld [vmem:[%s9076_s26 + $0xb0] ss:$8 sps:$4 sm:$0xff]  }
 0x228   : > { %4851 = vmatprep.mubr.bf16.mxu0 %v4598_v46  ;;  %v4013_v21 = vrot.slane %v8618_v51, 2 }
 0x229   : > { %v10703_v33 = vadd.f32 %v7547_v3, %v2250_v49  ;;  %v7436_v59 = vpop.f32.mrb[84].mxu1  ;;  %v7548_v56 = vpop.f32.mrb[84].mxu0  ;;  %v4019_v3 = vrot.slane %v8619_v37, 2  ;;  %v4605_v49 = vrot.slane %v10713_v9, 2 }
 0x22a   : > { %v7437_v28 = vpop.f32.mrb[85].mxu1  ;;  %v7549_v34 = vpop.f32.mrb[85].mxu0 }
 0x22b   : > { %v7438_v39 = vadd.f32 %v7437_v28, %v7436_v59  ;;  %v7550_v1 = vadd.f32 %v7549_v34, %v7548_v56  ;;  %v7439_v17 = vpop.f32.mrb[86].mxu1  ;;  %v7551_v63 = vpop.f32.mrb[86].mxu0  ;;  %v4020_v30 = vsel %vm3974_vm3, %v4015_v57, %v4019_v3 }
 0x22c   : > { %v7440_v19 = vpop.f32.mrb[87].mxu1  ;;  %v7552_v44 = vpop.f32.mrb[87].mxu0 }
 0x22d   : > { %v2251_v5 = vadd.f32 %v7438_v39, %v10152_v7  ;;  %v7441_v46 = vadd.f32 %v7440_v19, %v7439_v17  ;;  %v7553_v13 = vadd.f32 %v7552_v44, %v7551_v63  ;;  %v4600_v17 = vsel %vm3974_vm3, %v4595_v55, %v4599_v40  ;;  %v10728_v63 = vld [vmem:[%s9076_s26 + $0xd0] ss:$8 sps:$4 sm:$0xff]   ;;  %v10733_v44 = vld [vmem:[%s9076_s26 + $0xe4] ss:$8 sps:$4 sm:$0xff]  }
 0x22e   : > { %4266 = vmatmul.mubr.bf16.gmra.mrb[192].mxu1 %v4010_v26  ;;  %v4606_v19 = vsel %vm3974_vm3, %v4601_v12, %v4605_v49  ;;  %v11424_v55 = vld [vmem:[#allocation10_spill] sm:$0xff]  ;;  %v4603_v57 = vrot.slane %v10728_v63, 2  ;;  %v4609_v51 = vrot.slane %v10733_v44, 2  ;;  %v11425_v44 = vld [vmem:[#allocation12_spill] sm:$0xff] }
 0x22f   : > { %4852 = vmatmul.mubr.bf16.gmra.mrb[192].mxu0 %v4596_v23  ;;  %v10716_v11 = vadd.f32 %v7550_v1, %v2251_v5  ;;  %v2252_v14 = vadd.f32 %v7441_v46, %v10158_v52  ;;  %4273 = vmatprep.mubr.bf16.mxu1 %v4016_v45  ;;  %v4014_v1 = vsel %vm3974_vm3, %v4009_v36, %v4013_v21  ;;  %v8620_v46 = vld [vmem:[%s9076_s26 + $0xc0] ss:$8 sps:$4 sm:$0xff]   ;;  %v8621_v12 = vld [vmem:[%s9076_s26 + $0xd4] ss:$8 sps:$4 sm:$0xff]  }
 0x230   : > { %4859 = vmatprep.mubr.bf16.mxu0 %v4602_v27 }
 0x231   : > { %v10723_v7 = vadd.f32 %v7553_v13, %v2252_v14  ;;  %v7442_v41 = vpop.f32.mrb[88].mxu1  ;;  %v7554_v42 = vpop.f32.mrb[88].mxu0  ;;  %v4017_v13 = vrot.slane %v8620_v46, 2  ;;  %v4023_v14 = vrot.slane %v8621_v12, 2 }
 0x232   : > { %v7443_v59 = vpop.f32.mrb[89].mxu1  ;;  %v7555_v56 = vpop.f32.mrb[89].mxu0 }
 0x233   : > { %v7444_v28 = vadd.f32 %v7443_v59, %v7442_v41  ;;  %v7556_v52 = vadd.f32 %v7555_v56, %v7554_v42  ;;  %v7445_v34 = vpop.f32.mrb[90].mxu1  ;;  %v7557_v39 = vpop.f32.mrb[90].mxu0 }
 0x234   : > { %v7446_v26 = vpop.f32.mrb[91].mxu1  ;;  %v7558_v23 = vpop.f32.mrb[91].mxu0 }
 0x235   : > { %v2253_v45 = vadd.f32 %v7444_v28, %v10178_v31  ;;  %v7447_v27 = vadd.f32 %v7446_v26, %v7445_v34  ;;  %v7559_v9 = vadd.f32 %v7558_v23, %v7557_v39  ;;  %v4018_v39 = vsel %vm3974_vm3, %v4013_v21, %v4017_v13 }
 0x236   : > { %4274 = vmatmul.mubr.bf16.gmra.mrb[196].mxu1 %v4014_v1  ;;  %v4604_v1 = vsel %vm3974_vm3, %v4599_v40, %v4603_v57  ;;  %v4024_v23 = vsel %vm3974_vm3, %v4019_v3, %v4023_v14  ;;  %v11426_v40 = vld [vmem:[#allocation11_spill] sm:$0xff] }
 0x237   : > { %4860 = vmatmul.mubr.bf16.gmra.mrb[196].mxu0 %v4600_v17  ;;  %v10736_v36 = vadd.f32 %v7556_v52, %v2253_v45  ;;  %v2254_v5 = vadd.f32 %v7447_v27, %v11424_v55  ;;  %4281 = vmatprep.mubr.bf16.mxu1 %v4020_v30  ;;  %v10748_v17 = vld [vmem:[%s9076_s26 + $0xe0] ss:$8 sps:$4 sm:$0xff]   ;;  %v4610_v30 = vsel %vm3974_vm3, %v4605_v49, %v4609_v51  ;;  %v8623_v49 = vld [vmem:[%s9076_s26 + $0xe4] ss:$8 sps:$4 sm:$0xff]  }
 0x238   : > { %4867 = vmatprep.mubr.bf16.mxu0 %v4606_v19  ;;  %v10753_v19 = vld [vmem:[%s9076_s26 + $0xf4] ss:$8 sps:$4 sm:$0xff]   ;;  %v4607_v3 = vrot.slane %v10748_v17, 2  ;;  %v4027_v12 = vrot.slane %v8623_v49, 2  ;;  %v10768_v17 = vld [vmem:[%s9076_s26 + $0xf0] ss:$8 sps:$4 sm:$0xff]  }
 0x239   : > { %v10743_v31 = vadd.f32 %v7559_v9, %v2254_v5  ;;  %v7448_v37 = vpop.f32.mrb[92].mxu1  ;;  %v7560_v41 = vpop.f32.mrb[92].mxu0  ;;  %v8622_v5 = vld [vmem:[%s9076_s26 + $0xd0] ss:$8 sps:$4 sm:$0xff]  }
 0x23a   : > { %v7449_v42 = vpop.f32.mrb[93].mxu1  ;;  %v7561_v59 = vpop.f32.mrb[93].mxu0  ;;  %v4021_v46 = vrot.slane %v8622_v5, 2 }
 0x23b   : > { %v7450_v56 = vadd.f32 %v7449_v42, %v7448_v37  ;;  %v7562_v28 = vadd.f32 %v7561_v59, %v7560_v41  ;;  %v7451_v52 = vpop.f32.mrb[94].mxu1  ;;  %v7563_v34 = vpop.f32.mrb[94].mxu0  ;;  %v4613_v37 = vrot.slane %v10753_v19, 2  ;;  %v4028_v19 = vsel %vm3974_vm3, %v4023_v14, %v4027_v12 }
 0x23c   : > { %v7452_v63 = vpop.f32.mrb[95].mxu1  ;;  %v7564_v26 = vpop.f32.mrb[95].mxu0  ;;  %v4611_v14 = vrot.slane %v10768_v17, 2  ;;  %v10788_v17 = vld [vmem:[%s9076_s26 + $0x100] ss:$8 sps:$4 sm:$0xff]  }
 0x23d   : > { %v2255_v45 = vadd.f32 %v7450_v56, %v11425_v44  ;;  %v7453_v27 = vadd.f32 %v7452_v63, %v7451_v52  ;;  %v7565_v9 = vadd.f32 %v7564_v26, %v7563_v34  ;;  %v4022_v63 = vsel %vm3974_vm3, %v4017_v13, %v4021_v46 }
 0x23e   : > { %4282 = vmatmul.mubr.bf16.gmra.mrb[200].mxu1 %v4018_v39  ;;  %v4608_v26 = vsel %vm3974_vm3, %v4603_v57, %v4607_v3  ;;  %v4614_v44 = vsel %vm3974_vm3, %v4609_v51, %v4613_v37  ;;  %v8625_v51 = vld [vmem:[%s9076_s26 + $0xf4] ss:$8 sps:$4 sm:$0xff]  }
 0x23f   : > { %4868 = vmatmul.mubr.bf16.gmra.mrb[200].mxu0 %v4604_v1  ;;  %v10756_v21 = vadd.f32 %v7562_v28, %v2255_v45  ;;  %v2256_v55 = vadd.f32 %v7453_v27, %v11426_v40  ;;  %4289 = vmatprep.mubr.bf16.mxu1 %v4024_v23  ;;  %v10773_v45 = vld [vmem:[%s9076_s26 + $0x104] ss:$8 sps:$4 sm:$0xff]   ;;  %v4031_v49 = vrot.slane %v8625_v51, 2 }
 0x240   : > { %4875 = vmatprep.mubr.bf16.mxu0 %v4610_v30 }
 0x241   : > { %v10763_v41 = vadd.f32 %v7565_v9, %v2256_v55  ;;  %v7582_v42 = vpop.f32.mrb[96].mxu1  ;;  %v7694_v59 = vpop.f32.mrb[96].mxu0  ;;  %v8624_v55 = vld [vmem:[%s9076_s26 + $0xe0] ss:$8 sps:$4 sm:$0xff]  }
 0x242   : > { %v7583_v56 = vpop.f32.mrb[97].mxu1  ;;  %v7695_v28 = vpop.f32.mrb[97].mxu0  ;;  %v4025_v5 = vrot.slane %v8624_v55, 2 }
 0x243   : > { %v7584_v52 = vadd.f32 %v7583_v56, %v7582_v42  ;;  %v7696_v34 = vadd.f32 %v7695_v28, %v7694_v59  ;;  %v7585_v39 = vpop.f32.mrb[98].mxu1  ;;  %v7697_v1 = vpop.f32.mrb[98].mxu0  ;;  %v4617_v42 = vrot.slane %v10773_v45, 2  ;;  %v10793_v45 = vld [vmem:[%s9076_s26 + $0x114] ss:$8 sps:$4 sm:$0xff]  }
 0x244   : > { %v7586_v23 = vpop.f32.mrb[99].mxu1  ;;  %v7698_v30 = vpop.f32.mrb[99].mxu0 }
 0x245   : > { %v3238_v27 = vadd.f32 %v7584_v52, %v10232_v54  ;;  %v7587_v9 = vadd.f32 %v7586_v23, %v7585_v39  ;;  %v7699_v40 = vadd.f32 %v7698_v30, %v7697_v1 }
 0x246   : > { %4290 = vmatmul.mubr.bf16.gmra.mrb[204].mxu1 %v4022_v63  ;;  %v4026_v63 = vsel %vm3974_vm3, %v4021_v46, %v4025_v5 }
 0x247   : > { %4876 = vmatmul.mubr.bf16.gmra.mrb[204].mxu0 %v4608_v26  ;;  %v10776_v13 = vadd.f32 %v7696_v34, %v3238_v27  ;;  %v3239_v57 = vadd.f32 %v7587_v9, %v10239_v62  ;;  %4297 = vmatprep.mubr.bf16.mxu1 %v4028_v19  ;;  %v4612_v26 = vsel %vm3974_vm3, %v4607_v3, %v4611_v14 }
 0x248   : > { %4883 = vmatprep.mubr.bf16.mxu0 %v4614_v44  ;;  %v4032_v19 = vsel %vm3974_vm3, %v4027_v12, %v4031_v49  ;;  %v4618_v44 = vsel %vm3974_vm3, %v4613_v37, %v4617_v42  ;;  %v4615_v12 = vrot.slane %v10788_v17, 2  ;;  %v8627_v37 = vld [vmem:[%s9076_s26 + $0x104] ss:$8 sps:$4 sm:$0xff]  }
 0x249   : > { %v10783_v54 = vadd.f32 %v7699_v40, %v3239_v57  ;;  %v7588_v59 = vpop.f32.mrb[100].mxu1  ;;  %v7700_v56 = vpop.f32.mrb[100].mxu0  ;;  %v8626_v57 = vld [vmem:[%s9076_s26 + $0xf0] ss:$8 sps:$4 sm:$0xff]   ;;  %v4035_v51 = vrot.slane %v8627_v37, 2  ;;  %v5009_v37 = vshll.u32 %v10320_v22, 16 }
 0x24a   : > { %v7589_v28 = vpop.f32.mrb[101].mxu1  ;;  %v7701_v52 = vpop.f32.mrb[101].mxu0  ;;  %v4029_v55 = vrot.slane %v8626_v57, 2  ;;  %v4616_v17 = vsel %vm3974_vm3, %v4611_v14, %v4615_v12  ;;  %v5006_v57 = vshrl.u32 %v10320_v22, 16 }
 0x24b   : > { %11427 = vst [vmem:[#allocation10_spill] sm:$0xff] %v10783_v54  ;;  %v7590_v34 = vadd.f32 %v7589_v28, %v7588_v59  ;;  %v7702_v62 = vadd.f32 %v7701_v52, %v7700_v56  ;;  %v7591_v39 = vpop.f32.mrb[102].mxu1  ;;  %v7703_v1 = vpop.f32.mrb[102].mxu0  ;;  %v4394_v52 = vld [vmem:[%s9076_s26 + $0x120] sm:$0x33] }
 0x24c   : > { %v7592_v23 = vpop.f32.mrb[103].mxu1  ;;  %v7704_v30 = vpop.f32.mrb[103].mxu0 }
 0x24d   : > { %v3240_v27 = vadd.f32 %v7590_v34, %v10261_v58  ;;  %v7593_v9 = vadd.f32 %v7592_v23, %v7591_v39  ;;  %v7705_v40 = vadd.f32 %v7704_v30, %v7703_v1  ;;  %v4621_v58 = vrot.slane %v10793_v45, 2  ;;  %v10809_v23 = vld [vmem:[%s9076_s26 + $0x110] ss:$8 sps:$4 sm:$0xff]  }
 0x24e   : > { %4298 = vmatmul.mubr.bf16.gmra.mrb[208].mxu1 %v4026_v63 }
 0x24f   : > { %4884 = vmatmul.mubr.bf16.gmra.mrb[208].mxu0 %v4612_v26  ;;  %v10796_v46 = vadd.f32 %v7702_v62, %v3240_v27  ;;  %v3241_v3 = vadd.f32 %v7593_v9, %v10268_v4  ;;  %4305 = vmatprep.mubr.bf16.mxu1 %v4032_v19  ;;  %v4030_v26 = vsel %vm3974_vm3, %v4025_v5, %v4029_v55  ;;  %v10815_v5 = vld [vmem:[%s9076_s26 + $0x100] ss:$8 sps:$4 sm:$0xff]  }
 0x250   : > { %4891 = vmatprep.mubr.bf16.mxu0 %v4618_v44  ;;  %v4036_v44 = vsel %vm3974_vm3, %v4031_v49, %v4035_v51  ;;  %v4622_v45 = vsel %vm3974_vm3, %v4617_v42, %v4621_v58  ;;  %v6942_v27 = vcombine.high %v4394_v52, %v4394_v52  ;;  %v11394_v14 = vrot.slane %v10815_v5, 2 }
 0x251   : > { %11428 = vst [vmem:[#allocation12_spill] sm:$0xff] %v10796_v46  ;;  %v10803_v59 = vadd.f32 %v7705_v40, %v3241_v3  ;;  %v7594_v56 = vpop.f32.mrb[104].mxu1  ;;  %v7706_v28 = vpop.f32.mrb[104].mxu0 }
 0x252   : > { %v7595_v34 = vpop.f32.mrb[105].mxu1  ;;  %v7707_v62 = vpop.f32.mrb[105].mxu0 }
 0x253   : > { %11429 = vst [vmem:[#allocation11_spill] sm:$0xff] %v10803_v59  ;;  %v7596_v39 = vadd.f32 %v7595_v34, %v7594_v56  ;;  %v7708_v4 = vadd.f32 %v7707_v62, %v7706_v28  ;;  %v7597_v1 = vpop.f32.mrb[106].mxu1  ;;  %v7709_v63 = vpop.f32.mrb[106].mxu0  ;;  %v10825_v56 = vld [vmem:[%s9076_s26 + $0x20] sm:$0x88]  ;;  %v4625_v62 = vrot.slane %v6942_v27, 2 }
 0x254   : > { %v7598_v30 = vpop.f32.mrb[107].mxu1  ;;  %v7710_v19 = vpop.f32.mrb[107].mxu0  ;;  %v11431_v28 = vld [vmem:[#allocation13_spill] sm:$0xff] }
 0x255   : > { %v3242_v9 = vadd.f32 %v7596_v39, %v10295_v32  ;;  %v7599_v40 = vadd.f32 %v7598_v30, %v7597_v1  ;;  %v7711_v3 = vadd.f32 %v7710_v19, %v7709_v63  ;;  %v4619_v32 = vrot.slane %v10809_v23, 2  ;;  %v10829_v39 = vld [vmem:[%s9076_s26 + $0x34] ss:$8 sps:$4 sm:$0xff]  }
 0x256   : > { %4306 = vmatmul.mubr.bf16.gmra.mrb[212].mxu1 %v4030_v26  ;;  %v4039_v34 = vrot.slane %v11431_v28, 2  ;;  %v5014_v1 = vshrl.u32 %v10829_v39, 16  ;;  %v5017_v22 = vshll.u32 %v10829_v39, 16  ;;  %v6941_v26 = vcombine.low %v4394_v52, %v4394_v52  ;;  %v11433_v52 = vld [vmem:[#allocation14_spill] sm:$0xff] }
 0x257   : > { %4892 = vmatmul.mubr.bf16.gmra.mrb[212].mxu0 %v4616_v17  ;;  %v10820_v49 = vadd.f32 %v7708_v4, %v3242_v9  ;;  %v3243_v42 = vadd.f32 %v7599_v40, %v10300_v20  ;;  %4313 = vmatprep.mubr.bf16.mxu1 %v4036_v44  ;;  %v4034_v23 = vsel %vm3974_vm3, %v4029_v55, %v11394_v14  ;;  %v5008_v19 = vrot.slane %v5006_v57, 2 }
 0x258   : > { %4899 = vmatprep.mubr.bf16.mxu0 %v4622_v45  ;;  %v5011_v44 = vrot.slane %v5009_v37, 3  ;;  %v10839_v45 = vld [vmem:[%s9076_s26 + $0x28] sm:$0xff]  ;;  %v4620_v28 = vsel %vm3974_vm3, %v4615_v12, %v4619_v32  ;;  %v4040_v46 = vsel %vm3974_vm3, %v4035_v51, %v4039_v34  ;;  %v4626_v55 = vsel %vm3974_vm3, %v4621_v58, %v4625_v62  ;;  %v10854_v34 = vld [vmem:[%s9076_s26 + $0x30] ss:$8 sps:$4 sm:$0xff]  }
 0x259   : > { %11430 = vst [vmem:[#allocation15_spill] sm:$0xff] %v10820_v49  ;;  %v10833_v4 = vadd.f32 %v7711_v3, %v3243_v42  ;;  %v7600_v63 = vpop.f32.mrb[108].mxu1  ;;  %v7712_v20 = vpop.f32.mrb[108].mxu0  ;;  %v7042_v27 = vcombine.high %v10825_v56, %v10839_v45  ;;  %v5016_v57 = vrot.slane %v5014_v1, 2  ;;  %v5019_v37 = vrot.slane %v5017_v22, 3 }
 0x25a   : > { %v7601_v17 = vpop.f32.mrb[109].mxu1  ;;  %v7713_v30 = vpop.f32.mrb[109].mxu0  ;;  %v5012_v12 = vor.u32 %v5011_v44, %v5008_v19  ;;  %v5657_v62 = vrot.slane %v10829_v39, 3  ;;  %v10862_v1 = vld [vmem:[%s9076_s26 + $0x44] ss:$8 sps:$4 sm:$0xff]  }
 0x25b   : > { %11432 = vst [vmem:[#allocation13_spill] sm:$0xff] %v10833_v4  ;;  %v7602_v9 = vadd.f32 %v7601_v17, %v7600_v63  ;;  %v7714_v40 = vadd.f32 %v7713_v30, %v7712_v20  ;;  %v7603_v3 = vpop.f32.mrb[110].mxu1  ;;  %v7715_v42 = vpop.f32.mrb[110].mxu0  ;;  %v4037_v4 = vrot.slane %v11433_v52, 2  ;;  %v4623_v20 = vrot.slane %v6941_v26, 2 }
 0x25c   : > { %v7604_v49 = vpop.f32.mrb[111].mxu1  ;;  %v7716_v59 = vpop.f32.mrb[111].mxu0  ;;  %v5656_v17 = vrot.slane %v7042_v27, 3  ;;  %v4989_v30 = vshrl.u32 %v10339_v15, 16  ;;  %v4992_v52 = vshll.u32 %v10339_v15, 16  ;;  %v5032_v15 = vshrl.u32 %v10862_v1, 16 }
 0x25d   : > { %v3244_v14 = vadd.f32 %v7602_v9, %v10327_v24  ;;  %v7605_v54 = vadd.f32 %v7604_v49, %v7603_v3  ;;  %v7717_v63 = vadd.f32 %v7716_v59, %v7715_v42  ;;  %v4997_v24 = vshrl.u32 %v10854_v34, 16  ;;  %v10912_v39 = vld [vmem:[%s9076_s26 + $0x50] ss:$8 sps:$4 sm:$0xff]  }
 0x25e   : > { %4314 = vmatmul.mubr.bf16.gmra.mrb[216].mxu1 %v4034_v23  ;;  %v5000_v59 = vshll.u32 %v10854_v34, 16  ;;  %v10858_v49 = vor.u32 %v5019_v37, %v5016_v57  ;;  %v4624_v44 = vsel %vm3974_vm3, %v4619_v32, %v4623_v20  ;;  %v7041_v27 = vcombine.low %v10825_v56, %v10839_v45 }
 0x25f   : > { %4900 = vmatmul.mubr.bf16.gmra.mrb[216].mxu0 %v4620_v28  ;;  %v10850_v51 = vadd.f32 %v7714_v40, %v3244_v14  ;;  %v3245_v58 = vadd.f32 %v7605_v54, %v10332_v29  ;;  %4321 = vmatprep.mubr.bf16.mxu1 %v4040_v46  ;;  %v5035_v14 = vshll.u32 %v10862_v1, 16  ;;  %v11434_v46 = vrot.slane %v10815_v5, 2 }
 0x260   : > { %4907 = vmatprep.mubr.bf16.mxu0 %v4626_v55  ;;  %v4991_v9 = vrot.slane %v4989_v30, 2  ;;  %v4994_v40 = vrot.slane %v4992_v52, 3  ;;  %v4999_v57 = vrot.slane %v4997_v24, 2  ;;  %v5002_v5 = vrot.slane %v5000_v59, 3  ;;  %v10881_v59 = vld [vmem:[%s9076_s26 + $0x40] ss:$8 sps:$4 sm:$0xff]  }
 0x261   : > { %v10866_v22 = vadd.f32 %v7717_v63, %v3245_v58  ;;  %v7606_v29 = vpop.f32.mrb[112].mxu1  ;;  %v7718_v54 = vpop.f32.mrb[112].mxu0  ;;  %v4038_v26 = vsel %vm3974_vm3, %v11434_v46, %v4037_v4  ;;  %v5021_v63 = vsel %vm4987_vm4, %v5012_v12, %v10858_v49  ;;  %v5658_v32 = vsel %vm5652_vm5, %v5656_v17, %v5657_v62 }
 0x262   : > { %v7607_v23 = vpop.f32.mrb[113].mxu1  ;;  %v7719_v19 = vpop.f32.mrb[113].mxu0  ;;  %v5034_v20 = vrot.slane %v5032_v15, 2  ;;  %v5037_v56 = vrot.slane %v5035_v14, 3  ;;  %v5653_v58 = vrot.slane %v7041_v27, 3  ;;  %v4995_v24 = vor.u32 %v4994_v40, %v4991_v9 }
 0x263   : > { %v7608_v3 = vadd.f32 %v7607_v23, %v7606_v29  ;;  %v7720_v42 = vadd.f32 %v7719_v19, %v7718_v54  ;;  %v7609_v28 = vpop.f32.mrb[114].mxu1  ;;  %v7721_v55 = vpop.f32.mrb[114].mxu0  ;;  %v5023_v29 = vshrl.u32 %v10881_v59, 16  ;;  %v5026_v12 = vshll.u32 %v10881_v59, 16 }
 0x264   : > { %v7610_v37 = vpop.f32.mrb[115].mxu1  ;;  %v7722_v4 = vpop.f32.mrb[115].mxu0  ;;  %v5654_v15 = vrot.slane %v10854_v34, 3  ;;  %v5038_v14 = vor.u32 %v5037_v56, %v5034_v20  ;;  %v5661_v46 = vrot.slane %v10862_v1, 3 }
 0x265   : > { %v3246_v45 = vadd.f32 %v7608_v3, %v10355_v43  ;;  %v7611_v30 = vadd.f32 %v7610_v37, %v7609_v28  ;;  %v7723_v52 = vadd.f32 %v7722_v4, %v7721_v55  ;;  %v5003_v43 = vor.u32 %v5002_v5, %v4999_v57 }
 0x266   : > { %4322 = vmatmul.mubr.bf16.gmra.mrb[220].mxu1 %v4038_v26  ;;  %v10891_v26 = vld [vmem:[%s9076_s26 + $0x54] ss:$8 sps:$4 sm:$0xff]   ;;  %v5025_v3 = vrot.slane %v5023_v29, 2  ;;  %v5655_v5 = vsel %vm5652_vm5, %v5653_v58, %v5654_v15 }
 0x267   : > { %4908 = vmatmul.mubr.bf16.gmra.mrb[220].mxu0 %v4624_v44  ;;  %v10885_v54 = vadd.f32 %v7720_v42, %v3246_v45  ;;  %v3247_v17 = vadd.f32 %v7611_v30, %v10364_v50  ;;  %5452 = vmatprep.mubr.bf16.mxu1 %v5021_v63  ;;  %v5050_v23 = vshrl.u32 %v10891_v26, 16  ;;  %v5053_v19 = vshll.u32 %v10891_v26, 16 }
 0x268   : > { %5879 = vmatprep.mubr.bf16.mxu0 %v5658_v32  ;;  %v5028_v42 = vrot.slane %v5026_v12, 3  ;;  %v5004_v1 = vsel %vm4987_vm4, %v4995_v24, %v5003_v43  ;;  %v5039_v63 = vsel %vm4987_vm4, %v10858_v49, %v5038_v14  ;;  %v5662_v32 = vsel %vm5652_vm5, %v5657_v62, %v5661_v46 }
 0x269   : > { %v10895_v44 = vadd.f32 %v7723_v52, %v3247_v17  ;;  %v7612_v27 = vpop.f32.mrb[116].mxu1  ;;  %v7724_v9 = vpop.f32.mrb[116].mxu0  ;;  %v5052_v20 = vrot.slane %v5050_v23, 2  ;;  %v5055_v56 = vrot.slane %v5053_v19, 3  ;;  %v5659_v24 = vrot.slane %v10881_v59, 3 }
 0x26a   : > { %v7613_v40 = vpop.f32.mrb[117].mxu1  ;;  %v7725_v50 = vpop.f32.mrb[117].mxu0  ;;  %v10905_v58 = vor.u32 %v5028_v42, %v5025_v3  ;;  %v5041_v62 = vshrl.u32 %v10912_v39, 16  ;;  %v5665_v17 = vrot.slane %v10891_v26, 3  ;;  %v10918_v23 = vld [vmem:[%s9076_s26 + $0x64] ss:$8 sps:$4 sm:$0xff]  }
 0x26b   : > { %v7614_v28 = vadd.f32 %v7613_v40, %v7612_v27  ;;  %v7726_v55 = vadd.f32 %v7725_v50, %v7724_v9  ;;  %v7615_v34 = vpop.f32.mrb[118].mxu1  ;;  %v7727_v57 = vpop.f32.mrb[118].mxu0  ;;  %v5056_v12 = vor.u32 %v5055_v56, %v5052_v20  ;;  %v5068_v19 = vshrl.u32 %v10918_v23, 16 }
 0x26c   : > { %v7616_v37 = vpop.f32.mrb[119].mxu1  ;;  %v7728_v4 = vpop.f32.mrb[119].mxu0  ;;  %v5071_v27 = vshll.u32 %v10918_v23, 16  ;;  %v5030_v42 = vsel %vm4987_vm4, %v5003_v43, %v10905_v58 }
 0x26d   : > { %v3248_v45 = vadd.f32 %v7614_v28, %v10408_v60  ;;  %v7617_v30 = vadd.f32 %v7616_v37, %v7615_v34  ;;  %v7729_v52 = vadd.f32 %v7728_v4, %v7727_v57  ;;  %v5044_v60 = vshll.u32 %v10912_v39, 16 }
 0x26e   : > { %5453 = vmatmul.mubr.bf16.vlgmr.msra.gmra.mrb[224].mxu1 %v5004_v1  ;;  %v5660_v28 = vsel %vm5652_vm5, %v5654_v15, %v5659_v24  ;;  %v5043_v1 = vrot.slane %v5041_v62, 2  ;;  %v5070_v20 = vrot.slane %v5068_v19, 2  ;;  %v5073_v56 = vrot.slane %v5071_v27, 3  ;;  %v10943_v27 = vld [vmem:[%s9076_s26 + $0x74] ss:$8 sps:$4 sm:$0xff]  }
 0x26f   : > { %5880 = vmatmul.mubr.bf16.vlgmr.msra.gmra.mrb[224].mxu0 %v5655_v5  ;;  %v10908_v29 = vadd.f32 %v7726_v55, %v3248_v45  ;;  %v3249_v49 = vadd.f32 %v7617_v30, %v10427_v2  ;;  %5460 = vmatprep.mubr.bf16.mxu1 %v5039_v63  ;;  %v5046_v5 = vrot.slane %v5044_v60, 3  ;;  %v5057_v63 = vsel %vm4987_vm4, %v5038_v14, %v5056_v12  ;;  %v10933_v30 = vld [vmem:[%s9076_s26 + $0x60] ss:$8 sps:$4 sm:$0xff]  }
 0x270   : > { %5887 = vmatprep.mubr.bf16.mxu0 %v5662_v32  ;;  %v5666_v32 = vsel %vm5652_vm5, %v5661_v46, %v5665_v17  ;;  %v5074_v60 = vor.u32 %v5073_v56, %v5070_v20  ;;  %v5669_v19 = vrot.slane %v10918_v23, 3  ;;  %v5667_v59 = vrot.slane %v10933_v30, 3 }
 0x271   : > { %v10922_v9 = vadd.f32 %v7729_v52, %v3249_v49  ;;  %v7618_v2 = vpop.f32.mrb[120].mxu1  ;;  %v7730_v40 = vpop.f32.mrb[120].mxu0  ;;  %v5059_v52 = vshrl.u32 %v10933_v30, 16  ;;  %v5062_v49 = vshll.u32 %v10933_v30, 16  ;;  %v5047_v46 = vor.u32 %v5046_v5, %v5043_v1 }
 0x272   : > { %v7619_v50 = vpop.f32.mrb[121].mxu1  ;;  %v7731_v3 = vpop.f32.mrb[121].mxu0 }
 0x273   : > { %v7620_v26 = vadd.f32 %v7619_v50, %v7618_v2  ;;  %v7732_v55 = vadd.f32 %v7731_v3, %v7730_v40  ;;  %v7621_v34 = vpop.f32.mrb[122].mxu1  ;;  %v7733_v57 = vpop.f32.mrb[122].mxu0  ;;  %v5086_v2 = vshrl.u32 %v10943_v27, 16  ;;  %v5089_v40 = vshll.u32 %v10943_v27, 16 }
 0x274   : > { %v7622_v37 = vpop.f32.mrb[123].mxu1  ;;  %v7734_v4 = vpop.f32.mrb[123].mxu0  ;;  %v5048_v23 = vsel %vm4987_vm4, %v10905_v58, %v5047_v46 }
 0x275   : > { %v3250_v43 = vadd.f32 %v7620_v26, %v10473_v8  ;;  %v7623_v45 = vadd.f32 %v7622_v37, %v7621_v34  ;;  %v7735_v15 = vadd.f32 %v7734_v4, %v7733_v57  ;;  %v5663_v8 = vrot.slane %v10912_v39, 3 }
 0x276   : > { %5461 = vmatmul.mubr.bf16.gmra.mrb[228].mxu1 %v5030_v42  ;;  %v5061_v26 = vrot.slane %v5059_v52, 2  ;;  %v5088_v20 = vrot.slane %v5086_v2, 2  ;;  %v5091_v56 = vrot.slane %v5089_v40, 3  ;;  %v10970_v2 = vld [vmem:[%s9076_s26 + $0x84] ss:$8 sps:$4 sm:$0xff]  }
 0x277   : > { %5888 = vmatmul.mubr.bf16.gmra.mrb[228].mxu0 %v5660_v28  ;;  %v10937_v62 = vadd.f32 %v7732_v55, %v3250_v43  ;;  %v3251_v14 = vadd.f32 %v7623_v45, %v10487_v0  ;;  %5468 = vmatprep.mubr.bf16.mxu1 %v5057_v63  ;;  %v5064_v55 = vrot.slane %v5062_v49, 3  ;;  %v5664_v5 = vsel %vm5652_vm5, %v5659_v24, %v5663_v8 }
 0x278   : > { %5895 = vmatprep.mubr.bf16.mxu0 %v5666_v32  ;;  %v5075_v63 = vsel %vm4987_vm4, %v5056_v12, %v5074_v60  ;;  %v5670_v32 = vsel %vm5652_vm5, %v5665_v17, %v5669_v19  ;;  %v10964_v12 = vld [vmem:[%s9076_s26 + $0x70] ss:$8 sps:$4 sm:$0xff]   ;;  %v5092_v49 = vor.u32 %v5091_v56, %v5088_v20  ;;  %v5104_v40 = vshrl.u32 %v10970_v2, 16 }
 0x279   : > { %v10947_v50 = vadd.f32 %v7735_v15, %v3251_v14  ;;  %v7624_v3 = vpop.f32.mrb[124].mxu1  ;;  %v7736_v42 = vpop.f32.mrb[124].mxu0  ;;  %v10957_v58 = vor.u32 %v5064_v55, %v5061_v26  ;;  %v5077_v17 = vshrl.u32 %v10964_v12, 16  ;;  %v5673_v14 = vrot.slane %v10943_v27, 3 }
 0x27a   : > { %v7625_v28 = vpop.f32.mrb[125].mxu1  ;;  %v7737_v0 = vpop.f32.mrb[125].mxu0  ;;  %v5106_v20 = vrot.slane %v5104_v40, 2  ;;  %v5677_v40 = vrot.slane %v10970_v2, 3 }
 0x27b   : > { %v7626_v34 = vadd.f32 %v7625_v28, %v7624_v3  ;;  %v7738_v57 = vadd.f32 %v7737_v0, %v7736_v42  ;;  %v7627_v39 = vpop.f32.mrb[126].mxu1  ;;  %v7739_v1 = vpop.f32.mrb[126].mxu0  ;;  %v5107_v3 = vshll.u32 %v10970_v2, 16  ;;  %v5066_v55 = vsel %vm4987_vm4, %v5047_v46, %v10957_v58 }
 0x27c   : > { %v7628_v37 = vpop.f32.mrb[127].mxu1  ;;  %v7740_v4 = vpop.f32.mrb[127].mxu0 }
 0x27d   : > { %v3252_v43 = vadd.f32 %v7626_v34, %v10537_v10  ;;  %v7629_v45 = vadd.f32 %v7628_v37, %v7627_v39  ;;  %v7741_v15 = vadd.f32 %v7740_v4, %v7739_v1  ;;  %v5080_v10 = vshll.u32 %v10964_v12, 16 }
 0x27e   : > { %5469 = vmatmul.mubr.bf16.gmra.mrb[232].mxu1 %v5048_v23  ;;  %v5668_v34 = vsel %vm5652_vm5, %v5663_v8, %v5667_v59  ;;  %v5079_v23 = vrot.slane %v5077_v17, 2  ;;  %v5109_v56 = vrot.slane %v5107_v3, 3  ;;  %v10995_v3 = vld [vmem:[%s9076_s26 + $0x94] ss:$8 sps:$4 sm:$0xff]  }
 0x27f   : > { %5896 = vmatmul.mubr.bf16.gmra.mrb[232].mxu0 %v5664_v5  ;;  %v10960_v24 = vadd.f32 %v7738_v57, %v3252_v43  ;;  %v3253_v52 = vadd.f32 %v7629_v45, %v10555_v16  ;;  %5476 = vmatprep.mubr.bf16.mxu1 %v5075_v63  ;;  %v5082_v5 = vrot.slane %v5080_v10, 3  ;;  %v5093_v63 = vsel %vm4987_vm4, %v5074_v60, %v5092_v49  ;;  %v10985_v45 = vld [vmem:[%s9076_s26 + $0x80] ss:$8 sps:$4 sm:$0xff]  }
 0x280   : > { %5903 = vmatprep.mubr.bf16.mxu0 %v5670_v32  ;;  %v5674_v32 = vsel %vm5652_vm5, %v5669_v19, %v5673_v14  ;;  %v5110_v10 = vor.u32 %v5109_v56, %v5106_v20  ;;  %v5675_v30 = vrot.slane %v10985_v45, 3 }
 0x281   : > { %v10974_v42 = vadd.f32 %v7741_v15, %v3253_v52  ;;  %v7630_v16 = vpop.f32.mrb[128].mxu1  ;;  %v7742_v28 = vpop.f32.mrb[128].mxu0  ;;  %v5095_v15 = vshrl.u32 %v10985_v45, 16  ;;  %v5098_v52 = vshll.u32 %v10985_v45, 16  ;;  %v5083_v19 = vor.u32 %v5082_v5, %v5079_v23 }
 0x282   : > { %v7631_v0 = vpop.f32.mrb[129].mxu1  ;;  %v7743_v26 = vpop.f32.mrb[129].mxu0 }
 0x283   : > { %v7632_v27 = vadd.f32 %v7631_v0, %v7630_v16  ;;  %v7744_v57 = vadd.f32 %v7743_v26, %v7742_v28  ;;  %v7633_v39 = vpop.f32.mrb[130].mxu1  ;;  %v7745_v1 = vpop.f32.mrb[130].mxu0  ;;  %v5122_v16 = vshrl.u32 %v10995_v3, 16  ;;  %v5125_v28 = vshll.u32 %v10995_v3, 16 }
 0x284   : > { %v7634_v37 = vpop.f32.mrb[131].mxu1  ;;  %v7746_v4 = vpop.f32.mrb[131].mxu0  ;;  %v5084_v2 = vsel %vm4987_vm4, %v10957_v58, %v5083_v19 }
 0x285   : > { %v3254_v46 = vadd.f32 %v7632_v27, %v10602_v53  ;;  %v7635_v43 = vadd.f32 %v7634_v37, %v7633_v39  ;;  %v7747_v8 = vadd.f32 %v7746_v4, %v7745_v1  ;;  %v5671_v53 = vrot.slane %v10964_v12, 3 }
 0x286   : > { %5477 = vmatmul.mubr.bf16.gmra.mrb[236].mxu1 %v5066_v55  ;;  %v5097_v27 = vrot.slane %v5095_v15, 2  ;;  %v5124_v20 = vrot.slane %v5122_v16, 2  ;;  %v5127_v56 = vrot.slane %v5125_v28, 3  ;;  %v11022_v16 = vld [vmem:[%s9076_s26 + $0xa4] ss:$8 sps:$4 sm:$0xff]  }
 0x287   : > { %5904 = vmatmul.mubr.bf16.gmra.mrb[236].mxu0 %v5668_v34  ;;  %v10989_v17 = vadd.f32 %v7744_v57, %v3254_v46  ;;  %v3255_v60 = vadd.f32 %v7635_v43, %v10615_v38  ;;  %5484 = vmatprep.mubr.bf16.mxu1 %v5093_v63  ;;  %v5100_v57 = vrot.slane %v5098_v52, 3  ;;  %v5672_v5 = vsel %vm5652_vm5, %v5667_v59, %v5671_v53 }
 0x288   : > { %5911 = vmatprep.mubr.bf16.mxu0 %v5674_v32  ;;  %v5111_v63 = vsel %vm4987_vm4, %v5092_v49, %v5110_v10  ;;  %v5678_v32 = vsel %vm5652_vm5, %v5673_v14, %v5677_v40  ;;  %v11016_v49 = vld [vmem:[%s9076_s26 + $0x90] ss:$8 sps:$4 sm:$0xff]   ;;  %v5128_v52 = vor.u32 %v5127_v56, %v5124_v20  ;;  %v5140_v28 = vshrl.u32 %v11022_v16, 16 }
 0x289   : > { %v10999_v0 = vadd.f32 %v7747_v8, %v3255_v60  ;;  %v7636_v26 = vpop.f32.mrb[132].mxu1  ;;  %v7748_v55 = vpop.f32.mrb[132].mxu0  ;;  %v11009_v58 = vor.u32 %v5100_v57, %v5097_v27  ;;  %v5113_v14 = vshrl.u32 %v11016_v49, 16  ;;  %v5681_v60 = vrot.slane %v10995_v3, 3 }
 0x28a   : > { %v7637_v34 = vpop.f32.mrb[133].mxu1  ;;  %v7749_v38 = vpop.f32.mrb[133].mxu0  ;;  %v5142_v20 = vrot.slane %v5140_v28, 2  ;;  %v5685_v28 = vrot.slane %v11022_v16, 3 }
 0x28b   : > { %v7638_v39 = vadd.f32 %v7637_v34, %v7636_v26  ;;  %v7750_v1 = vadd.f32 %v7749_v38, %v7748_v55  ;;  %v7639_v12 = vpop.f32.mrb[134].mxu1  ;;  %v7751_v23 = vpop.f32.mrb[134].mxu0  ;;  %v5143_v26 = vshll.u32 %v11022_v16, 16  ;;  %v5102_v57 = vsel %vm4987_vm4, %v5083_v19, %v11009_v58 }
 0x28c   : > { %v7640_v37 = vpop.f32.mrb[135].mxu1  ;;  %v7752_v4 = vpop.f32.mrb[135].mxu0 }
 0x28d   : > { %v3256_v46 = vadd.f32 %v7638_v39, %v10636_v61  ;;  %v7641_v43 = vadd.f32 %v7640_v37, %v7639_v12  ;;  %v7753_v8 = vadd.f32 %v7752_v4, %v7751_v23  ;;  %v5116_v61 = vshll.u32 %v11016_v49, 16 }
 0x28e   : > { %5485 = vmatmul.mubr.bf16.gmra.mrb[240].mxu1 %v5084_v2  ;;  %v5676_v39 = vsel %vm5652_vm5, %v5671_v53, %v5675_v30  ;;  %v5115_v2 = vrot.slane %v5113_v14, 2  ;;  %v5145_v56 = vrot.slane %v5143_v26, 3  ;;  %v11047_v26 = vld [vmem:[%s9076_s26 + $0xb4] ss:$8 sps:$4 sm:$0xff]  }
 0x28f   : > { %5912 = vmatmul.mubr.bf16.gmra.mrb[240].mxu0 %v5672_v5  ;;  %v11012_v59 = vadd.f32 %v7750_v1, %v3256_v46  ;;  %v3257_v15 = vadd.f32 %v7641_v43, %v10643_v48  ;;  %5492 = vmatprep.mubr.bf16.mxu1 %v5111_v63  ;;  %v5118_v5 = vrot.slane %v5116_v61, 3  ;;  %v5129_v63 = vsel %vm4987_vm4, %v5110_v10, %v5128_v52  ;;  %v11037_v43 = vld [vmem:[%s9076_s26 + $0xa0] ss:$8 sps:$4 sm:$0xff]  }
 0x290   : > { %5919 = vmatprep.mubr.bf16.mxu0 %v5678_v32  ;;  %v5682_v32 = vsel %vm5652_vm5, %v5677_v40, %v5681_v60  ;;  %v5146_v61 = vor.u32 %v5145_v56, %v5142_v20  ;;  %v5683_v45 = vrot.slane %v11037_v43, 3 }
 0x291   : > { %v11026_v55 = vadd.f32 %v7753_v8, %v3257_v15  ;;  %v7642_v48 = vpop.f32.mrb[136].mxu1  ;;  %v7754_v34 = vpop.f32.mrb[136].mxu0  ;;  %v5131_v8 = vshrl.u32 %v11037_v43, 16  ;;  %v5134_v15 = vshll.u32 %v11037_v43, 16  ;;  %v5119_v40 = vor.u32 %v5118_v5, %v5115_v2 }
 0x292   : > { %v7643_v38 = vpop.f32.mrb[137].mxu1  ;;  %v7755_v27 = vpop.f32.mrb[137].mxu0 }
 0x293   : > { %v7644_v3 = vadd.f32 %v7643_v38, %v7642_v48  ;;  %v7756_v1 = vadd.f32 %v7755_v27, %v7754_v34  ;;  %v7645_v12 = vpop.f32.mrb[138].mxu1  ;;  %v7757_v23 = vpop.f32.mrb[138].mxu0  ;;  %v5158_v48 = vshrl.u32 %v11047_v26, 16  ;;  %v5161_v34 = vshll.u32 %v11047_v26, 16 }
 0x294   : > { %v7646_v37 = vpop.f32.mrb[139].mxu1  ;;  %v7758_v4 = vpop.f32.mrb[139].mxu0  ;;  %v5120_v16 = vsel %vm4987_vm4, %v11009_v58, %v5119_v40 }
 0x295   : > { %v3258_v19 = vadd.f32 %v7644_v3, %v10656_v35  ;;  %v7647_v46 = vadd.f32 %v7646_v37, %v7645_v12  ;;  %v7759_v53 = vadd.f32 %v7758_v4, %v7757_v23  ;;  %v5679_v35 = vrot.slane %v11016_v49, 3 }
 0x296   : > { %5493 = vmatmul.mubr.bf16.gmra.mrb[244].mxu1 %v5102_v57  ;;  %v5133_v3 = vrot.slane %v5131_v8, 2  ;;  %v5160_v20 = vrot.slane %v5158_v48, 2  ;;  %v5163_v56 = vrot.slane %v5161_v34, 3  ;;  %v11072_v48 = vld [vmem:[%s9076_s26 + $0xc4] ss:$8 sps:$4 sm:$0xff]  }
 0x297   : > { %5920 = vmatmul.mubr.bf16.gmra.mrb[244].mxu0 %v5676_v39  ;;  %v11041_v14 = vadd.f32 %v7756_v1, %v3258_v19  ;;  %v3259_v10 = vadd.f32 %v7647_v46, %v10663_v6  ;;  %5500 = vmatprep.mubr.bf16.mxu1 %v5129_v63  ;;  %v5136_v1 = vrot.slane %v5134_v15, 3  ;;  %v5680_v5 = vsel %vm5652_vm5, %v5675_v30, %v5679_v35 }
 0x298   : > { %5927 = vmatprep.mubr.bf16.mxu0 %v5682_v32  ;;  %v5147_v63 = vsel %vm4987_vm4, %v5128_v52, %v5146_v61  ;;  %v5686_v32 = vsel %vm5652_vm5, %v5681_v60, %v5685_v28  ;;  %v11066_v52 = vld [vmem:[%s9076_s26 + $0xb0] ss:$8 sps:$4 sm:$0xff]   ;;  %v5164_v15 = vor.u32 %v5163_v56, %v5160_v20  ;;  %v5176_v34 = vshrl.u32 %v11072_v48, 16 }
 0x299   : > { %v11051_v38 = vadd.f32 %v7759_v53, %v3259_v10  ;;  %v7648_v27 = vpop.f32.mrb[140].mxu1  ;;  %v7760_v57 = vpop.f32.mrb[140].mxu0  ;;  %v5137_v58 = vor.u32 %v5136_v1, %v5133_v3  ;;  %v5149_v60 = vshrl.u32 %v11066_v52, 16  ;;  %v5689_v10 = vrot.slane %v11047_v26, 3 }
 0x29a   : > { %v7649_v39 = vpop.f32.mrb[141].mxu1  ;;  %v7761_v6 = vpop.f32.mrb[141].mxu0  ;;  %v5179_v43 = vshll.u32 %v11072_v48, 16  ;;  %v5684_v1 = vsel %vm5652_vm5, %v5679_v35, %v5683_v45 }
 0x29b   : > { %v7650_v12 = vadd.f32 %v7649_v39, %v7648_v27  ;;  %v7762_v23 = vadd.f32 %v7761_v6, %v7760_v57  ;;  %v7651_v49 = vpop.f32.mrb[142].mxu1  ;;  %v7763_v2 = vpop.f32.mrb[142].mxu0  ;;  %v5138_v3 = vsel %vm4987_vm4, %v5119_v40, %v5137_v58 }
 0x29c   : > { %v7652_v37 = vpop.f32.mrb[143].mxu1  ;;  %v7764_v4 = vpop.f32.mrb[143].mxu0  ;;  %v5181_v20 = vrot.slane %v5179_v43, 3 }
 0x29d   : > { %v3260_v19 = vadd.f32 %v7650_v12, %v10676_v25  ;;  %v7653_v46 = vadd.f32 %v7652_v37, %v7651_v49  ;;  %v7765_v53 = vadd.f32 %v7764_v4, %v7763_v2  ;;  %v5152_v25 = vshll.u32 %v11066_v52, 16 }
 0x29e   : > { %5501 = vmatmul.mubr.bf16.gmra.mrb[248].mxu1 %v5120_v16  ;;  %v5151_v2 = vrot.slane %v5149_v60, 2  ;;  %v5165_v4 = vsel %vm4987_vm4, %v5146_v61, %v5164_v15  ;;  %v5687_v60 = vrot.slane %v11066_v52, 3 }
 0x29f   : > { %5928 = vmatmul.mubr.bf16.gmra.mrb[248].mxu0 %v5680_v5  ;;  %v11062_v30 = vadd.f32 %v7762_v23, %v3260_v19  ;;  %v3261_v8 = vadd.f32 %v7653_v46, %v10683_v18  ;;  %5508 = vmatprep.mubr.bf16.mxu1 %v5147_v63  ;;  %v5154_v16 = vrot.slane %v5152_v25, 3  ;;  %v5690_v63 = vsel %vm5652_vm5, %v5685_v28, %v5689_v10  ;;  %v11084_v19 = vld [vmem:[%s9076_s26 + $0xc0] ss:$8 sps:$4 sm:$0xff]  }
 0x2a0   : > { %5935 = vmatprep.mubr.bf16.mxu0 %v5686_v32  ;;  %v5178_v32 = vrot.slane %v5176_v34, 2  ;;  %v5167_v46 = vshrl.u32 %v11084_v19, 16  ;;  %v5693_v25 = vrot.slane %v11072_v48, 3  ;;  %v11094_v34 = vld [vmem:[%s9076_s26 + $0xd4] ss:$8 sps:$4 sm:$0xff]  }
 0x2a1   : > { %v11076_v27 = vadd.f32 %v7765_v53, %v3261_v8  ;;  %v7654_v18 = vpop.f32.mrb[144].mxu1  ;;  %v7766_v57 = vpop.f32.mrb[144].mxu0  ;;  %v5170_v53 = vshll.u32 %v11084_v19, 16  ;;  %v5155_v28 = vor.u32 %v5154_v16, %v5151_v2  ;;  %v5194_v43 = vshrl.u32 %v11094_v34, 16 }
 0x2a2   : > { %v7655_v39 = vpop.f32.mrb[145].mxu1  ;;  %v7767_v6 = vpop.f32.mrb[145].mxu0 }
 0x2a3   : > { %v7656_v12 = vadd.f32 %v7655_v39, %v7654_v18  ;;  %v7768_v23 = vadd.f32 %v7767_v6, %v7766_v57  ;;  %v7657_v26 = vpop.f32.mrb[146].mxu1  ;;  %v7769_v49 = vpop.f32.mrb[146].mxu0  ;;  %v5197_v18 = vshll.u32 %v11094_v34, 16  ;;  %v5156_v52 = vsel %vm4987_vm4, %v5137_v58, %v5155_v28 }
 0x2a4   : > { %v7658_v5 = vpop.f32.mrb[147].mxu1  ;;  %v7770_v37 = vpop.f32.mrb[147].mxu0 }
 0x2a5   : > { %v3262_v56 = vadd.f32 %v7656_v12, %v10696_v47  ;;  %v7659_v40 = vadd.f32 %v7658_v5, %v7657_v26  ;;  %v7771_v35 = vadd.f32 %v7770_v37, %v7769_v49  ;;  %v5182_v47 = vor.u32 %v5181_v20, %v5178_v32 }
 0x2a6   : > { %5509 = vmatmul.mubr.bf16.gmra.mrb[252].mxu1 %v5138_v3  ;;  %v5172_v12 = vrot.slane %v5170_v53, 3  ;;  %v5199_v32 = vrot.slane %v5197_v18, 3 }
 0x2a7   : > { %5936 = vmatmul.mubr.bf16.gmra.mrb[252].mxu0 %v5684_v1  ;;  %v11088_v8 = vadd.f32 %v7768_v23, %v3262_v56  ;;  %v3263_v61 = vadd.f32 %v7659_v40, %v10703_v33  ;;  %5516 = vmatprep.mubr.bf16.mxu1 %v5165_v4  ;;  %v5169_v1 = vrot.slane %v5167_v46, 2  ;;  %v5688_v23 = vsel %vm5652_vm5, %v5683_v45, %v5687_v60 }
 0x2a8   : > { %5943 = vmatprep.mubr.bf16.mxu0 %v5690_v63  ;;  %v5183_v37 = vsel %vm4987_vm4, %v5164_v15, %v5182_v47  ;;  %v5694_v4 = vsel %vm5652_vm5, %v5689_v10, %v5693_v25  ;;  %v5196_v63 = vrot.slane %v5194_v43, 2  ;;  %v5691_v40 = vrot.slane %v11084_v19, 3  ;;  %v11112_v15 = vld [vmem:[%s9076_s26 + $0xd0] ss:$8 sps:$4 sm:$0xff]   ;;  %v11118_v43 = vld [vmem:[%s9076_s26 + $0xe4] ss:$8 sps:$4 sm:$0xff]  }
 0x2a9   : > { %v11098_v57 = vadd.f32 %v7771_v35, %v3263_v61  ;;  %v7660_v39 = vpop.f32.mrb[148].mxu1  ;;  %v7772_v6 = vpop.f32.mrb[148].mxu0  ;;  %v11105_v45 = vor.u32 %v5172_v12, %v5169_v1  ;;  %v5185_v10 = vshrl.u32 %v11112_v15, 16  ;;  %v5697_v61 = vrot.slane %v11094_v34, 3 }
 0x2aa   : > { %v7661_v3 = vpop.f32.mrb[149].mxu1  ;;  %v7773_v33 = vpop.f32.mrb[149].mxu0  ;;  %v5200_v53 = vor.u32 %v5199_v32, %v5196_v63  ;;  %v5212_v18 = vshrl.u32 %v11118_v43, 16 }
 0x2ab   : > { %v7662_v26 = vadd.f32 %v7661_v3, %v7660_v39  ;;  %v7774_v48 = vadd.f32 %v7773_v33, %v7772_v6  ;;  %v7663_v49 = vpop.f32.mrb[150].mxu1  ;;  %v7775_v2 = vpop.f32.mrb[150].mxu0  ;;  %v5215_v39 = vshll.u32 %v11118_v43, 16  ;;  %v5174_v12 = vsel %vm4987_vm4, %v5155_v28, %v11105_v45 }
 0x2ac   : > { %v7664_v16 = vpop.f32.mrb[151].mxu1  ;;  %v7776_v5 = vpop.f32.mrb[151].mxu0  ;;  %v5214_v63 = vrot.slane %v5212_v18, 2  ;;  %v5701_v18 = vrot.slane %v11118_v43, 3 }
 0x2ad   : > { %v3264_v20 = vadd.f32 %v7662_v26, %v10716_v11  ;;  %v7665_v56 = vadd.f32 %v7664_v16, %v7663_v49  ;;  %v7777_v58 = vadd.f32 %v7776_v5, %v7775_v2  ;;  %v5188_v11 = vshll.u32 %v11112_v15, 16 }
 0x2ae   : > { %5517 = vmatmul.mubr.bf16.gmra.mrb[0].mxu1 %v5156_v52  ;;  %v5692_v52 = vsel %vm5652_vm5, %v5687_v60, %v5691_v40  ;;  %v5187_v49 = vrot.slane %v5185_v10, 2  ;;  %v5217_v32 = vrot.slane %v5215_v39, 3  ;;  %v11143_v39 = vld [vmem:[%s9076_s26 + $0xf4] ss:$8 sps:$4 sm:$0xff]  }
 0x2af   : > { %5944 = vmatmul.mubr.bf16.gmra.mrb[0].mxu0 %v5688_v23  ;;  %v11108_v35 = vadd.f32 %v7774_v48, %v3264_v20  ;;  %v3265_v46 = vadd.f32 %v7665_v56, %v10723_v7  ;;  %5524 = vmatprep.mubr.bf16.mxu1 %v5183_v37  ;;  %v5190_v2 = vrot.slane %v5188_v11, 3  ;;  %v5201_v37 = vsel %vm4987_vm4, %v5182_v47, %v5200_v53  ;;  %v11133_v56 = vld [vmem:[%s9076_s26 + $0xe0] ss:$8 sps:$4 sm:$0xff]  }
 0x2b0   : > { %5951 = vmatprep.mubr.bf16.mxu0 %v5694_v4  ;;  %v5698_v4 = vsel %vm5652_vm5, %v5693_v25, %v5697_v61  ;;  %v5218_v11 = vor.u32 %v5217_v32, %v5214_v63  ;;  %v5699_v19 = vrot.slane %v11133_v56, 3 }
 0x2b1   : > { %v11122_v6 = vadd.f32 %v7777_v58, %v3265_v46  ;;  %v7666_v7 = vpop.f32.mrb[152].mxu1  ;;  %v7778_v3 = vpop.f32.mrb[152].mxu0  ;;  %v5203_v58 = vshrl.u32 %v11133_v56, 16  ;;  %v5206_v46 = vshll.u32 %v11133_v56, 16  ;;  %v5191_v25 = vor.u32 %v5190_v2, %v5187_v49  ;;  %v11209_v56 = vld [vmem:[%s9076_s26 + $0x110] ss:$8 sps:$4 sm:$0xff]  }
 0x2b2   : > { %v7667_v33 = vpop.f32.mrb[153].mxu1  ;;  %v7779_v1 = vpop.f32.mrb[153].mxu0 }
 0x2b3   : > { %v7668_v34 = vadd.f32 %v7667_v33, %v7666_v7  ;;  %v7780_v23 = vadd.f32 %v7779_v1, %v7778_v3  ;;  %v7669_v26 = vpop.f32.mrb[154].mxu1  ;;  %v7781_v48 = vpop.f32.mrb[154].mxu0  ;;  %v5230_v7 = vshrl.u32 %v11143_v39, 16  ;;  %v5233_v3 = vshll.u32 %v11143_v39, 16 }
 0x2b4   : > { %v7670_v16 = vpop.f32.mrb[155].mxu1  ;;  %v7782_v5 = vpop.f32.mrb[155].mxu0  ;;  %v5192_v43 = vsel %vm4987_vm4, %v11105_v45, %v5191_v25 }
 0x2b5   : > { %v3266_v28 = vadd.f32 %v7668_v34, %v10736_v36  ;;  %v7671_v20 = vadd.f32 %v7670_v16, %v7669_v26  ;;  %v7783_v60 = vadd.f32 %v7782_v5, %v7781_v48  ;;  %v5695_v36 = vrot.slane %v11112_v15, 3 }
 0x2b6   : > { %5525 = vmatmul.mubr.bf16.gmra.mrb[4].mxu1 %v5174_v12  ;;  %v5205_v34 = vrot.slane %v5203_v58, 2  ;;  %v5232_v63 = vrot.slane %v5230_v7, 2  ;;  %v5235_v32 = vrot.slane %v5233_v3, 3  ;;  %v11159_v58 = vld [vmem:[%s9076_s26 + $0xf0] ss:$8 sps:$4 sm:$0xff]  }
 0x2b7   : > { %5952 = vmatmul.mubr.bf16.gmra.mrb[4].mxu0 %v5692_v52  ;;  %v11137_v10 = vadd.f32 %v7780_v23, %v3266_v28  ;;  %v3267_v47 = vadd.f32 %v7671_v20, %v10743_v31  ;;  %5532 = vmatprep.mubr.bf16.mxu1 %v5201_v37  ;;  %v5208_v23 = vrot.slane %v5206_v46, 3  ;;  %v5696_v2 = vsel %vm5652_vm5, %v5691_v40, %v5695_v36 }
 0x2b8   : > { %5959 = vmatprep.mubr.bf16.mxu0 %v5698_v4  ;;  %v5219_v37 = vsel %vm4987_vm4, %v5200_v53, %v5218_v11  ;;  %v5702_v4 = vsel %vm5652_vm5, %v5697_v61, %v5701_v18  ;;  %v5221_v40 = vshrl.u32 %v11159_v58, 16  ;;  %v5224_v53 = vshll.u32 %v11159_v58, 16 }
 0x2b9   : > { %v11147_v33 = vadd.f32 %v7783_v60, %v3267_v47  ;;  %v7672_v1 = vpop.f32.mrb[156].mxu1  ;;  %v7784_v12 = vpop.f32.mrb[156].mxu0  ;;  %v5209_v45 = vor.u32 %v5208_v23, %v5205_v34  ;;  %v5236_v3 = vor.u32 %v5235_v32, %v5232_v63 }
 0x2ba   : > { %v7673_v52 = vpop.f32.mrb[157].mxu1  ;;  %v7785_v31 = vpop.f32.mrb[157].mxu0 }
 0x2bb   : > { %v7674_v26 = vadd.f32 %v7673_v52, %v7672_v1  ;;  %v7786_v48 = vadd.f32 %v7785_v31, %v7784_v12  ;;  %v7675_v15 = vpop.f32.mrb[158].mxu1  ;;  %v7787_v49 = vpop.f32.mrb[158].mxu0  ;;  %v5705_v1 = vrot.slane %v11143_v39, 3  ;;  %v5237_v63 = vsel %vm4987_vm4, %v5218_v11, %v5236_v3  ;;  %v11435_v11 = vld [vmem:[#allocation10_spill] sm:$0xff] }
 0x2bc   : > { %v7676_v16 = vpop.f32.mrb[159].mxu1  ;;  %v7788_v5 = vpop.f32.mrb[159].mxu0 }
 0x2bd   : > { %v3268_v28 = vadd.f32 %v7674_v26, %v10756_v21  ;;  %v7677_v20 = vadd.f32 %v7676_v16, %v7675_v15  ;;  %v7789_v60 = vadd.f32 %v7788_v5, %v7787_v49  ;;  %v11167_v21 = vld [vmem:[%s9076_s26 + $0x104] ss:$8 sps:$4 sm:$0xff]   ;;  %v5210_v26 = vsel %vm4987_vm4, %v5191_v25, %v5209_v45 }
 0x2be   : > { %5533 = vmatmul.mubr.bf16.gmra.mrb[8].mxu1 %v5192_v43  ;;  %v5248_v47 = vshrl.u32 %v11167_v21, 16  ;;  %v5251_v7 = vshll.u32 %v11167_v21, 16  ;;  %v5226_v15 = vrot.slane %v5224_v53, 3  ;;  %v5706_v32 = vsel %vm5652_vm5, %v5701_v18, %v5705_v1 }
 0x2bf   : > { %5960 = vmatmul.mubr.bf16.gmra.mrb[8].mxu0 %v5696_v2  ;;  %v11163_v46 = vadd.f32 %v7786_v48, %v3268_v28  ;;  %v3269_v61 = vadd.f32 %v7677_v20, %v10763_v41  ;;  %5540 = vmatprep.mubr.bf16.mxu1 %v5219_v37  ;;  %v5700_v41 = vsel %vm5652_vm5, %v5695_v36, %v5699_v19  ;;  %v5223_v48 = vrot.slane %v5221_v40, 2 }
 0x2c0   : > { %5967 = vmatprep.mubr.bf16.mxu0 %v5702_v4  ;;  %v5250_v39 = vrot.slane %v5248_v47, 2  ;;  %v5253_v5 = vrot.slane %v5251_v7, 3  ;;  %v5709_v7 = vrot.slane %v11167_v21, 3 }
 0x2c1   : > { %v11172_v12 = vadd.f32 %v7789_v60, %v3269_v61  ;;  %v7806_v52 = vpop.f32.mrb[160].mxu1  ;;  %v7918_v31 = vpop.f32.mrb[160].mxu0  ;;  %v5227_v20 = vor.u32 %v5226_v15, %v5223_v48  ;;  %v11182_v60 = vld [vmem:[%s9076_s26 + $0x100] ss:$8 sps:$4 sm:$0xff]  }
 0x2c2   : > { %v7807_v34 = vpop.f32.mrb[161].mxu1  ;;  %v7919_v23 = vpop.f32.mrb[161].mxu0  ;;  %v5239_v40 = vshrl.u32 %v11182_v60, 16  ;;  %v5242_v53 = vshll.u32 %v11182_v60, 16  ;;  %v5254_v18 = vor.u32 %v5253_v5, %v5250_v39  ;;  %v4948_v48 = vld [vmem:[%s9076_s26 + $0x120] sm:$0x77] }
 0x2c3   : > { %v7808_v49 = vadd.f32 %v7807_v34, %v7806_v52  ;;  %v7920_v43 = vadd.f32 %v7919_v23, %v7918_v31  ;;  %v7809_v2 = vpop.f32.mrb[162].mxu1  ;;  %v7921_v16 = vpop.f32.mrb[162].mxu0  ;;  %v11192_v52 = vld [vmem:[%s9076_s26 + $0x114] ss:$8 sps:$4 sm:$0xff]  }
 0x2c4   : > { %v7810_v37 = vpop.f32.mrb[163].mxu1  ;;  %v7922_v4 = vpop.f32.mrb[163].mxu0  ;;  %v5266_v31 = vshrl.u32 %v11192_v52, 16  ;;  %v5269_v34 = vshll.u32 %v11192_v52, 16 }
 0x2c5   : > { %v4330_v25 = vadd.f32 %v7808_v49, %v10776_v13  ;;  %v7811_v28 = vadd.f32 %v7810_v37, %v7809_v2  ;;  %v7923_v36 = vadd.f32 %v7922_v4, %v7921_v16  ;;  %v5703_v13 = vrot.slane %v11159_v58, 3 }
 0x2c6   : > { %5541 = vmatmul.mubr.bf16.gmra.mrb[12].mxu1 %v5210_v26  ;;  %v5241_v2 = vrot.slane %v5239_v40, 2  ;;  %v5244_v58 = vrot.slane %v5242_v53, 3  ;;  %v5255_v4 = vsel %vm4987_vm4, %v5236_v3, %v5254_v18  ;;  %v11436_v40 = vld [vmem:[#allocation12_spill] sm:$0xff]  ;;  %v5260_v3 = vshll.u32 %v11209_v56, 16 }
 0x2c7   : > { %5968 = vmatmul.mubr.bf16.gmra.mrb[12].mxu0 %v5700_v41  ;;  %v11186_v61 = vadd.f32 %v7920_v43, %v4330_v25  ;;  %v4331_v47 = vadd.f32 %v7811_v28, %v11435_v11  ;;  %5548 = vmatprep.mubr.bf16.mxu1 %v5237_v63  ;;  %v5228_v43 = vsel %vm4987_vm4, %v5209_v45, %v5227_v20  ;;  %v5268_v28 = vrot.slane %v5266_v31, 2 }
 0x2c8   : > { %5975 = vmatprep.mubr.bf16.mxu0 %v5706_v32  ;;  %v5704_v37 = vsel %vm5652_vm5, %v5699_v19, %v5703_v13  ;;  %v5710_v25 = vsel %vm5652_vm5, %v5705_v1, %v5709_v7  ;;  %v11205_v45 = vcombine.high %v4948_v48, %v4948_v48  ;;  %v5257_v19 = vshrl.u32 %v11209_v56, 16  ;;  %v11438_v1 = vld [vmem:[#allocation11_spill] sm:$0xff] }
 0x2c9   : > { %v11196_v23 = vadd.f32 %v7923_v36, %v4331_v47  ;;  %v7812_v26 = vpop.f32.mrb[164].mxu1  ;;  %v7924_v41 = vpop.f32.mrb[164].mxu0  ;;  %v5271_v36 = vrot.slane %v5269_v34, 3  ;;  %v5707_v34 = vrot.slane %v11182_v60, 3 }
 0x2ca   : > { %v7813_v15 = vpop.f32.mrb[165].mxu1  ;;  %v7925_v49 = vpop.f32.mrb[165].mxu0 }
 0x2cb   : > { %v7814_v16 = vadd.f32 %v7813_v15, %v7812_v26  ;;  %v7926_v39 = vadd.f32 %v7925_v49, %v7924_v41  ;;  %v7815_v21 = vpop.f32.mrb[166].mxu1  ;;  %v7927_v5 = vpop.f32.mrb[166].mxu0  ;;  %v5245_v26 = vor.u32 %v5244_v58, %v5241_v2  ;;  %v5272_v15 = vor.u32 %v5271_v36, %v5268_v28 }
 0x2cc   : > { %v7816_v63 = vpop.f32.mrb[167].mxu1  ;;  %v7928_v32 = vpop.f32.mrb[167].mxu0  ;;  %v5713_v49 = vrot.slane %v11192_v52, 3  ;;  %v5287_v2 = vshll.u32 %v11205_v45, 16  ;;  %v5708_v52 = vsel %vm5652_vm5, %v5703_v13, %v5707_v34  ;;  %v6991_v36 = vcombine.low %v4948_v48, %v4948_v48  ;;  %v11441_v13 = vld [vmem:[#allocation13_spill] sm:$0xff] }
 0x2cd   : > { %v4332_v53 = vadd.f32 %v7814_v16, %v11436_v40  ;;  %v7817_v11 = vadd.f32 %v7816_v63, %v7815_v21  ;;  %v7929_v47 = vadd.f32 %v7928_v32, %v7927_v5  ;;  %v5259_v63 = vrot.slane %v5257_v19, 2 }
 0x2ce   : > { %5549 = vmatmul.mubr.bf16.gmra.mrb[16].mxu1 %v5228_v43  ;;  %v5284_v43 = vshrl.u32 %v11205_v45, 16 }
 0x2cf   : > { %5976 = vmatmul.mubr.bf16.gmra.mrb[16].mxu0 %v5704_v37  ;;  %v11213_v41 = vadd.f32 %v7926_v39, %v4332_v53  ;;  %v4333_v31 = vadd.f32 %v7817_v11, %v11438_v1  ;;  %5556 = vmatprep.mubr.bf16.mxu1 %v5255_v4  ;;  %v5246_v37 = vsel %vm4987_vm4, %v5227_v20, %v5245_v26  ;;  %v5262_v4 = vrot.slane %v5260_v3, 3 }
 0x2d0   : > { %5983 = vmatprep.mubr.bf16.mxu0 %v5710_v25  ;;  %v5273_v11 = vsel %vm4987_vm4, %v5254_v18, %v5272_v15  ;;  %v5286_v1 = vrot.slane %v5284_v43, 2  ;;  %v5275_v18 = vshrl.u32 %v6991_v36, 16  ;;  %v5717_v43 = vrot.slane %v11205_v45, 3 }
 0x2d1   : > { %11437 = vst [vmem:[#allocation14_spill] sm:$0xff] %v11213_v41  ;;  %v11220_v58 = vadd.f32 %v7929_v47, %v4333_v31  ;;  %v7818_v16 = vpop.f32.mrb[168].mxu1  ;;  %v5714_v47 = vsel %vm5652_vm5, %v5709_v7, %v5713_v49  ;;  %v5289_v31 = vrot.slane %v5287_v2, 3  ;;  %v5263_v3 = vor.u32 %v5262_v4, %v5259_v63 }
 0x2d2   : > { %v7930_v21 = vpop.f32.mrb[168].mxu0  ;;  %v7819_v5 = vpop.f32.mrb[169].mxu1 }
 0x2d3   : > { %11439 = vst [vmem:[#allocation10_spill] sm:$0xff] %v11220_v58  ;;  %v7931_v39 = vpop.f32.mrb[169].mxu0  ;;  %v7820_v32 = vadd.f32 %v7819_v5, %v7818_v16  ;;  %v7821_v60 = vpop.f32.mrb[170].mxu1  ;;  %v11440_v58 = vld [vmem:[#allocation15_spill] sm:$0xff]  ;;  %v5711_v16 = vrot.slane %v11209_v56, 3  ;;  %v5278_v5 = vshll.u32 %v6991_v36, 16  ;;  %v5290_v7 = vor.u32 %v5289_v31, %v5286_v1 }
 0x2d4   : > { %v7932_v25 = vadd.f32 %v7931_v39, %v7930_v21  ;;  %v7933_v28 = vpop.f32.mrb[170].mxu0  ;;  %v7822_v40 = vpop.f32.mrb[171].mxu1  ;;  %v5264_v63 = vsel %vm4987_vm4, %v5245_v26, %v5263_v3 }
 0x2d5   : > { %v7934_v53 = vpop.f32.mrb[171].mxu0  ;;  %v4334_v41 = vadd.f32 %v7820_v32, %v11440_v58  ;;  %v7823_v20 = vadd.f32 %v7822_v40, %v7821_v60  ;;  %v5712_v56 = vsel %vm5652_vm5, %v5707_v34, %v5711_v16  ;;  %v5291_v45 = vsel %vm4987_vm4, %v5272_v15, %v5290_v7 }
 0x2d6   : > { %v7935_v19 = vadd.f32 %v7934_v53, %v7933_v28  ;;  %5557 = vmatmul.mubr.bf16.gmra.mrb[20].mxu1 %v5246_v37  ;;  %v5277_v28 = vrot.slane %v5275_v18, 2 }
 0x2d7   : > { %5984 = vmatmul.mubr.bf16.gmra.mrb[20].mxu0 %v5708_v52  ;;  %v11228_v21 = vadd.f32 %v7932_v25, %v4334_v41  ;;  %v4335_v48 = vadd.f32 %v7823_v20, %v11441_v13  ;;  %5564 = vmatprep.mubr.bf16.mxu1 %v5273_v11  ;;  %v5280_v52 = vrot.slane %v5278_v5, 3  ;;  %v5718_v11 = vsel %vm5652_vm5, %v5713_v49, %v5717_v43 }
 0x2d8   : > { %5991 = vmatprep.mubr.bf16.mxu0 %v5714_v47 }
 0x2d9   : > { %v11232_v2 = vadd.f32 %v7935_v19, %v4335_v48  ;;  %v7824_v58 = vpop.f32.mrb[172].mxu1  ;;  %v5281_v20 = vor.u32 %v5280_v52, %v5277_v28  ;;  %v5715_v19 = vrot.slane %v6991_v36, 3 }
 0x2da   : > { %v7936_v39 = vpop.f32.mrb[172].mxu0  ;;  %v7825_v37 = vpop.f32.mrb[173].mxu1 }
 0x2db   : > { %v7937_v32 = vpop.f32.mrb[173].mxu0  ;;  %v7826_v41 = vadd.f32 %v7825_v37, %v7824_v58  ;;  %v7827_v25 = vpop.f32.mrb[174].mxu1  ;;  %v5282_v58 = vsel %vm4987_vm4, %v5263_v3, %v5281_v20 }
 0x2dc   : > { %v7938_v4 = vadd.f32 %v7937_v32, %v7936_v39  ;;  %v7939_v60 = vpop.f32.mrb[174].mxu0  ;;  %v7828_v40 = vpop.f32.mrb[175].mxu1  ;;  %v5716_v39 = vsel %vm5652_vm5, %v5711_v16, %v5715_v19 }
 0x2dd   : > { %v7940_v53 = vpop.f32.mrb[175].mxu0  ;;  %v4336_v47 = vadd.f32 %v7826_v41, %v10850_v51  ;;  %v7829_v1 = vadd.f32 %v7828_v40, %v7827_v25 }
 0x2de   : > { %v7941_v31 = vadd.f32 %v7940_v53, %v7939_v60  ;;  %5565 = vmatmul.mubr.bf16.gmra.mrb[24].mxu1 %v5264_v63 }
 0x2df   : > { %5992 = vmatmul.mubr.bf16.gmra.mrb[24].mxu0 %v5712_v56  ;;  %v11239_v26 = vadd.f32 %v7938_v4, %v4336_v47  ;;  %v4337_v34 = vadd.f32 %v7829_v1, %v10866_v22  ;;  %5572 = vmatprep.mubr.bf16.mxu1 %v5291_v45 }
 0x2e0   : > { %5999 = vmatprep.mubr.bf16.mxu0 %v5718_v11 }
 0x2e1   : > { %v11242_v13 = vadd.f32 %v7941_v31, %v4337_v34  ;;  %v7830_v48 = vpop.f32.mrb[176].mxu1 }
 0x2e2   : > { %v7942_v15 = vpop.f32.mrb[176].mxu0  ;;  %v7831_v18 = vpop.f32.mrb[177].mxu1 }
 0x2e3   : > { %v7943_v49 = vpop.f32.mrb[177].mxu0  ;;  %v7832_v5 = vadd.f32 %v7831_v18, %v7830_v48  ;;  %v7833_v7 = vpop.f32.mrb[178].mxu1 }
 0x2e4   : > { %v7944_v51 = vadd.f32 %v7943_v49, %v7942_v15  ;;  %v7945_v43 = vpop.f32.mrb[178].mxu0  ;;  %v7834_v37 = vpop.f32.mrb[179].mxu1 }
 0x2e5   : > { %v7946_v22 = vpop.f32.mrb[179].mxu0  ;;  %v4338_v32 = vadd.f32 %v7832_v5, %v10885_v54  ;;  %v7835_v63 = vadd.f32 %v7834_v37, %v7833_v7 }
 0x2e6   : > { %v7947_v36 = vadd.f32 %v7946_v22, %v7945_v43  ;;  %5573 = vmatmul.mubr.bf16.gmra.mrb[28].mxu1 %v5282_v58 }
 0x2e7   : > { %6000 = vmatmul.mubr.bf16.gmra.mrb[28].mxu0 %v5716_v39  ;;  %v11247_v56 = vadd.f32 %v7944_v51, %v4338_v32  ;;  %v4339_v41 = vadd.f32 %v7835_v63, %v10895_v44 }
 0x2e9   : > { %v11250_v4 = vadd.f32 %v7947_v36, %v4339_v41  ;;  %v7836_v25 = vpop.f32.mrb[180].mxu1 }
 0x2ea   : > { %v7948_v60 = vpop.f32.mrb[180].mxu0  ;;  %v7837_v28 = vpop.f32.mrb[181].mxu1 }
 0x2eb   : > { %v7949_v3 = vpop.f32.mrb[181].mxu0  ;;  %v7838_v52 = vadd.f32 %v7837_v28, %v7836_v25  ;;  %v7839_v40 = vpop.f32.mrb[182].mxu1 }
 0x2ec   : > { %v7950_v16 = vadd.f32 %v7949_v3, %v7948_v60  ;;  %v7951_v53 = vpop.f32.mrb[182].mxu0  ;;  %v7840_v45 = vpop.f32.mrb[183].mxu1 }
 0x2ed   : > { %v7952_v54 = vpop.f32.mrb[183].mxu0  ;;  %v4340_v11 = vadd.f32 %v7838_v52, %v10908_v29  ;;  %v7841_v47 = vadd.f32 %v7840_v45, %v7839_v40 }
 0x2ee   : > { %v7953_v1 = vadd.f32 %v7952_v54, %v7951_v53 }
 0x2ef   : > { %v11253_v31 = vadd.f32 %v7950_v16, %v4340_v11  ;;  %v4341_v44 = vadd.f32 %v7841_v47, %v10922_v9 }
 0x2f1   : > { %v11256_v34 = vadd.f32 %v7953_v1, %v4341_v44  ;;  %v7842_v20 = vpop.f32.mrb[184].mxu1 }
 0x2f2   : > { %v7954_v19 = vpop.f32.mrb[184].mxu0  ;;  %v7843_v48 = vpop.f32.mrb[185].mxu1 }
 0x2f3   : > { %v7955_v15 = vpop.f32.mrb[185].mxu0  ;;  %v7844_v18 = vadd.f32 %v7843_v48, %v7842_v20  ;;  %v7845_v5 = vpop.f32.mrb[186].mxu1 }
 0x2f4   : > { %v7956_v49 = vadd.f32 %v7955_v15, %v7954_v19  ;;  %v7957_v51 = vpop.f32.mrb[186].mxu0  ;;  %v7846_v7 = vpop.f32.mrb[187].mxu1 }
 0x2f5   : > { %v7958_v43 = vpop.f32.mrb[187].mxu0  ;;  %v4342_v29 = vadd.f32 %v7844_v18, %v10937_v62  ;;  %v7847_v58 = vadd.f32 %v7846_v7, %v7845_v5 }
 0x2f6   : > { %v7959_v39 = vadd.f32 %v7958_v43, %v7957_v51 }
 0x2f7   : > { %v11259_v37 = vadd.f32 %v7956_v49, %v4342_v29  ;;  %v4343_v9 = vadd.f32 %v7847_v58, %v10947_v50 }
 0x2f9   : > { %v11262_v22 = vadd.f32 %v7959_v39, %v4343_v9  ;;  %v7848_v32 = vpop.f32.mrb[188].mxu1 }
 0x2fa   : > { %v7960_v63 = vpop.f32.mrb[188].mxu0  ;;  %v7849_v36 = vpop.f32.mrb[189].mxu1 }
 0x2fb   : > { %v7961_v41 = vpop.f32.mrb[189].mxu0  ;;  %v7850_v25 = vadd.f32 %v7849_v36, %v7848_v32  ;;  %v7851_v28 = vpop.f32.mrb[190].mxu1 }
 0x2fc   : > { %v7962_v60 = vadd.f32 %v7961_v41, %v7960_v63  ;;  %v7963_v3 = vpop.f32.mrb[190].mxu0  ;;  %v7852_v52 = vpop.f32.mrb[191].mxu1 }
 0x2fd   : > { %v7964_v16 = vpop.f32.mrb[191].mxu0  ;;  %v4344_v62 = vadd.f32 %v7850_v25, %v10960_v24  ;;  %v7853_v40 = vadd.f32 %v7852_v52, %v7851_v28 }
 0x2fe   : > { %v7965_v53 = vadd.f32 %v7964_v16, %v7963_v3 }
 0x2ff   : > { %v11265_v45 = vadd.f32 %v7962_v60, %v4344_v62  ;;  %v4345_v50 = vadd.f32 %v7853_v40, %v10974_v42 }
 0x301   : > { %v11268_v54 = vadd.f32 %v7965_v53, %v4345_v50  ;;  %v7854_v11 = vpop.f32.mrb[192].mxu1 }
 0x302   : > { %v7966_v47 = vpop.f32.mrb[192].mxu0  ;;  %v7855_v1 = vpop.f32.mrb[193].mxu1 }
 0x303   : > { %v7967_v44 = vpop.f32.mrb[193].mxu0  ;;  %v7856_v20 = vadd.f32 %v7855_v1, %v7854_v11  ;;  %v7857_v48 = vpop.f32.mrb[194].mxu1 }
 0x304   : > { %v7968_v19 = vadd.f32 %v7967_v44, %v7966_v47  ;;  %v7969_v15 = vpop.f32.mrb[194].mxu0  ;;  %v7858_v18 = vpop.f32.mrb[195].mxu1 }
 0x305   : > { %v7970_v49 = vpop.f32.mrb[195].mxu0  ;;  %v4346_v24 = vadd.f32 %v7856_v20, %v10989_v17  ;;  %v7859_v5 = vadd.f32 %v7858_v18, %v7857_v48 }
 0x306   : > { %v7971_v51 = vadd.f32 %v7970_v49, %v7969_v15 }
 0x307   : > { %v11271_v7 = vadd.f32 %v7968_v19, %v4346_v24  ;;  %v4347_v42 = vadd.f32 %v7859_v5, %v10999_v0 }
 0x309   : > { %v11274_v43 = vadd.f32 %v7971_v51, %v4347_v42  ;;  %v7860_v29 = vpop.f32.mrb[196].mxu1 }
 0x30a   : > { %v7972_v58 = vpop.f32.mrb[196].mxu0  ;;  %v7861_v39 = vpop.f32.mrb[197].mxu1 }
 0x30b   : > { %v7973_v9 = vpop.f32.mrb[197].mxu0  ;;  %v7862_v32 = vadd.f32 %v7861_v39, %v7860_v29  ;;  %v7863_v36 = vpop.f32.mrb[198].mxu1 }
 0x30c   : > { %v7974_v63 = vadd.f32 %v7973_v9, %v7972_v58  ;;  %v7975_v41 = vpop.f32.mrb[198].mxu0  ;;  %v7864_v25 = vpop.f32.mrb[199].mxu1 }
 0x30d   : > { %v7976_v60 = vpop.f32.mrb[199].mxu0  ;;  %v4348_v17 = vadd.f32 %v7862_v32, %v11012_v59  ;;  %v7865_v28 = vadd.f32 %v7864_v25, %v7863_v36 }
 0x30e   : > { %v7977_v3 = vadd.f32 %v7976_v60, %v7975_v41 }
 0x30f   : > { %v11277_v52 = vadd.f32 %v7974_v63, %v4348_v17  ;;  %v4349_v0 = vadd.f32 %v7865_v28, %v11026_v55 }
 0x311   : > { %v11280_v16 = vadd.f32 %v7977_v3, %v4349_v0  ;;  %v7866_v62 = vpop.f32.mrb[200].mxu1 }
 0x312   : > { %v7978_v40 = vpop.f32.mrb[200].mxu0  ;;  %v7867_v53 = vpop.f32.mrb[201].mxu1 }
 0x313   : > { %v7979_v50 = vpop.f32.mrb[201].mxu0  ;;  %v7868_v11 = vadd.f32 %v7867_v53, %v7866_v62  ;;  %v7869_v1 = vpop.f32.mrb[202].mxu1 }
 0x314   : > { %v7980_v47 = vadd.f32 %v7979_v50, %v7978_v40  ;;  %v7981_v44 = vpop.f32.mrb[202].mxu0  ;;  %v7870_v20 = vpop.f32.mrb[203].mxu1 }
 0x315   : > { %v7982_v19 = vpop.f32.mrb[203].mxu0  ;;  %v4350_v59 = vadd.f32 %v7868_v11, %v11041_v14  ;;  %v7871_v48 = vadd.f32 %v7870_v20, %v7869_v1 }
 0x316   : > { %v7983_v15 = vadd.f32 %v7982_v19, %v7981_v44 }
 0x317   : > { %v11283_v18 = vadd.f32 %v7980_v47, %v4350_v59  ;;  %v4351_v55 = vadd.f32 %v7871_v48, %v11051_v38 }
 0x319   : > { %v11286_v49 = vadd.f32 %v7983_v15, %v4351_v55  ;;  %v7872_v24 = vpop.f32.mrb[204].mxu1 }
 0x31a   : > { %v7984_v5 = vpop.f32.mrb[204].mxu0  ;;  %v7873_v51 = vpop.f32.mrb[205].mxu1 }
 0x31b   : > { %v7985_v42 = vpop.f32.mrb[205].mxu0  ;;  %v7874_v29 = vadd.f32 %v7873_v51, %v7872_v24  ;;  %v7875_v39 = vpop.f32.mrb[206].mxu1 }
 0x31c   : > { %v7986_v58 = vadd.f32 %v7985_v42, %v7984_v5  ;;  %v7987_v9 = vpop.f32.mrb[206].mxu0  ;;  %v7876_v32 = vpop.f32.mrb[207].mxu1 }
 0x31d   : > { %v7988_v63 = vpop.f32.mrb[207].mxu0  ;;  %v4352_v14 = vadd.f32 %v7874_v29, %v11062_v30  ;;  %v7877_v36 = vadd.f32 %v7876_v32, %v7875_v39 }
 0x31e   : > { %v7989_v41 = vadd.f32 %v7988_v63, %v7987_v9 }
 0x31f   : > { %v11289_v25 = vadd.f32 %v7986_v58, %v4352_v14  ;;  %v4353_v38 = vadd.f32 %v7877_v36, %v11076_v27 }
 0x321   : > { %v11292_v60 = vadd.f32 %v7989_v41, %v4353_v38  ;;  %v7878_v17 = vpop.f32.mrb[208].mxu1 }
 0x322   : > { %v7990_v28 = vpop.f32.mrb[208].mxu0  ;;  %v7879_v3 = vpop.f32.mrb[209].mxu1 }
 0x323   : > { %v7991_v0 = vpop.f32.mrb[209].mxu0  ;;  %v7880_v62 = vadd.f32 %v7879_v3, %v7878_v17  ;;  %v7881_v53 = vpop.f32.mrb[210].mxu1 }
 0x324   : > { %v7992_v40 = vadd.f32 %v7991_v0, %v7990_v28  ;;  %v7993_v50 = vpop.f32.mrb[210].mxu0  ;;  %v7882_v11 = vpop.f32.mrb[211].mxu1 }
 0x325   : > { %v7994_v47 = vpop.f32.mrb[211].mxu0  ;;  %v4354_v30 = vadd.f32 %v7880_v62, %v11088_v8  ;;  %v7883_v1 = vadd.f32 %v7882_v11, %v7881_v53 }
 0x326   : > { %v7995_v44 = vadd.f32 %v7994_v47, %v7993_v50 }
 0x327   : > { %v11295_v20 = vadd.f32 %v7992_v40, %v4354_v30  ;;  %v4355_v27 = vadd.f32 %v7883_v1, %v11098_v57 }
 0x329   : > { %v11298_v19 = vadd.f32 %v7995_v44, %v4355_v27  ;;  %v7884_v59 = vpop.f32.mrb[212].mxu1 }
 0x32a   : > { %v7996_v48 = vpop.f32.mrb[212].mxu0  ;;  %v7885_v15 = vpop.f32.mrb[213].mxu1 }
 0x32b   : > { %v7997_v55 = vpop.f32.mrb[213].mxu0  ;;  %v7886_v24 = vadd.f32 %v7885_v15, %v7884_v59  ;;  %v7887_v51 = vpop.f32.mrb[214].mxu1 }
 0x32c   : > { %v7998_v5 = vadd.f32 %v7997_v55, %v7996_v48  ;;  %v7999_v42 = vpop.f32.mrb[214].mxu0  ;;  %v7888_v29 = vpop.f32.mrb[215].mxu1 }
 0x32d   : > { %v8000_v58 = vpop.f32.mrb[215].mxu0  ;;  %v4356_v8 = vadd.f32 %v7886_v24, %v11108_v35  ;;  %v7889_v39 = vadd.f32 %v7888_v29, %v7887_v51 }
 0x32e   : > { %v8001_v9 = vadd.f32 %v8000_v58, %v7999_v42 }
 0x32f   : > { %v11301_v32 = vadd.f32 %v7998_v5, %v4356_v8  ;;  %v4357_v57 = vadd.f32 %v7889_v39, %v11122_v6 }
 0x331   : > { %v11304_v63 = vadd.f32 %v8001_v9, %v4357_v57  ;;  %v7890_v14 = vpop.f32.mrb[216].mxu1 }
 0x332   : > { %v8002_v36 = vpop.f32.mrb[216].mxu0  ;;  %v7891_v41 = vpop.f32.mrb[217].mxu1 }
 0x333   : > { %v8003_v38 = vpop.f32.mrb[217].mxu0  ;;  %v7892_v17 = vadd.f32 %v7891_v41, %v7890_v14  ;;  %v7893_v3 = vpop.f32.mrb[218].mxu1 }
 0x334   : > { %v8004_v28 = vadd.f32 %v8003_v38, %v8002_v36  ;;  %v8005_v0 = vpop.f32.mrb[218].mxu0  ;;  %v7894_v62 = vpop.f32.mrb[219].mxu1 }
 0x335   : > { %v8006_v40 = vpop.f32.mrb[219].mxu0  ;;  %v4358_v35 = vadd.f32 %v7892_v17, %v11137_v10  ;;  %v7895_v53 = vadd.f32 %v7894_v62, %v7893_v3 }
 0x336   : > { %v8007_v50 = vadd.f32 %v8006_v40, %v8005_v0 }
 0x337   : > { %v11307_v11 = vadd.f32 %v8004_v28, %v4358_v35  ;;  %v4359_v6 = vadd.f32 %v7895_v53, %v11147_v33 }
 0x339   : > { %v11310_v47 = vadd.f32 %v8007_v50, %v4359_v6  ;;  %v7896_v30 = vpop.f32.mrb[220].mxu1 }
 0x33a   : > { %v8008_v1 = vpop.f32.mrb[220].mxu0  ;;  %v7897_v44 = vpop.f32.mrb[221].mxu1 }
 0x33b   : > { %v8009_v27 = vpop.f32.mrb[221].mxu0  ;;  %v7898_v59 = vadd.f32 %v7897_v44, %v7896_v30  ;;  %v7899_v15 = vpop.f32.mrb[222].mxu1 }
 0x33c   : > { %v8010_v48 = vadd.f32 %v8009_v27, %v8008_v1  ;;  %v8011_v55 = vpop.f32.mrb[222].mxu0  ;;  %v7900_v24 = vpop.f32.mrb[223].mxu1 }
 0x33d   : > { %v8012_v5 = vpop.f32.mrb[223].mxu0  ;;  %v4360_v10 = vadd.f32 %v7898_v59, %v11163_v46  ;;  %v7901_v51 = vadd.f32 %v7900_v24, %v7899_v15  ;;  %v11442_v24 = vld [vmem:[#allocation14_spill] sm:$0xff] }
 0x33e   : > { %v8013_v42 = vadd.f32 %v8012_v5, %v8011_v55 }
 0x33f   : > { %v11313_v29 = vadd.f32 %v8010_v48, %v4360_v10  ;;  %v4361_v33 = vadd.f32 %v7901_v51, %v11172_v12 }
 0x341   : > { %v11316_v58 = vadd.f32 %v8013_v42, %v4361_v33  ;;  %v8030_v8 = vpop.f32.mrb[224].mxu1  ;;  %v11443_v42 = vld [vmem:[#allocation10_spill] sm:$0xff] }
 0x342   : > { %v8142_v39 = vpop.f32.mrb[224].mxu0  ;;  %v8031_v9 = vpop.f32.mrb[225].mxu1 }
 0x343   : > { %v8143_v57 = vpop.f32.mrb[225].mxu0  ;;  %v8032_v14 = vadd.f32 %v8031_v9, %v8030_v8  ;;  %v8033_v41 = vpop.f32.mrb[226].mxu1 }
 0x344   : > { %v8144_v36 = vadd.f32 %v8143_v57, %v8142_v39  ;;  %v8145_v38 = vpop.f32.mrb[226].mxu0  ;;  %v8034_v17 = vpop.f32.mrb[227].mxu1 }
 0x345   : > { %v8146_v28 = vpop.f32.mrb[227].mxu0  ;;  %v5581_v46 = vadd.f32 %v8032_v14, %v11186_v61  ;;  %v8035_v3 = vadd.f32 %v8034_v17, %v8033_v41 }
 0x346   : > { %v8147_v0 = vadd.f32 %v8146_v28, %v8145_v38 }
 0x347   : > { %v6008_v62 = vadd.f32 %v8144_v36, %v5581_v46  ;;  %v5582_v40 = vadd.f32 %v8035_v3, %v11196_v23 }
 0x349   : > { %v6009_v12 = vadd.f32 %v8147_v0, %v5582_v40  ;;  %v8036_v35 = vpop.f32.mrb[228].mxu1  ;;  %v6040_v30 = vmax.f32 %v6008_v62, 0.0 }
 0x34a   : > { %v8148_v53 = vpop.f32.mrb[228].mxu0  ;;  %v8037_v50 = vpop.f32.mrb[229].mxu1 }
 0x34b   : > { %v8149_v6 = vpop.f32.mrb[229].mxu0  ;;  %v6041_v1 = vmax.f32 %v6009_v12, 0.0  ;;  %v8038_v44 = vadd.f32 %v8037_v50, %v8036_v35  ;;  %v8039_v59 = vpop.f32.mrb[230].mxu1 }
 0x34c   : > { %v8150_v27 = vadd.f32 %v8149_v6, %v8148_v53  ;;  %v8151_v48 = vpop.f32.mrb[230].mxu0  ;;  %v8040_v15 = vpop.f32.mrb[231].mxu1 }
 0x34d   : > { %v8152_v55 = vpop.f32.mrb[231].mxu0  ;;  %v7138_v61 = vpack.c.bf16 %v6041_v1, %v6040_v30  ;;  %v5583_v5 = vadd.f32 %v8038_v44, %v11442_v24  ;;  %v8041_v10 = vadd.f32 %v8040_v15, %v8039_v59 }
 0x34e   : > { %v8153_v51 = vadd.f32 %v8152_v55, %v8151_v48 }
 0x34f   : > { %7139 = vst [vmem:[%s8772_s30] sm:$0xff] %v7138_v61   ;;  %v6010_v23 = vadd.f32 %v8150_v27, %v5583_v5  ;;  %v5584_v33 = vadd.f32 %v8041_v10, %v11443_v42 }
 0x351   : > { %v6011_v8 = vadd.f32 %v8153_v51, %v5584_v33  ;;  %v8042_v39 = vpop.f32.mrb[232].mxu1  ;;  %v6042_v36 = vmax.f32 %v6010_v23, 0.0 }
 0x352   : > { %v8154_v9 = vpop.f32.mrb[232].mxu0  ;;  %v8043_v57 = vpop.f32.mrb[233].mxu1 }
 0x353   : > { %v8155_v14 = vpop.f32.mrb[233].mxu0  ;;  %v6043_v41 = vmax.f32 %v6011_v8, 0.0  ;;  %v8044_v38 = vadd.f32 %v8043_v57, %v8042_v39  ;;  %v8045_v28 = vpop.f32.mrb[234].mxu1 }
 0x354   : > { %v8156_v17 = vadd.f32 %v8155_v14, %v8154_v9  ;;  %v8157_v46 = vpop.f32.mrb[234].mxu0  ;;  %v8046_v3 = vpop.f32.mrb[235].mxu1 }
 0x355   : > { %v8158_v0 = vpop.f32.mrb[235].mxu0  ;;  %v7143_v62 = vpack.c.bf16 %v6043_v41, %v6042_v36  ;;  %v5585_v40 = vadd.f32 %v8044_v38, %v11228_v21  ;;  %v8047_v12 = vadd.f32 %v8046_v3, %v8045_v28 }
 0x356   : > { %v8159_v35 = vadd.f32 %v8158_v0, %v8157_v46 }
 0x357   : > { %7215 = vst [vmem:[%s8772_s30 + $0x8] sm:$0xff] %v7143_v62   ;;  %v6012_v53 = vadd.f32 %v8156_v17, %v5585_v40  ;;  %v5586_v50 = vadd.f32 %v8047_v12, %v11232_v2 }
 0x359   : > { %v6013_v6 = vadd.f32 %v8159_v35, %v5586_v50  ;;  %v8048_v30 = vpop.f32.mrb[236].mxu1  ;;  %v6044_v59 = vmax.f32 %v6012_v53, 0.0 }
 0x35a   : > { %v8160_v1 = vpop.f32.mrb[236].mxu0  ;;  %v8049_v44 = vpop.f32.mrb[237].mxu1 }
 0x35b   : > { %v8161_v27 = vpop.f32.mrb[237].mxu0  ;;  %v6045_v48 = vmax.f32 %v6013_v6, 0.0  ;;  %v8050_v15 = vadd.f32 %v8049_v44, %v8048_v30  ;;  %v8051_v61 = vpop.f32.mrb[238].mxu1 }
 0x35c   : > { %v8162_v55 = vadd.f32 %v8161_v27, %v8160_v1  ;;  %v8163_v24 = vpop.f32.mrb[238].mxu0  ;;  %v8052_v5 = vpop.f32.mrb[239].mxu1 }
 0x35d   : > { %v8164_v21 = vpop.f32.mrb[239].mxu0  ;;  %v7148_v10 = vpack.c.bf16 %v6045_v48, %v6044_v59  ;;  %v5587_v51 = vadd.f32 %v8050_v15, %v11239_v26  ;;  %v8053_v23 = vadd.f32 %v8052_v5, %v8051_v61 }
 0x35e   : > { %v8165_v42 = vadd.f32 %v8164_v21, %v8163_v24 }
 0x35f   : > { %7216 = vst [vmem:[%s8772_s30 + $0x10] sm:$0xff] %v7148_v10   ;;  %v6014_v2 = vadd.f32 %v8162_v55, %v5587_v51  ;;  %v5588_v33 = vadd.f32 %v8053_v23, %v11242_v13 }
 0x361   : > { %v6015_v8 = vadd.f32 %v8165_v42, %v5588_v33  ;;  %v8054_v39 = vpop.f32.mrb[240].mxu1  ;;  %v6046_v36 = vmax.f32 %v6014_v2, 0.0 }
 0x362   : > { %v8166_v9 = vpop.f32.mrb[240].mxu0  ;;  %v8055_v57 = vpop.f32.mrb[241].mxu1 }
 0x363   : > { %v8167_v14 = vpop.f32.mrb[241].mxu0  ;;  %v6047_v41 = vmax.f32 %v6015_v8, 0.0  ;;  %v8056_v38 = vadd.f32 %v8055_v57, %v8054_v39  ;;  %v8057_v28 = vpop.f32.mrb[242].mxu1 }
 0x364   : > { %v8168_v17 = vadd.f32 %v8167_v14, %v8166_v9  ;;  %v8169_v46 = vpop.f32.mrb[242].mxu0  ;;  %v8058_v3 = vpop.f32.mrb[243].mxu1 }
 0x365   : > { %v8170_v26 = vpop.f32.mrb[243].mxu0  ;;  %v7153_v0 = vpack.c.bf16 %v6047_v41, %v6046_v36  ;;  %v5589_v62 = vadd.f32 %v8056_v38, %v11247_v56  ;;  %v8059_v40 = vadd.f32 %v8058_v3, %v8057_v28 }
 0x366   : > { %v8171_v12 = vadd.f32 %v8170_v26, %v8169_v46 }
 0x367   : > { %7217 = vst [vmem:[%s8772_s30 + $0x18] sm:$0xff] %v7153_v0   ;;  %v6016_v13 = vadd.f32 %v8168_v17, %v5589_v62  ;;  %v5590_v35 = vadd.f32 %v8059_v40, %v11250_v4 }
 0x369   : > { %v6017_v53 = vadd.f32 %v8171_v12, %v5590_v35  ;;  %v8060_v50 = vpop.f32.mrb[244].mxu1  ;;  %v6048_v44 = vmax.f32 %v6016_v13, 0.0 }
 0x36a   : > { %v8172_v6 = vpop.f32.mrb[244].mxu0  ;;  %v8061_v30 = vpop.f32.mrb[245].mxu1 }
 0x36b   : > { %v8173_v1 = vpop.f32.mrb[245].mxu0  ;;  %v6049_v27 = vmax.f32 %v6017_v53, 0.0  ;;  %v8062_v59 = vadd.f32 %v8061_v30, %v8060_v50  ;;  %v8063_v15 = vpop.f32.mrb[246].mxu1 }
 0x36c   : > { %v8174_v48 = vadd.f32 %v8173_v1, %v8172_v6  ;;  %v8175_v55 = vpop.f32.mrb[246].mxu0  ;;  %v8064_v61 = vpop.f32.mrb[247].mxu1 }
 0x36d   : > { %v8176_v56 = vpop.f32.mrb[247].mxu0  ;;  %v7158_v24 = vpack.c.bf16 %v6049_v27, %v6048_v44  ;;  %v5591_v5 = vadd.f32 %v8062_v59, %v11253_v31  ;;  %v8065_v21 = vadd.f32 %v8064_v61, %v8063_v15 }
 0x36e   : > { %v8177_v10 = vadd.f32 %v8176_v56, %v8175_v55 }
 0x36f   : > { %7218 = vst [vmem:[%s8772_s30 + $0x20] sm:$0xff] %v7158_v24   ;;  %v6018_v4 = vadd.f32 %v8174_v48, %v5591_v5  ;;  %v5592_v51 = vadd.f32 %v8065_v21, %v11256_v34 }
 0x371   : > { %v6019_v23 = vadd.f32 %v8177_v10, %v5592_v51  ;;  %v8066_v42 = vpop.f32.mrb[248].mxu1  ;;  %v6050_v39 = vmax.f32 %v6018_v4, 0.0 }
 0x372   : > { %v8178_v2 = vpop.f32.mrb[248].mxu0  ;;  %v8067_v33 = vpop.f32.mrb[249].mxu1 }
 0x373   : > { %v8179_v8 = vpop.f32.mrb[249].mxu0  ;;  %v6051_v9 = vmax.f32 %v6019_v23, 0.0  ;;  %v8068_v57 = vadd.f32 %v8067_v33, %v8066_v42  ;;  %v8069_v36 = vpop.f32.mrb[250].mxu1 }
 0x374   : > { %v8180_v14 = vadd.f32 %v8179_v8, %v8178_v2  ;;  %v8181_v41 = vpop.f32.mrb[250].mxu0  ;;  %v8070_v38 = vpop.f32.mrb[251].mxu1 }
 0x375   : > { %v8182_v31 = vpop.f32.mrb[251].mxu0  ;;  %v7163_v17 = vpack.c.bf16 %v6051_v9, %v6050_v39  ;;  %v5593_v28 = vadd.f32 %v8068_v57, %v11259_v37  ;;  %v8071_v46 = vadd.f32 %v8070_v38, %v8069_v36 }
 0x376   : > { %v8183_v3 = vadd.f32 %v8182_v31, %v8181_v41 }
 0x377   : > { %7219 = vst [vmem:[%s8772_s30 + $0x28] sm:$0xff] %v7163_v17   ;;  %v6020_v34 = vadd.f32 %v8180_v14, %v5593_v28  ;;  %v5594_v26 = vadd.f32 %v8071_v46, %v11262_v22 }
 0x379   : > { %v6021_v0 = vadd.f32 %v8183_v3, %v5594_v26  ;;  %v8072_v62 = vpop.f32.mrb[252].mxu1  ;;  %v6052_v35 = vmax.f32 %v6020_v34, 0.0 }
 0x37a   : > { %v8184_v40 = vpop.f32.mrb[252].mxu0  ;;  %v8073_v12 = vpop.f32.mrb[253].mxu1 }
 0x37b   : > { %v8185_v13 = vpop.f32.mrb[253].mxu0  ;;  %v6053_v53 = vmax.f32 %v6021_v0, 0.0  ;;  %v8074_v50 = vadd.f32 %v8073_v12, %v8072_v62  ;;  %v8075_v30 = vpop.f32.mrb[254].mxu1 }
 0x37c   : > { %v8186_v6 = vadd.f32 %v8185_v13, %v8184_v40  ;;  %v8187_v1 = vpop.f32.mrb[254].mxu0  ;;  %v8076_v44 = vpop.f32.mrb[255].mxu1 }
 0x37d   : > { %v8188_v37 = vpop.f32.mrb[255].mxu0  ;;  %v7168_v27 = vpack.c.bf16 %v6053_v53, %v6052_v35  ;;  %v5595_v59 = vadd.f32 %v8074_v50, %v11265_v45  ;;  %v8077_v48 = vadd.f32 %v8076_v44, %v8075_v30 }
 0x37e   : > { %v8189_v15 = vadd.f32 %v8188_v37, %v8187_v1 }
 0x37f   : > { %7220 = vst [vmem:[%s8772_s30 + $0x30] sm:$0xff] %v7168_v27   ;;  %v6022_v22 = vadd.f32 %v8186_v6, %v5595_v59  ;;  %v5596_v55 = vadd.f32 %v8077_v48, %v11268_v54 }
 0x381   : > { %v6023_v61 = vadd.f32 %v8189_v15, %v5596_v55  ;;  %v8078_v56 = vpop.f32.mrb[0].mxu1  ;;  %v6054_v10 = vmax.f32 %v6022_v22, 0.0 }
 0x382   : > { %v8190_v24 = vpop.f32.mrb[0].mxu0  ;;  %v8079_v5 = vpop.f32.mrb[1].mxu1 }
 0x383   : > { %v8191_v21 = vpop.f32.mrb[1].mxu0  ;;  %v6055_v4 = vmax.f32 %v6023_v61, 0.0  ;;  %v8080_v51 = vadd.f32 %v8079_v5, %v8078_v56  ;;  %v8081_v42 = vpop.f32.mrb[2].mxu1 }
 0x384   : > { %v8192_v23 = vadd.f32 %v8191_v21, %v8190_v24  ;;  %v8193_v2 = vpop.f32.mrb[2].mxu0  ;;  %v8082_v33 = vpop.f32.mrb[3].mxu1 }
 0x385   : > { %v8194_v45 = vpop.f32.mrb[3].mxu0  ;;  %v7173_v8 = vpack.c.bf16 %v6055_v4, %v6054_v10  ;;  %v5597_v39 = vadd.f32 %v8080_v51, %v11271_v7  ;;  %v8083_v9 = vadd.f32 %v8082_v33, %v8081_v42 }
 0x386   : > { %v8195_v57 = vadd.f32 %v8194_v45, %v8193_v2 }
 0x387   : > { %7221 = vst [vmem:[%s8772_s30 + $0x38] sm:$0xff] %v7173_v8   ;;  %v6024_v54 = vadd.f32 %v8192_v23, %v5597_v39  ;;  %v5598_v14 = vadd.f32 %v8083_v9, %v11274_v43 }
 0x389   : > { %v6025_v36 = vadd.f32 %v8195_v57, %v5598_v14  ;;  %v8084_v41 = vpop.f32.mrb[4].mxu1  ;;  %v6056_v28 = vmax.f32 %v6024_v54, 0.0 }
 0x38a   : > { %v8196_v38 = vpop.f32.mrb[4].mxu0  ;;  %v8085_v31 = vpop.f32.mrb[5].mxu1 }
 0x38b   : > { %v8197_v17 = vpop.f32.mrb[5].mxu0  ;;  %v6057_v46 = vmax.f32 %v6025_v36, 0.0  ;;  %v8086_v3 = vadd.f32 %v8085_v31, %v8084_v41  ;;  %v8087_v26 = vpop.f32.mrb[6].mxu1 }
 0x38c   : > { %v8198_v34 = vadd.f32 %v8197_v17, %v8196_v38  ;;  %v8199_v0 = vpop.f32.mrb[6].mxu0  ;;  %v8088_v62 = vpop.f32.mrb[7].mxu1 }
 0x38d   : > { %v8200_v7 = vpop.f32.mrb[7].mxu0  ;;  %v7178_v40 = vpack.c.bf16 %v6057_v46, %v6056_v28  ;;  %v5599_v12 = vadd.f32 %v8086_v3, %v11277_v52  ;;  %v8089_v13 = vadd.f32 %v8088_v62, %v8087_v26 }
 0x38e   : > { %v8201_v35 = vadd.f32 %v8200_v7, %v8199_v0 }
 0x38f   : > { %7222 = vst [vmem:[%s8772_s30 + $0x40] sm:$0xff] %v7178_v40   ;;  %v6026_v43 = vadd.f32 %v8198_v34, %v5599_v12  ;;  %v5600_v53 = vadd.f32 %v8089_v13, %v11280_v16 }
 0x391   : > { %v6027_v50 = vadd.f32 %v8201_v35, %v5600_v53  ;;  %v8090_v6 = vpop.f32.mrb[8].mxu1  ;;  %v6058_v37 = vmax.f32 %v6026_v43, 0.0 }
 0x392   : > { %v8202_v30 = vpop.f32.mrb[8].mxu0  ;;  %v8091_v1 = vpop.f32.mrb[9].mxu1 }
 0x393   : > { %v8203_v44 = vpop.f32.mrb[9].mxu0  ;;  %v6059_v27 = vmax.f32 %v6027_v50, 0.0  ;;  %v8092_v59 = vadd.f32 %v8091_v1, %v8090_v6  ;;  %v8093_v15 = vpop.f32.mrb[10].mxu1 }
 0x394   : > { %v8204_v48 = vadd.f32 %v8203_v44, %v8202_v30  ;;  %v8205_v22 = vpop.f32.mrb[10].mxu0  ;;  %v8094_v55 = vpop.f32.mrb[11].mxu1 }
 0x395   : > { %v8206_v52 = vpop.f32.mrb[11].mxu0  ;;  %v7183_v61 = vpack.c.bf16 %v6059_v27, %v6058_v37  ;;  %v5601_v56 = vadd.f32 %v8092_v59, %v11283_v18  ;;  %v8095_v24 = vadd.f32 %v8094_v55, %v8093_v15 }
 0x396   : > { %v8207_v5 = vadd.f32 %v8206_v52, %v8205_v22 }
 0x397   : > { %7223 = vst [vmem:[%s8772_s30 + $0x48] sm:$0xff] %v7183_v61   ;;  %v6028_v16 = vadd.f32 %v8204_v48, %v5601_v56  ;;  %v5602_v21 = vadd.f32 %v8095_v24, %v11286_v49 }
 0x399   : > { %v6029_v10 = vadd.f32 %v8207_v5, %v5602_v21  ;;  %v8096_v4 = vpop.f32.mrb[12].mxu1  ;;  %v6060_v2 = vmax.f32 %v6028_v16, 0.0 }
 0x39a   : > { %v8208_v51 = vpop.f32.mrb[12].mxu0  ;;  %v8097_v23 = vpop.f32.mrb[13].mxu1 }
 0x39b   : > { %v8209_v42 = vpop.f32.mrb[13].mxu0  ;;  %v6061_v33 = vmax.f32 %v6029_v10, 0.0  ;;  %v8098_v45 = vadd.f32 %v8097_v23, %v8096_v4  ;;  %v8099_v39 = vpop.f32.mrb[14].mxu1 }
 0x39c   : > { %v8210_v8 = vadd.f32 %v8209_v42, %v8208_v51  ;;  %v8211_v9 = vpop.f32.mrb[14].mxu0  ;;  %v8100_v57 = vpop.f32.mrb[15].mxu1 }
 0x39d   : > { %v8212_v18 = vpop.f32.mrb[15].mxu0  ;;  %v7188_v54 = vpack.c.bf16 %v6061_v33, %v6060_v2  ;;  %v5603_v14 = vadd.f32 %v8098_v45, %v11289_v25  ;;  %v8101_v36 = vadd.f32 %v8100_v57, %v8099_v39 }
 0x39e   : > { %v8213_v41 = vadd.f32 %v8212_v18, %v8211_v9 }
 0x39f   : > { %7224 = vst [vmem:[%s8772_s30 + $0x50] sm:$0xff] %v7188_v54   ;;  %v6030_v49 = vadd.f32 %v8210_v8, %v5603_v14  ;;  %v5604_v38 = vadd.f32 %v8101_v36, %v11292_v60 }
 0x3a1   : > { %v6031_v31 = vadd.f32 %v8213_v41, %v5604_v38  ;;  %v8102_v17 = vpop.f32.mrb[16].mxu1  ;;  %v6062_v34 = vmax.f32 %v6030_v49, 0.0 }
 0x3a2   : > { %v8214_v28 = vpop.f32.mrb[16].mxu0  ;;  %v8103_v46 = vpop.f32.mrb[17].mxu1 }
 0x3a3   : > { %v8215_v3 = vpop.f32.mrb[17].mxu0  ;;  %v6063_v26 = vmax.f32 %v6031_v31, 0.0  ;;  %v8104_v0 = vadd.f32 %v8103_v46, %v8102_v17  ;;  %v8105_v7 = vpop.f32.mrb[18].mxu1 }
 0x3a4   : > { %v8216_v62 = vadd.f32 %v8215_v3, %v8214_v28  ;;  %v8217_v40 = vpop.f32.mrb[18].mxu0  ;;  %v8106_v12 = vpop.f32.mrb[19].mxu1 }
 0x3a5   : > { %v8218_v25 = vpop.f32.mrb[19].mxu0  ;;  %v7193_v13 = vpack.c.bf16 %v6063_v26, %v6062_v34  ;;  %v5605_v35 = vadd.f32 %v8104_v0, %v11295_v20  ;;  %v8107_v43 = vadd.f32 %v8106_v12, %v8105_v7 }
 0x3a6   : > { %v8219_v53 = vadd.f32 %v8218_v25, %v8217_v40 }
 0x3a7   : > { %7225 = vst [vmem:[%s8772_s30 + $0x58] sm:$0xff] %v7193_v13   ;;  %v6032_v60 = vadd.f32 %v8216_v62, %v5605_v35  ;;  %v5606_v50 = vadd.f32 %v8107_v43, %v11298_v19 }
 0x3a9   : > { %v6033_v6 = vadd.f32 %v8219_v53, %v5606_v50  ;;  %v8108_v30 = vpop.f32.mrb[20].mxu1  ;;  %v6064_v27 = vmax.f32 %v6032_v60, 0.0 }
 0x3aa   : > { %v8220_v1 = vpop.f32.mrb[20].mxu0  ;;  %v8109_v44 = vpop.f32.mrb[21].mxu1 }
 0x3ab   : > { %v8221_v37 = vpop.f32.mrb[21].mxu0  ;;  %v6065_v59 = vmax.f32 %v6033_v6, 0.0  ;;  %v8110_v48 = vadd.f32 %v8109_v44, %v8108_v30  ;;  %v8111_v22 = vpop.f32.mrb[22].mxu1 }
 0x3ac   : > { %v8222_v15 = vadd.f32 %v8221_v37, %v8220_v1  ;;  %v8223_v55 = vpop.f32.mrb[22].mxu0  ;;  %v8112_v52 = vpop.f32.mrb[23].mxu1 }
 0x3ad   : > { %v8224_v20 = vpop.f32.mrb[23].mxu0  ;;  %v7198_v61 = vpack.c.bf16 %v6065_v59, %v6064_v27  ;;  %v5607_v56 = vadd.f32 %v8110_v48, %v11301_v32  ;;  %v8113_v24 = vadd.f32 %v8112_v52, %v8111_v22 }
 0x3ae   : > { %v8225_v5 = vadd.f32 %v8224_v20, %v8223_v55 }
 0x3af   : > { %7226 = vst [vmem:[%s8772_s30 + $0x60] sm:$0xff] %v7198_v61   ;;  %v6034_v19 = vadd.f32 %v8222_v15, %v5607_v56  ;;  %v5608_v16 = vadd.f32 %v8113_v24, %v11304_v63 }
 0x3b1   : > { %v6035_v21 = vadd.f32 %v8225_v5, %v5608_v16  ;;  %v8114_v10 = vpop.f32.mrb[24].mxu1  ;;  %v6066_v42 = vmax.f32 %v6034_v19, 0.0 }
 0x3b2   : > { %v8226_v4 = vpop.f32.mrb[24].mxu0  ;;  %v8115_v51 = vpop.f32.mrb[25].mxu1 }
 0x3b3   : > { %v8227_v23 = vpop.f32.mrb[25].mxu0  ;;  %v6067_v2 = vmax.f32 %v6035_v21, 0.0  ;;  %v8116_v33 = vadd.f32 %v8115_v51, %v8114_v10  ;;  %v8117_v8 = vpop.f32.mrb[26].mxu1 }
 0x3b4   : > { %v8228_v45 = vadd.f32 %v8227_v23, %v8226_v4  ;;  %v8229_v39 = vpop.f32.mrb[26].mxu0  ;;  %v8118_v9 = vpop.f32.mrb[27].mxu1 }
 0x3b5   : > { %v8230_v32 = vpop.f32.mrb[27].mxu0  ;;  %v7203_v57 = vpack.c.bf16 %v6067_v2, %v6066_v42  ;;  %v5609_v18 = vadd.f32 %v8116_v33, %v11307_v11  ;;  %v8119_v54 = vadd.f32 %v8118_v9, %v8117_v8 }
 0x3b6   : > { %v8231_v14 = vadd.f32 %v8230_v32, %v8229_v39 }
 0x3b7   : > { %7227 = vst [vmem:[%s8772_s30 + $0x68] sm:$0xff] %v7203_v57   ;;  %v6036_v63 = vadd.f32 %v8228_v45, %v5609_v18  ;;  %v5610_v36 = vadd.f32 %v8119_v54, %v11310_v47 }
 0x3b9   : > { %v6037_v41 = vadd.f32 %v8231_v14, %v5610_v36  ;;  %v8120_v49 = vpop.f32.mrb[28].mxu1  ;;  %v6068_v28 = vmax.f32 %v6036_v63, 0.0 }
 0x3ba   : > { %v8232_v38 = vpop.f32.mrb[28].mxu0  ;;  %v8121_v31 = vpop.f32.mrb[29].mxu1 }
 0x3bb   : > { %v8233_v17 = vpop.f32.mrb[29].mxu0  ;;  %v6069_v46 = vmax.f32 %v6037_v41, 0.0  ;;  %v8122_v3 = vadd.f32 %v8121_v31, %v8120_v49  ;;  %v8123_v26 = vpop.f32.mrb[30].mxu1 }
 0x3bc   : > { %v8234_v34 = vadd.f32 %v8233_v17, %v8232_v38  ;;  %v8235_v0 = vpop.f32.mrb[30].mxu0  ;;  %v8124_v11 = vpop.f32.mrb[31].mxu1 }
 0x3bd   : > { %v8236_v62 = vpop.f32.mrb[31].mxu0  ;;  %v7208_v7 = vpack.c.bf16 %v6069_v46, %v6068_v28  ;;  %v5611_v40 = vadd.f32 %v8122_v3, %v11313_v29  ;;  %v8125_v12 = vadd.f32 %v8124_v11, %v8123_v26 }
 0x3be   : > { %v8237_v47 = vadd.f32 %v8236_v62, %v8235_v0 }
 0x3bf   : > { %7228 = vst [vmem:[%s8772_s30 + $0x70] sm:$0xff] %v7208_v7   ;;  %v6038_v25 = vadd.f32 %v8234_v34, %v5611_v40  ;;  %v5612_v13 = vadd.f32 %v8125_v12, %v11316_v58 }
 0x3c1   : > { %v6039_v35 = vadd.f32 %v8237_v47, %v5612_v13  ;;  %v6070_v43 = vmax.f32 %v6038_v25, 0.0 }
 0x3c3   : > { %v6071_v53 = vmax.f32 %v6039_v35, 0.0 }
 0x3c5   : > { %v7213_v60 = vpack.c.bf16 %v6071_v53, %v6070_v43 }
 0x3c7   : > { %7229 = vst [vmem:[%s8772_s30 + $0x78] sm:$0xff] %v7213_v60  }
 0x3c8 PF: > { %s14_s19 = sadd.s32 1, %s8702_s19   ;;  %s11444_s15 = smov %s8694_s17 }
 0x3c9   : > { %p11_p9 = scmp.ge.s32.totalorder %s14_s19, 6   ;;  %s11445_s16 = smov %s8698_s18 }
 0x3ca   : > { %s11446_s17 = smov %s11449_s20  ;;  %s11447_s18 = smov %s11453_s21 }
 0x3cb   :  { %13 = sbr.rel (!%p11_p9) target bundleno = 3 (0x3), region = 291 }
 0x3d2   :  { %6262 = vsyncmov [#allocation3] }
 0x3d5   :  { %s6263_s30 = vpop.sfrf %6262 }
 0x3d6   :  { %p7093_p10 = scmp.ne.s32.totalorder %s6263_s30, 0 }
 0x3d8   :  { %6267 = shalt.err (%p7093_p10)  }
 0x3d9   :  { %6269 = vsyncmov [#allocation3 + $0x1] }
 0x3dc   :  { %s6270_s26 = vpop.sfrf %6269 }
 0x3dd   :  { %p7094_p11 = scmp.ne.s32.totalorder %s6270_s26, 0 }
 0x3df   :  { %6274 = shalt.err (%p7094_p11)  }
 0x3e0   :  { %6276 = vsyncmov [#allocation3 + $0x2] }
 0x3e3   :  { %s6277_s6 = vpop.sfrf %6276 }
 0x3e4   :  { %p7095_p12 = scmp.ne.s32.totalorder %s6277_s6, 0 }
 0x3e6   :  { %6281 = shalt.err (%p7095_p12)  }
 0x3e7   :  { %6283 = vsyncmov [#allocation3 + $0x3] }
 0x3ea   :  { %s6284_s7 = vpop.sfrf %6283 }
 0x3eb   :  { %p7096_p13 = scmp.ne.s32.totalorder %s6284_s7, 0 }
 0x3ed   :  { %6288 = shalt.err (%p7096_p13)  }

</bundles_post_ra>
